<compile_context>
chip_gen: v7x
topology: tpu7x:2x2x1
jax: 0.10.0
libtpu: 0.0.40
codegen_flags: <defaults>
</compile_context>

<pallas_src>
import functools

import jax
import jax.numpy as jnp
from jax import lax
from jax.experimental import pallas as pl
from jax.experimental.pallas import tpu as pltpu


# ---------------------------------------------------------------------------
# GRU recurrence step given a precomputed input projection gx = x@Wih + bih.
# PyTorch gate order (r, z, n):
#   r = sigmoid(gx_r + gh_r); z = sigmoid(gx_z + gh_z)
#   n = tanh(gx_n + r * gh_n); h' = (1-z)*n + z*h
# ---------------------------------------------------------------------------
def _gru_h_step(gx, h, whh, bhh_b, H):
    gh = jnp.dot(h, whh, preferred_element_type=jnp.float32) + bhh_b
    r = jax.nn.sigmoid(gx[:, :H] + gh[:, :H])
    z = jax.nn.sigmoid(gx[:, H:2 * H] + gh[:, H:2 * H])
    n = jnp.tanh(gx[:, 2 * H:] + r * gh[:, 2 * H:])
    return (1.0 - z) * n + z * h


# ---------------------------------------------------------------------------
# Intra-chunk kernel: bidirectional GRU over F -> FC -> LayerNorm -> + x
#   x_ref / out_ref : (F*BT, N)     (row-major: seq index F major, batch minor)
#   scratches       : gx fwd/bwd (F*BT, 3H), hidden fwd/bwd (F*BT, H)
# ---------------------------------------------------------------------------
def _intra_kernel(x_ref,
                  wih_f_ref, whh_f_ref, bih_f_ref, bhh_f_ref,
                  wih_b_ref, whh_b_ref, bih_b_ref, bhh_b_ref,
                  fcw_f_ref, fcw_b_ref, fcb_ref, gamma_ref, beta_ref,
                  out_ref,
                  gxf_buf, gxb_buf, hf_buf, hb_buf,
                  *, F, BT):
    H = whh_f_ref.shape[0]
    x2d = x_ref[...]

    # Hoisted input projections: one big MXU matmul per direction, bias folded.
    gxf_buf[...] = (jnp.dot(x2d, wih_f_ref[...],
                            preferred_element_type=jnp.float32) + bih_f_ref[...])
    gxb_buf[...] = (jnp.dot(x2d, wih_b_ref[...],
                            preferred_element_type=jnp.float32) + bih_b_ref[...])

    whh_f = whh_f_ref[...]
    whh_b = whh_b_ref[...]
    # Hoisted broadcasts (not CSE'd if left inside the loop).
    bhh_f = jnp.broadcast_to(bhh_f_ref[...], (BT, 3 * H))
    bhh_b = jnp.broadcast_to(bhh_b_ref[...], (BT, 3 * H))

    h0 = jnp.zeros((BT, H), jnp.float32)

    # Fused fwd/bwd recurrence, fully unrolled; only h@Whh inside the loop.
    def step(i, carry):
        hf, hb = carry
        rf = pl.multiple_of(i * BT, BT)                 # fwd rows
        rb = pl.multiple_of((F - 1 - i) * BT, BT)       # bwd rows
        hf_new = _gru_h_step(gxf_buf[pl.ds(rf, BT), :], hf, whh_f, bhh_f, H)
        hb_new = _gru_h_step(gxb_buf[pl.ds(rb, BT), :], hb, whh_b, bhh_b, H)
        hf_buf[pl.ds(rf, BT), :] = hf_new               # lane-dense store
        hb_buf[pl.ds(rb, BT), :] = hb_new
        return hf_new, hb_new

    lax.fori_loop(0, F, step, (h0, h0), unroll=True)

    # FC over [fwd | bwd] as two 2-D matmuls (no concat), LayerNorm over N,
    # residual add.
    fc = (jnp.dot(hf_buf[...], fcw_f_ref[...], preferred_element_type=jnp.float32)
          + jnp.dot(hb_buf[...], fcw_b_ref[...], preferred_element_type=jnp.float32)
          + fcb_ref[...])
    mean = jnp.mean(fc, axis=-1, keepdims=True)
    var = jnp.mean(jnp.square(fc - mean), axis=-1, keepdims=True)
    ln = (fc - mean) * lax.rsqrt(var + 1e-5) * gamma_ref[...] + beta_ref[...]
    out_ref[...] = x2d + ln


# ---------------------------------------------------------------------------
# Inter-chunk kernel: GroupRNN collapsed to a single block-diagonal GRU over T,
# then FC and residual add.
#   x_ref / out_ref : (T*BF, N)     h0_ref / hout_ref : (BF, He)
#   scratches       : gx (T*BF, 3He), hidden (T*BF, He)
# ---------------------------------------------------------------------------
def _inter_kernel(x_ref, h0_ref,
                  wih_ref, whh_ref, bih_ref, bhh_ref,
                  fcw_ref, fcb_ref,
                  out_ref, hout_ref,
                  gx_buf, h_buf,
                  *, T, BF):
    He = whh_ref.shape[0]
    x2d = x_ref[...]

    # Hoisted input projection over all T at once (block-diag weights already
    # encode the grouping), bias folded.
    gx_buf[...] = (jnp.dot(x2d, wih_ref[...],
                           preferred_element_type=jnp.float32) + bih_ref[...])

    whh = whh_ref[...]
    bhh = jnp.broadcast_to(bhh_ref[...], (BF, 3 * He))

    def step(t, h):
        r = pl.multiple_of(t * BF, BF)
        h_new = _gru_h_step(gx_buf[pl.ds(r, BF), :], h, whh, bhh, He)
        h_buf[pl.ds(r, BF), :] = h_new                  # lane-dense store
        return h_new

    h_fin = lax.fori_loop(0, T, step, h0_ref[...], unroll=True)
    hout_ref[...] = h_fin

    fc = jnp.dot(h_buf[...], fcw_ref[...],
                 preferred_element_type=jnp.float32) + fcb_ref[...]
    out_ref[...] = fc + x2d


# ---------------------------------------------------------------------------
# pallas_call wrappers (whole-array VMEM residency; no grid needed at these
# sizes -- total VMEM footprint is well under 1 MiB).
# ---------------------------------------------------------------------------
def _vmem():
    return pl.BlockSpec(memory_space=pltpu.MemorySpace.VMEM)


def intra_path(x_2d, p, F, BT):
    N = x_2d.shape[-1]
    Hi = p['whh_f'].shape[0]
    return pl.pallas_call(
        functools.partial(_intra_kernel, F=F, BT=BT),
        out_shape=jax.ShapeDtypeStruct((F * BT, N), jnp.float32),
        in_specs=[_vmem() for _ in range(14)],
        out_specs=_vmem(),
        scratch_shapes=[
            pltpu.VMEM((F * BT, 3 * Hi), jnp.float32),   # gx fwd
            pltpu.VMEM((F * BT, 3 * Hi), jnp.float32),   # gx bwd
            pltpu.VMEM((F * BT, Hi), jnp.float32),       # h fwd
            pltpu.VMEM((F * BT, Hi), jnp.float32),       # h bwd
        ],
    )(x_2d,
      p['wih_f'], p['whh_f'], p['bih_f'], p['bhh_f'],
      p['wih_b'], p['whh_b'], p['bih_b'], p['bhh_b'],
      p['fcw_f'], p['fcw_b'], p['fcb'], p['gamma'], p['beta'])


def inter_path(x_2d, h0, p, T, BF):
    N = x_2d.shape[-1]
    He = p['whh'].shape[0]
    return pl.pallas_call(
        functools.partial(_inter_kernel, T=T, BF=BF),
        out_shape=(jax.ShapeDtypeStruct((T * BF, N), jnp.float32),
                   jax.ShapeDtypeStruct((BF, He), jnp.float32)),
        in_specs=[_vmem() for _ in range(8)],
        out_specs=(_vmem(), _vmem()),
        scratch_shapes=[
            pltpu.VMEM((T * BF, 3 * He), jnp.float32),   # gx
            pltpu.VMEM((T * BF, He), jnp.float32),       # h per step
        ],
    )(x_2d, h0, p['wih'], p['whh'], p['bih'], p['bhh'], p['fcw'], p['fcb'])


# ---------------------------------------------------------------------------
# Parameter preparation (done once, outside the kernels):
#   * split the bidirectional intra FC into fcw_f / fcw_b
#   * fuse the group GRUs into block-diagonal weights, gate-major columns
#     [r_all | z_all | n_all], group-major within each gate.
# ---------------------------------------------------------------------------
def _block_diag_per_gate(w_g, Hg):
    """(G, a, 3*Hg) grouped weights -> (G*a, 3*G*Hg), gate-major columns."""
    G, a, _ = w_g.shape
    eye = jnp.eye(G, dtype=w_g.dtype)
    blocks = []
    for gate in range(3):
        wg = w_g[:, :, gate * Hg:(gate + 1) * Hg]                       # (G, a, Hg)
        bd = (eye[:, None, :, None] * wg[:, :, None, :]).reshape(G * a, G * Hg)
        blocks.append(bd)
    return jnp.concatenate(blocks, axis=1)


def _fuse_gate_bias(b_g, Hg):
    """(G, 3*Hg) -> (1, 3*G*Hg), gate-major columns."""
    G = b_g.shape[0]
    parts = [b_g[:, gate * Hg:(gate + 1) * Hg].reshape(1, G * Hg)
             for gate in range(3)]
    return jnp.concatenate(parts, axis=1)


def prepare_params(params):
    intra = dict(params['intra'])
    Hi = intra['whh_f'].shape[0]
    intra['fcw_f'] = intra['fcw'][:Hi]
    intra['fcw_b'] = intra['fcw'][Hi:]

    inter_g = params['inter']
    Hg = inter_g['whh'].shape[1]
    inter = dict(
        wih=_block_diag_per_gate(inter_g['wih'], Hg),   # (N, 3*He)
        whh=_block_diag_per_gate(inter_g['whh'], Hg),   # (He, 3*He)
        bih=_fuse_gate_bias(inter_g['bih'], Hg),        # (1, 3*He)
        bhh=_fuse_gate_bias(inter_g['bhh'], Hg),        # (1, 3*He)
        fcw=inter_g['fcw'], fcb=inter_g['fcb'],
    )
    return dict(intra=intra, inter=inter)


# ---------------------------------------------------------------------------
# Module forward
# ---------------------------------------------------------------------------
def dual_path_extension_rnn(inputs, hidden_state, params):
    """inputs: (B, F, T, N); hidden_state: list of G arrays (1, B*F, Hg)."""
    B, F, T, N = inputs.shape

    # ---- intra path: sequence axis = F, batch = B*T ----
    x_intra = jnp.transpose(inputs, (1, 0, 2, 3)).reshape(F * B * T, N)
    intra = intra_path(x_intra, params['intra'], F, B * T)             # (F*BT, N)

    # ---- inter path: sequence axis = T, batch = B*F ----
    x_inter = jnp.transpose(intra.reshape(F, B, T, N),
                            (2, 1, 0, 3)).reshape(T * B * F, N)
    h0 = jnp.concatenate([h[0] for h in hidden_state], axis=-1)        # (B*F, He)
    inter, h_out = inter_path(x_inter, h0, params['inter'], T, B * F)
    inter_bftn = jnp.transpose(inter.reshape(T, B, F, N), (1, 2, 0, 3))

    G = len(hidden_state)
    Hg = hidden_state[0].shape[-1]
    new_hidden = [h_out[:, g * Hg:(g + 1) * Hg][None] for g in range(G)]
    return inter_bftn, new_hidden


# ---------------------------------------------------------------------------
# Deterministic synthetic parameter init (weights stored as (in, 3H); real
# PyTorch checkpoints store (3H, in) and would need a transpose when porting).
# ---------------------------------------------------------------------------
def init_params(key, N, Hi, He, G):
    Ng, Hg = N // G, He // G
    ks = jax.random.split(key, 16)
    s = 0.1

    def rnd(k, shape):
        return jax.random.normal(k, shape, jnp.float32) * s

    intra = dict(
        wih_f=rnd(ks[0], (N, 3 * Hi)), whh_f=rnd(ks[1], (Hi, 3 * Hi)),
        bih_f=rnd(ks[2], (1, 3 * Hi)), bhh_f=rnd(ks[3], (1, 3 * Hi)),
        wih_b=rnd(ks[4], (N, 3 * Hi)), whh_b=rnd(ks[5], (Hi, 3 * Hi)),
        bih_b=rnd(ks[6], (1, 3 * Hi)), bhh_b=rnd(ks[7], (1, 3 * Hi)),
        fcw=rnd(ks[8], (2 * Hi, N)), fcb=rnd(ks[9], (1, N)),
        gamma=jnp.ones((1, N), jnp.float32), beta=jnp.zeros((1, N), jnp.float32),
    )
    inter = dict(
        wih=rnd(ks[10], (G, Ng, 3 * Hg)), whh=rnd(ks[11], (G, Hg, 3 * Hg)),
        bih=rnd(ks[12], (G, 3 * Hg)), bhh=rnd(ks[13], (G, 3 * Hg)),
        fcw=rnd(ks[14], (He, N)), fcb=rnd(ks[15], (1, N)),
    )
    return dict(intra=intra, inter=inter)


if __name__ == "__main__":
    B, F, T, N = 2, 16, 8, 32          # (batch, freq-bands, time-steps, features)
    INTRA_H, INTER_H, GROUPS = 32, 32, 4

    key = jax.random.PRNGKey(0)
    k_in, k_h, k_p = jax.random.split(key, 3)

    inputs = jax.random.normal(k_in, (B, F, T, N), jnp.float32)
    hkeys = jax.random.split(k_h, GROUPS)
    hidden_state = [jax.random.normal(hkeys[g], (1, B * F, INTER_H // GROUPS),
                                      jnp.float32) * 0.1
                    for g in range(GROUPS)]
    params = prepare_params(init_params(k_p, N, INTRA_H, INTER_H, GROUPS))

    fwd = jax.jit(dual_path_extension_rnn)
    out, new_hidden = fwd(inputs, hidden_state, params)
    out = jax.block_until_ready(out)
    new_hidden = [jax.block_until_ready(h) for h in new_hidden]

    assert out.shape == (B, F, T, N)
    assert len(new_hidden) == GROUPS
    assert new_hidden[0].shape == (1, B * F, INTER_H // GROUPS)
    assert bool(jnp.all(jnp.isfinite(out)))
    assert all(bool(jnp.all(jnp.isfinite(h))) for h in new_hidden)
    print("KERNEL_OK")
</pallas_src>

<mosaic_0001>
module attributes {stable_mosaic.version = 11 : i64} {
  func.func @_inter_kernel(%arg0: memref<256x32xf32, #tpu.memory_space<vmem>>, %arg1: memref<32x32xf32, #tpu.memory_space<vmem>>, %arg2: memref<32x96xf32, #tpu.memory_space<vmem>>, %arg3: memref<32x96xf32, #tpu.memory_space<vmem>>, %arg4: memref<1x96xf32, #tpu.memory_space<vmem>>, %arg5: memref<1x96xf32, #tpu.memory_space<vmem>>, %arg6: memref<32x32xf32, #tpu.memory_space<vmem>>, %arg7: memref<1x32xf32, #tpu.memory_space<vmem>>, %arg8: memref<256x32xf32, #tpu.memory_space<vmem>>, %arg9: memref<32x32xf32, #tpu.memory_space<vmem>>, %arg10: memref<256x96xf32, #tpu.memory_space<vmem>>, %arg11: memref<256x32xf32, #tpu.memory_space<vmem>>) attributes {dimension_semantics = [], scalar_prefetch = 0 : i64, scratch_operands = 2 : i64, tpu.core_type = #tpu.core_type<tc>} {
    %c0 = arith.constant 0 : index
    %c0_0 = arith.constant 0 : index
    %0 = vector.load %arg0[%c0, %c0_0] : memref<256x32xf32, #tpu.memory_space<vmem>>, vector<256x32xf32>
    %c0_1 = arith.constant 0 : index
    %c0_2 = arith.constant 0 : index
    %1 = vector.load %arg2[%c0_1, %c0_2] : memref<32x96xf32, #tpu.memory_space<vmem>>, vector<32x96xf32>
    %cst = arith.constant dense<0.000000e+00> : vector<256x96xf32>
    %2 = tpu.matmul %0, %1, %cst {dimension_numbers = #tpu.dot_dimension_numbers<[1], [0], [0], [1], [0, 0, 1, 1], [], []>} : vector<256x32xf32>, vector<32x96xf32>, vector<256x96xf32> -> vector<256x96xf32>
    %c0_3 = arith.constant 0 : index
    %c0_4 = arith.constant 0 : index
    %3 = vector.load %arg4[%c0_3, %c0_4] : memref<1x96xf32, #tpu.memory_space<vmem>>, vector<1x96xf32>
    %4 = vector.broadcast %3 : vector<1x96xf32> to vector<256x96xf32>
    %5 = arith.addf %2, %4 : vector<256x96xf32>
    %c0_5 = arith.constant 0 : index
    %c0_6 = arith.constant 0 : index
    %6 = vector.load %arg10[%c0_5, %c0_6] : memref<256x96xf32, #tpu.memory_space<vmem>>, vector<256x96xf32>
    tpu.vector_store %arg10[%c0_5, %c0_6], %5 {strides = array<i32>} : memref<256x96xf32, #tpu.memory_space<vmem>>, vector<256x96xf32>,
    %c0_7 = arith.constant 0 : index
    %c0_8 = arith.constant 0 : index
    %7 = vector.load %arg3[%c0_7, %c0_8] : memref<32x96xf32, #tpu.memory_space<vmem>>, vector<32x96xf32>
    %c0_9 = arith.constant 0 : index
    %c0_10 = arith.constant 0 : index
    %8 = vector.load %arg5[%c0_9, %c0_10] : memref<1x96xf32, #tpu.memory_space<vmem>>, vector<1x96xf32>
    %9 = vector.shape_cast %8 : vector<1x96xf32> to vector<1x96xf32>
    %10 = vector.broadcast %9 : vector<1x96xf32> to vector<32x96xf32>
    %c0_11 = arith.constant 0 : index
    %c0_12 = arith.constant 0 : index
    %11 = vector.load %arg1[%c0_11, %c0_12] : memref<32x32xf32, #tpu.memory_space<vmem>>, vector<32x32xf32>
    %c0_i32 = arith.constant 0 : i32
    %c32_i32 = arith.constant 32 : i32
    %12 = arith.muli %c0_i32, %c32_i32 : i32
    %13 = tpu.assume_multiple %12, 32 : i32
    %14 = arith.index_cast %13 : i32 to index
    %c0_13 = arith.constant 0 : index
    %15 = vector.load %arg10[%14, %c0_13] : memref<256x96xf32, #tpu.memory_space<vmem>>, vector<32x96xf32>
    %cst_14 = arith.constant dense<0.000000e+00> : vector<32x96xf32>
    %16 = tpu.matmul %11, %7, %cst_14 {dimension_numbers = #tpu.dot_dimension_numbers<[1], [0], [0], [1], [0, 0, 1, 1], [], []>} : vector<32x32xf32>, vector<32x96xf32>, vector<32x96xf32> -> vector<32x96xf32>
    %17 = arith.addf %16, %10 : vector<32x96xf32>
    %18 = vector.extract_strided_slice %15 {offsets = [0, 0], sizes = [32, 32], strides = [1, 1]} : vector<32x96xf32> to vector<32x32xf32>
    %19 = vector.extract_strided_slice %17 {offsets = [0, 0], sizes = [32, 32], strides = [1, 1]} : vector<32x96xf32> to vector<32x32xf32>
    %20 = arith.addf %18, %19 : vector<32x32xf32>
    %21 = arith.negf %20 : vector<32x32xf32>
    %22 = math.exp %21 : vector<32x32xf32>
    %cst_15 = arith.constant 1.000000e+00 : f32
    %23 = vector.broadcast %cst_15 : f32 to vector<32x32xf32>
    %24 = arith.addf %23, %22 : vector<32x32xf32>
    %25 = arith.divf %23, %24 : vector<32x32xf32>
    %26 = vector.extract_strided_slice %15 {offsets = [0, 32], sizes = [32, 32], strides = [1, 1]} : vector<32x96xf32> to vector<32x32xf32>
    %27 = vector.extract_strided_slice %17 {offsets = [0, 32], sizes = [32, 32], strides = [1, 1]} : vector<32x96xf32> to vector<32x32xf32>
    %28 = arith.addf %26, %27 : vector<32x32xf32>
    %29 = arith.negf %28 : vector<32x32xf32>
    %30 = math.exp %29 : vector<32x32xf32>
    %cst_16 = arith.constant 1.000000e+00 : f32
    %31 = vector.broadcast %cst_16 : f32 to vector<32x32xf32>
    %32 = arith.addf %31, %30 : vector<32x32xf32>
    %33 = arith.divf %31, %32 : vector<32x32xf32>
    %34 = vector.extract_strided_slice %15 {offsets = [0, 64], sizes = [32, 32], strides = [1, 1]} : vector<32x96xf32> to vector<32x32xf32>
    %35 = vector.extract_strided_slice %17 {offsets = [0, 64], sizes = [32, 32], strides = [1, 1]} : vector<32x96xf32> to vector<32x32xf32>
    %36 = arith.mulf %25, %35 : vector<32x32xf32>
    %37 = arith.addf %34, %36 : vector<32x32xf32>
    %38 = math.tanh %37 : vector<32x32xf32>
    %cst_17 = arith.constant 1.000000e+00 : f32
    %39 = vector.broadcast %cst_17 : f32 to vector<32x32xf32>
    %40 = arith.subf %39, %33 : vector<32x32xf32>
    %41 = arith.mulf %40, %38 : vector<32x32xf32>
    %42 = arith.mulf %33, %11 : vector<32x32xf32>
    %43 = arith.addf %41, %42 : vector<32x32xf32>
    %44 = arith.index_cast %13 : i32 to index
    %c0_18 = arith.constant 0 : index
    %45 = vector.load %arg11[%44, %c0_18] : memref<256x32xf32, #tpu.memory_space<vmem>>, vector<32x32xf32>
    tpu.vector_store %arg11[%44, %c0_18], %43 {strides = array<i32>} : memref<256x32xf32, #tpu.memory_space<vmem>>, vector<32x32xf32>,
    %c1_i32 = arith.constant 1 : i32
    %c32_i32_19 = arith.constant 32 : i32
    %46 = arith.muli %c1_i32, %c32_i32_19 : i32
    %47 = tpu.assume_multiple %46, 32 : i32
    %48 = arith.index_cast %47 : i32 to index
    %c0_20 = arith.constant 0 : index
    %49 = vector.load %arg10[%48, %c0_20] : memref<256x96xf32, #tpu.memory_space<vmem>>, vector<32x96xf32>
    %cst_21 = arith.constant dense<0.000000e+00> : vector<32x96xf32>
    %50 = tpu.matmul %43, %7, %cst_21 {dimension_numbers = #tpu.dot_dimension_numbers<[1], [0], [0], [1], [0, 0, 1, 1], [], []>} : vector<32x32xf32>, vector<32x96xf32>, vector<32x96xf32> -> vector<32x96xf32>
    %51 = arith.addf %50, %10 : vector<32x96xf32>
    %52 = vector.extract_strided_slice %49 {offsets = [0, 0], sizes = [32, 32], strides = [1, 1]} : vector<32x96xf32> to vector<32x32xf32>
    %53 = vector.extract_strided_slice %51 {offsets = [0, 0], sizes = [32, 32], strides = [1, 1]} : vector<32x96xf32> to vector<32x32xf32>
    %54 = arith.addf %52, %53 : vector<32x32xf32>
    %55 = arith.negf %54 : vector<32x32xf32>
    %56 = math.exp %55 : vector<32x32xf32>
    %cst_22 = arith.constant 1.000000e+00 : f32
    %57 = vector.broadcast %cst_22 : f32 to vector<32x32xf32>
    %58 = arith.addf %57, %56 : vector<32x32xf32>
    %59 = arith.divf %57, %58 : vector<32x32xf32>
    %60 = vector.extract_strided_slice %49 {offsets = [0, 32], sizes = [32, 32], strides = [1, 1]} : vector<32x96xf32> to vector<32x32xf32>
    %61 = vector.extract_strided_slice %51 {offsets = [0, 32], sizes = [32, 32], strides = [1, 1]} : vector<32x96xf32> to vector<32x32xf32>
    %62 = arith.addf %60, %61 : vector<32x32xf32>
    %63 = arith.negf %62 : vector<32x32xf32>
    %64 = math.exp %63 : vector<32x32xf32>
    %cst_23 = arith.constant 1.000000e+00 : f32
    %65 = vector.broadcast %cst_23 : f32 to vector<32x32xf32>
    %66 = arith.addf %65, %64 : vector<32x32xf32>
    %67 = arith.divf %65, %66 : vector<32x32xf32>
    %68 = vector.extract_strided_slice %49 {offsets = [0, 64], sizes = [32, 32], strides = [1, 1]} : vector<32x96xf32> to vector<32x32xf32>
    %69 = vector.extract_strided_slice %51 {offsets = [0, 64], sizes = [32, 32], strides = [1, 1]} : vector<32x96xf32> to vector<32x32xf32>
    %70 = arith.mulf %59, %69 : vector<32x32xf32>
    %71 = arith.addf %68, %70 : vector<32x32xf32>
    %72 = math.tanh %71 : vector<32x32xf32>
    %cst_24 = arith.constant 1.000000e+00 : f32
    %73 = vector.broadcast %cst_24 : f32 to vector<32x32xf32>
    %74 = arith.subf %73, %67 : vector<32x32xf32>
    %75 = arith.mulf %74, %72 : vector<32x32xf32>
    %76 = arith.mulf %67, %43 : vector<32x32xf32>
    %77 = arith.addf %75, %76 : vector<32x32xf32>
    %78 = arith.index_cast %47 : i32 to index
    %c0_25 = arith.constant 0 : index
    %79 = vector.load %arg11[%78, %c0_25] : memref<256x32xf32, #tpu.memory_space<vmem>>, vector<32x32xf32>
    tpu.vector_store %arg11[%78, %c0_25], %77 {strides = array<i32>} : memref<256x32xf32, #tpu.memory_space<vmem>>, vector<32x32xf32>,
    %c2_i32 = arith.constant 2 : i32
    %c32_i32_26 = arith.constant 32 : i32
    %80 = arith.muli %c2_i32, %c32_i32_26 : i32
    %81 = tpu.assume_multiple %80, 32 : i32
    %82 = arith.index_cast %81 : i32 to index
    %c0_27 = arith.constant 0 : index
    %83 = vector.load %arg10[%82, %c0_27] : memref<256x96xf32, #tpu.memory_space<vmem>>, vector<32x96xf32>
    %cst_28 = arith.constant dense<0.000000e+00> : vector<32x96xf32>
    %84 = tpu.matmul %77, %7, %cst_28 {dimension_numbers = #tpu.dot_dimension_numbers<[1], [0], [0], [1], [0, 0, 1, 1], [], []>} : vector<32x32xf32>, vector<32x96xf32>, vector<32x96xf32> -> vector<32x96xf32>
    %85 = arith.addf %84, %10 : vector<32x96xf32>
    %86 = vector.extract_strided_slice %83 {offsets = [0, 0], sizes = [32, 32], strides = [1, 1]} : vector<32x96xf32> to vector<32x32xf32>
    %87 = vector.extract_strided_slice %85 {offsets = [0, 0], sizes = [32, 32], strides = [1, 1]} : vector<32x96xf32> to vector<32x32xf32>
    %88 = arith.addf %86, %87 : vector<32x32xf32>
    %89 = arith.negf %88 : vector<32x32xf32>
    %90 = math.exp %89 : vector<32x32xf32>
    %cst_29 = arith.constant 1.000000e+00 : f32
    %91 = vector.broadcast %cst_29 : f32 to vector<32x32xf32>
    %92 = arith.addf %91, %90 : vector<32x32xf32>
    %93 = arith.divf %91, %92 : vector<32x32xf32>
    %94 = vector.extract_strided_slice %83 {offsets = [0, 32], sizes = [32, 32], strides = [1, 1]} : vector<32x96xf32> to vector<32x32xf32>
    %95 = vector.extract_strided_slice %85 {offsets = [0, 32], sizes = [32, 32], strides = [1, 1]} : vector<32x96xf32> to vector<32x32xf32>
    %96 = arith.addf %94, %95 : vector<32x32xf32>
    %97 = arith.negf %96 : vector<32x32xf32>
    %98 = math.exp %97 : vector<32x32xf32>
    %cst_30 = arith.constant 1.000000e+00 : f32
    %99 = vector.broadcast %cst_30 : f32 to vector<32x32xf32>
    %100 = arith.addf %99, %98 : vector<32x32xf32>
    %101 = arith.divf %99, %100 : vector<32x32xf32>
    %102 = vector.extract_strided_slice %83 {offsets = [0, 64], sizes = [32, 32], strides = [1, 1]} : vector<32x96xf32> to vector<32x32xf32>
    %103 = vector.extract_strided_slice %85 {offsets = [0, 64], sizes = [32, 32], strides = [1, 1]} : vector<32x96xf32> to vector<32x32xf32>
    %104 = arith.mulf %93, %103 : vector<32x32xf32>
    %105 = arith.addf %102, %104 : vector<32x32xf32>
    %106 = math.tanh %105 : vector<32x32xf32>
    %cst_31 = arith.constant 1.000000e+00 : f32
    %107 = vector.broadcast %cst_31 : f32 to vector<32x32xf32>
    %108 = arith.subf %107, %101 : vector<32x32xf32>
    %109 = arith.mulf %108, %106 : vector<32x32xf32>
    %110 = arith.mulf %101, %77 : vector<32x32xf32>
    %111 = arith.addf %109, %110 : vector<32x32xf32>
    %112 = arith.index_cast %81 : i32 to index
    %c0_32 = arith.constant 0 : index
    %113 = vector.load %arg11[%112, %c0_32] : memref<256x32xf32, #tpu.memory_space<vmem>>, vector<32x32xf32>
    tpu.vector_store %arg11[%112, %c0_32], %111 {strides = array<i32>} : memref<256x32xf32, #tpu.memory_space<vmem>>, vector<32x32xf32>,
    %c3_i32 = arith.constant 3 : i32
    %c32_i32_33 = arith.constant 32 : i32
    %114 = arith.muli %c3_i32, %c32_i32_33 : i32
    %115 = tpu.assume_multiple %114, 32 : i32
    %116 = arith.index_cast %115 : i32 to index
    %c0_34 = arith.constant 0 : index
    %117 = vector.load %arg10[%116, %c0_34] : memref<256x96xf32, #tpu.memory_space<vmem>>, vector<32x96xf32>
    %cst_35 = arith.constant dense<0.000000e+00> : vector<32x96xf32>
    %118 = tpu.matmul %111, %7, %cst_35 {dimension_numbers = #tpu.dot_dimension_numbers<[1], [0], [0], [1], [0, 0, 1, 1], [], []>} : vector<32x32xf32>, vector<32x96xf32>, vector<32x96xf32> -> vector<32x96xf32>
    %119 = arith.addf %118, %10 : vector<32x96xf32>
    %120 = vector.extract_strided_slice %117 {offsets = [0, 0], sizes = [32, 32], strides = [1, 1]} : vector<32x96xf32> to vector<32x32xf32>
    %121 = vector.extract_strided_slice %119 {offsets = [0, 0], sizes = [32, 32], strides = [1, 1]} : vector<32x96xf32> to vector<32x32xf32>
    %122 = arith.addf %120, %121 : vector<32x32xf32>
    %123 = arith.negf %122 : vector<32x32xf32>
    %124 = math.exp %123 : vector<32x32xf32>
    %cst_36 = arith.constant 1.000000e+00 : f32
    %125 = vector.broadcast %cst_36 : f32 to vector<32x32xf32>
    %126 = arith.addf %125, %124 : vector<32x32xf32>
    %127 = arith.divf %125, %126 : vector<32x32xf32>
    %128 = vector.extract_strided_slice %117 {offsets = [0, 32], sizes = [32, 32], strides = [1, 1]} : vector<32x96xf32> to vector<32x32xf32>
    %129 = vector.extract_strided_slice %119 {offsets = [0, 32], sizes = [32, 32], strides = [1, 1]} : vector<32x96xf32> to vector<32x32xf32>
    %130 = arith.addf %128, %129 : vector<32x32xf32>
    %131 = arith.negf %130 : vector<32x32xf32>
    %132 = math.exp %131 : vector<32x32xf32>
    %cst_37 = arith.constant 1.000000e+00 : f32
    %133 = vector.broadcast %cst_37 : f32 to vector<32x32xf32>
    %134 = arith.addf %133, %132 : vector<32x32xf32>
    %135 = arith.divf %133, %134 : vector<32x32xf32>
    %136 = vector.extract_strided_slice %117 {offsets = [0, 64], sizes = [32, 32], strides = [1, 1]} : vector<32x96xf32> to vector<32x32xf32>
    %137 = vector.extract_strided_slice %119 {offsets = [0, 64], sizes = [32, 32], strides = [1, 1]} : vector<32x96xf32> to vector<32x32xf32>
    %138 = arith.mulf %127, %137 : vector<32x32xf32>
    %139 = arith.addf %136, %138 : vector<32x32xf32>
    %140 = math.tanh %139 : vector<32x32xf32>
    %cst_38 = arith.constant 1.000000e+00 : f32
    %141 = vector.broadcast %cst_38 : f32 to vector<32x32xf32>
    %142 = arith.subf %141, %135 : vector<32x32xf32>
    %143 = arith.mulf %142, %140 : vector<32x32xf32>
    %144 = arith.mulf %135, %111 : vector<32x32xf32>
    %145 = arith.addf %143, %144 : vector<32x32xf32>
    %146 = arith.index_cast %115 : i32 to index
    %c0_39 = arith.constant 0 : index
    %147 = vector.load %arg11[%146, %c0_39] : memref<256x32xf32, #tpu.memory_space<vmem>>, vector<32x32xf32>
    tpu.vector_store %arg11[%146, %c0_39], %145 {strides = array<i32>} : memref<256x32xf32, #tpu.memory_space<vmem>>, vector<32x32xf32>,
    %c4_i32 = arith.constant 4 : i32
    %c32_i32_40 = arith.constant 32 : i32
    %148 = arith.muli %c4_i32, %c32_i32_40 : i32
    %149 = tpu.assume_multiple %148, 32 : i32
    %150 = arith.index_cast %149 : i32 to index
    %c0_41 = arith.constant 0 : index
    %151 = vector.load %arg10[%150, %c0_41] : memref<256x96xf32, #tpu.memory_space<vmem>>, vector<32x96xf32>
    %cst_42 = arith.constant dense<0.000000e+00> : vector<32x96xf32>
    %152 = tpu.matmul %145, %7, %cst_42 {dimension_numbers = #tpu.dot_dimension_numbers<[1], [0], [0], [1], [0, 0, 1, 1], [], []>} : vector<32x32xf32>, vector<32x96xf32>, vector<32x96xf32> -> vector<32x96xf32>
    %153 = arith.addf %152, %10 : vector<32x96xf32>
    %154 = vector.extract_strided_slice %151 {offsets = [0, 0], sizes = [32, 32], strides = [1, 1]} : vector<32x96xf32> to vector<32x32xf32>
    %155 = vector.extract_strided_slice %153 {offsets = [0, 0], sizes = [32, 32], strides = [1, 1]} : vector<32x96xf32> to vector<32x32xf32>
    %156 = arith.addf %154, %155 : vector<32x32xf32>
    %157 = arith.negf %156 : vector<32x32xf32>
    %158 = math.exp %157 : vector<32x32xf32>
    %cst_43 = arith.constant 1.000000e+00 : f32
    %159 = vector.broadcast %cst_43 : f32 to vector<32x32xf32>
    %160 = arith.addf %159, %158 : vector<32x32xf32>
    %161 = arith.divf %159, %160 : vector<32x32xf32>
    %162 = vector.extract_strided_slice %151 {offsets = [0, 32], sizes = [32, 32], strides = [1, 1]} : vector<32x96xf32> to vector<32x32xf32>
    %163 = vector.extract_strided_slice %153 {offsets = [0, 32], sizes = [32, 32], strides = [1, 1]} : vector<32x96xf32> to vector<32x32xf32>
    %164 = arith.addf %162, %163 : vector<32x32xf32>
    %165 = arith.negf %164 : vector<32x32xf32>
    %166 = math.exp %165 : vector<32x32xf32>
    %cst_44 = arith.constant 1.000000e+00 : f32
    %167 = vector.broadcast %cst_44 : f32 to vector<32x32xf32>
    %168 = arith.addf %167, %166 : vector<32x32xf32>
    %169 = arith.divf %167, %168 : vector<32x32xf32>
    %170 = vector.extract_strided_slice %151 {offsets = [0, 64], sizes = [32, 32], strides = [1, 1]} : vector<32x96xf32> to vector<32x32xf32>
    %171 = vector.extract_strided_slice %153 {offsets = [0, 64], sizes = [32, 32], strides = [1, 1]} : vector<32x96xf32> to vector<32x32xf32>
    %172 = arith.mulf %161, %171 : vector<32x32xf32>
    %173 = arith.addf %170, %172 : vector<32x32xf32>
    %174 = math.tanh %173 : vector<32x32xf32>
    %cst_45 = arith.constant 1.000000e+00 : f32
    %175 = vector.broadcast %cst_45 : f32 to vector<32x32xf32>
    %176 = arith.subf %175, %169 : vector<32x32xf32>
    %177 = arith.mulf %176, %174 : vector<32x32xf32>
    %178 = arith.mulf %169, %145 : vector<32x32xf32>
    %179 = arith.addf %177, %178 : vector<32x32xf32>
    %180 = arith.index_cast %149 : i32 to index
    %c0_46 = arith.constant 0 : index
    %181 = vector.load %arg11[%180, %c0_46] : memref<256x32xf32, #tpu.memory_space<vmem>>, vector<32x32xf32>
    tpu.vector_store %arg11[%180, %c0_46], %179 {strides = array<i32>} : memref<256x32xf32, #tpu.memory_space<vmem>>, vector<32x32xf32>,
    %c5_i32 = arith.constant 5 : i32
    %c32_i32_47 = arith.constant 32 : i32
    %182 = arith.muli %c5_i32, %c32_i32_47 : i32
    %183 = tpu.assume_multiple %182, 32 : i32
    %184 = arith.index_cast %183 : i32 to index
    %c0_48 = arith.constant 0 : index
    %185 = vector.load %arg10[%184, %c0_48] : memref<256x96xf32, #tpu.memory_space<vmem>>, vector<32x96xf32>
    %cst_49 = arith.constant dense<0.000000e+00> : vector<32x96xf32>
    %186 = tpu.matmul %179, %7, %cst_49 {dimension_numbers = #tpu.dot_dimension_numbers<[1], [0], [0], [1], [0, 0, 1, 1], [], []>} : vector<32x32xf32>, vector<32x96xf32>, vector<32x96xf32> -> vector<32x96xf32>
    %187 = arith.addf %186, %10 : vector<32x96xf32>
    %188 = vector.extract_strided_slice %185 {offsets = [0, 0], sizes = [32, 32], strides = [1, 1]} : vector<32x96xf32> to vector<32x32xf32>
    %189 = vector.extract_strided_slice %187 {offsets = [0, 0], sizes = [32, 32], strides = [1, 1]} : vector<32x96xf32> to vector<32x32xf32>
    %190 = arith.addf %188, %189 : vector<32x32xf32>
    %191 = arith.negf %190 : vector<32x32xf32>
    %192 = math.exp %191 : vector<32x32xf32>
    %cst_50 = arith.constant 1.000000e+00 : f32
    %193 = vector.broadcast %cst_50 : f32 to vector<32x32xf32>
    %194 = arith.addf %193, %192 : vector<32x32xf32>
    %195 = arith.divf %193, %194 : vector<32x32xf32>
    %196 = vector.extract_strided_slice %185 {offsets = [0, 32], sizes = [32, 32], strides = [1, 1]} : vector<32x96xf32> to vector<32x32xf32>
    %197 = vector.extract_strided_slice %187 {offsets = [0, 32], sizes = [32, 32], strides = [1, 1]} : vector<32x96xf32> to vector<32x32xf32>
    %198 = arith.addf %196, %197 : vector<32x32xf32>
    %199 = arith.negf %198 : vector<32x32xf32>
    %200 = math.exp %199 : vector<32x32xf32>
    %cst_51 = arith.constant 1.000000e+00 : f32
    %201 = vector.broadcast %cst_51 : f32 to vector<32x32xf32>
    %202 = arith.addf %201, %200 : vector<32x32xf32>
    %203 = arith.divf %201, %202 : vector<32x32xf32>
    %204 = vector.extract_strided_slice %185 {offsets = [0, 64], sizes = [32, 32], strides = [1, 1]} : vector<32x96xf32> to vector<32x32xf32>
    %205 = vector.extract_strided_slice %187 {offsets = [0, 64], sizes = [32, 32], strides = [1, 1]} : vector<32x96xf32> to vector<32x32xf32>
    %206 = arith.mulf %195, %205 : vector<32x32xf32>
    %207 = arith.addf %204, %206 : vector<32x32xf32>
    %208 = math.tanh %207 : vector<32x32xf32>
    %cst_52 = arith.constant 1.000000e+00 : f32
    %209 = vector.broadcast %cst_52 : f32 to vector<32x32xf32>
    %210 = arith.subf %209, %203 : vector<32x32xf32>
    %211 = arith.mulf %210, %208 : vector<32x32xf32>
    %212 = arith.mulf %203, %179 : vector<32x32xf32>
    %213 = arith.addf %211, %212 : vector<32x32xf32>
    %214 = arith.index_cast %183 : i32 to index
    %c0_53 = arith.constant 0 : index
    %215 = vector.load %arg11[%214, %c0_53] : memref<256x32xf32, #tpu.memory_space<vmem>>, vector<32x32xf32>
    tpu.vector_store %arg11[%214, %c0_53], %213 {strides = array<i32>} : memref<256x32xf32, #tpu.memory_space<vmem>>, vector<32x32xf32>,
    %c6_i32 = arith.constant 6 : i32
    %c32_i32_54 = arith.constant 32 : i32
    %216 = arith.muli %c6_i32, %c32_i32_54 : i32
    %217 = tpu.assume_multiple %216, 32 : i32
    %218 = arith.index_cast %217 : i32 to index
    %c0_55 = arith.constant 0 : index
    %219 = vector.load %arg10[%218, %c0_55] : memref<256x96xf32, #tpu.memory_space<vmem>>, vector<32x96xf32>
    %cst_56 = arith.constant dense<0.000000e+00> : vector<32x96xf32>
    %220 = tpu.matmul %213, %7, %cst_56 {dimension_numbers = #tpu.dot_dimension_numbers<[1], [0], [0], [1], [0, 0, 1, 1], [], []>} : vector<32x32xf32>, vector<32x96xf32>, vector<32x96xf32> -> vector<32x96xf32>
    %221 = arith.addf %220, %10 : vector<32x96xf32>
    %222 = vector.extract_strided_slice %219 {offsets = [0, 0], sizes = [32, 32], strides = [1, 1]} : vector<32x96xf32> to vector<32x32xf32>
    %223 = vector.extract_strided_slice %221 {offsets = [0, 0], sizes = [32, 32], strides = [1, 1]} : vector<32x96xf32> to vector<32x32xf32>
    %224 = arith.addf %222, %223 : vector<32x32xf32>
    %225 = arith.negf %224 : vector<32x32xf32>
    %226 = math.exp %225 : vector<32x32xf32>
    %cst_57 = arith.constant 1.000000e+00 : f32
    %227 = vector.broadcast %cst_57 : f32 to vector<32x32xf32>
    %228 = arith.addf %227, %226 : vector<32x32xf32>
    %229 = arith.divf %227, %228 : vector<32x32xf32>
    %230 = vector.extract_strided_slice %219 {offsets = [0, 32], sizes = [32, 32], strides = [1, 1]} : vector<32x96xf32> to vector<32x32xf32>
    %231 = vector.extract_strided_slice %221 {offsets = [0, 32], sizes = [32, 32], strides = [1, 1]} : vector<32x96xf32> to vector<32x32xf32>
    %232 = arith.addf %230, %231 : vector<32x32xf32>
    %233 = arith.negf %232 : vector<32x32xf32>
    %234 = math.exp %233 : vector<32x32xf32>
    %cst_58 = arith.constant 1.000000e+00 : f32
    %235 = vector.broadcast %cst_58 : f32 to vector<32x32xf32>
    %236 = arith.addf %235, %234 : vector<32x32xf32>
    %237 = arith.divf %235, %236 : vector<32x32xf32>
    %238 = vector.extract_strided_slice %219 {offsets = [0, 64], sizes = [32, 32], strides = [1, 1]} : vector<32x96xf32> to vector<32x32xf32>
    %239 = vector.extract_strided_slice %221 {offsets = [0, 64], sizes = [32, 32], strides = [1, 1]} : vector<32x96xf32> to vector<32x32xf32>
    %240 = arith.mulf %229, %239 : vector<32x32xf32>
    %241 = arith.addf %238, %240 : vector<32x32xf32>
    %242 = math.tanh %241 : vector<32x32xf32>
    %cst_59 = arith.constant 1.000000e+00 : f32
    %243 = vector.broadcast %cst_59 : f32 to vector<32x32xf32>
    %244 = arith.subf %243, %237 : vector<32x32xf32>
    %245 = arith.mulf %244, %242 : vector<32x32xf32>
    %246 = arith.mulf %237, %213 : vector<32x32xf32>
    %247 = arith.addf %245, %246 : vector<32x32xf32>
    %248 = arith.index_cast %217 : i32 to index
    %c0_60 = arith.constant 0 : index
    %249 = vector.load %arg11[%248, %c0_60] : memref<256x32xf32, #tpu.memory_space<vmem>>, vector<32x32xf32>
    tpu.vector_store %arg11[%248, %c0_60], %247 {strides = array<i32>} : memref<256x32xf32, #tpu.memory_space<vmem>>, vector<32x32xf32>,
    %c7_i32 = arith.constant 7 : i32
    %c32_i32_61 = arith.constant 32 : i32
    %250 = arith.muli %c7_i32, %c32_i32_61 : i32
    %251 = tpu.assume_multiple %250, 32 : i32
    %252 = arith.index_cast %251 : i32 to index
    %c0_62 = arith.constant 0 : index
    %253 = vector.load %arg10[%252, %c0_62] : memref<256x96xf32, #tpu.memory_space<vmem>>, vector<32x96xf32>
    %cst_63 = arith.constant dense<0.000000e+00> : vector<32x96xf32>
    %254 = tpu.matmul %247, %7, %cst_63 {dimension_numbers = #tpu.dot_dimension_numbers<[1], [0], [0], [1], [0, 0, 1, 1], [], []>} : vector<32x32xf32>, vector<32x96xf32>, vector<32x96xf32> -> vector<32x96xf32>
    %255 = arith.addf %254, %10 : vector<32x96xf32>
    %256 = vector.extract_strided_slice %253 {offsets = [0, 0], sizes = [32, 32], strides = [1, 1]} : vector<32x96xf32> to vector<32x32xf32>
    %257 = vector.extract_strided_slice %255 {offsets = [0, 0], sizes = [32, 32], strides = [1, 1]} : vector<32x96xf32> to vector<32x32xf32>
    %258 = arith.addf %256, %257 : vector<32x32xf32>
    %259 = arith.negf %258 : vector<32x32xf32>
    %260 = math.exp %259 : vector<32x32xf32>
    %cst_64 = arith.constant 1.000000e+00 : f32
    %261 = vector.broadcast %cst_64 : f32 to vector<32x32xf32>
    %262 = arith.addf %261, %260 : vector<32x32xf32>
    %263 = arith.divf %261, %262 : vector<32x32xf32>
    %264 = vector.extract_strided_slice %253 {offsets = [0, 32], sizes = [32, 32], strides = [1, 1]} : vector<32x96xf32> to vector<32x32xf32>
    %265 = vector.extract_strided_slice %255 {offsets = [0, 32], sizes = [32, 32], strides = [1, 1]} : vector<32x96xf32> to vector<32x32xf32>
    %266 = arith.addf %264, %265 : vector<32x32xf32>
    %267 = arith.negf %266 : vector<32x32xf32>
    %268 = math.exp %267 : vector<32x32xf32>
    %cst_65 = arith.constant 1.000000e+00 : f32
    %269 = vector.broadcast %cst_65 : f32 to vector<32x32xf32>
    %270 = arith.addf %269, %268 : vector<32x32xf32>
    %271 = arith.divf %269, %270 : vector<32x32xf32>
    %272 = vector.extract_strided_slice %253 {offsets = [0, 64], sizes = [32, 32], strides = [1, 1]} : vector<32x96xf32> to vector<32x32xf32>
    %273 = vector.extract_strided_slice %255 {offsets = [0, 64], sizes = [32, 32], strides = [1, 1]} : vector<32x96xf32> to vector<32x32xf32>
    %274 = arith.mulf %263, %273 : vector<32x32xf32>
    %275 = arith.addf %272, %274 : vector<32x32xf32>
    %276 = math.tanh %275 : vector<32x32xf32>
    %cst_66 = arith.constant 1.000000e+00 : f32
    %277 = vector.broadcast %cst_66 : f32 to vector<32x32xf32>
    %278 = arith.subf %277, %271 : vector<32x32xf32>
    %279 = arith.mulf %278, %276 : vector<32x32xf32>
    %280 = arith.mulf %271, %247 : vector<32x32xf32>
    %281 = arith.addf %279, %280 : vector<32x32xf32>
    %282 = arith.index_cast %251 : i32 to index
    %c0_67 = arith.constant 0 : index
    %283 = vector.load %arg11[%282, %c0_67] : memref<256x32xf32, #tpu.memory_space<vmem>>, vector<32x32xf32>
    tpu.vector_store %arg11[%282, %c0_67], %281 {strides = array<i32>} : memref<256x32xf32, #tpu.memory_space<vmem>>, vector<32x32xf32>,
    %c8_i32 = arith.constant 8 : i32
    %c0_68 = arith.constant 0 : index
    %c0_69 = arith.constant 0 : index
    %284 = vector.load %arg9[%c0_68, %c0_69] : memref<32x32xf32, #tpu.memory_space<vmem>>, vector<32x32xf32>
    tpu.vector_store %arg9[%c0_68, %c0_69], %281 {strides = array<i32>} : memref<32x32xf32, #tpu.memory_space<vmem>>, vector<32x32xf32>,
    %c0_70 = arith.constant 0 : index
    %c0_71 = arith.constant 0 : index
    %285 = vector.load %arg11[%c0_70, %c0_71] : memref<256x32xf32, #tpu.memory_space<vmem>>, vector<256x32xf32>
    %c0_72 = arith.constant 0 : index
    %c0_73 = arith.constant 0 : index
    %286 = vector.load %arg6[%c0_72, %c0_73] : memref<32x32xf32, #tpu.memory_space<vmem>>, vector<32x32xf32>
    %cst_74 = arith.constant dense<0.000000e+00> : vector<256x32xf32>
    %287 = tpu.matmul %285, %286, %cst_74 {dimension_numbers = #tpu.dot_dimension_numbers<[1], [0], [0], [1], [0, 0, 1, 1], [], []>} : vector<256x32xf32>, vector<32x32xf32>, vector<256x32xf32> -> vector<256x32xf32>
    %c0_75 = arith.constant 0 : index
    %c0_76 = arith.constant 0 : index
    %288 = vector.load %arg7[%c0_75, %c0_76] : memref<1x32xf32, #tpu.memory_space<vmem>>, vector<1x32xf32>
    %289 = vector.broadcast %288 : vector<1x32xf32> to vector<256x32xf32>
    %290 = arith.addf %287, %289 : vector<256x32xf32>
    %291 = arith.addf %290, %0 : vector<256x32xf32>
    %c0_77 = arith.constant 0 : index
    %c0_78 = arith.constant 0 : index
    %292 = vector.load %arg8[%c0_77, %c0_78] : memref<256x32xf32, #tpu.memory_space<vmem>>, vector<256x32xf32>
    tpu.vector_store %arg8[%c0_77, %c0_78], %291 {strides = array<i32>} : memref<256x32xf32, #tpu.memory_space<vmem>>, vector<256x32xf32>,
    return
  }
}

module attributes {stable_mosaic.version = 11 : i64} {
  func.func @_intra_kernel(%arg0: memref<256x32xf32, #tpu.memory_space<vmem>>, %arg1: memref<32x96xf32, #tpu.memory_space<vmem>>, %arg2: memref<32x96xf32, #tpu.memory_space<vmem>>, %arg3: memref<1x96xf32, #tpu.memory_space<vmem>>, %arg4: memref<1x96xf32, #tpu.memory_space<vmem>>, %arg5: memref<32x96xf32, #tpu.memory_space<vmem>>, %arg6: memref<32x96xf32, #tpu.memory_space<vmem>>, %arg7: memref<1x96xf32, #tpu.memory_space<vmem>>, %arg8: memref<1x96xf32, #tpu.memory_space<vmem>>, %arg9: memref<32x32xf32, #tpu.memory_space<vmem>>, %arg10: memref<32x32xf32, #tpu.memory_space<vmem>>, %arg11: memref<1x32xf32, #tpu.memory_space<vmem>>, %arg12: memref<1x32xf32, #tpu.memory_space<vmem>>, %arg13: memref<1x32xf32, #tpu.memory_space<vmem>>, %arg14: memref<256x32xf32, #tpu.memory_space<vmem>>, %arg15: memref<256x96xf32, #tpu.memory_space<vmem>>, %arg16: memref<256x96xf32, #tpu.memory_space<vmem>>, %arg17: memref<256x32xf32, #tpu.memory_space<vmem>>, %arg18: memref<256x32xf32, #tpu.memory_space<vmem>>) attributes {dimension_semantics = [], scalar_prefetch = 0 : i64, scratch_operands = 4 : i64, tpu.core_type = #tpu.core_type<tc>} {
    %c0 = arith.constant 0 : index
    %c0_0 = arith.constant 0 : index
    %0 = vector.load %arg0[%c0, %c0_0] : memref<256x32xf32, #tpu.memory_space<vmem>>, vector<256x32xf32>
    %c0_1 = arith.constant 0 : index
    %c0_2 = arith.constant 0 : index
    %1 = vector.load %arg1[%c0_1, %c0_2] : memref<32x96xf32, #tpu.memory_space<vmem>>, vector<32x96xf32>
    %cst = arith.constant dense<0.000000e+00> : vector<256x96xf32>
    %2 = tpu.matmul %0, %1, %cst {dimension_numbers = #tpu.dot_dimension_numbers<[1], [0], [0], [1], [0, 0, 1, 1], [], []>} : vector<256x32xf32>, vector<32x96xf32>, vector<256x96xf32> -> vector<256x96xf32>
    %c0_3 = arith.constant 0 : index
    %c0_4 = arith.constant 0 : index
    %3 = vector.load %arg3[%c0_3, %c0_4] : memref<1x96xf32, #tpu.memory_space<vmem>>, vector<1x96xf32>
    %4 = vector.broadcast %3 : vector<1x96xf32> to vector<256x96xf32>
    %5 = arith.addf %2, %4 : vector<256x96xf32>
    %c0_5 = arith.constant 0 : index
    %c0_6 = arith.constant 0 : index
    %6 = vector.load %arg15[%c0_5, %c0_6] : memref<256x96xf32, #tpu.memory_space<vmem>>, vector<256x96xf32>
    tpu.vector_store %arg15[%c0_5, %c0_6], %5 {strides = array<i32>} : memref<256x96xf32, #tpu.memory_space<vmem>>, vector<256x96xf32>,
    %c0_7 = arith.constant 0 : index
    %c0_8 = arith.constant 0 : index
    %7 = vector.load %arg5[%c0_7, %c0_8] : memref<32x96xf32, #tpu.memory_space<vmem>>, vector<32x96xf32>
    %cst_9 = arith.constant dense<0.000000e+00> : vector<256x96xf32>
    %8 = tpu.matmul %0, %7, %cst_9 {dimension_numbers = #tpu.dot_dimension_numbers<[1], [0], [0], [1], [0, 0, 1, 1], [], []>} : vector<256x32xf32>, vector<32x96xf32>, vector<256x96xf32> -> vector<256x96xf32>
    %c0_10 = arith.constant 0 : index
    %c0_11 = arith.constant 0 : index
    %9 = vector.load %arg7[%c0_10, %c0_11] : memref<1x96xf32, #tpu.memory_space<vmem>>, vector<1x96xf32>
    %10 = vector.broadcast %9 : vector<1x96xf32> to vector<256x96xf32>
    %11 = arith.addf %8, %10 : vector<256x96xf32>
    %c0_12 = arith.constant 0 : index
    %c0_13 = arith.constant 0 : index
    %12 = vector.load %arg16[%c0_12, %c0_13] : memref<256x96xf32, #tpu.memory_space<vmem>>, vector<256x96xf32>
    tpu.vector_store %arg16[%c0_12, %c0_13], %11 {strides = array<i32>} : memref<256x96xf32, #tpu.memory_space<vmem>>, vector<256x96xf32>,
    %c0_14 = arith.constant 0 : index
    %c0_15 = arith.constant 0 : index
    %13 = vector.load %arg2[%c0_14, %c0_15] : memref<32x96xf32, #tpu.memory_space<vmem>>, vector<32x96xf32>
    %c0_16 = arith.constant 0 : index
    %c0_17 = arith.constant 0 : index
    %14 = vector.load %arg6[%c0_16, %c0_17] : memref<32x96xf32, #tpu.memory_space<vmem>>, vector<32x96xf32>
    %c0_18 = arith.constant 0 : index
    %c0_19 = arith.constant 0 : index
    %15 = vector.load %arg4[%c0_18, %c0_19] : memref<1x96xf32, #tpu.memory_space<vmem>>, vector<1x96xf32>
    %16 = vector.shape_cast %15 : vector<1x96xf32> to vector<1x96xf32>
    %17 = vector.broadcast %16 : vector<1x96xf32> to vector<16x96xf32>
    %c0_20 = arith.constant 0 : index
    %c0_21 = arith.constant 0 : index
    %18 = vector.load %arg8[%c0_20, %c0_21] : memref<1x96xf32, #tpu.memory_space<vmem>>, vector<1x96xf32>
    %19 = vector.shape_cast %18 : vector<1x96xf32> to vector<1x96xf32>
    %20 = vector.broadcast %19 : vector<1x96xf32> to vector<16x96xf32>
    %cst_22 = arith.constant 0.000000e+00 : f32
    %21 = vector.broadcast %cst_22 : f32 to vector<16x32xf32>
    %c0_i32 = arith.constant 0 : i32
    %c16_i32 = arith.constant 16 : i32
    %22 = arith.muli %c0_i32, %c16_i32 : i32
    %23 = tpu.assume_multiple %22, 16 : i32
    %c15_i32 = arith.constant 15 : i32
    %24 = arith.subi %c15_i32, %c0_i32 : i32
    %c16_i32_23 = arith.constant 16 : i32
    %25 = arith.muli %24, %c16_i32_23 : i32
    %26 = tpu.assume_multiple %25, 16 : i32
    %27 = arith.index_cast %23 : i32 to index
    %c0_24 = arith.constant 0 : index
    %28 = vector.load %arg15[%27, %c0_24] : memref<256x96xf32, #tpu.memory_space<vmem>>, vector<16x96xf32>
    %cst_25 = arith.constant dense<0.000000e+00> : vector<16x96xf32>
    %29 = tpu.matmul %21, %13, %cst_25 {dimension_numbers = #tpu.dot_dimension_numbers<[1], [0], [0], [1], [0, 0, 1, 1], [], []>} : vector<16x32xf32>, vector<32x96xf32>, vector<16x96xf32> -> vector<16x96xf32>
    %30 = arith.addf %29, %17 : vector<16x96xf32>
    %31 = vector.extract_strided_slice %28 {offsets = [0, 0], sizes = [16, 32], strides = [1, 1]} : vector<16x96xf32> to vector<16x32xf32>
    %32 = vector.extract_strided_slice %30 {offsets = [0, 0], sizes = [16, 32], strides = [1, 1]} : vector<16x96xf32> to vector<16x32xf32>
    %33 = arith.addf %31, %32 : vector<16x32xf32>
    %34 = arith.negf %33 : vector<16x32xf32>
    %35 = math.exp %34 : vector<16x32xf32>
    %cst_26 = arith.constant 1.000000e+00 : f32
    %36 = vector.broadcast %cst_26 : f32 to vector<16x32xf32>
    %37 = arith.addf %36, %35 : vector<16x32xf32>
    %38 = arith.divf %36, %37 : vector<16x32xf32>
    %39 = vector.extract_strided_slice %28 {offsets = [0, 32], sizes = [16, 32], strides = [1, 1]} : vector<16x96xf32> to vector<16x32xf32>
    %40 = vector.extract_strided_slice %30 {offsets = [0, 32], sizes = [16, 32], strides = [1, 1]} : vector<16x96xf32> to vector<16x32xf32>
    %41 = arith.addf %39, %40 : vector<16x32xf32>
    %42 = arith.negf %41 : vector<16x32xf32>
    %43 = math.exp %42 : vector<16x32xf32>
    %cst_27 = arith.constant 1.000000e+00 : f32
    %44 = vector.broadcast %cst_27 : f32 to vector<16x32xf32>
    %45 = arith.addf %44, %43 : vector<16x32xf32>
    %46 = arith.divf %44, %45 : vector<16x32xf32>
    %47 = vector.extract_strided_slice %28 {offsets = [0, 64], sizes = [16, 32], strides = [1, 1]} : vector<16x96xf32> to vector<16x32xf32>
    %48 = vector.extract_strided_slice %30 {offsets = [0, 64], sizes = [16, 32], strides = [1, 1]} : vector<16x96xf32> to vector<16x32xf32>
    %49 = arith.mulf %38, %48 : vector<16x32xf32>
    %50 = arith.addf %47, %49 : vector<16x32xf32>
    %51 = math.tanh %50 : vector<16x32xf32>
    %cst_28 = arith.constant 1.000000e+00 : f32
    %52 = vector.broadcast %cst_28 : f32 to vector<16x32xf32>
    %53 = arith.subf %52, %46 : vector<16x32xf32>
    %54 = arith.mulf %53, %51 : vector<16x32xf32>
    %55 = arith.mulf %46, %21 : vector<16x32xf32>
    %56 = arith.addf %54, %55 : vector<16x32xf32>
    %57 = arith.index_cast %26 : i32 to index
    %c0_29 = arith.constant 0 : index
    %58 = vector.load %arg16[%57, %c0_29] : memref<256x96xf32, #tpu.memory_space<vmem>>, vector<16x96xf32>
    %cst_30 = arith.constant dense<0.000000e+00> : vector<16x96xf32>
    %59 = tpu.matmul %21, %14, %cst_30 {dimension_numbers = #tpu.dot_dimension_numbers<[1], [0], [0], [1], [0, 0, 1, 1], [], []>} : vector<16x32xf32>, vector<32x96xf32>, vector<16x96xf32> -> vector<16x96xf32>
    %60 = arith.addf %59, %20 : vector<16x96xf32>
    %61 = vector.extract_strided_slice %58 {offsets = [0, 0], sizes = [16, 32], strides = [1, 1]} : vector<16x96xf32> to vector<16x32xf32>
    %62 = vector.extract_strided_slice %60 {offsets = [0, 0], sizes = [16, 32], strides = [1, 1]} : vector<16x96xf32> to vector<16x32xf32>
    %63 = arith.addf %61, %62 : vector<16x32xf32>
    %64 = arith.negf %63 : vector<16x32xf32>
    %65 = math.exp %64 : vector<16x32xf32>
    %cst_31 = arith.constant 1.000000e+00 : f32
    %66 = vector.broadcast %cst_31 : f32 to vector<16x32xf32>
    %67 = arith.addf %66, %65 : vector<16x32xf32>
    %68 = arith.divf %66, %67 : vector<16x32xf32>
    %69 = vector.extract_strided_slice %58 {offsets = [0, 32], sizes = [16, 32], strides = [1, 1]} : vector<16x96xf32> to vector<16x32xf32>
    %70 = vector.extract_strided_slice %60 {offsets = [0, 32], sizes = [16, 32], strides = [1, 1]} : vector<16x96xf32> to vector<16x32xf32>
    %71 = arith.addf %69, %70 : vector<16x32xf32>
    %72 = arith.negf %71 : vector<16x32xf32>
    %73 = math.exp %72 : vector<16x32xf32>
    %cst_32 = arith.constant 1.000000e+00 : f32
    %74 = vector.broadcast %cst_32 : f32 to vector<16x32xf32>
    %75 = arith.addf %74, %73 : vector<16x32xf32>
    %76 = arith.divf %74, %75 : vector<16x32xf32>
    %77 = vector.extract_strided_slice %58 {offsets = [0, 64], sizes = [16, 32], strides = [1, 1]} : vector<16x96xf32> to vector<16x32xf32>
    %78 = vector.extract_strided_slice %60 {offsets = [0, 64], sizes = [16, 32], strides = [1, 1]} : vector<16x96xf32> to vector<16x32xf32>
    %79 = arith.mulf %68, %78 : vector<16x32xf32>
    %80 = arith.addf %77, %79 : vector<16x32xf32>
    %81 = math.tanh %80 : vector<16x32xf32>
    %cst_33 = arith.constant 1.000000e+00 : f32
    %82 = vector.broadcast %cst_33 : f32 to vector<16x32xf32>
    %83 = arith.subf %82, %76 : vector<16x32xf32>
    %84 = arith.mulf %83, %81 : vector<16x32xf32>
    %85 = arith.mulf %76, %21 : vector<16x32xf32>
    %86 = arith.addf %84, %85 : vector<16x32xf32>
    %87 = arith.index_cast %23 : i32 to index
    %c0_34 = arith.constant 0 : index
    %88 = vector.load %arg17[%87, %c0_34] : memref<256x32xf32, #tpu.memory_space<vmem>>, vector<16x32xf32>
    tpu.vector_store %arg17[%87, %c0_34], %56 {strides = array<i32>} : memref<256x32xf32, #tpu.memory_space<vmem>>, vector<16x32xf32>,
    %89 = arith.index_cast %26 : i32 to index
    %c0_35 = arith.constant 0 : index
    %90 = vector.load %arg18[%89, %c0_35] : memref<256x32xf32, #tpu.memory_space<vmem>>, vector<16x32xf32>
    tpu.vector_store %arg18[%89, %c0_35], %86 {strides = array<i32>} : memref<256x32xf32, #tpu.memory_space<vmem>>, vector<16x32xf32>,
    %c1_i32 = arith.constant 1 : i32
    %c16_i32_36 = arith.constant 16 : i32
    %91 = arith.muli %c1_i32, %c16_i32_36 : i32
    %92 = tpu.assume_multiple %91, 16 : i32
    %c15_i32_37 = arith.constant 15 : i32
    %93 = arith.subi %c15_i32_37, %c1_i32 : i32
    %c16_i32_38 = arith.constant 16 : i32
    %94 = arith.muli %93, %c16_i32_38 : i32
    %95 = tpu.assume_multiple %94, 16 : i32
    %96 = arith.index_cast %92 : i32 to index
    %c0_39 = arith.constant 0 : index
    %97 = vector.load %arg15[%96, %c0_39] : memref<256x96xf32, #tpu.memory_space<vmem>>, vector<16x96xf32>
    %cst_40 = arith.constant dense<0.000000e+00> : vector<16x96xf32>
    %98 = tpu.matmul %56, %13, %cst_40 {dimension_numbers = #tpu.dot_dimension_numbers<[1], [0], [0], [1], [0, 0, 1, 1], [], []>} : vector<16x32xf32>, vector<32x96xf32>, vector<16x96xf32> -> vector<16x96xf32>
    %99 = arith.addf %98, %17 : vector<16x96xf32>
    %100 = vector.extract_strided_slice %97 {offsets = [0, 0], sizes = [16, 32], strides = [1, 1]} : vector<16x96xf32> to vector<16x32xf32>
    %101 = vector.extract_strided_slice %99 {offsets = [0, 0], sizes = [16, 32], strides = [1, 1]} : vector<16x96xf32> to vector<16x32xf32>
    %102 = arith.addf %100, %101 : vector<16x32xf32>
    %103 = arith.negf %102 : vector<16x32xf32>
    %104 = math.exp %103 : vector<16x32xf32>
    %cst_41 = arith.constant 1.000000e+00 : f32
    %105 = vector.broadcast %cst_41 : f32 to vector<16x32xf32>
    %106 = arith.addf %105, %104 : vector<16x32xf32>
    %107 = arith.divf %105, %106 : vector<16x32xf32>
    %108 = vector.extract_strided_slice %97 {offsets = [0, 32], sizes = [16, 32], strides = [1, 1]} : vector<16x96xf32> to vector<16x32xf32>
    %109 = vector.extract_strided_slice %99 {offsets = [0, 32], sizes = [16, 32], strides = [1, 1]} : vector<16x96xf32> to vector<16x32xf32>
    %110 = arith.addf %108, %109 : vector<16x32xf32>
    %111 = arith.negf %110 : vector<16x32xf32>
    %112 = math.exp %111 : vector<16x32xf32>
    %cst_42 = arith.constant 1.000000e+00 : f32
    %113 = vector.broadcast %cst_42 : f32 to vector<16x32xf32>
    %114 = arith.addf %113, %112 : vector<16x32xf32>
    %115 = arith.divf %113, %114 : vector<16x32xf32>
    %116 = vector.extract_strided_slice %97 {offsets = [0, 64], sizes = [16, 32], strides = [1, 1]} : vector<16x96xf32> to vector<16x32xf32>
    %117 = vector.extract_strided_slice %99 {offsets = [0, 64], sizes = [16, 32], strides = [1, 1]} : vector<16x96xf32> to vector<16x32xf32>
    %118 = arith.mulf %107, %117 : vector<16x32xf32>
    %119 = arith.addf %116, %118 : vector<16x32xf32>
    %120 = math.tanh %119 : vector<16x32xf32>
    %cst_43 = arith.constant 1.000000e+00 : f32
    %121 = vector.broadcast %cst_43 : f32 to vector<16x32xf32>
    %122 = arith.subf %121, %115 : vector<16x32xf32>
    %123 = arith.mulf %122, %120 : vector<16x32xf32>
    %124 = arith.mulf %115, %56 : vector<16x32xf32>
    %125 = arith.addf %123, %124 : vector<16x32xf32>
    %126 = arith.index_cast %95 : i32 to index
    %c0_44 = arith.constant 0 : index
    %127 = vector.load %arg16[%126, %c0_44] : memref<256x96xf32, #tpu.memory_space<vmem>>, vector<16x96xf32>
    %cst_45 = arith.constant dense<0.000000e+00> : vector<16x96xf32>
    %128 = tpu.matmul %86, %14, %cst_45 {dimension_numbers = #tpu.dot_dimension_numbers<[1], [0], [0], [1], [0, 0, 1, 1], [], []>} : vector<16x32xf32>, vector<32x96xf32>, vector<16x96xf32> -> vector<16x96xf32>
    %129 = arith.addf %128, %20 : vector<16x96xf32>
    %130 = vector.extract_strided_slice %127 {offsets = [0, 0], sizes = [16, 32], strides = [1, 1]} : vector<16x96xf32> to vector<16x32xf32>
    %131 = vector.extract_strided_slice %129 {offsets = [0, 0], sizes = [16, 32], strides = [1, 1]} : vector<16x96xf32> to vector<16x32xf32>
    %132 = arith.addf %130, %131 : vector<16x32xf32>
    %133 = arith.negf %132 : vector<16x32xf32>
    %134 = math.exp %133 : vector<16x32xf32>
    %cst_46 = arith.constant 1.000000e+00 : f32
    %135 = vector.broadcast %cst_46 : f32 to vector<16x32xf32>
    %136 = arith.addf %135, %134 : vector<16x32xf32>
    %137 = arith.divf %135, %136 : vector<16x32xf32>
    %138 = vector.extract_strided_slice %127 {offsets = [0, 32], sizes = [16, 32], strides = [1, 1]} : vector<16x96xf32> to vector<16x32xf32>
    %139 = vector.extract_strided_slice %129 {offsets = [0, 32], sizes = [16, 32], strides = [1, 1]} : vector<16x96xf32> to vector<16x32xf32>
    %140 = arith.addf %138, %139 : vector<16x32xf32>
    %141 = arith.negf %140 : vector<16x32xf32>
    %142 = math.exp %141 : vector<16x32xf32>
    %cst_47 = arith.constant 1.000000e+00 : f32
    %143 = vector.broadcast %cst_47 : f32 to vector<16x32xf32>
    %144 = arith.addf %143, %142 : vector<16x32xf32>
    %145 = arith.divf %143, %144 : vector<16x32xf32>
    %146 = vector.extract_strided_slice %127 {offsets = [0, 64], sizes = [16, 32], strides = [1, 1]} : vector<16x96xf32> to vector<16x32xf32>
    %147 = vector.extract_strided_slice %129 {offsets = [0, 64], sizes = [16, 32], strides = [1, 1]} : vector<16x96xf32> to vector<16x32xf32>
    %148 = arith.mulf %137, %147 : vector<16x32xf32>
    %149 = arith.addf %146, %148 : vector<16x32xf32>
    %150 = math.tanh %149 : vector<16x32xf32>
    %cst_48 = arith.constant 1.000000e+00 : f32
    %151 = vector.broadcast %cst_48 : f32 to vector<16x32xf32>
    %152 = arith.subf %151, %145 : vector<16x32xf32>
    %153 = arith.mulf %152, %150 : vector<16x32xf32>
    %154 = arith.mulf %145, %86 : vector<16x32xf32>
    %155 = arith.addf %153, %154 : vector<16x32xf32>
    %156 = arith.index_cast %92 : i32 to index
    %c0_49 = arith.constant 0 : index
    %157 = vector.load %arg17[%156, %c0_49] : memref<256x32xf32, #tpu.memory_space<vmem>>, vector<16x32xf32>
    tpu.vector_store %arg17[%156, %c0_49], %125 {strides = array<i32>} : memref<256x32xf32, #tpu.memory_space<vmem>>, vector<16x32xf32>,
    %158 = arith.index_cast %95 : i32 to index
    %c0_50 = arith.constant 0 : index
    %159 = vector.load %arg18[%158, %c0_50] : memref<256x32xf32, #tpu.memory_space<vmem>>, vector<16x32xf32>
    tpu.vector_store %arg18[%158, %c0_50], %155 {strides = array<i32>} : memref<256x32xf32, #tpu.memory_space<vmem>>, vector<16x32xf32>,
    %c2_i32 = arith.constant 2 : i32
    %c16_i32_51 = arith.constant 16 : i32
    %160 = arith.muli %c2_i32, %c16_i32_51 : i32
    %161 = tpu.assume_multiple %160, 16 : i32
    %c15_i32_52 = arith.constant 15 : i32
    %162 = arith.subi %c15_i32_52, %c2_i32 : i32
    %c16_i32_53 = arith.constant 16 : i32
    %163 = arith.muli %162, %c16_i32_53 : i32
    %164 = tpu.assume_multiple %163, 16 : i32
    %165 = arith.index_cast %161 : i32 to index
    %c0_54 = arith.constant 0 : index
    %166 = vector.load %arg15[%165, %c0_54] : memref<256x96xf32, #tpu.memory_space<vmem>>, vector<16x96xf32>
    %cst_55 = arith.constant dense<0.000000e+00> : vector<16x96xf32>
    %167 = tpu.matmul %125, %13, %cst_55 {dimension_numbers = #tpu.dot_dimension_numbers<[1], [0], [0], [1], [0, 0, 1, 1], [], []>} : vector<16x32xf32>, vector<32x96xf32>, vector<16x96xf32> -> vector<16x96xf32>
    %168 = arith.addf %167, %17 : vector<16x96xf32>
    %169 = vector.extract_strided_slice %166 {offsets = [0, 0], sizes = [16, 32], strides = [1, 1]} : vector<16x96xf32> to vector<16x32xf32>
    %170 = vector.extract_strided_slice %168 {offsets = [0, 0], sizes = [16, 32], strides = [1, 1]} : vector<16x96xf32> to vector<16x32xf32>
    %171 = arith.addf %169, %170 : vector<16x32xf32>
    %172 = arith.negf %171 : vector<16x32xf32>
    %173 = math.exp %172 : vector<16x32xf32>
    %cst_56 = arith.constant 1.000000e+00 : f32
    %174 = vector.broadcast %cst_56 : f32 to vector<16x32xf32>
    %175 = arith.addf %174, %173 : vector<16x32xf32>
    %176 = arith.divf %174, %175 : vector<16x32xf32>
    %177 = vector.extract_strided_slice %166 {offsets = [0, 32], sizes = [16, 32], strides = [1, 1]} : vector<16x96xf32> to vector<16x32xf32>
    %178 = vector.extract_strided_slice %168 {offsets = [0, 32], sizes = [16, 32], strides = [1, 1]} : vector<16x96xf32> to vector<16x32xf32>
    %179 = arith.addf %177, %178 : vector<16x32xf32>
    %180 = arith.negf %179 : vector<16x32xf32>
    %181 = math.exp %180 : vector<16x32xf32>
    %cst_57 = arith.constant 1.000000e+00 : f32
    %182 = vector.broadcast %cst_57 : f32 to vector<16x32xf32>
    %183 = arith.addf %182, %181 : vector<16x32xf32>
    %184 = arith.divf %182, %183 : vector<16x32xf32>
    %185 = vector.extract_strided_slice %166 {offsets = [0, 64], sizes = [16, 32], strides = [1, 1]} : vector<16x96xf32> to vector<16x32xf32>
    %186 = vector.extract_strided_slice %168 {offsets = [0, 64], sizes = [16, 32], strides = [1, 1]} : vector<16x96xf32> to vector<16x32xf32>
    %187 = arith.mulf %176, %186 : vector<16x32xf32>
    %188 = arith.addf %185, %187 : vector<16x32xf32>
    %189 = math.tanh %188 : vector<16x32xf32>
    %cst_58 = arith.constant 1.000000e+00 : f32
    %190 = vector.broadcast %cst_58 : f32 to vector<16x32xf32>
    %191 = arith.subf %190, %184 : vector<16x32xf32>
    %192 = arith.mulf %191, %189 : vector<16x32xf32>
    %193 = arith.mulf %184, %125 : vector<16x32xf32>
    %194 = arith.addf %192, %193 : vector<16x32xf32>
    %195 = arith.index_cast %164 : i32 to index
    %c0_59 = arith.constant 0 : index
    %196 = vector.load %arg16[%195, %c0_59] : memref<256x96xf32, #tpu.memory_space<vmem>>, vector<16x96xf32>
    %cst_60 = arith.constant dense<0.000000e+00> : vector<16x96xf32>
    %197 = tpu.matmul %155, %14, %cst_60 {dimension_numbers = #tpu.dot_dimension_numbers<[1], [0], [0], [1], [0, 0, 1, 1], [], []>} : vector<16x32xf32>, vector<32x96xf32>, vector<16x96xf32> -> vector<16x96xf32>
    %198 = arith.addf %197, %20 : vector<16x96xf32>
    %199 = vector.extract_strided_slice %196 {offsets = [0, 0], sizes = [16, 32], strides = [1, 1]} : vector<16x96xf32> to vector<16x32xf32>
    %200 = vector.extract_strided_slice %198 {offsets = [0, 0], sizes = [16, 32], strides = [1, 1]} : vector<16x96xf32> to vector<16x32xf32>
    %201 = arith.addf %199, %200 : vector<16x32xf32>
    %202 = arith.negf %201 : vector<16x32xf32>
    %203 = math.exp %202 : vector<16x32xf32>
    %cst_61 = arith.constant 1.000000e+00 : f32
    %204 = vector.broadcast %cst_61 : f32 to vector<16x32xf32>
    %205 = arith.addf %204, %203 : vector<16x32xf32>
    %206 = arith.divf %204, %205 : vector<16x32xf32>
    %207 = vector.extract_strided_slice %196 {offsets = [0, 32], sizes = [16, 32], strides = [1, 1]} : vector<16x96xf32> to vector<16x32xf32>
    %208 = vector.extract_strided_slice %198 {offsets = [0, 32], sizes = [16, 32], strides = [1, 1]} : vector<16x96xf32> to vector<16x32xf32>
    %209 = arith.addf %207, %208 : vector<16x32xf32>
    %210 = arith.negf %209 : vector<16x32xf32>
    %211 = math.exp %210 : vector<16x32xf32>
    %cst_62 = arith.constant 1.000000e+00 : f32
    %212 = vector.broadcast %cst_62 : f32 to vector<16x32xf32>
    %213 = arith.addf %212, %211 : vector<16x32xf32>
    %214 = arith.divf %212, %213 : vector<16x32xf32>
    %215 = vector.extract_strided_slice %196 {offsets = [0, 64], sizes = [16, 32], strides = [1, 1]} : vector<16x96xf32> to vector<16x32xf32>
    %216 = vector.extract_strided_slice %198 {offsets = [0, 64], sizes = [16, 32], strides = [1, 1]} : vector<16x96xf32> to vector<16x32xf32>
    %217 = arith.mulf %206, %216 : vector<16x32xf32>
    %218 = arith.addf %215, %217 : vector<16x32xf32>
    %219 = math.tanh %218 : vector<16x32xf32>
    %cst_63 = arith.constant 1.000000e+00 : f32
    %220 = vector.broadcast %cst_63 : f32 to vector<16x32xf32>
    %221 = arith.subf %220, %214 : vector<16x32xf32>
    %222 = arith.mulf %221, %219 : vector<16x32xf32>
    %223 = arith.mulf %214, %155 : vector<16x32xf32>
    %224 = arith.addf %222, %223 : vector<16x32xf32>
    %225 = arith.index_cast %161 : i32 to index
    %c0_64 = arith.constant 0 : index
    %226 = vector.load %arg17[%225, %c0_64] : memref<256x32xf32, #tpu.memory_space<vmem>>, vector<16x32xf32>
    tpu.vector_store %arg17[%225, %c0_64], %194 {strides = array<i32>} : memref<256x32xf32, #tpu.memory_space<vmem>>, vector<16x32xf32>,
    %227 = arith.index_cast %164 : i32 to index
    %c0_65 = arith.constant 0 : index
    %228 = vector.load %arg18[%227, %c0_65] : memref<256x32xf32, #tpu.memory_space<vmem>>, vector<16x32xf32>
    tpu.vector_store %arg18[%227, %c0_65], %224 {strides = array<i32>} : memref<256x32xf32, #tpu.memory_space<vmem>>, vector<16x32xf32>,
    %c3_i32 = arith.constant 3 : i32
    %c16_i32_66 = arith.constant 16 : i32
    %229 = arith.muli %c3_i32, %c16_i32_66 : i32
    %230 = tpu.assume_multiple %229, 16 : i32
    %c15_i32_67 = arith.constant 15 : i32
    %231 = arith.subi %c15_i32_67, %c3_i32 : i32
    %c16_i32_68 = arith.constant 16 : i32
    %232 = arith.muli %231, %c16_i32_68 : i32
    %233 = tpu.assume_multiple %232, 16 : i32
    %234 = arith.index_cast %230 : i32 to index
    %c0_69 = arith.constant 0 : index
    %235 = vector.load %arg15[%234, %c0_69] : memref<256x96xf32, #tpu.memory_space<vmem>>, vector<16x96xf32>
    %cst_70 = arith.constant dense<0.000000e+00> : vector<16x96xf32>
    %236 = tpu.matmul %194, %13, %cst_70 {dimension_numbers = #tpu.dot_dimension_numbers<[1], [0], [0], [1], [0, 0, 1, 1], [], []>} : vector<16x32xf32>, vector<32x96xf32>, vector<16x96xf32> -> vector<16x96xf32>
    %237 = arith.addf %236, %17 : vector<16x96xf32>
    %238 = vector.extract_strided_slice %235 {offsets = [0, 0], sizes = [16, 32], strides = [1, 1]} : vector<16x96xf32> to vector<16x32xf32>
    %239 = vector.extract_strided_slice %237 {offsets = [0, 0], sizes = [16, 32], strides = [1, 1]} : vector<16x96xf32> to vector<16x32xf32>
    %240 = arith.addf %238, %239 : vector<16x32xf32>
    %241 = arith.negf %240 : vector<16x32xf32>
    %242 = math.exp %241 : vector<16x32xf32>
    %cst_71 = arith.constant 1.000000e+00 : f32
    %243 = vector.broadcast %cst_71 : f32 to vector<16x32xf32>
    %244 = arith.addf %243, %242 : vector<16x32xf32>
    %245 = arith.divf %243, %244 : vector<16x32xf32>
    %246 = vector.extract_strided_slice %235 {offsets = [0, 32], sizes = [16, 32], strides = [1, 1]} : vector<16x96xf32> to vector<16x32xf32>
    %247 = vector.extract_strided_slice %237 {offsets = [0, 32], sizes = [16, 32], strides = [1, 1]} : vector<16x96xf32> to vector<16x32xf32>
    %248 = arith.addf %246, %247 : vector<16x32xf32>
    %249 = arith.negf %248 : vector<16x32xf32>
    %250 = math.exp %249 : vector<16x32xf32>
    %cst_72 = arith.constant 1.000000e+00 : f32
    %251 = vector.broadcast %cst_72 : f32 to vector<16x32xf32>
    %252 = arith.addf %251, %250 : vector<16x32xf32>
    %253 = arith.divf %251, %252 : vector<16x32xf32>
    %254 = vector.extract_strided_slice %235 {offsets = [0, 64], sizes = [16, 32], strides = [1, 1]} : vector<16x96xf32> to vector<16x32xf32>
    %255 = vector.extract_strided_slice %237 {offsets = [0, 64], sizes = [16, 32], strides = [1, 1]} : vector<16x96xf32> to vector<16x32xf32>
    %256 = arith.mulf %245, %255 : vector<16x32xf32>
    %257 = arith.addf %254, %256 : vector<16x32xf32>
    %258 = math.tanh %257 : vector<16x32xf32>
    %cst_73 = arith.constant 1.000000e+00 : f32
    %259 = vector.broadcast %cst_73 : f32 to vector<16x32xf32>
    %260 = arith.subf %259, %253 : vector<16x32xf32>
    %261 = arith.mulf %260, %258 : vector<16x32xf32>
    %262 = arith.mulf %253, %194 : vector<16x32xf32>
    %263 = arith.addf %261, %262 : vector<16x32xf32>
    %264 = arith.index_cast %233 : i32 to index
    %c0_74 = arith.constant 0 : index
    %265 = vector.load %arg16[%264, %c0_74] : memref<256x96xf32, #tpu.memory_space<vmem>>, vector<16x96xf32>
    %cst_75 = arith.constant dense<0.000000e+00> : vector<16x96xf32>
    %266 = tpu.matmul %224, %14, %cst_75 {dimension_numbers = #tpu.dot_dimension_numbers<[1], [0], [0], [1], [0, 0, 1, 1], [], []>} : vector<16x32xf32>, vector<32x96xf32>, vector<16x96xf32> -> vector<16x96xf32>
    %267 = arith.addf %266, %20 : vector<16x96xf32>
    %268 = vector.extract_strided_slice %265 {offsets = [0, 0], sizes = [16, 32], strides = [1, 1]} : vector<16x96xf32> to vector<16x32xf32>
    %269 = vector.extract_strided_slice %267 {offsets = [0, 0], sizes = [16, 32], strides = [1, 1]} : vector<16x96xf32> to vector<16x32xf32>
    %270 = arith.addf %268, %269 : vector<16x32xf32>
    %271 = arith.negf %270 : vector<16x32xf32>
    %272 = math.exp %271 : vector<16x32xf32>
    %cst_76 = arith.constant 1.000000e+00 : f32
    %273 = vector.broadcast %cst_76 : f32 to vector<16x32xf32>
    %274 = arith.addf %273, %272 : vector<16x32xf32>
    %275 = arith.divf %273, %274 : vector<16x32xf32>
    %276 = vector.extract_strided_slice %265 {offsets = [0, 32], sizes = [16, 32], strides = [1, 1]} : vector<16x96xf32> to vector<16x32xf32>
    %277 = vector.extract_strided_slice %267 {offsets = [0, 32], sizes = [16, 32], strides = [1, 1]} : vector<16x96xf32> to vector<16x32xf32>
    %278 = arith.addf %276, %277 : vector<16x32xf32>
    %279 = arith.negf %278 : vector<16x32xf32>
    %280 = math.exp %279 : vector<16x32xf32>
    %cst_77 = arith.constant 1.000000e+00 : f32
    %281 = vector.broadcast %cst_77 : f32 to vector<16x32xf32>
    %282 = arith.addf %281, %280 : vector<16x32xf32>
    %283 = arith.divf %281, %282 : vector<16x32xf32>
    %284 = vector.extract_strided_slice %265 {offsets = [0, 64], sizes = [16, 32], strides = [1, 1]} : vector<16x96xf32> to vector<16x32xf32>
    %285 = vector.extract_strided_slice %267 {offsets = [0, 64], sizes = [16, 32], strides = [1, 1]} : vector<16x96xf32> to vector<16x32xf32>
    %286 = arith.mulf %275, %285 : vector<16x32xf32>
    %287 = arith.addf %284, %286 : vector<16x32xf32>
    %288 = math.tanh %287 : vector<16x32xf32>
    %cst_78 = arith.constant 1.000000e+00 : f32
    %289 = vector.broadcast %cst_78 : f32 to vector<16x32xf32>
    %290 = arith.subf %289, %283 : vector<16x32xf32>
    %291 = arith.mulf %290, %288 : vector<16x32xf32>
    %292 = arith.mulf %283, %224 : vector<16x32xf32>
    %293 = arith.addf %291, %292 : vector<16x32xf32>
    %294 = arith.index_cast %230 : i32 to index
    %c0_79 = arith.constant 0 : index
    %295 = vector.load %arg17[%294, %c0_79] : memref<256x32xf32, #tpu.memory_space<vmem>>, vector<16x32xf32>
    tpu.vector_store %arg17[%294, %c0_79], %263 {strides = array<i32>} : memref<256x32xf32, #tpu.memory_space<vmem>>, vector<16x32xf32>,
    %296 = arith.index_cast %233 : i32 to index
    %c0_80 = arith.constant 0 : index
    %297 = vector.load %arg18[%296, %c0_80] : memref<256x32xf32, #tpu.memory_space<vmem>>, vector<16x32xf32>
    tpu.vector_store %arg18[%296, %c0_80], %293 {strides = array<i32>} : memref<256x32xf32, #tpu.memory_space<vmem>>, vector<16x32xf32>,
    %c4_i32 = arith.constant 4 : i32
    %c16_i32_81 = arith.constant 16 : i32
    %298 = arith.muli %c4_i32, %c16_i32_81 : i32
    %299 = tpu.assume_multiple %298, 16 : i32
    %c15_i32_82 = arith.constant 15 : i32
    %300 = arith.subi %c15_i32_82, %c4_i32 : i32
    %c16_i32_83 = arith.constant 16 : i32
    %301 = arith.muli %300, %c16_i32_83 : i32
    %302 = tpu.assume_multiple %301, 16 : i32
    %303 = arith.index_cast %299 : i32 to index
    %c0_84 = arith.constant 0 : index
    %304 = vector.load %arg15[%303, %c0_84] : memref<256x96xf32, #tpu.memory_space<vmem>>, vector<16x96xf32>
    %cst_85 = arith.constant dense<0.000000e+00> : vector<16x96xf32>
    %305 = tpu.matmul %263, %13, %cst_85 {dimension_numbers = #tpu.dot_dimension_numbers<[1], [0], [0], [1], [0, 0, 1, 1], [], []>} : vector<16x32xf32>, vector<32x96xf32>, vector<16x96xf32> -> vector<16x96xf32>
    %306 = arith.addf %305, %17 : vector<16x96xf32>
    %307 = vector.extract_strided_slice %304 {offsets = [0, 0], sizes = [16, 32], strides = [1, 1]} : vector<16x96xf32> to vector<16x32xf32>
    %308 = vector.extract_strided_slice %306 {offsets = [0, 0], sizes = [16, 32], strides = [1, 1]} : vector<16x96xf32> to vector<16x32xf32>
    %309 = arith.addf %307, %308 : vector<16x32xf32>
    %310 = arith.negf %309 : vector<16x32xf32>
    %311 = math.exp %310 : vector<16x32xf32>
    %cst_86 = arith.constant 1.000000e+00 : f32
    %312 = vector.broadcast %cst_86 : f32 to vector<16x32xf32>
    %313 = arith.addf %312, %311 : vector<16x32xf32>
    %314 = arith.divf %312, %313 : vector<16x32xf32>
    %315 = vector.extract_strided_slice %304 {offsets = [0, 32], sizes = [16, 32], strides = [1, 1]} : vector<16x96xf32> to vector<16x32xf32>
    %316 = vector.extract_strided_slice %306 {offsets = [0, 32], sizes = [16, 32], strides = [1, 1]} : vector<16x96xf32> to vector<16x32xf32>
    %317 = arith.addf %315, %316 : vector<16x32xf32>
    %318 = arith.negf %317 : vector<16x32xf32>
    %319 = math.exp %318 : vector<16x32xf32>
    %cst_87 = arith.constant 1.000000e+00 : f32
    %320 = vector.broadcast %cst_87 : f32 to vector<16x32xf32>
    %321 = arith.addf %320, %319 : vector<16x32xf32>
    %322 = arith.divf %320, %321 : vector<16x32xf32>
    %323 = vector.extract_strided_slice %304 {offsets = [0, 64], sizes = [16, 32], strides = [1, 1]} : vector<16x96xf32> to vector<16x32xf32>
    %324 = vector.extract_strided_slice %306 {offsets = [0, 64], sizes = [16, 32], strides = [1, 1]} : vector<16x96xf32> to vector<16x32xf32>
    %325 = arith.mulf %314, %324 : vector<16x32xf32>
    %326 = arith.addf %323, %325 : vector<16x32xf32>
    %327 = math.tanh %326 : vector<16x32xf32>
    %cst_88 = arith.constant 1.000000e+00 : f32
    %328 = vector.broadcast %cst_88 : f32 to vector<16x32xf32>
    %329 = arith.subf %328, %322 : vector<16x32xf32>
    %330 = arith.mulf %329, %327 : vector<16x32xf32>
    %331 = arith.mulf %322, %263 : vector<16x32xf32>
    %332 = arith.addf %330, %331 : vector<16x32xf32>
    %333 = arith.index_cast %302 : i32 to index
    %c0_89 = arith.constant 0 : index
    %334 = vector.load %arg16[%333, %c0_89] : memref<256x96xf32, #tpu.memory_space<vmem>>, vector<16x96xf32>
    %cst_90 = arith.constant dense<0.000000e+00> : vector<16x96xf32>
    %335 = tpu.matmul %293, %14, %cst_90 {dimension_numbers = #tpu.dot_dimension_numbers<[1], [0], [0], [1], [0, 0, 1, 1], [], []>} : vector<16x32xf32>, vector<32x96xf32>, vector<16x96xf32> -> vector<16x96xf32>
    %336 = arith.addf %335, %20 : vector<16x96xf32>
    %337 = vector.extract_strided_slice %334 {offsets = [0, 0], sizes = [16, 32], strides = [1, 1]} : vector<16x96xf32> to vector<16x32xf32>
    %338 = vector.extract_strided_slice %336 {offsets = [0, 0], sizes = [16, 32], strides = [1, 1]} : vector<16x96xf32> to vector<16x32xf32>
    %339 = arith.addf %337, %338 : vector<16x32xf32>
    %340 = arith.negf %339 : vector<16x32xf32>
    %341 = math.exp %340 : vector<16x32xf32>
    %cst_91 = arith.constant 1.000000e+00 : f32
    %342 = vector.broadcast %cst_91 : f32 to vector<16x32xf32>
    %343 = arith.addf %342, %341 : vector<16x32xf32>
    %344 = arith.divf %342, %343 : vector<16x32xf32>
    %345 = vector.extract_strided_slice %334 {offsets = [0, 32], sizes = [16, 32], strides = [1, 1]} : vector<16x96xf32> to vector<16x32xf32>
    %346 = vector.extract_strided_slice %336 {offsets = [0, 32], sizes = [16, 32], strides = [1, 1]} : vector<16x96xf32> to vector<16x32xf32>
    %347 = arith.addf %345, %346 : vector<16x32xf32>
    %348 = arith.negf %347 : vector<16x32xf32>
    %349 = math.exp %348 : vector<16x32xf32>
    %cst_92 = arith.constant 1.000000e+00 : f32
    %350 = vector.broadcast %cst_92 : f32 to vector<16x32xf32>
    %351 = arith.addf %350, %349 : vector<16x32xf32>
    %352 = arith.divf %350, %351 : vector<16x32xf32>
    %353 = vector.extract_strided_slice %334 {offsets = [0, 64], sizes = [16, 32], strides = [1, 1]} : vector<16x96xf32> to vector<16x32xf32>
    %354 = vector.extract_strided_slice %336 {offsets = [0, 64], sizes = [16, 32], strides = [1, 1]} : vector<16x96xf32> to vector<16x32xf32>
    %355 = arith.mulf %344, %354 : vector<16x32xf32>
    %356 = arith.addf %353, %355 : vector<16x32xf32>
    %357 = math.tanh %356 : vector<16x32xf32>
    %cst_93 = arith.constant 1.000000e+00 : f32
    %358 = vector.broadcast %cst_93 : f32 to vector<16x32xf32>
    %359 = arith.subf %358, %352 : vector<16x32xf32>
    %360 = arith.mulf %359, %357 : vector<16x32xf32>
    %361 = arith.mulf %352, %293 : vector<16x32xf32>
    %362 = arith.addf %360, %361 : vector<16x32xf32>
    %363 = arith.index_cast %299 : i32 to index
    %c0_94 = arith.constant 0 : index
    %364 = vector.load %arg17[%363, %c0_94] : memref<256x32xf32, #tpu.memory_space<vmem>>, vector<16x32xf32>
    tpu.vector_store %arg17[%363, %c0_94], %332 {strides = array<i32>} : memref<256x32xf32, #tpu.memory_space<vmem>>, vector<16x32xf32>,
    %365 = arith.index_cast %302 : i32 to index
    %c0_95 = arith.constant 0 : index
    %366 = vector.load %arg18[%365, %c0_95] : memref<256x32xf32, #tpu.memory_space<vmem>>, vector<16x32xf32>
    tpu.vector_store %arg18[%365, %c0_95], %362 {strides = array<i32>} : memref<256x32xf32, #tpu.memory_space<vmem>>, vector<16x32xf32>,
    %c5_i32 = arith.constant 5 : i32
    %c16_i32_96 = arith.constant 16 : i32
    %367 = arith.muli %c5_i32, %c16_i32_96 : i32
    %368 = tpu.assume_multiple %367, 16 : i32
    %c15_i32_97 = arith.constant 15 : i32
    %369 = arith.subi %c15_i32_97, %c5_i32 : i32
    %c16_i32_98 = arith.constant 16 : i32
    %370 = arith.muli %369, %c16_i32_98 : i32
    %371 = tpu.assume_multiple %370, 16 : i32
    %372 = arith.index_cast %368 : i32 to index
    %c0_99 = arith.constant 0 : index
    %373 = vector.load %arg15[%372, %c0_99] : memref<256x96xf32, #tpu.memory_space<vmem>>, vector<16x96xf32>
    %cst_100 = arith.constant dense<0.000000e+00> : vector<16x96xf32>
    %374 = tpu.matmul %332, %13, %cst_100 {dimension_numbers = #tpu.dot_dimension_numbers<[1], [0], [0], [1], [0, 0, 1, 1], [], []>} : vector<16x32xf32>, vector<32x96xf32>, vector<16x96xf32> -> vector<16x96xf32>
    %375 = arith.addf %374, %17 : vector<16x96xf32>
    %376 = vector.extract_strided_slice %373 {offsets = [0, 0], sizes = [16, 32], strides = [1, 1]} : vector<16x96xf32> to vector<16x32xf32>
    %377 = vector.extract_strided_slice %375 {offsets = [0, 0], sizes = [16, 32], strides = [1, 1]} : vector<16x96xf32> to vector<16x32xf32>
    %378 = arith.addf %376, %377 : vector<16x32xf32>
    %379 = arith.negf %378 : vector<16x32xf32>
    %380 = math.exp %379 : vector<16x32xf32>
    %cst_101 = arith.constant 1.000000e+00 : f32
    %381 = vector.broadcast %cst_101 : f32 to vector<16x32xf32>
    %382 = arith.addf %381, %380 : vector<16x32xf32>
    %383 = arith.divf %381, %382 : vector<16x32xf32>
    %384 = vector.extract_strided_slice %373 {offsets = [0, 32], sizes = [16, 32], strides = [1, 1]} : vector<16x96xf32> to vector<16x32xf32>
    %385 = vector.extract_strided_slice %375 {offsets = [0, 32], sizes = [16, 32], strides = [1, 1]} : vector<16x96xf32> to vector<16x32xf32>
    %386 = arith.addf %384, %385 : vector<16x32xf32>
    %387 = arith.negf %386 : vector<16x32xf32>
    %388 = math.exp %387 : vector<16x32xf32>
    %cst_102 = arith.constant 1.000000e+00 : f32
    %389 = vector.broadcast %cst_102 : f32 to vector<16x32xf32>
    %390 = arith.addf %389, %388 : vector<16x32xf32>
    %391 = arith.divf %389, %390 : vector<16x32xf32>
    %392 = vector.extract_strided_slice %373 {offsets = [0, 64], sizes = [16, 32], strides = [1, 1]} : vector<16x96xf32> to vector<16x32xf32>
    %393 = vector.extract_strided_slice %375 {offsets = [0, 64], sizes = [16, 32], strides = [1, 1]} : vector<16x96xf32> to vector<16x32xf32>
    %394 = arith.mulf %383, %393 : vector<16x32xf32>
    %395 = arith.addf %392, %394 : vector<16x32xf32>
    %396 = math.tanh %395 : vector<16x32xf32>
    %cst_103 = arith.constant 1.000000e+00 : f32
    %397 = vector.broadcast %cst_103 : f32 to vector<16x32xf32>
    %398 = arith.subf %397, %391 : vector<16x32xf32>
    %399 = arith.mulf %398, %396 : vector<16x32xf32>
    %400 = arith.mulf %391, %332 : vector<16x32xf32>
    %401 = arith.addf %399, %400 : vector<16x32xf32>
    %402 = arith.index_cast %371 : i32 to index
    %c0_104 = arith.constant 0 : index
    %403 = vector.load %arg16[%402, %c0_104] : memref<256x96xf32, #tpu.memory_space<vmem>>, vector<16x96xf32>
    %cst_105 = arith.constant dense<0.000000e+00> : vector<16x96xf32>
    %404 = tpu.matmul %362, %14, %cst_105 {dimension_numbers = #tpu.dot_dimension_numbers<[1], [0], [0], [1], [0, 0, 1, 1], [], []>} : vector<16x32xf32>, vector<32x96xf32>, vector<16x96xf32> -> vector<16x96xf32>
    %405 = arith.addf %404, %20 : vector<16x96xf32>
    %406 = vector.extract_strided_slice %403 {offsets = [0, 0], sizes = [16, 32], strides = [1, 1]} : vector<16x96xf32> to vector<16x32xf32>
    %407 = vector.extract_strided_slice %405 {offsets = [0, 0], sizes = [16, 32], strides = [1, 1]} : vector<16x96xf32> to vector<16x32xf32>
    %408 = arith.addf %406, %407 : vector<16x32xf32>
    %409 = arith.negf %408 : vector<16x32xf32>
    %410 = math.exp %409 : vector<16x32xf32>
    %cst_106 = arith.constant 1.000000e+00 : f32
    %411 = vector.broadcast %cst_106 : f32 to vector<16x32xf32>
    %412 = arith.addf %411, %410 : vector<16x32xf32>
    %413 = arith.divf %411, %412 : vector<16x32xf32>
    %414 = vector.extract_strided_slice %403 {offsets = [0, 32], sizes = [16, 32], strides = [1, 1]} : vector<16x96xf32> to vector<16x32xf32>
    %415 = vector.extract_strided_slice %405 {offsets = [0, 32], sizes = [16, 32], strides = [1, 1]} : vector<16x96xf32> to vector<16x32xf32>
    %416 = arith.addf %414, %415 : vector<16x32xf32>
    %417 = arith.negf %416 : vector<16x32xf32>
    %418 = math.exp %417 : vector<16x32xf32>
    %cst_107 = arith.constant 1.000000e+00 : f32
    %419 = vector.broadcast %cst_107 : f32 to vector<16x32xf32>
    %420 = arith.addf %419, %418 : vector<16x32xf32>
    %421 = arith.divf %419, %420 : vector<16x32xf32>
    %422 = vector.extract_strided_slice %403 {offsets = [0, 64], sizes = [16, 32], strides = [1, 1]} : vector<16x96xf32> to vector<16x32xf32>
    %423 = vector.extract_strided_slice %405 {offsets = [0, 64], sizes = [16, 32], strides = [1, 1]} : vector<16x96xf32> to vector<16x32xf32>
    %424 = arith.mulf %413, %423 : vector<16x32xf32>
    %425 = arith.addf %422, %424 : vector<16x32xf32>
    %426 = math.tanh %425 : vector<16x32xf32>
    %cst_108 = arith.constant 1.000000e+00 : f32
    %427 = vector.broadcast %cst_108 : f32 to vector<16x32xf32>
    %428 = arith.subf %427, %421 : vector<16x32xf32>
    %429 = arith.mulf %428, %426 : vector<16x32xf32>
    %430 = arith.mulf %421, %362 : vector<16x32xf32>
    %431 = arith.addf %429, %430 : vector<16x32xf32>
    %432 = arith.index_cast %368 : i32 to index
    %c0_109 = arith.constant 0 : index
    %433 = vector.load %arg17[%432, %c0_109] : memref<256x32xf32, #tpu.memory_space<vmem>>, vector<16x32xf32>
    tpu.vector_store %arg17[%432, %c0_109], %401 {strides = array<i32>} : memref<256x32xf32, #tpu.memory_space<vmem>>, vector<16x32xf32>,
    %434 = arith.index_cast %371 : i32 to index
    %c0_110 = arith.constant 0 : index
    %435 = vector.load %arg18[%434, %c0_110] : memref<256x32xf32, #tpu.memory_space<vmem>>, vector<16x32xf32>
    tpu.vector_store %arg18[%434, %c0_110], %431 {strides = array<i32>} : memref<256x32xf32, #tpu.memory_space<vmem>>, vector<16x32xf32>,
    %c6_i32 = arith.constant 6 : i32
    %c16_i32_111 = arith.constant 16 : i32
    %436 = arith.muli %c6_i32, %c16_i32_111 : i32
    %437 = tpu.assume_multiple %436, 16 : i32
    %c15_i32_112 = arith.constant 15 : i32
    %438 = arith.subi %c15_i32_112, %c6_i32 : i32
    %c16_i32_113 = arith.constant 16 : i32
    %439 = arith.muli %438, %c16_i32_113 : i32
    %440 = tpu.assume_multiple %439, 16 : i32
    %441 = arith.index_cast %437 : i32 to index
    %c0_114 = arith.constant 0 : index
    %442 = vector.load %arg15[%441, %c0_114] : memref<256x96xf32, #tpu.memory_space<vmem>>, vector<16x96xf32>
    %cst_115 = arith.constant dense<0.000000e+00> : vector<16x96xf32>
    %443 = tpu.matmul %401, %13, %cst_115 {dimension_numbers = #tpu.dot_dimension_numbers<[1], [0], [0], [1], [0, 0, 1, 1], [], []>} : vector<16x32xf32>, vector<32x96xf32>, vector<16x96xf32> -> vector<16x96xf32>
    %444 = arith.addf %443, %17 : vector<16x96xf32>
    %445 = vector.extract_strided_slice %442 {offsets = [0, 0], sizes = [16, 32], strides = [1, 1]} : vector<16x96xf32> to vector<16x32xf32>
    %446 = vector.extract_strided_slice %444 {offsets = [0, 0], sizes = [16, 32], strides = [1, 1]} : vector<16x96xf32> to vector<16x32xf32>
    %447 = arith.addf %445, %446 : vector<16x32xf32>
    %448 = arith.negf %447 : vector<16x32xf32>
    %449 = math.exp %448 : vector<16x32xf32>
    %cst_116 = arith.constant 1.000000e+00 : f32
    %450 = vector.broadcast %cst_116 : f32 to vector<16x32xf32>
    %451 = arith.addf %450, %449 : vector<16x32xf32>
    %452 = arith.divf %450, %451 : vector<16x32xf32>
    %453 = vector.extract_strided_slice %442 {offsets = [0, 32], sizes = [16, 32], strides = [1, 1]} : vector<16x96xf32> to vector<16x32xf32>
    %454 = vector.extract_strided_slice %444 {offsets = [0, 32], sizes = [16, 32], strides = [1, 1]} : vector<16x96xf32> to vector<16x32xf32>
    %455 = arith.addf %453, %454 : vector<16x32xf32>
    %456 = arith.negf %455 : vector<16x32xf32>
    %457 = math.exp %456 : vector<16x32xf32>
    %cst_117 = arith.constant 1.000000e+00 : f32
    %458 = vector.broadcast %cst_117 : f32 to vector<16x32xf32>
    %459 = arith.addf %458, %457 : vector<16x32xf32>
    %460 = arith.divf %458, %459 : vector<16x32xf32>
    %461 = vector.extract_strided_slice %442 {offsets = [0, 64], sizes = [16, 32], strides = [1, 1]} : vector<16x96xf32> to vector<16x32xf32>
    %462 = vector.extract_strided_slice %444 {offsets = [0, 64], sizes = [16, 32], strides = [1, 1]} : vector<16x96xf32> to vector<16x32xf32>
    %463 = arith.mulf %452, %462 : vector<16x32xf32>
    %464 = arith.addf %461, %463 : vector<16x32xf32>
    %465 = math.tanh %464 : vector<16x32xf32>
    %cst_118 = arith.constant 1.000000e+00 : f32
    %466 = vector.broadcast %cst_118 : f32 to vector<16x32xf32>
    %467 = arith.subf %466, %460 : vector<16x32xf32>
    %468 = arith.mulf %467, %465 : vector<16x32xf32>
    %469 = arith.mulf %460, %401 : vector<16x32xf32>
    %470 = arith.addf %468, %469 : vector<16x32xf32>
    %471 = arith.index_cast %440 : i32 to index
    %c0_119 = arith.constant 0 : index
    %472 = vector.load %arg16[%471, %c0_119] : memref<256x96xf32, #tpu.memory_space<vmem>>, vector<16x96xf32>
    %cst_120 = arith.constant dense<0.000000e+00> : vector<16x96xf32>
    %473 = tpu.matmul %431, %14, %cst_120 {dimension_numbers = #tpu.dot_dimension_numbers<[1], [0], [0], [1], [0, 0, 1, 1], [], []>} : vector<16x32xf32>, vector<32x96xf32>, vector<16x96xf32> -> vector<16x96xf32>
    %474 = arith.addf %473, %20 : vector<16x96xf32>
    %475 = vector.extract_strided_slice %472 {offsets = [0, 0], sizes = [16, 32], strides = [1, 1]} : vector<16x96xf32> to vector<16x32xf32>
    %476 = vector.extract_strided_slice %474 {offsets = [0, 0], sizes = [16, 32], strides = [1, 1]} : vector<16x96xf32> to vector<16x32xf32>
    %477 = arith.addf %475, %476 : vector<16x32xf32>
    %478 = arith.negf %477 : vector<16x32xf32>
    %479 = math.exp %478 : vector<16x32xf32>
    %cst_121 = arith.constant 1.000000e+00 : f32
    %480 = vector.broadcast %cst_121 : f32 to vector<16x32xf32>
    %481 = arith.addf %480, %479 : vector<16x32xf32>
    %482 = arith.divf %480, %481 : vector<16x32xf32>
    %483 = vector.extract_strided_slice %472 {offsets = [0, 32], sizes = [16, 32], strides = [1, 1]} : vector<16x96xf32> to vector<16x32xf32>
    %484 = vector.extract_strided_slice %474 {offsets = [0, 32], sizes = [16, 32], strides = [1, 1]} : vector<16x96xf32> to vector<16x32xf32>
    %485 = arith.addf %483, %484 : vector<16x32xf32>
    %486 = arith.negf %485 : vector<16x32xf32>
    %487 = math.exp %486 : vector<16x32xf32>
    %cst_122 = arith.constant 1.000000e+00 : f32
    %488 = vector.broadcast %cst_122 : f32 to vector<16x32xf32>
    %489 = arith.addf %488, %487 : vector<16x32xf32>
    %490 = arith.divf %488, %489 : vector<16x32xf32>
    %491 = vector.extract_strided_slice %472 {offsets = [0, 64], sizes = [16, 32], strides = [1, 1]} : vector<16x96xf32> to vector<16x32xf32>
    %492 = vector.extract_strided_slice %474 {offsets = [0, 64], sizes = [16, 32], strides = [1, 1]} : vector<16x96xf32> to vector<16x32xf32>
    %493 = arith.mulf %482, %492 : vector<16x32xf32>
    %494 = arith.addf %491, %493 : vector<16x32xf32>
    %495 = math.tanh %494 : vector<16x32xf32>
    %cst_123 = arith.constant 1.000000e+00 : f32
    %496 = vector.broadcast %cst_123 : f32 to vector<16x32xf32>
    %497 = arith.subf %496, %490 : vector<16x32xf32>
    %498 = arith.mulf %497, %495 : vector<16x32xf32>
    %499 = arith.mulf %490, %431 : vector<16x32xf32>
    %500 = arith.addf %498, %499 : vector<16x32xf32>
    %501 = arith.index_cast %437 : i32 to index
    %c0_124 = arith.constant 0 : index
    %502 = vector.load %arg17[%501, %c0_124] : memref<256x32xf32, #tpu.memory_space<vmem>>, vector<16x32xf32>
    tpu.vector_store %arg17[%501, %c0_124], %470 {strides = array<i32>} : memref<256x32xf32, #tpu.memory_space<vmem>>, vector<16x32xf32>,
    %503 = arith.index_cast %440 : i32 to index
    %c0_125 = arith.constant 0 : index
    %504 = vector.load %arg18[%503, %c0_125] : memref<256x32xf32, #tpu.memory_space<vmem>>, vector<16x32xf32>
    tpu.vector_store %arg18[%503, %c0_125], %500 {strides = array<i32>} : memref<256x32xf32, #tpu.memory_space<vmem>>, vector<16x32xf32>,
    %c7_i32 = arith.constant 7 : i32
    %c16_i32_126 = arith.constant 16 : i32
    %505 = arith.muli %c7_i32, %c16_i32_126 : i32
    %506 = tpu.assume_multiple %505, 16 : i32
    %c15_i32_127 = arith.constant 15 : i32
    %507 = arith.subi %c15_i32_127, %c7_i32 : i32
    %c16_i32_128 = arith.constant 16 : i32
    %508 = arith.muli %507, %c16_i32_128 : i32
    %509 = tpu.assume_multiple %508, 16 : i32
    %510 = arith.index_cast %506 : i32 to index
    %c0_129 = arith.constant 0 : index
    %511 = vector.load %arg15[%510, %c0_129] : memref<256x96xf32, #tpu.memory_space<vmem>>, vector<16x96xf32>
    %cst_130 = arith.constant dense<0.000000e+00> : vector<16x96xf32>
    %512 = tpu.matmul %470, %13, %cst_130 {dimension_numbers = #tpu.dot_dimension_numbers<[1], [0], [0], [1], [0, 0, 1, 1], [], []>} : vector<16x32xf32>, vector<32x96xf32>, vector<16x96xf32> -> vector<16x96xf32>
    %513 = arith.addf %512, %17 : vector<16x96xf32>
    %514 = vector.extract_strided_slice %511 {offsets = [0, 0], sizes = [16, 32], strides = [1, 1]} : vector<16x96xf32> to vector<16x32xf32>
    %515 = vector.extract_strided_slice %513 {offsets = [0, 0], sizes = [16, 32], strides = [1, 1]} : vector<16x96xf32> to vector<16x32xf32>
    %516 = arith.addf %514, %515 : vector<16x32xf32>
    %517 = arith.negf %516 : vector<16x32xf32>
    %518 = math.exp %517 : vector<16x32xf32>
    %cst_131 = arith.constant 1.000000e+00 : f32
    %519 = vector.broadcast %cst_131 : f32 to vector<16x32xf32>
    %520 = arith.addf %519, %518 : vector<16x32xf32>
    %521 = arith.divf %519, %520 : vector<16x32xf32>
    %522 = vector.extract_strided_slice %511 {offsets = [0, 32], sizes = [16, 32], strides = [1, 1]} : vector<16x96xf32> to vector<16x32xf32>
    %523 = vector.extract_strided_slice %513 {offsets = [0, 32], sizes = [16, 32], strides = [1, 1]} : vector<16x96xf32> to vector<16x32xf32>
    %524 = arith.addf %522, %523 : vector<16x32xf32>
    %525 = arith.negf %524 : vector<16x32xf32>
    %526 = math.exp %525 : vector<16x32xf32>
    %cst_132 = arith.constant 1.000000e+00 : f32
    %527 = vector.broadcast %cst_132 : f32 to vector<16x32xf32>
    %528 = arith.addf %527, %526 : vector<16x32xf32>
    %529 = arith.divf %527, %528 : vector<16x32xf32>
    %530 = vector.extract_strided_slice %511 {offsets = [0, 64], sizes = [16, 32], strides = [1, 1]} : vector<16x96xf32> to vector<16x32xf32>
    %531 = vector.extract_strided_slice %513 {offsets = [0, 64], sizes = [16, 32], strides = [1, 1]} : vector<16x96xf32> to vector<16x32xf32>
    %532 = arith.mulf %521, %531 : vector<16x32xf32>
    %533 = arith.addf %530, %532 : vector<16x32xf32>
    %534 = math.tanh %533 : vector<16x32xf32>
    %cst_133 = arith.constant 1.000000e+00 : f32
    %535 = vector.broadcast %cst_133 : f32 to vector<16x32xf32>
    %536 = arith.subf %535, %529 : vector<16x32xf32>
    %537 = arith.mulf %536, %534 : vector<16x32xf32>
    %538 = arith.mulf %529, %470 : vector<16x32xf32>
    %539 = arith.addf %537, %538 : vector<16x32xf32>
    %540 = arith.index_cast %509 : i32 to index
    %c0_134 = arith.constant 0 : index
    %541 = vector.load %arg16[%540, %c0_134] : memref<256x96xf32, #tpu.memory_space<vmem>>, vector<16x96xf32>
    %cst_135 = arith.constant dense<0.000000e+00> : vector<16x96xf32>
    %542 = tpu.matmul %500, %14, %cst_135 {dimension_numbers = #tpu.dot_dimension_numbers<[1], [0], [0], [1], [0, 0, 1, 1], [], []>} : vector<16x32xf32>, vector<32x96xf32>, vector<16x96xf32> -> vector<16x96xf32>
    %543 = arith.addf %542, %20 : vector<16x96xf32>
    %544 = vector.extract_strided_slice %541 {offsets = [0, 0], sizes = [16, 32], strides = [1, 1]} : vector<16x96xf32> to vector<16x32xf32>
    %545 = vector.extract_strided_slice %543 {offsets = [0, 0], sizes = [16, 32], strides = [1, 1]} : vector<16x96xf32> to vector<16x32xf32>
    %546 = arith.addf %544, %545 : vector<16x32xf32>
    %547 = arith.negf %546 : vector<16x32xf32>
    %548 = math.exp %547 : vector<16x32xf32>
    %cst_136 = arith.constant 1.000000e+00 : f32
    %549 = vector.broadcast %cst_136 : f32 to vector<16x32xf32>
    %550 = arith.addf %549, %548 : vector<16x32xf32>
    %551 = arith.divf %549, %550 : vector<16x32xf32>
    %552 = vector.extract_strided_slice %541 {offsets = [0, 32], sizes = [16, 32], strides = [1, 1]} : vector<16x96xf32> to vector<16x32xf32>
    %553 = vector.extract_strided_slice %543 {offsets = [0, 32], sizes = [16, 32], strides = [1, 1]} : vector<16x96xf32> to vector<16x32xf32>
    %554 = arith.addf %552, %553 : vector<16x32xf32>
    %555 = arith.negf %554 : vector<16x32xf32>
    %556 = math.exp %555 : vector<16x32xf32>
    %cst_137 = arith.constant 1.000000e+00 : f32
    %557 = vector.broadcast %cst_137 : f32 to vector<16x32xf32>
    %558 = arith.addf %557, %556 : vector<16x32xf32>
    %559 = arith.divf %557, %558 : vector<16x32xf32>
    %560 = vector.extract_strided_slice %541 {offsets = [0, 64], sizes = [16, 32], strides = [1, 1]} : vector<16x96xf32> to vector<16x32xf32>
    %561 = vector.extract_strided_slice %543 {offsets = [0, 64], sizes = [16, 32], strides = [1, 1]} : vector<16x96xf32> to vector<16x32xf32>
    %562 = arith.mulf %551, %561 : vector<16x32xf32>
    %563 = arith.addf %560, %562 : vector<16x32xf32>
    %564 = math.tanh %563 : vector<16x32xf32>
    %cst_138 = arith.constant 1.000000e+00 : f32
    %565 = vector.broadcast %cst_138 : f32 to vector<16x32xf32>
    %566 = arith.subf %565, %559 : vector<16x32xf32>
    %567 = arith.mulf %566, %564 : vector<16x32xf32>
    %568 = arith.mulf %559, %500 : vector<16x32xf32>
    %569 = arith.addf %567, %568 : vector<16x32xf32>
    %570 = arith.index_cast %506 : i32 to index
    %c0_139 = arith.constant 0 : index
    %571 = vector.load %arg17[%570, %c0_139] : memref<256x32xf32, #tpu.memory_space<vmem>>, vector<16x32xf32>
    tpu.vector_store %arg17[%570, %c0_139], %539 {strides = array<i32>} : memref<256x32xf32, #tpu.memory_space<vmem>>, vector<16x32xf32>,
    %572 = arith.index_cast %509 : i32 to index
    %c0_140 = arith.constant 0 : index
    %573 = vector.load %arg18[%572, %c0_140] : memref<256x32xf32, #tpu.memory_space<vmem>>, vector<16x32xf32>
    tpu.vector_store %arg18[%572, %c0_140], %569 {strides = array<i32>} : memref<256x32xf32, #tpu.memory_space<vmem>>, vector<16x32xf32>,
    %c8_i32 = arith.constant 8 : i32
    %c16_i32_141 = arith.constant 16 : i32
    %574 = arith.muli %c8_i32, %c16_i32_141 : i32
    %575 = tpu.assume_multiple %574, 16 : i32
    %c15_i32_142 = arith.constant 15 : i32
    %576 = arith.subi %c15_i32_142, %c8_i32 : i32
    %c16_i32_143 = arith.constant 16 : i32
    %577 = arith.muli %576, %c16_i32_143 : i32
    %578 = tpu.assume_multiple %577, 16 : i32
    %579 = arith.index_cast %575 : i32 to index
    %c0_144 = arith.constant 0 : index
    %580 = vector.load %arg15[%579, %c0_144] : memref<256x96xf32, #tpu.memory_space<vmem>>, vector<16x96xf32>
    %cst_145 = arith.constant dense<0.000000e+00> : vector<16x96xf32>
    %581 = tpu.matmul %539, %13, %cst_145 {dimension_numbers = #tpu.dot_dimension_numbers<[1], [0], [0], [1], [0, 0, 1, 1], [], []>} : vector<16x32xf32>, vector<32x96xf32>, vector<16x96xf32> -> vector<16x96xf32>
    %582 = arith.addf %581, %17 : vector<16x96xf32>
    %583 = vector.extract_strided_slice %580 {offsets = [0, 0], sizes = [16, 32], strides = [1, 1]} : vector<16x96xf32> to vector<16x32xf32>
    %584 = vector.extract_strided_slice %582 {offsets = [0, 0], sizes = [16, 32], strides = [1, 1]} : vector<16x96xf32> to vector<16x32xf32>
    %585 = arith.addf %583, %584 : vector<16x32xf32>
    %586 = arith.negf %585 : vector<16x32xf32>
    %587 = math.exp %586 : vector<16x32xf32>
    %cst_146 = arith.constant 1.000000e+00 : f32
    %588 = vector.broadcast %cst_146 : f32 to vector<16x32xf32>
    %589 = arith.addf %588, %587 : vector<16x32xf32>
    %590 = arith.divf %588, %589 : vector<16x32xf32>
    %591 = vector.extract_strided_slice %580 {offsets = [0, 32], sizes = [16, 32], strides = [1, 1]} : vector<16x96xf32> to vector<16x32xf32>
    %592 = vector.extract_strided_slice %582 {offsets = [0, 32], sizes = [16, 32], strides = [1, 1]} : vector<16x96xf32> to vector<16x32xf32>
    %593 = arith.addf %591, %592 : vector<16x32xf32>
    %594 = arith.negf %593 : vector<16x32xf32>
    %595 = math.exp %594 : vector<16x32xf32>
    %cst_147 = arith.constant 1.000000e+00 : f32
    %596 = vector.broadcast %cst_147 : f32 to vector<16x32xf32>
    %597 = arith.addf %596, %595 : vector<16x32xf32>
    %598 = arith.divf %596, %597 : vector<16x32xf32>
    %599 = vector.extract_strided_slice %580 {offsets = [0, 64], sizes = [16, 32], strides = [1, 1]} : vector<16x96xf32> to vector<16x32xf32>
    %600 = vector.extract_strided_slice %582 {offsets = [0, 64], sizes = [16, 32], strides = [1, 1]} : vector<16x96xf32> to vector<16x32xf32>
    %601 = arith.mulf %590, %600 : vector<16x32xf32>
    %602 = arith.addf %599, %601 : vector<16x32xf32>
    %603 = math.tanh %602 : vector<16x32xf32>
    %cst_148 = arith.constant 1.000000e+00 : f32
    %604 = vector.broadcast %cst_148 : f32 to vector<16x32xf32>
    %605 = arith.subf %604, %598 : vector<16x32xf32>
    %606 = arith.mulf %605, %603 : vector<16x32xf32>
    %607 = arith.mulf %598, %539 : vector<16x32xf32>
    %608 = arith.addf %606, %607 : vector<16x32xf32>
    %609 = arith.index_cast %578 : i32 to index
    %c0_149 = arith.constant 0 : index
    %610 = vector.load %arg16[%609, %c0_149] : memref<256x96xf32, #tpu.memory_space<vmem>>, vector<16x96xf32>
    %cst_150 = arith.constant dense<0.000000e+00> : vector<16x96xf32>
    %611 = tpu.matmul %569, %14, %cst_150 {dimension_numbers = #tpu.dot_dimension_numbers<[1], [0], [0], [1], [0, 0, 1, 1], [], []>} : vector<16x32xf32>, vector<32x96xf32>, vector<16x96xf32> -> vector<16x96xf32>
    %612 = arith.addf %611, %20 : vector<16x96xf32>
    %613 = vector.extract_strided_slice %610 {offsets = [0, 0], sizes = [16, 32], strides = [1, 1]} : vector<16x96xf32> to vector<16x32xf32>
    %614 = vector.extract_strided_slice %612 {offsets = [0, 0], sizes = [16, 32], strides = [1, 1]} : vector<16x96xf32> to vector<16x32xf32>
    %615 = arith.addf %613, %614 : vector<16x32xf32>
    %616 = arith.negf %615 : vector<16x32xf32>
    %617 = math.exp %616 : vector<16x32xf32>
    %cst_151 = arith.constant 1.000000e+00 : f32
    %618 = vector.broadcast %cst_151 : f32 to vector<16x32xf32>
    %619 = arith.addf %618, %617 : vector<16x32xf32>
    %620 = arith.divf %618, %619 : vector<16x32xf32>
    %621 = vector.extract_strided_slice %610 {offsets = [0, 32], sizes = [16, 32], strides = [1, 1]} : vector<16x96xf32> to vector<16x32xf32>
    %622 = vector.extract_strided_slice %612 {offsets = [0, 32], sizes = [16, 32], strides = [1, 1]} : vector<16x96xf32> to vector<16x32xf32>
    %623 = arith.addf %621, %622 : vector<16x32xf32>
    %624 = arith.negf %623 : vector<16x32xf32>
    %625 = math.exp %624 : vector<16x32xf32>
    %cst_152 = arith.constant 1.000000e+00 : f32
    %626 = vector.broadcast %cst_152 : f32 to vector<16x32xf32>
    %627 = arith.addf %626, %625 : vector<16x32xf32>
    %628 = arith.divf %626, %627 : vector<16x32xf32>
    %629 = vector.extract_strided_slice %610 {offsets = [0, 64], sizes = [16, 32], strides = [1, 1]} : vector<16x96xf32> to vector<16x32xf32>
    %630 = vector.extract_strided_slice %612 {offsets = [0, 64], sizes = [16, 32], strides = [1, 1]} : vector<16x96xf32> to vector<16x32xf32>
    %631 = arith.mulf %620, %630 : vector<16x32xf32>
    %632 = arith.addf %629, %631 : vector<16x32xf32>
    %633 = math.tanh %632 : vector<16x32xf32>
    %cst_153 = arith.constant 1.000000e+00 : f32
    %634 = vector.broadcast %cst_153 : f32 to vector<16x32xf32>
    %635 = arith.subf %634, %628 : vector<16x32xf32>
    %636 = arith.mulf %635, %633 : vector<16x32xf32>
    %637 = arith.mulf %628, %569 : vector<16x32xf32>
    %638 = arith.addf %636, %637 : vector<16x32xf32>
    %639 = arith.index_cast %575 : i32 to index
    %c0_154 = arith.constant 0 : index
    %640 = vector.load %arg17[%639, %c0_154] : memref<256x32xf32, #tpu.memory_space<vmem>>, vector<16x32xf32>
    tpu.vector_store %arg17[%639, %c0_154], %608 {strides = array<i32>} : memref<256x32xf32, #tpu.memory_space<vmem>>, vector<16x32xf32>,
    %641 = arith.index_cast %578 : i32 to index
    %c0_155 = arith.constant 0 : index
    %642 = vector.load %arg18[%641, %c0_155] : memref<256x32xf32, #tpu.memory_space<vmem>>, vector<16x32xf32>
    tpu.vector_store %arg18[%641, %c0_155], %638 {strides = array<i32>} : memref<256x32xf32, #tpu.memory_space<vmem>>, vector<16x32xf32>,
    %c9_i32 = arith.constant 9 : i32
    %c16_i32_156 = arith.constant 16 : i32
    %643 = arith.muli %c9_i32, %c16_i32_156 : i32
    %644 = tpu.assume_multiple %643, 16 : i32
    %c15_i32_157 = arith.constant 15 : i32
    %645 = arith.subi %c15_i32_157, %c9_i32 : i32
    %c16_i32_158 = arith.constant 16 : i32
    %646 = arith.muli %645, %c16_i32_158 : i32
    %647 = tpu.assume_multiple %646, 16 : i32
    %648 = arith.index_cast %644 : i32 to index
    %c0_159 = arith.constant 0 : index
    %649 = vector.load %arg15[%648, %c0_159] : memref<256x96xf32, #tpu.memory_space<vmem>>, vector<16x96xf32>
    %cst_160 = arith.constant dense<0.000000e+00> : vector<16x96xf32>
    %650 = tpu.matmul %608, %13, %cst_160 {dimension_numbers = #tpu.dot_dimension_numbers<[1], [0], [0], [1], [0, 0, 1, 1], [], []>} : vector<16x32xf32>, vector<32x96xf32>, vector<16x96xf32> -> vector<16x96xf32>
    %651 = arith.addf %650, %17 : vector<16x96xf32>
    %652 = vector.extract_strided_slice %649 {offsets = [0, 0], sizes = [16, 32], strides = [1, 1]} : vector<16x96xf32> to vector<16x32xf32>
    %653 = vector.extract_strided_slice %651 {offsets = [0, 0], sizes = [16, 32], strides = [1, 1]} : vector<16x96xf32> to vector<16x32xf32>
    %654 = arith.addf %652, %653 : vector<16x32xf32>
    %655 = arith.negf %654 : vector<16x32xf32>
    %656 = math.exp %655 : vector<16x32xf32>
    %cst_161 = arith.constant 1.000000e+00 : f32
    %657 = vector.broadcast %cst_161 : f32 to vector<16x32xf32>
    %658 = arith.addf %657, %656 : vector<16x32xf32>
    %659 = arith.divf %657, %658 : vector<16x32xf32>
    %660 = vector.extract_strided_slice %649 {offsets = [0, 32], sizes = [16, 32], strides = [1, 1]} : vector<16x96xf32> to vector<16x32xf32>
    %661 = vector.extract_strided_slice %651 {offsets = [0, 32], sizes = [16, 32], strides = [1, 1]} : vector<16x96xf32> to vector<16x32xf32>
    %662 = arith.addf %660, %661 : vector<16x32xf32>
    %663 = arith.negf %662 : vector<16x32xf32>
    %664 = math.exp %663 : vector<16x32xf32>
    %cst_162 = arith.constant 1.000000e+00 : f32
    %665 = vector.broadcast %cst_162 : f32 to vector<16x32xf32>
    %666 = arith.addf %665, %664 : vector<16x32xf32>
    %667 = arith.divf %665, %666 : vector<16x32xf32>
    %668 = vector.extract_strided_slice %649 {offsets = [0, 64], sizes = [16, 32], strides = [1, 1]} : vector<16x96xf32> to vector<16x32xf32>
    %669 = vector.extract_strided_slice %651 {offsets = [0, 64], sizes = [16, 32], strides = [1, 1]} : vector<16x96xf32> to vector<16x32xf32>
    %670 = arith.mulf %659, %669 : vector<16x32xf32>
    %671 = arith.addf %668, %670 : vector<16x32xf32>
    %672 = math.tanh %671 : vector<16x32xf32>
    %cst_163 = arith.constant 1.000000e+00 : f32
    %673 = vector.broadcast %cst_163 : f32 to vector<16x32xf32>
    %674 = arith.subf %673, %667 : vector<16x32xf32>
    %675 = arith.mulf %674, %672 : vector<16x32xf32>
    %676 = arith.mulf %667, %608 : vector<16x32xf32>
    %677 = arith.addf %675, %676 : vector<16x32xf32>
    %678 = arith.index_cast %647 : i32 to index
    %c0_164 = arith.constant 0 : index
    %679 = vector.load %arg16[%678, %c0_164] : memref<256x96xf32, #tpu.memory_space<vmem>>, vector<16x96xf32>
    %cst_165 = arith.constant dense<0.000000e+00> : vector<16x96xf32>
    %680 = tpu.matmul %638, %14, %cst_165 {dimension_numbers = #tpu.dot_dimension_numbers<[1], [0], [0], [1], [0, 0, 1, 1], [], []>} : vector<16x32xf32>, vector<32x96xf32>, vector<16x96xf32> -> vector<16x96xf32>
    %681 = arith.addf %680, %20 : vector<16x96xf32>
    %682 = vector.extract_strided_slice %679 {offsets = [0, 0], sizes = [16, 32], strides = [1, 1]} : vector<16x96xf32> to vector<16x32xf32>
    %683 = vector.extract_strided_slice %681 {offsets = [0, 0], sizes = [16, 32], strides = [1, 1]} : vector<16x96xf32> to vector<16x32xf32>
    %684 = arith.addf %682, %683 : vector<16x32xf32>
    %685 = arith.negf %684 : vector<16x32xf32>
    %686 = math.exp %685 : vector<16x32xf32>
    %cst_166 = arith.constant 1.000000e+00 : f32
    %687 = vector.broadcast %cst_166 : f32 to vector<16x32xf32>
    %688 = arith.addf %687, %686 : vector<16x32xf32>
    %689 = arith.divf %687, %688 : vector<16x32xf32>
    %690 = vector.extract_strided_slice %679 {offsets = [0, 32], sizes = [16, 32], strides = [1, 1]} : vector<16x96xf32> to vector<16x32xf32>
    %691 = vector.extract_strided_slice %681 {offsets = [0, 32], sizes = [16, 32], strides = [1, 1]} : vector<16x96xf32> to vector<16x32xf32>
    %692 = arith.addf %690, %691 : vector<16x32xf32>
    %693 = arith.negf %692 : vector<16x32xf32>
    %694 = math.exp %693 : vector<16x32xf32>
    %cst_167 = arith.constant 1.000000e+00 : f32
    %695 = vector.broadcast %cst_167 : f32 to vector<16x32xf32>
    %696 = arith.addf %695, %694 : vector<16x32xf32>
    %697 = arith.divf %695, %696 : vector<16x32xf32>
    %698 = vector.extract_strided_slice %679 {offsets = [0, 64], sizes = [16, 32], strides = [1, 1]} : vector<16x96xf32> to vector<16x32xf32>
    %699 = vector.extract_strided_slice %681 {offsets = [0, 64], sizes = [16, 32], strides = [1, 1]} : vector<16x96xf32> to vector<16x32xf32>
    %700 = arith.mulf %689, %699 : vector<16x32xf32>
    %701 = arith.addf %698, %700 : vector<16x32xf32>
    %702 = math.tanh %701 : vector<16x32xf32>
    %cst_168 = arith.constant 1.000000e+00 : f32
    %703 = vector.broadcast %cst_168 : f32 to vector<16x32xf32>
    %704 = arith.subf %703, %697 : vector<16x32xf32>
    %705 = arith.mulf %704, %702 : vector<16x32xf32>
    %706 = arith.mulf %697, %638 : vector<16x32xf32>
    %707 = arith.addf %705, %706 : vector<16x32xf32>
    %708 = arith.index_cast %644 : i32 to index
    %c0_169 = arith.constant 0 : index
    %709 = vector.load %arg17[%708, %c0_169] : memref<256x32xf32, #tpu.memory_space<vmem>>, vector<16x32xf32>
    tpu.vector_store %arg17[%708, %c0_169], %677 {strides = array<i32>} : memref<256x32xf32, #tpu.memory_space<vmem>>, vector<16x32xf32>,
    %710 = arith.index_cast %647 : i32 to index
    %c0_170 = arith.constant 0 : index
    %711 = vector.load %arg18[%710, %c0_170] : memref<256x32xf32, #tpu.memory_space<vmem>>, vector<16x32xf32>
    tpu.vector_store %arg18[%710, %c0_170], %707 {strides = array<i32>} : memref<256x32xf32, #tpu.memory_space<vmem>>, vector<16x32xf32>,
    %c10_i32 = arith.constant 10 : i32
    %c16_i32_171 = arith.constant 16 : i32
    %712 = arith.muli %c10_i32, %c16_i32_171 : i32
    %713 = tpu.assume_multiple %712, 16 : i32
    %c15_i32_172 = arith.constant 15 : i32
    %714 = arith.subi %c15_i32_172, %c10_i32 : i32
    %c16_i32_173 = arith.constant 16 : i32
    %715 = arith.muli %714, %c16_i32_173 : i32
    %716 = tpu.assume_multiple %715, 16 : i32
    %717 = arith.index_cast %713 : i32 to index
    %c0_174 = arith.constant 0 : index
    %718 = vector.load %arg15[%717, %c0_174] : memref<256x96xf32, #tpu.memory_space<vmem>>, vector<16x96xf32>
    %cst_175 = arith.constant dense<0.000000e+00> : vector<16x96xf32>
    %719 = tpu.matmul %677, %13, %cst_175 {dimension_numbers = #tpu.dot_dimension_numbers<[1], [0], [0], [1], [0, 0, 1, 1], [], []>} : vector<16x32xf32>, vector<32x96xf32>, vector<16x96xf32> -> vector<16x96xf32>
    %720 = arith.addf %719, %17 : vector<16x96xf32>
    %721 = vector.extract_strided_slice %718 {offsets = [0, 0], sizes = [16, 32], strides = [1, 1]} : vector<16x96xf32> to vector<16x32xf32>
    %722 = vector.extract_strided_slice %720 {offsets = [0, 0], sizes = [16, 32], strides = [1, 1]} : vector<16x96xf32> to vector<16x32xf32>
    %723 = arith.addf %721, %722 : vector<16x32xf32>
    %724 = arith.negf %723 : vector<16x32xf32>
    %725 = math.exp %724 : vector<16x32xf32>
    %cst_176 = arith.constant 1.000000e+00 : f32
    %726 = vector.broadcast %cst_176 : f32 to vector<16x32xf32>
    %727 = arith.addf %726, %725 : vector<16x32xf32>
    %728 = arith.divf %726, %727 : vector<16x32xf32>
    %729 = vector.extract_strided_slice %718 {offsets = [0, 32], sizes = [16, 32], strides = [1, 1]} : vector<16x96xf32> to vector<16x32xf32>
    %730 = vector.extract_strided_slice %720 {offsets = [0, 32], sizes = [16, 32], strides = [1, 1]} : vector<16x96xf32> to vector<16x32xf32>
    %731 = arith.addf %729, %730 : vector<16x32xf32>
    %732 = arith.negf %731 : vector<16x32xf32>
    %733 = math.exp %732 : vector<16x32xf32>
    %cst_177 = arith.constant 1.000000e+00 : f32
    %734 = vector.broadcast %cst_177 : f32 to vector<16x32xf32>
    %735 = arith.addf %734, %733 : vector<16x32xf32>
    %736 = arith.divf %734, %735 : vector<16x32xf32>
    %737 = vector.extract_strided_slice %718 {offsets = [0, 64], sizes = [16, 32], strides = [1, 1]} : vector<16x96xf32> to vector<16x32xf32>
    %738 = vector.extract_strided_slice %720 {offsets = [0, 64], sizes = [16, 32], strides = [1, 1]} : vector<16x96xf32> to vector<16x32xf32>
    %739 = arith.mulf %728, %738 : vector<16x32xf32>
    %740 = arith.addf %737, %739 : vector<16x32xf32>
    %741 = math.tanh %740 : vector<16x32xf32>
    %cst_178 = arith.constant 1.000000e+00 : f32
    %742 = vector.broadcast %cst_178 : f32 to vector<16x32xf32>
    %743 = arith.subf %742, %736 : vector<16x32xf32>
    %744 = arith.mulf %743, %741 : vector<16x32xf32>
    %745 = arith.mulf %736, %677 : vector<16x32xf32>
    %746 = arith.addf %744, %745 : vector<16x32xf32>
    %747 = arith.index_cast %716 : i32 to index
    %c0_179 = arith.constant 0 : index
    %748 = vector.load %arg16[%747, %c0_179] : memref<256x96xf32, #tpu.memory_space<vmem>>, vector<16x96xf32>
    %cst_180 = arith.constant dense<0.000000e+00> : vector<16x96xf32>
    %749 = tpu.matmul %707, %14, %cst_180 {dimension_numbers = #tpu.dot_dimension_numbers<[1], [0], [0], [1], [0, 0, 1, 1], [], []>} : vector<16x32xf32>, vector<32x96xf32>, vector<16x96xf32> -> vector<16x96xf32>
    %750 = arith.addf %749, %20 : vector<16x96xf32>
    %751 = vector.extract_strided_slice %748 {offsets = [0, 0], sizes = [16, 32], strides = [1, 1]} : vector<16x96xf32> to vector<16x32xf32>
    %752 = vector.extract_strided_slice %750 {offsets = [0, 0], sizes = [16, 32], strides = [1, 1]} : vector<16x96xf32> to vector<16x32xf32>
    %753 = arith.addf %751, %752 : vector<16x32xf32>
    %754 = arith.negf %753 : vector<16x32xf32>
    %755 = math.exp %754 : vector<16x32xf32>
    %cst_181 = arith.constant 1.000000e+00 : f32
    %756 = vector.broadcast %cst_181 : f32 to vector<16x32xf32>
    %757 = arith.addf %756, %755 : vector<16x32xf32>
    %758 = arith.divf %756, %757 : vector<16x32xf32>
    %759 = vector.extract_strided_slice %748 {offsets = [0, 32], sizes = [16, 32], strides = [1, 1]} : vector<16x96xf32> to vector<16x32xf32>
    %760 = vector.extract_strided_slice %750 {offsets = [0, 32], sizes = [16, 32], strides = [1, 1]} : vector<16x96xf32> to vector<16x32xf32>
    %761 = arith.addf %759, %760 : vector<16x32xf32>
    %762 = arith.negf %761 : vector<16x32xf32>
    %763 = math.exp %762 : vector<16x32xf32>
    %cst_182 = arith.constant 1.000000e+00 : f32
    %764 = vector.broadcast %cst_182 : f32 to vector<16x32xf32>
    %765 = arith.addf %764, %763 : vector<16x32xf32>
    %766 = arith.divf %764, %765 : vector<16x32xf32>
    %767 = vector.extract_strided_slice %748 {offsets = [0, 64], sizes = [16, 32], strides = [1, 1]} : vector<16x96xf32> to vector<16x32xf32>
    %768 = vector.extract_strided_slice %750 {offsets = [0, 64], sizes = [16, 32], strides = [1, 1]} : vector<16x96xf32> to vector<16x32xf32>
    %769 = arith.mulf %758, %768 : vector<16x32xf32>
    %770 = arith.addf %767, %769 : vector<16x32xf32>
    %771 = math.tanh %770 : vector<16x32xf32>
    %cst_183 = arith.constant 1.000000e+00 : f32
    %772 = vector.broadcast %cst_183 : f32 to vector<16x32xf32>
    %773 = arith.subf %772, %766 : vector<16x32xf32>
    %774 = arith.mulf %773, %771 : vector<16x32xf32>
    %775 = arith.mulf %766, %707 : vector<16x32xf32>
    %776 = arith.addf %774, %775 : vector<16x32xf32>
    %777 = arith.index_cast %713 : i32 to index
    %c0_184 = arith.constant 0 : index
    %778 = vector.load %arg17[%777, %c0_184] : memref<256x32xf32, #tpu.memory_space<vmem>>, vector<16x32xf32>
    tpu.vector_store %arg17[%777, %c0_184], %746 {strides = array<i32>} : memref<256x32xf32, #tpu.memory_space<vmem>>, vector<16x32xf32>,
    %779 = arith.index_cast %716 : i32 to index
    %c0_185 = arith.constant 0 : index
    %780 = vector.load %arg18[%779, %c0_185] : memref<256x32xf32, #tpu.memory_space<vmem>>, vector<16x32xf32>
    tpu.vector_store %arg18[%779, %c0_185], %776 {strides = array<i32>} : memref<256x32xf32, #tpu.memory_space<vmem>>, vector<16x32xf32>,
    %c11_i32 = arith.constant 11 : i32
    %c16_i32_186 = arith.constant 16 : i32
    %781 = arith.muli %c11_i32, %c16_i32_186 : i32
    %782 = tpu.assume_multiple %781, 16 : i32
    %c15_i32_187 = arith.constant 15 : i32
    %783 = arith.subi %c15_i32_187, %c11_i32 : i32
    %c16_i32_188 = arith.constant 16 : i32
    %784 = arith.muli %783, %c16_i32_188 : i32
    %785 = tpu.assume_multiple %784, 16 : i32
    %786 = arith.index_cast %782 : i32 to index
    %c0_189 = arith.constant 0 : index
    %787 = vector.load %arg15[%786, %c0_189] : memref<256x96xf32, #tpu.memory_space<vmem>>, vector<16x96xf32>
    %cst_190 = arith.constant dense<0.000000e+00> : vector<16x96xf32>
    %788 = tpu.matmul %746, %13, %cst_190 {dimension_numbers = #tpu.dot_dimension_numbers<[1], [0], [0], [1], [0, 0, 1, 1], [], []>} : vector<16x32xf32>, vector<32x96xf32>, vector<16x96xf32> -> vector<16x96xf32>
    %789 = arith.addf %788, %17 : vector<16x96xf32>
    %790 = vector.extract_strided_slice %787 {offsets = [0, 0], sizes = [16, 32], strides = [1, 1]} : vector<16x96xf32> to vector<16x32xf32>
    %791 = vector.extract_strided_slice %789 {offsets = [0, 0], sizes = [16, 32], strides = [1, 1]} : vector<16x96xf32> to vector<16x32xf32>
    %792 = arith.addf %790, %791 : vector<16x32xf32>
    %793 = arith.negf %792 : vector<16x32xf32>
    %794 = math.exp %793 : vector<16x32xf32>
    %cst_191 = arith.constant 1.000000e+00 : f32
    %795 = vector.broadcast %cst_191 : f32 to vector<16x32xf32>
    %796 = arith.addf %795, %794 : vector<16x32xf32>
    %797 = arith.divf %795, %796 : vector<16x32xf32>
    %798 = vector.extract_strided_slice %787 {offsets = [0, 32], sizes = [16, 32], strides = [1, 1]} : vector<16x96xf32> to vector<16x32xf32>
    %799 = vector.extract_strided_slice %789 {offsets = [0, 32], sizes = [16, 32], strides = [1, 1]} : vector<16x96xf32> to vector<16x32xf32>
    %800 = arith.addf %798, %799 : vector<16x32xf32>
    %801 = arith.negf %800 : vector<16x32xf32>
    %802 = math.exp %801 : vector<16x32xf32>
    %cst_192 = arith.constant 1.000000e+00 : f32
    %803 = vector.broadcast %cst_192 : f32 to vector<16x32xf32>
    %804 = arith.addf %803, %802 : vector<16x32xf32>
    %805 = arith.divf %803, %804 : vector<16x32xf32>
    %806 = vector.extract_strided_slice %787 {offsets = [0, 64], sizes = [16, 32], strides = [1, 1]} : vector<16x96xf32> to vector<16x32xf32>
    %807 = vector.extract_strided_slice %789 {offsets = [0, 64], sizes = [16, 32], strides = [1, 1]} : vector<16x96xf32> to vector<16x32xf32>
    %808 = arith.mulf %797, %807 : vector<16x32xf32>
    %809 = arith.addf %806, %808 : vector<16x32xf32>
    %810 = math.tanh %809 : vector<16x32xf32>
    %cst_193 = arith.constant 1.000000e+00 : f32
    %811 = vector.broadcast %cst_193 : f32 to vector<16x32xf32>
    %812 = arith.subf %811, %805 : vector<16x32xf32>
    %813 = arith.mulf %812, %810 : vector<16x32xf32>
    %814 = arith.mulf %805, %746 : vector<16x32xf32>
    %815 = arith.addf %813, %814 : vector<16x32xf32>
    %816 = arith.index_cast %785 : i32 to index
    %c0_194 = arith.constant 0 : index
    %817 = vector.load %arg16[%816, %c0_194] : memref<256x96xf32, #tpu.memory_space<vmem>>, vector<16x96xf32>
    %cst_195 = arith.constant dense<0.000000e+00> : vector<16x96xf32>
    %818 = tpu.matmul %776, %14, %cst_195 {dimension_numbers = #tpu.dot_dimension_numbers<[1], [0], [0], [1], [0, 0, 1, 1], [], []>} : vector<16x32xf32>, vector<32x96xf32>, vector<16x96xf32> -> vector<16x96xf32>
    %819 = arith.addf %818, %20 : vector<16x96xf32>
    %820 = vector.extract_strided_slice %817 {offsets = [0, 0], sizes = [16, 32], strides = [1, 1]} : vector<16x96xf32> to vector<16x32xf32>
    %821 = vector.extract_strided_slice %819 {offsets = [0, 0], sizes = [16, 32], strides = [1, 1]} : vector<16x96xf32> to vector<16x32xf32>
    %822 = arith.addf %820, %821 : vector<16x32xf32>
    %823 = arith.negf %822 : vector<16x32xf32>
    %824 = math.exp %823 : vector<16x32xf32>
    %cst_196 = arith.constant 1.000000e+00 : f32
    %825 = vector.broadcast %cst_196 : f32 to vector<16x32xf32>
    %826 = arith.addf %825, %824 : vector<16x32xf32>
    %827 = arith.divf %825, %826 : vector<16x32xf32>
    %828 = vector.extract_strided_slice %817 {offsets = [0, 32], sizes = [16, 32], strides = [1, 1]} : vector<16x96xf32> to vector<16x32xf32>
    %829 = vector.extract_strided_slice %819 {offsets = [0, 32], sizes = [16, 32], strides = [1, 1]} : vector<16x96xf32> to vector<16x32xf32>
    %830 = arith.addf %828, %829 : vector<16x32xf32>
    %831 = arith.negf %830 : vector<16x32xf32>
    %832 = math.exp %831 : vector<16x32xf32>
    %cst_197 = arith.constant 1.000000e+00 : f32
    %833 = vector.broadcast %cst_197 : f32 to vector<16x32xf32>
    %834 = arith.addf %833, %832 : vector<16x32xf32>
    %835 = arith.divf %833, %834 : vector<16x32xf32>
    %836 = vector.extract_strided_slice %817 {offsets = [0, 64], sizes = [16, 32], strides = [1, 1]} : vector<16x96xf32> to vector<16x32xf32>
    %837 = vector.extract_strided_slice %819 {offsets = [0, 64], sizes = [16, 32], strides = [1, 1]} : vector<16x96xf32> to vector<16x32xf32>
    %838 = arith.mulf %827, %837 : vector<16x32xf32>
    %839 = arith.addf %836, %838 : vector<16x32xf32>
    %840 = math.tanh %839 : vector<16x32xf32>
    %cst_198 = arith.constant 1.000000e+00 : f32
    %841 = vector.broadcast %cst_198 : f32 to vector<16x32xf32>
    %842 = arith.subf %841, %835 : vector<16x32xf32>
    %843 = arith.mulf %842, %840 : vector<16x32xf32>
    %844 = arith.mulf %835, %776 : vector<16x32xf32>
    %845 = arith.addf %843, %844 : vector<16x32xf32>
    %846 = arith.index_cast %782 : i32 to index
    %c0_199 = arith.constant 0 : index
    %847 = vector.load %arg17[%846, %c0_199] : memref<256x32xf32, #tpu.memory_space<vmem>>, vector<16x32xf32>
    tpu.vector_store %arg17[%846, %c0_199], %815 {strides = array<i32>} : memref<256x32xf32, #tpu.memory_space<vmem>>, vector<16x32xf32>,
    %848 = arith.index_cast %785 : i32 to index
    %c0_200 = arith.constant 0 : index
    %849 = vector.load %arg18[%848, %c0_200] : memref<256x32xf32, #tpu.memory_space<vmem>>, vector<16x32xf32>
    tpu.vector_store %arg18[%848, %c0_200], %845 {strides = array<i32>} : memref<256x32xf32, #tpu.memory_space<vmem>>, vector<16x32xf32>,
    %c12_i32 = arith.constant 12 : i32
    %c16_i32_201 = arith.constant 16 : i32
    %850 = arith.muli %c12_i32, %c16_i32_201 : i32
    %851 = tpu.assume_multiple %850, 16 : i32
    %c15_i32_202 = arith.constant 15 : i32
    %852 = arith.subi %c15_i32_202, %c12_i32 : i32
    %c16_i32_203 = arith.constant 16 : i32
    %853 = arith.muli %852, %c16_i32_203 : i32
    %854 = tpu.assume_multiple %853, 16 : i32
    %855 = arith.index_cast %851 : i32 to index
    %c0_204 = arith.constant 0 : index
    %856 = vector.load %arg15[%855, %c0_204] : memref<256x96xf32, #tpu.memory_space<vmem>>, vector<16x96xf32>
    %cst_205 = arith.constant dense<0.000000e+00> : vector<16x96xf32>
    %857 = tpu.matmul %815, %13, %cst_205 {dimension_numbers = #tpu.dot_dimension_numbers<[1], [0], [0], [1], [0, 0, 1, 1], [], []>} : vector<16x32xf32>, vector<32x96xf32>, vector<16x96xf32> -> vector<16x96xf32>
    %858 = arith.addf %857, %17 : vector<16x96xf32>
    %859 = vector.extract_strided_slice %856 {offsets = [0, 0], sizes = [16, 32], strides = [1, 1]} : vector<16x96xf32> to vector<16x32xf32>
    %860 = vector.extract_strided_slice %858 {offsets = [0, 0], sizes = [16, 32], strides = [1, 1]} : vector<16x96xf32> to vector<16x32xf32>
    %861 = arith.addf %859, %860 : vector<16x32xf32>
    %862 = arith.negf %861 : vector<16x32xf32>
    %863 = math.exp %862 : vector<16x32xf32>
    %cst_206 = arith.constant 1.000000e+00 : f32
    %864 = vector.broadcast %cst_206 : f32 to vector<16x32xf32>
    %865 = arith.addf %864, %863 : vector<16x32xf32>
    %866 = arith.divf %864, %865 : vector<16x32xf32>
    %867 = vector.extract_strided_slice %856 {offsets = [0, 32], sizes = [16, 32], strides = [1, 1]} : vector<16x96xf32> to vector<16x32xf32>
    %868 = vector.extract_strided_slice %858 {offsets = [0, 32], sizes = [16, 32], strides = [1, 1]} : vector<16x96xf32> to vector<16x32xf32>
    %869 = arith.addf %867, %868 : vector<16x32xf32>
    %870 = arith.negf %869 : vector<16x32xf32>
    %871 = math.exp %870 : vector<16x32xf32>
    %cst_207 = arith.constant 1.000000e+00 : f32
    %872 = vector.broadcast %cst_207 : f32 to vector<16x32xf32>
    %873 = arith.addf %872, %871 : vector<16x32xf32>
    %874 = arith.divf %872, %873 : vector<16x32xf32>
    %875 = vector.extract_strided_slice %856 {offsets = [0, 64], sizes = [16, 32], strides = [1, 1]} : vector<16x96xf32> to vector<16x32xf32>
    %876 = vector.extract_strided_slice %858 {offsets = [0, 64], sizes = [16, 32], strides = [1, 1]} : vector<16x96xf32> to vector<16x32xf32>
    %877 = arith.mulf %866, %876 : vector<16x32xf32>
    %878 = arith.addf %875, %877 : vector<16x32xf32>
    %879 = math.tanh %878 : vector<16x32xf32>
    %cst_208 = arith.constant 1.000000e+00 : f32
    %880 = vector.broadcast %cst_208 : f32 to vector<16x32xf32>
    %881 = arith.subf %880, %874 : vector<16x32xf32>
    %882 = arith.mulf %881, %879 : vector<16x32xf32>
    %883 = arith.mulf %874, %815 : vector<16x32xf32>
    %884 = arith.addf %882, %883 : vector<16x32xf32>
    %885 = arith.index_cast %854 : i32 to index
    %c0_209 = arith.constant 0 : index
    %886 = vector.load %arg16[%885, %c0_209] : memref<256x96xf32, #tpu.memory_space<vmem>>, vector<16x96xf32>
    %cst_210 = arith.constant dense<0.000000e+00> : vector<16x96xf32>
    %887 = tpu.matmul %845, %14, %cst_210 {dimension_numbers = #tpu.dot_dimension_numbers<[1], [0], [0], [1], [0, 0, 1, 1], [], []>} : vector<16x32xf32>, vector<32x96xf32>, vector<16x96xf32> -> vector<16x96xf32>
    %888 = arith.addf %887, %20 : vector<16x96xf32>
    %889 = vector.extract_strided_slice %886 {offsets = [0, 0], sizes = [16, 32], strides = [1, 1]} : vector<16x96xf32> to vector<16x32xf32>
    %890 = vector.extract_strided_slice %888 {offsets = [0, 0], sizes = [16, 32], strides = [1, 1]} : vector<16x96xf32> to vector<16x32xf32>
    %891 = arith.addf %889, %890 : vector<16x32xf32>
    %892 = arith.negf %891 : vector<16x32xf32>
    %893 = math.exp %892 : vector<16x32xf32>
    %cst_211 = arith.constant 1.000000e+00 : f32
    %894 = vector.broadcast %cst_211 : f32 to vector<16x32xf32>
    %895 = arith.addf %894, %893 : vector<16x32xf32>
    %896 = arith.divf %894, %895 : vector<16x32xf32>
    %897 = vector.extract_strided_slice %886 {offsets = [0, 32], sizes = [16, 32], strides = [1, 1]} : vector<16x96xf32> to vector<16x32xf32>
    %898 = vector.extract_strided_slice %888 {offsets = [0, 32], sizes = [16, 32], strides = [1, 1]} : vector<16x96xf32> to vector<16x32xf32>
    %899 = arith.addf %897, %898 : vector<16x32xf32>
    %900 = arith.negf %899 : vector<16x32xf32>
    %901 = math.exp %900 : vector<16x32xf32>
    %cst_212 = arith.constant 1.000000e+00 : f32
    %902 = vector.broadcast %cst_212 : f32 to vector<16x32xf32>
    %903 = arith.addf %902, %901 : vector<16x32xf32>
    %904 = arith.divf %902, %903 : vector<16x32xf32>
    %905 = vector.extract_strided_slice %886 {offsets = [0, 64], sizes = [16, 32], strides = [1, 1]} : vector<16x96xf32> to vector<16x32xf32>
    %906 = vector.extract_strided_slice %888 {offsets = [0, 64], sizes = [16, 32], strides = [1, 1]} : vector<16x96xf32> to vector<16x32xf32>
    %907 = arith.mulf %896, %906 : vector<16x32xf32>
    %908 = arith.addf %905, %907 : vector<16x32xf32>
    %909 = math.tanh %908 : vector<16x32xf32>
    %cst_213 = arith.constant 1.000000e+00 : f32
    %910 = vector.broadcast %cst_213 : f32 to vector<16x32xf32>
    %911 = arith.subf %910, %904 : vector<16x32xf32>
    %912 = arith.mulf %911, %909 : vector<16x32xf32>
    %913 = arith.mulf %904, %845 : vector<16x32xf32>
    %914 = arith.addf %912, %913 : vector<16x32xf32>
    %915 = arith.index_cast %851 : i32 to index
    %c0_214 = arith.constant 0 : index
    %916 = vector.load %arg17[%915, %c0_214] : memref<256x32xf32, #tpu.memory_space<vmem>>, vector<16x32xf32>
    tpu.vector_store %arg17[%915, %c0_214], %884 {strides = array<i32>} : memref<256x32xf32, #tpu.memory_space<vmem>>, vector<16x32xf32>,
    %917 = arith.index_cast %854 : i32 to index
    %c0_215 = arith.constant 0 : index
    %918 = vector.load %arg18[%917, %c0_215] : memref<256x32xf32, #tpu.memory_space<vmem>>, vector<16x32xf32>
    tpu.vector_store %arg18[%917, %c0_215], %914 {strides = array<i32>} : memref<256x32xf32, #tpu.memory_space<vmem>>, vector<16x32xf32>,
    %c13_i32 = arith.constant 13 : i32
    %c16_i32_216 = arith.constant 16 : i32
    %919 = arith.muli %c13_i32, %c16_i32_216 : i32
    %920 = tpu.assume_multiple %919, 16 : i32
    %c15_i32_217 = arith.constant 15 : i32
    %921 = arith.subi %c15_i32_217, %c13_i32 : i32
    %c16_i32_218 = arith.constant 16 : i32
    %922 = arith.muli %921, %c16_i32_218 : i32
    %923 = tpu.assume_multiple %922, 16 : i32
    %924 = arith.index_cast %920 : i32 to index
    %c0_219 = arith.constant 0 : index
    %925 = vector.load %arg15[%924, %c0_219] : memref<256x96xf32, #tpu.memory_space<vmem>>, vector<16x96xf32>
    %cst_220 = arith.constant dense<0.000000e+00> : vector<16x96xf32>
    %926 = tpu.matmul %884, %13, %cst_220 {dimension_numbers = #tpu.dot_dimension_numbers<[1], [0], [0], [1], [0, 0, 1, 1], [], []>} : vector<16x32xf32>, vector<32x96xf32>, vector<16x96xf32> -> vector<16x96xf32>
    %927 = arith.addf %926, %17 : vector<16x96xf32>
    %928 = vector.extract_strided_slice %925 {offsets = [0, 0], sizes = [16, 32], strides = [1, 1]} : vector<16x96xf32> to vector<16x32xf32>
    %929 = vector.extract_strided_slice %927 {offsets = [0, 0], sizes = [16, 32], strides = [1, 1]} : vector<16x96xf32> to vector<16x32xf32>
    %930 = arith.addf %928, %929 : vector<16x32xf32>
    %931 = arith.negf %930 : vector<16x32xf32>
    %932 = math.exp %931 : vector<16x32xf32>
    %cst_221 = arith.constant 1.000000e+00 : f32
    %933 = vector.broadcast %cst_221 : f32 to vector<16x32xf32>
    %934 = arith.addf %933, %932 : vector<16x32xf32>
    %935 = arith.divf %933, %934 : vector<16x32xf32>
    %936 = vector.extract_strided_slice %925 {offsets = [0, 32], sizes = [16, 32], strides = [1, 1]} : vector<16x96xf32> to vector<16x32xf32>
    %937 = vector.extract_strided_slice %927 {offsets = [0, 32], sizes = [16, 32], strides = [1, 1]} : vector<16x96xf32> to vector<16x32xf32>
    %938 = arith.addf %936, %937 : vector<16x32xf32>
    %939 = arith.negf %938 : vector<16x32xf32>
    %940 = math.exp %939 : vector<16x32xf32>
    %cst_222 = arith.constant 1.000000e+00 : f32
    %941 = vector.broadcast %cst_222 : f32 to vector<16x32xf32>
    %942 = arith.addf %941, %940 : vector<16x32xf32>
    %943 = arith.divf %941, %942 : vector<16x32xf32>
    %944 = vector.extract_strided_slice %925 {offsets = [0, 64], sizes = [16, 32], strides = [1, 1]} : vector<16x96xf32> to vector<16x32xf32>
    %945 = vector.extract_strided_slice %927 {offsets = [0, 64], sizes = [16, 32], strides = [1, 1]} : vector<16x96xf32> to vector<16x32xf32>
    %946 = arith.mulf %935, %945 : vector<16x32xf32>
    %947 = arith.addf %944, %946 : vector<16x32xf32>
    %948 = math.tanh %947 : vector<16x32xf32>
    %cst_223 = arith.constant 1.000000e+00 : f32
    %949 = vector.broadcast %cst_223 : f32 to vector<16x32xf32>
    %950 = arith.subf %949, %943 : vector<16x32xf32>
    %951 = arith.mulf %950, %948 : vector<16x32xf32>
    %952 = arith.mulf %943, %884 : vector<16x32xf32>
    %953 = arith.addf %951, %952 : vector<16x32xf32>
    %954 = arith.index_cast %923 : i32 to index
    %c0_224 = arith.constant 0 : index
    %955 = vector.load %arg16[%954, %c0_224] : memref<256x96xf32, #tpu.memory_space<vmem>>, vector<16x96xf32>
    %cst_225 = arith.constant dense<0.000000e+00> : vector<16x96xf32>
    %956 = tpu.matmul %914, %14, %cst_225 {dimension_numbers = #tpu.dot_dimension_numbers<[1], [0], [0], [1], [0, 0, 1, 1], [], []>} : vector<16x32xf32>, vector<32x96xf32>, vector<16x96xf32> -> vector<16x96xf32>
    %957 = arith.addf %956, %20 : vector<16x96xf32>
    %958 = vector.extract_strided_slice %955 {offsets = [0, 0], sizes = [16, 32], strides = [1, 1]} : vector<16x96xf32> to vector<16x32xf32>
    %959 = vector.extract_strided_slice %957 {offsets = [0, 0], sizes = [16, 32], strides = [1, 1]} : vector<16x96xf32> to vector<16x32xf32>
    %960 = arith.addf %958, %959 : vector<16x32xf32>
    %961 = arith.negf %960 : vector<16x32xf32>
    %962 = math.exp %961 : vector<16x32xf32>
    %cst_226 = arith.constant 1.000000e+00 : f32
    %963 = vector.broadcast %cst_226 : f32 to vector<16x32xf32>
    %964 = arith.addf %963, %962 : vector<16x32xf32>
    %965 = arith.divf %963, %964 : vector<16x32xf32>
    %966 = vector.extract_strided_slice %955 {offsets = [0, 32], sizes = [16, 32], strides = [1, 1]} : vector<16x96xf32> to vector<16x32xf32>
    %967 = vector.extract_strided_slice %957 {offsets = [0, 32], sizes = [16, 32], strides = [1, 1]} : vector<16x96xf32> to vector<16x32xf32>
    %968 = arith.addf %966, %967 : vector<16x32xf32>
    %969 = arith.negf %968 : vector<16x32xf32>
    %970 = math.exp %969 : vector<16x32xf32>
    %cst_227 = arith.constant 1.000000e+00 : f32
    %971 = vector.broadcast %cst_227 : f32 to vector<16x32xf32>
    %972 = arith.addf %971, %970 : vector<16x32xf32>
    %973 = arith.divf %971, %972 : vector<16x32xf32>
    %974 = vector.extract_strided_slice %955 {offsets = [0, 64], sizes = [16, 32], strides = [1, 1]} : vector<16x96xf32> to vector<16x32xf32>
    %975 = vector.extract_strided_slice %957 {offsets = [0, 64], sizes = [16, 32], strides = [1, 1]} : vector<16x96xf32> to vector<16x32xf32>
    %976 = arith.mulf %965, %975 : vector<16x32xf32>
    %977 = arith.addf %974, %976 : vector<16x32xf32>
    %978 = math.tanh %977 : vector<16x32xf32>
    %cst_228 = arith.constant 1.000000e+00 : f32
    %979 = vector.broadcast %cst_228 : f32 to vector<16x32xf32>
    %980 = arith.subf %979, %973 : vector<16x32xf32>
    %981 = arith.mulf %980, %978 : vector<16x32xf32>
    %982 = arith.mulf %973, %914 : vector<16x32xf32>
    %983 = arith.addf %981, %982 : vector<16x32xf32>
    %984 = arith.index_cast %920 : i32 to index
    %c0_229 = arith.constant 0 : index
    %985 = vector.load %arg17[%984, %c0_229] : memref<256x32xf32, #tpu.memory_space<vmem>>, vector<16x32xf32>
    tpu.vector_store %arg17[%984, %c0_229], %953 {strides = array<i32>} : memref<256x32xf32, #tpu.memory_space<vmem>>, vector<16x32xf32>,
    %986 = arith.index_cast %923 : i32 to index
    %c0_230 = arith.constant 0 : index
    %987 = vector.load %arg18[%986, %c0_230] : memref<256x32xf32, #tpu.memory_space<vmem>>, vector<16x32xf32>
    tpu.vector_store %arg18[%986, %c0_230], %983 {strides = array<i32>} : memref<256x32xf32, #tpu.memory_space<vmem>>, vector<16x32xf32>,
    %c14_i32 = arith.constant 14 : i32
    %c16_i32_231 = arith.constant 16 : i32
    %988 = arith.muli %c14_i32, %c16_i32_231 : i32
    %989 = tpu.assume_multiple %988, 16 : i32
    %c15_i32_232 = arith.constant 15 : i32
    %990 = arith.subi %c15_i32_232, %c14_i32 : i32
    %c16_i32_233 = arith.constant 16 : i32
    %991 = arith.muli %990, %c16_i32_233 : i32
    %992 = tpu.assume_multiple %991, 16 : i32
    %993 = arith.index_cast %989 : i32 to index
    %c0_234 = arith.constant 0 : index
    %994 = vector.load %arg15[%993, %c0_234] : memref<256x96xf32, #tpu.memory_space<vmem>>, vector<16x96xf32>
    %cst_235 = arith.constant dense<0.000000e+00> : vector<16x96xf32>
    %995 = tpu.matmul %953, %13, %cst_235 {dimension_numbers = #tpu.dot_dimension_numbers<[1], [0], [0], [1], [0, 0, 1, 1], [], []>} : vector<16x32xf32>, vector<32x96xf32>, vector<16x96xf32> -> vector<16x96xf32>
    %996 = arith.addf %995, %17 : vector<16x96xf32>
    %997 = vector.extract_strided_slice %994 {offsets = [0, 0], sizes = [16, 32], strides = [1, 1]} : vector<16x96xf32> to vector<16x32xf32>
    %998 = vector.extract_strided_slice %996 {offsets = [0, 0], sizes = [16, 32], strides = [1, 1]} : vector<16x96xf32> to vector<16x32xf32>
    %999 = arith.addf %997, %998 : vector<16x32xf32>
    %1000 = arith.negf %999 : vector<16x32xf32>
    %1001 = math.exp %1000 : vector<16x32xf32>
    %cst_236 = arith.constant 1.000000e+00 : f32
    %1002 = vector.broadcast %cst_236 : f32 to vector<16x32xf32>
    %1003 = arith.addf %1002, %1001 : vector<16x32xf32>
    %1004 = arith.divf %1002, %1003 : vector<16x32xf32>
    %1005 = vector.extract_strided_slice %994 {offsets = [0, 32], sizes = [16, 32], strides = [1, 1]} : vector<16x96xf32> to vector<16x32xf32>
    %1006 = vector.extract_strided_slice %996 {offsets = [0, 32], sizes = [16, 32], strides = [1, 1]} : vector<16x96xf32> to vector<16x32xf32>
    %1007 = arith.addf %1005, %1006 : vector<16x32xf32>
    %1008 = arith.negf %1007 : vector<16x32xf32>
    %1009 = math.exp %1008 : vector<16x32xf32>
    %cst_237 = arith.constant 1.000000e+00 : f32
    %1010 = vector.broadcast %cst_237 : f32 to vector<16x32xf32>
    %1011 = arith.addf %1010, %1009 : vector<16x32xf32>
    %1012 = arith.divf %1010, %1011 : vector<16x32xf32>
    %1013 = vector.extract_strided_slice %994 {offsets = [0, 64], sizes = [16, 32], strides = [1, 1]} : vector<16x96xf32> to vector<16x32xf32>
    %1014 = vector.extract_strided_slice %996 {offsets = [0, 64], sizes = [16, 32], strides = [1, 1]} : vector<16x96xf32> to vector<16x32xf32>
    %1015 = arith.mulf %1004, %1014 : vector<16x32xf32>
    %1016 = arith.addf %1013, %1015 : vector<16x32xf32>
    %1017 = math.tanh %1016 : vector<16x32xf32>
    %cst_238 = arith.constant 1.000000e+00 : f32
    %1018 = vector.broadcast %cst_238 : f32 to vector<16x32xf32>
    %1019 = arith.subf %1018, %1012 : vector<16x32xf32>
    %1020 = arith.mulf %1019, %1017 : vector<16x32xf32>
    %1021 = arith.mulf %1012, %953 : vector<16x32xf32>
    %1022 = arith.addf %1020, %1021 : vector<16x32xf32>
    %1023 = arith.index_cast %992 : i32 to index
    %c0_239 = arith.constant 0 : index
    %1024 = vector.load %arg16[%1023, %c0_239] : memref<256x96xf32, #tpu.memory_space<vmem>>, vector<16x96xf32>
    %cst_240 = arith.constant dense<0.000000e+00> : vector<16x96xf32>
    %1025 = tpu.matmul %983, %14, %cst_240 {dimension_numbers = #tpu.dot_dimension_numbers<[1], [0], [0], [1], [0, 0, 1, 1], [], []>} : vector<16x32xf32>, vector<32x96xf32>, vector<16x96xf32> -> vector<16x96xf32>
    %1026 = arith.addf %1025, %20 : vector<16x96xf32>
    %1027 = vector.extract_strided_slice %1024 {offsets = [0, 0], sizes = [16, 32], strides = [1, 1]} : vector<16x96xf32> to vector<16x32xf32>
    %1028 = vector.extract_strided_slice %1026 {offsets = [0, 0], sizes = [16, 32], strides = [1, 1]} : vector<16x96xf32> to vector<16x32xf32>
    %1029 = arith.addf %1027, %1028 : vector<16x32xf32>
    %1030 = arith.negf %1029 : vector<16x32xf32>
    %1031 = math.exp %1030 : vector<16x32xf32>
    %cst_241 = arith.constant 1.000000e+00 : f32
    %1032 = vector.broadcast %cst_241 : f32 to vector<16x32xf32>
    %1033 = arith.addf %1032, %1031 : vector<16x32xf32>
    %1034 = arith.divf %1032, %1033 : vector<16x32xf32>
    %1035 = vector.extract_strided_slice %1024 {offsets = [0, 32], sizes = [16, 32], strides = [1, 1]} : vector<16x96xf32> to vector<16x32xf32>
    %1036 = vector.extract_strided_slice %1026 {offsets = [0, 32], sizes = [16, 32], strides = [1, 1]} : vector<16x96xf32> to vector<16x32xf32>
    %1037 = arith.addf %1035, %1036 : vector<16x32xf32>
    %1038 = arith.negf %1037 : vector<16x32xf32>
    %1039 = math.exp %1038 : vector<16x32xf32>
    %cst_242 = arith.constant 1.000000e+00 : f32
    %1040 = vector.broadcast %cst_242 : f32 to vector<16x32xf32>
    %1041 = arith.addf %1040, %1039 : vector<16x32xf32>
    %1042 = arith.divf %1040, %1041 : vector<16x32xf32>
    %1043 = vector.extract_strided_slice %1024 {offsets = [0, 64], sizes = [16, 32], strides = [1, 1]} : vector<16x96xf32> to vector<16x32xf32>
    %1044 = vector.extract_strided_slice %1026 {offsets = [0, 64], sizes = [16, 32], strides = [1, 1]} : vector<16x96xf32> to vector<16x32xf32>
    %1045 = arith.mulf %1034, %1044 : vector<16x32xf32>
    %1046 = arith.addf %1043, %1045 : vector<16x32xf32>
    %1047 = math.tanh %1046 : vector<16x32xf32>
    %cst_243 = arith.constant 1.000000e+00 : f32
    %1048 = vector.broadcast %cst_243 : f32 to vector<16x32xf32>
    %1049 = arith.subf %1048, %1042 : vector<16x32xf32>
    %1050 = arith.mulf %1049, %1047 : vector<16x32xf32>
    %1051 = arith.mulf %1042, %983 : vector<16x32xf32>
    %1052 = arith.addf %1050, %1051 : vector<16x32xf32>
    %1053 = arith.index_cast %989 : i32 to index
    %c0_244 = arith.constant 0 : index
    %1054 = vector.load %arg17[%1053, %c0_244] : memref<256x32xf32, #tpu.memory_space<vmem>>, vector<16x32xf32>
    tpu.vector_store %arg17[%1053, %c0_244], %1022 {strides = array<i32>} : memref<256x32xf32, #tpu.memory_space<vmem>>, vector<16x32xf32>,
    %1055 = arith.index_cast %992 : i32 to index
    %c0_245 = arith.constant 0 : index
    %1056 = vector.load %arg18[%1055, %c0_245] : memref<256x32xf32, #tpu.memory_space<vmem>>, vector<16x32xf32>
    tpu.vector_store %arg18[%1055, %c0_245], %1052 {strides = array<i32>} : memref<256x32xf32, #tpu.memory_space<vmem>>, vector<16x32xf32>,
    %c15_i32_246 = arith.constant 15 : i32
    %c16_i32_247 = arith.constant 16 : i32
    %1057 = arith.muli %c15_i32_246, %c16_i32_247 : i32
    %1058 = tpu.assume_multiple %1057, 16 : i32
    %c15_i32_248 = arith.constant 15 : i32
    %1059 = arith.subi %c15_i32_248, %c15_i32_246 : i32
    %c16_i32_249 = arith.constant 16 : i32
    %1060 = arith.muli %1059, %c16_i32_249 : i32
    %1061 = tpu.assume_multiple %1060, 16 : i32
    %1062 = arith.index_cast %1058 : i32 to index
    %c0_250 = arith.constant 0 : index
    %1063 = vector.load %arg15[%1062, %c0_250] : memref<256x96xf32, #tpu.memory_space<vmem>>, vector<16x96xf32>
    %cst_251 = arith.constant dense<0.000000e+00> : vector<16x96xf32>
    %1064 = tpu.matmul %1022, %13, %cst_251 {dimension_numbers = #tpu.dot_dimension_numbers<[1], [0], [0], [1], [0, 0, 1, 1], [], []>} : vector<16x32xf32>, vector<32x96xf32>, vector<16x96xf32> -> vector<16x96xf32>
    %1065 = arith.addf %1064, %17 : vector<16x96xf32>
    %1066 = vector.extract_strided_slice %1063 {offsets = [0, 0], sizes = [16, 32], strides = [1, 1]} : vector<16x96xf32> to vector<16x32xf32>
    %1067 = vector.extract_strided_slice %1065 {offsets = [0, 0], sizes = [16, 32], strides = [1, 1]} : vector<16x96xf32> to vector<16x32xf32>
    %1068 = arith.addf %1066, %1067 : vector<16x32xf32>
    %1069 = arith.negf %1068 : vector<16x32xf32>
    %1070 = math.exp %1069 : vector<16x32xf32>
    %cst_252 = arith.constant 1.000000e+00 : f32
    %1071 = vector.broadcast %cst_252 : f32 to vector<16x32xf32>
    %1072 = arith.addf %1071, %1070 : vector<16x32xf32>
    %1073 = arith.divf %1071, %1072 : vector<16x32xf32>
    %1074 = vector.extract_strided_slice %1063 {offsets = [0, 32], sizes = [16, 32], strides = [1, 1]} : vector<16x96xf32> to vector<16x32xf32>
    %1075 = vector.extract_strided_slice %1065 {offsets = [0, 32], sizes = [16, 32], strides = [1, 1]} : vector<16x96xf32> to vector<16x32xf32>
    %1076 = arith.addf %1074, %1075 : vector<16x32xf32>
    %1077 = arith.negf %1076 : vector<16x32xf32>
    %1078 = math.exp %1077 : vector<16x32xf32>
    %cst_253 = arith.constant 1.000000e+00 : f32
    %1079 = vector.broadcast %cst_253 : f32 to vector<16x32xf32>
    %1080 = arith.addf %1079, %1078 : vector<16x32xf32>
    %1081 = arith.divf %1079, %1080 : vector<16x32xf32>
    %1082 = vector.extract_strided_slice %1063 {offsets = [0, 64], sizes = [16, 32], strides = [1, 1]} : vector<16x96xf32> to vector<16x32xf32>
    %1083 = vector.extract_strided_slice %1065 {offsets = [0, 64], sizes = [16, 32], strides = [1, 1]} : vector<16x96xf32> to vector<16x32xf32>
    %1084 = arith.mulf %1073, %1083 : vector<16x32xf32>
    %1085 = arith.addf %1082, %1084 : vector<16x32xf32>
    %1086 = math.tanh %1085 : vector<16x32xf32>
    %cst_254 = arith.constant 1.000000e+00 : f32
    %1087 = vector.broadcast %cst_254 : f32 to vector<16x32xf32>
    %1088 = arith.subf %1087, %1081 : vector<16x32xf32>
    %1089 = arith.mulf %1088, %1086 : vector<16x32xf32>
    %1090 = arith.mulf %1081, %1022 : vector<16x32xf32>
    %1091 = arith.addf %1089, %1090 : vector<16x32xf32>
    %1092 = arith.index_cast %1061 : i32 to index
    %c0_255 = arith.constant 0 : index
    %1093 = vector.load %arg16[%1092, %c0_255] : memref<256x96xf32, #tpu.memory_space<vmem>>, vector<16x96xf32>
    %cst_256 = arith.constant dense<0.000000e+00> : vector<16x96xf32>
    %1094 = tpu.matmul %1052, %14, %cst_256 {dimension_numbers = #tpu.dot_dimension_numbers<[1], [0], [0], [1], [0, 0, 1, 1], [], []>} : vector<16x32xf32>, vector<32x96xf32>, vector<16x96xf32> -> vector<16x96xf32>
    %1095 = arith.addf %1094, %20 : vector<16x96xf32>
    %1096 = vector.extract_strided_slice %1093 {offsets = [0, 0], sizes = [16, 32], strides = [1, 1]} : vector<16x96xf32> to vector<16x32xf32>
    %1097 = vector.extract_strided_slice %1095 {offsets = [0, 0], sizes = [16, 32], strides = [1, 1]} : vector<16x96xf32> to vector<16x32xf32>
    %1098 = arith.addf %1096, %1097 : vector<16x32xf32>
    %1099 = arith.negf %1098 : vector<16x32xf32>
    %1100 = math.exp %1099 : vector<16x32xf32>
    %cst_257 = arith.constant 1.000000e+00 : f32
    %1101 = vector.broadcast %cst_257 : f32 to vector<16x32xf32>
    %1102 = arith.addf %1101, %1100 : vector<16x32xf32>
    %1103 = arith.divf %1101, %1102 : vector<16x32xf32>
    %1104 = vector.extract_strided_slice %1093 {offsets = [0, 32], sizes = [16, 32], strides = [1, 1]} : vector<16x96xf32> to vector<16x32xf32>
    %1105 = vector.extract_strided_slice %1095 {offsets = [0, 32], sizes = [16, 32], strides = [1, 1]} : vector<16x96xf32> to vector<16x32xf32>
    %1106 = arith.addf %1104, %1105 : vector<16x32xf32>
    %1107 = arith.negf %1106 : vector<16x32xf32>
    %1108 = math.exp %1107 : vector<16x32xf32>
    %cst_258 = arith.constant 1.000000e+00 : f32
    %1109 = vector.broadcast %cst_258 : f32 to vector<16x32xf32>
    %1110 = arith.addf %1109, %1108 : vector<16x32xf32>
    %1111 = arith.divf %1109, %1110 : vector<16x32xf32>
    %1112 = vector.extract_strided_slice %1093 {offsets = [0, 64], sizes = [16, 32], strides = [1, 1]} : vector<16x96xf32> to vector<16x32xf32>
    %1113 = vector.extract_strided_slice %1095 {offsets = [0, 64], sizes = [16, 32], strides = [1, 1]} : vector<16x96xf32> to vector<16x32xf32>
    %1114 = arith.mulf %1103, %1113 : vector<16x32xf32>
    %1115 = arith.addf %1112, %1114 : vector<16x32xf32>
    %1116 = math.tanh %1115 : vector<16x32xf32>
    %cst_259 = arith.constant 1.000000e+00 : f32
    %1117 = vector.broadcast %cst_259 : f32 to vector<16x32xf32>
    %1118 = arith.subf %1117, %1111 : vector<16x32xf32>
    %1119 = arith.mulf %1118, %1116 : vector<16x32xf32>
    %1120 = arith.mulf %1111, %1052 : vector<16x32xf32>
    %1121 = arith.addf %1119, %1120 : vector<16x32xf32>
    %1122 = arith.index_cast %1058 : i32 to index
    %c0_260 = arith.constant 0 : index
    %1123 = vector.load %arg17[%1122, %c0_260] : memref<256x32xf32, #tpu.memory_space<vmem>>, vector<16x32xf32>
    tpu.vector_store %arg17[%1122, %c0_260], %1091 {strides = array<i32>} : memref<256x32xf32, #tpu.memory_space<vmem>>, vector<16x32xf32>,
    %1124 = arith.index_cast %1061 : i32 to index
    %c0_261 = arith.constant 0 : index
    %1125 = vector.load %arg18[%1124, %c0_261] : memref<256x32xf32, #tpu.memory_space<vmem>>, vector<16x32xf32>
    tpu.vector_store %arg18[%1124, %c0_261], %1121 {strides = array<i32>} : memref<256x32xf32, #tpu.memory_space<vmem>>, vector<16x32xf32>,
    %c16_i32_262 = arith.constant 16 : i32
    %c0_263 = arith.constant 0 : index
    %c0_264 = arith.constant 0 : index
    %1126 = vector.load %arg17[%c0_263, %c0_264] : memref<256x32xf32, #tpu.memory_space<vmem>>, vector<256x32xf32>
    %c0_265 = arith.constant 0 : index
    %c0_266 = arith.constant 0 : index
    %1127 = vector.load %arg9[%c0_265, %c0_266] : memref<32x32xf32, #tpu.memory_space<vmem>>, vector<32x32xf32>
    %cst_267 = arith.constant dense<0.000000e+00> : vector<256x32xf32>
    %1128 = tpu.matmul %1126, %1127, %cst_267 {dimension_numbers = #tpu.dot_dimension_numbers<[1], [0], [0], [1], [0, 0, 1, 1], [], []>} : vector<256x32xf32>, vector<32x32xf32>, vector<256x32xf32> -> vector<256x32xf32>
    %c0_268 = arith.constant 0 : index
    %c0_269 = arith.constant 0 : index
    %1129 = vector.load %arg18[%c0_268, %c0_269] : memref<256x32xf32, #tpu.memory_space<vmem>>, vector<256x32xf32>
    %c0_270 = arith.constant 0 : index
    %c0_271 = arith.constant 0 : index
    %1130 = vector.load %arg10[%c0_270, %c0_271] : memref<32x32xf32, #tpu.memory_space<vmem>>, vector<32x32xf32>
    %cst_272 = arith.constant dense<0.000000e+00> : vector<256x32xf32>
    %1131 = tpu.matmul %1129, %1130, %cst_272 {dimension_numbers = #tpu.dot_dimension_numbers<[1], [0], [0], [1], [0, 0, 1, 1], [], []>} : vector<256x32xf32>, vector<32x32xf32>, vector<256x32xf32> -> vector<256x32xf32>
    %1132 = arith.addf %1128, %1131 : vector<256x32xf32>
    %c0_273 = arith.constant 0 : index
    %c0_274 = arith.constant 0 : index
    %1133 = vector.load %arg11[%c0_273, %c0_274] : memref<1x32xf32, #tpu.memory_space<vmem>>, vector<1x32xf32>
    %1134 = vector.broadcast %1133 : vector<1x32xf32> to vector<256x32xf32>
    %1135 = arith.addf %1132, %1134 : vector<256x32xf32>
    %cst_275 = arith.constant dense<0.000000e+00> : vector<256xf32>
    %1136 = vector.multi_reduction <add>, %1135, %cst_275 [1] : vector<256x32xf32> to vector<256xf32>
    %1137 = vector.shape_cast %1136 : vector<256xf32> to vector<256x1xf32>
    %cst_276 = arith.constant 3.200000e+01 : f32
    %1138 = vector.broadcast %cst_276 : f32 to vector<256x1xf32>
    %1139 = arith.divf %1137, %1138 : vector<256x1xf32>
    %1140 = vector.broadcast %1139 : vector<256x1xf32> to vector<256x32xf32>
    %1141 = arith.subf %1135, %1140 : vector<256x32xf32>
    %1142 = arith.mulf %1141, %1141 : vector<256x32xf32>
    %cst_277 = arith.constant dense<0.000000e+00> : vector<256xf32>
    %1143 = vector.multi_reduction <add>, %1142, %cst_277 [1] : vector<256x32xf32> to vector<256xf32>
    %1144 = vector.shape_cast %1143 : vector<256xf32> to vector<256x1xf32>
    %cst_278 = arith.constant 3.200000e+01 : f32
    %1145 = vector.broadcast %cst_278 : f32 to vector<256x1xf32>
    %1146 = arith.divf %1144, %1145 : vector<256x1xf32>
    %1147 = vector.broadcast %1139 : vector<256x1xf32> to vector<256x32xf32>
    %1148 = arith.subf %1135, %1147 : vector<256x32xf32>
    %cst_279 = arith.constant 9.99999974E-6 : f32
    %1149 = vector.broadcast %cst_279 : f32 to vector<256x1xf32>
    %1150 = arith.addf %1146, %1149 : vector<256x1xf32>
    %1151 = math.rsqrt %1150 : vector<256x1xf32>
    %1152 = vector.broadcast %1151 : vector<256x1xf32> to vector<256x32xf32>
    %1153 = arith.mulf %1148, %1152 : vector<256x32xf32>
    %c0_280 = arith.constant 0 : index
    %c0_281 = arith.constant 0 : index
    %1154 = vector.load %arg12[%c0_280, %c0_281] : memref<1x32xf32, #tpu.memory_space<vmem>>, vector<1x32xf32>
    %1155 = vector.broadcast %1154 : vector<1x32xf32> to vector<256x32xf32>
    %1156 = arith.mulf %1153, %1155 : vector<256x32xf32>
    %c0_282 = arith.constant 0 : index
    %c0_283 = arith.constant 0 : index
    %1157 = vector.load %arg13[%c0_282, %c0_283] : memref<1x32xf32, #tpu.memory_space<vmem>>, vector<1x32xf32>
    %1158 = vector.broadcast %1157 : vector<1x32xf32> to vector<256x32xf32>
    %1159 = arith.addf %1156, %1158 : vector<256x32xf32>
    %1160 = arith.addf %0, %1159 : vector<256x32xf32>
    %c0_284 = arith.constant 0 : index
    %c0_285 = arith.constant 0 : index
    %1161 = vector.load %arg14[%c0_284, %c0_285] : memref<256x32xf32, #tpu.memory_space<vmem>>, vector<256x32xf32>
    tpu.vector_store %arg14[%c0_284, %c0_285], %1160 {strides = array<i32>} : memref<256x32xf32, #tpu.memory_space<vmem>>, vector<256x32xf32>,
    return
  }
}

</mosaic_0001>

<bundles_post_ra>
// kernel: dual_path_extension_rnn.3
= control target key start
LH: loop header
LB: loop body
LE: loop exit
PB: predicated region body
PF: predicated region fallthrough
CT: control target
= control target key end

     0   :  { %vm74_vm0 = vcmask 261120   ;;  %vm396_vm1 = vcmask 785408   ;;  %s3474_s28 = smov 64   ;;  %s3475_s29 = smov 32   ;;  %s4516_s2 = inlined_call_operand.vmem [shape: f32[32,96], index: 2, kind: input, shape index: {}]   ;;  %s4517_s0 = inlined_call_operand.vmem [shape: f32[256,32], index: 0, kind: input, shape index: {}]   ;;  %s4518_s3 = inlined_call_operand.vmem [shape: f32[32,96], index: 3, kind: input, shape index: {}]   ;;  %s4519_s1 = inlined_call_operand.vmem [shape: f32[32,32], index: 1, kind: input, shape index: {}]   ;;  %s4520_s4 = inlined_call_operand.vmem [shape: f32[1,96], index: 4, kind: input, shape index: {}]   ;;  %s4521_s5 = inlined_call_operand.vmem [shape: f32[1,96], index: 5, kind: input, shape index: {}]   ;;  %s4522_s6 = inlined_call_operand.vmem [shape: f32[32,32], index: 6, kind: input, shape index: {}]   ;;  %s4523_s7 = inlined_call_operand.vmem [shape: f32[1,32], index: 7, kind: input, shape index: {}]   ;;  %s4524_s8 = inlined_call_operand.vmem [shape: f32[256,32], index: 8, kind: output, shape index: {0}]   ;;  %s4525_s9 = inlined_call_operand.vmem [shape: f32[32,32], index: 9, kind: output, shape index: {1}]  }
   0x1   :  { %v63_v0 = vld [vmem:[%s4516_s2] sm:$0xff]  ;;  %v64_v1 = vld [vmem:[%s4516_s2 + $0x8] sm:$0xff]  ;;  %v65_v2 = vld [vmem:[%s4516_s2 + $0x10] sm:$0xff]  ;;  %s3476_s30 = smov 96  }
   0x2   :  { %v3173_v3 = vpack.c.bf16 %v64_v1, %v63_v0  ;;  %v66_v4 = vld [vmem:[%s4516_s2 + $0x18] sm:$0xff]  ;;  %v47_v5 = vld [vmem:[%s4517_s0 + $0x80] sm:$0xff]  ;;  %v430_v8 = vld [vmem:[%s4518_s3 + $0x8] sm:$0xff] }
   0x3   :  { %v3177_v6 = vpack.c.bf16 %v66_v4, %v65_v2  ;;  %2981 = vmatprep.mubr.msk.f32.mxu1 %vm74_vm0, %v47_v5  ;;  %v429_v7 = vld [vmem:[%s4518_s3] sm:$0xff]  ;;  %v431_v10 = vld [vmem:[%s4518_s3 + $0x10] sm:$0xff]  ;;  %v432_v11 = vld [vmem:[%s4518_s3 + $0x18] sm:$0xff] }
   0x4   :  { %3253 = vmatprep.subr.bf16.mxu1 %v3173_v3  ;;  %3174 = vmatprep.subr.bf16.mxu0 %v3173_v3  ;;  %v3549_v9 = vpack.c.bf16 %v430_v8, %v429_v7  ;;  %v3560_v12 = vld [vmem:[%s4517_s0] sm:$0xff]  ;;  %v48_v13 = vld [vmem:[%s4517_s0 + $0x88] sm:$0xff]  ;;  %v49_v15 = vld [vmem:[%s4517_s0 + $0x90] sm:$0xff]  ;;  %v3576_v16 = vpack.c.bf16 %v432_v11, %v431_v10 }
   0x5   :  { %3255 = vmatpush3.bf16.msra.mxu1 %v3173_v3  ;;  %3176 = vmatpush3.bf16.msra.mxu0 %v3173_v3  ;;  %v3570_v14 = vld [vmem:[%s4517_s0 + $0x8] sm:$0xff]  ;;  %v3581_v17 = vld [vmem:[%s4517_s0 + $0x10] sm:$0xff]  ;;  %v50_v18 = vld [vmem:[%s4517_s0 + $0x98] sm:$0xff] }
   0x6   :  { %3254 = vmatprep.subr.bf16.mxu1 %v3177_v6  ;;  %3178 = vmatprep.subr.bf16.mxu0 %v3177_v6  ;;  %v3594_v19 = vld [vmem:[%s4517_s0 + $0x18] sm:$0xff]  ;;  %v51_v20 = vld [vmem:[%s4517_s0 + $0xa0] sm:$0xff]  ;;  %v52_v21 = vld [vmem:[%s4517_s0 + $0xa8] sm:$0xff] }
   0x7   :  { %2957 = vmatprep.mubr.msk.f32.mxu0 %vm74_vm0, %v3560_v12  ;;  %v53_v22 = vld [vmem:[%s4517_s0 + $0xb0] sm:$0xff]  ;;  %v54_v23 = vld [vmem:[%s4517_s0 + $0xb8] sm:$0xff]  ;;  %v55_v24 = vld [vmem:[%s4517_s0 + $0xc0] sm:$0xff] }
   0x8   :  { %v56_v25 = vld [vmem:[%s4517_s0 + $0xc8] sm:$0xff]  ;;  %v57_v26 = vld [vmem:[%s4517_s0 + $0xd0] sm:$0xff]  ;;  %v58_v27 = vld [vmem:[%s4517_s0 + $0xd8] sm:$0xff] }
   0x9   :  { %3256 = vmatpush3.bf16.msra.mxu1 %v3177_v6  ;;  %3180 = vmatpush3.bf16.msra.mxu0 %v3177_v6  ;;  %v59_v28 = vld [vmem:[%s4517_s0 + $0xe0] sm:$0xff]  ;;  %v60_v29 = vld [vmem:[%s4517_s0 + $0xe8] sm:$0xff]  ;;  %v61_v30 = vld [vmem:[%s4517_s0 + $0xf0] sm:$0xff] }
   0xa   :  { %3182 = vmatprep.subr.bf16.mxu1 %v3549_v9  ;;  %v62_v31 = vld [vmem:[%s4517_s0 + $0xf8] sm:$0xff]  ;;  %v3654_v32 = vld [vmem:[%s4519_s1] sm:$0xff]  ;;  %v3662_v33 = vld [vmem:[%s4519_s1 + $0x8] sm:$0xff] }
   0xb   :  { %v3667_v34 = vld [vmem:[%s4519_s1 + $0x10] sm:$0xff]  ;;  %v3676_v35 = vld [vmem:[%s4519_s1 + $0x18] sm:$0xff]  ;;  %v3687_v36 = vld [vmem:[%s4520_s4] ss:$0 sm:$0xff] }
   0xc   :  { %2982 = vmatmul.mubr.msk.f32.vlgmr.msra.gmra.mrb[0].mxu1 %vm74_vm0, %v48_v13  ;;  %2958 = vmatmul.mubr.msk.f32.vlgmr.msra.gmra.mrb[0].mxu0 %vm74_vm0, %v3570_v14 }
   0xd   :  { %3184 = vmatpush3.bf16.msra.mxu1 %v3549_v9  ;;  %2984 = vmatprep.mubr.msk.f32.mxu1 %vm74_vm0, %v49_v15 }
   0xe   :  { %3186 = vmatprep.subr.bf16.mxu1 %v3576_v16  ;;  %2960 = vmatprep.mubr.msk.f32.mxu0 %vm74_vm0, %v3581_v17 }
  0x10   :  { %2985 = vmatmul.mubr.msk.f32.gmra.mrb[2].mxu1 %vm74_vm0, %v50_v18  ;;  %2961 = vmatmul.mubr.msk.f32.gmra.mrb[2].mxu0 %vm74_vm0, %v3594_v19  ;;  %v3731_v18 = vld [vmem:[%s4521_s5] ss:$0 sm:$0xff] }
  0x11   :  { %2987 = vmatprep.mubr.msk.f32.mxu1 %vm74_vm0, %v51_v20  ;;  %3188 = vmatpush3.bf16.msra.mxu1 %v3576_v16 }
  0x12   :  { %3190 = vmatprep.subr.bf16.mxu1 %v3549_v9 }
  0x14   :  { %2988 = vmatmul.mubr.msk.f32.gmra.mrb[4].mxu1 %vm74_vm0, %v52_v21 }
  0x15   :  { %2990 = vmatprep.mubr.msk.f32.mxu1 %vm74_vm0, %v53_v22 }
  0x18   :  { %2991 = vmatmul.mubr.msk.f32.gmra.mrb[6].mxu1 %vm74_vm0, %v54_v23 }
  0x19   :  { %2993 = vmatprep.mubr.msk.f32.mxu1 %vm74_vm0, %v55_v24 }
  0x1c   :  { %2994 = vmatmul.mubr.msk.f32.gmra.mrb[8].mxu1 %vm74_vm0, %v56_v25 }
  0x1d   :  { %2996 = vmatprep.mubr.msk.f32.mxu1 %vm74_vm0, %v57_v26 }
  0x20   :  { %2997 = vmatmul.mubr.msk.f32.gmra.mrb[10].mxu1 %vm74_vm0, %v58_v27 }
  0x21   :  { %2999 = vmatprep.mubr.msk.f32.mxu1 %vm74_vm0, %v59_v28 }
  0x24   :  { %3000 = vmatmul.mubr.msk.f32.gmra.mrb[12].mxu1 %vm74_vm0, %v60_v29 }
  0x25   :  { %3002 = vmatprep.mubr.msk.f32.mxu1 %vm74_vm0, %v61_v30 }
  0x28   :  { %3003 = vmatmul.mubr.msk.f32.gmra.mrb[14].mxu1 %vm74_vm0, %v62_v31 }
  0x29   :  { %3013 = vmatprep.mubr.msk.f32.mxu1 %vm74_vm0, %v3654_v32 }
  0x2c   :  { %3014 = vmatmul.mubr.msk.f32.vlgmr.msra.gmra.mrb[16].mxu1 %vm74_vm0, %v3662_v33 }
  0x2d   :  { %3016 = vmatprep.mubr.msk.f32.mxu1 %vm74_vm0, %v3667_v34  ;;  %3192 = vmatpush3.bf16.msra.mxu1 %v3549_v9 }
  0x2e   :  { %3194 = vmatprep.subr.bf16.mxu1 %v3576_v16 }
  0x30   :  { %3017 = vmatmul.mubr.msk.f32.gmra.mrb[18].mxu1 %vm74_vm0, %v3676_v35 }
  0x31   :  { %3196 = vmatpush3.bf16.msra.mxu1 %v3576_v16 }
  0x32   :  { %3198 = vmatprep.subr.bf16.mxu1 %v3549_v9 }
  0xdf   :  { %v2983_v37 = vpop.f32.mrb[0].mxu1  ;;  %v2959_v38 = vpop.f32.mrb[0].mxu0 }
  0xe0   :  { %v323_v39 = vadd.f32 %v2983_v37, %v3687_v36  ;;  %v317_v40 = vpop.f32.mrb[1].mxu1  ;;  %v243_v41 = vadd.f32 %v2959_v38, %v3687_v36  ;;  %v237_v42 = vpop.f32.mrb[1].mxu0 }
  0xe1   :  { %v318_v43 = vadd.f32 %v3687_v36, %v317_v40  ;;  %v238_v44 = vadd.f32 %v3687_v36, %v237_v42 }
  0xe2   :  { %414 = vst.msk [vmem:[#allocation2 + $0x88] sm:$0xff] %vm396_vm1, %v323_v39  ;;  %398 = vst.msk [vmem:[#allocation2 + $0x8] sm:$0xff] %vm396_vm1, %v243_v41 }
  0xe3   :  { %413 = vst.msk [vmem:[#allocation2 + $0x80] sm:$0xff] %vm396_vm1, %v318_v43  ;;  %v2986_v45 = vpop.f32.mrb[2].mxu1  ;;  %397 = vst.msk [vmem:[#allocation2] sm:$0xff] %vm396_vm1, %v238_v44  ;;  %v2962_v46 = vpop.f32.mrb[2].mxu0 }
  0xe4   :  { %v333_v47 = vadd.f32 %v2986_v45, %v3687_v36  ;;  %v327_v48 = vpop.f32.mrb[3].mxu1  ;;  %v253_v49 = vadd.f32 %v2962_v46, %v3687_v36  ;;  %v247_v50 = vpop.f32.mrb[3].mxu0 }
  0xe5   :  { %v328_v51 = vadd.f32 %v3687_v36, %v327_v48  ;;  %v248_v52 = vadd.f32 %v3687_v36, %v247_v50 }
  0xe6   :  { %416 = vst.msk [vmem:[#allocation2 + $0x98] sm:$0xff] %vm396_vm1, %v333_v47  ;;  %400 = vst.msk [vmem:[#allocation2 + $0x18] sm:$0xff] %vm396_vm1, %v253_v49 }
  0xe7   :  { %415 = vst.msk [vmem:[#allocation2 + $0x90] sm:$0xff] %vm396_vm1, %v328_v51  ;;  %v2989_v53 = vpop.f32.mrb[4].mxu1  ;;  %399 = vst.msk [vmem:[#allocation2 + $0x10] sm:$0xff] %vm396_vm1, %v248_v52 }
  0xe8   :  { %v343_v54 = vadd.f32 %v2989_v53, %v3687_v36  ;;  %v337_v55 = vpop.f32.mrb[5].mxu1 }
  0xe9   :  { %v338_v56 = vadd.f32 %v3687_v36, %v337_v55  ;;  %v445_v29 = vld [vmem:[#allocation2 + $0x8] sm:$0xff] }
  0xea   :  { %418 = vst.msk [vmem:[#allocation2 + $0xa8] sm:$0xff] %vm396_vm1, %v343_v54  ;;  %v444_v28 = vld [vmem:[#allocation2] sm:$0xff] }
  0xeb   :  { %417 = vst.msk [vmem:[#allocation2 + $0xa0] sm:$0xff] %vm396_vm1, %v338_v56  ;;  %v2992_v57 = vpop.f32.mrb[6].mxu1 }
  0xec   :  { %v353_v58 = vadd.f32 %v2992_v57, %v3687_v36  ;;  %v347_v59 = vpop.f32.mrb[7].mxu1 }
  0xed   :  { %v348_v60 = vadd.f32 %v3687_v36, %v347_v59  ;;  %v447_v40 = vld [vmem:[#allocation2 + $0x18] sm:$0xff] }
  0xee   :  { %420 = vst.msk [vmem:[#allocation2 + $0xb8] sm:$0xff] %vm396_vm1, %v353_v58  ;;  %v446_v31 = vld [vmem:[#allocation2 + $0x10] sm:$0xff] }
  0xef   :  { %419 = vst.msk [vmem:[#allocation2 + $0xb0] sm:$0xff] %vm396_vm1, %v348_v60  ;;  %v2995_v61 = vpop.f32.mrb[8].mxu1 }
  0xf0   :  { %v363_v62 = vadd.f32 %v2995_v61, %v3687_v36  ;;  %v357_v63 = vpop.f32.mrb[9].mxu1 }
  0xf1   :  { %v358_v0 = vadd.f32 %v3687_v36, %v357_v63 }
  0xf2   :  { %422 = vst.msk [vmem:[#allocation2 + $0xc8] sm:$0xff] %vm396_vm1, %v363_v62 }
  0xf3   :  { %421 = vst.msk [vmem:[#allocation2 + $0xc0] sm:$0xff] %vm396_vm1, %v358_v0  ;;  %v2998_v1 = vpop.f32.mrb[10].mxu1 }
  0xf4   :  { %v373_v2 = vadd.f32 %v2998_v1, %v3687_v36  ;;  %v367_v3 = vpop.f32.mrb[11].mxu1 }
  0xf5   :  { %v368_v4 = vadd.f32 %v3687_v36, %v367_v3 }
  0xf6   :  { %424 = vst.msk [vmem:[#allocation2 + $0xd8] sm:$0xff] %vm396_vm1, %v373_v2 }
  0xf7   :  { %423 = vst.msk [vmem:[#allocation2 + $0xd0] sm:$0xff] %vm396_vm1, %v368_v4  ;;  %v3001_v5 = vpop.f32.mrb[12].mxu1 }
  0xf8   :  { %v383_v6 = vadd.f32 %v3001_v5, %v3687_v36  ;;  %v377_v7 = vpop.f32.mrb[13].mxu1 }
  0xf9   :  { %v378_v8 = vadd.f32 %v3687_v36, %v377_v7 }
  0xfa   :  { %426 = vst.msk [vmem:[#allocation2 + $0xe8] sm:$0xff] %vm396_vm1, %v383_v6 }
  0xfb   :  { %425 = vst.msk [vmem:[#allocation2 + $0xe0] sm:$0xff] %vm396_vm1, %v378_v8  ;;  %v3004_v10 = vpop.f32.mrb[14].mxu1 }
  0xfc   :  { %v393_v11 = vadd.f32 %v3004_v10, %v3687_v36  ;;  %v387_v13 = vpop.f32.mrb[15].mxu1 }
  0xfd   :  { %v388_v15 = vadd.f32 %v3687_v36, %v387_v13 }
  0xfe   :  { %428 = vst.msk [vmem:[#allocation2 + $0xf8] sm:$0xff] %vm396_vm1, %v393_v11  ;;  %v3788_v11 = vld [vmem:[%s4517_s0 + $0x38] sm:$0xff] }
  0xff   :  { %427 = vst.msk [vmem:[#allocation2 + $0xf0] sm:$0xff] %vm396_vm1, %v388_v15  ;;  %v3015_v20 = vpop.f32.mrb[16].mxu1  ;;  %v3793_v15 = vld [vmem:[%s4517_s0 + $0x40] sm:$0xff] }
 0x100   :  { %v526_v21 = vpop.f32.mrb[17].mxu1  ;;  %v532_v25 = vadd.f32 %v3015_v20, %v3731_v18  ;;  %v3803_v20 = vld [vmem:[%s4517_s0 + $0x48] sm:$0xff] }
 0x101   :  { %v527_v22 = vadd.f32 %v3731_v18, %v526_v21 }
 0x102   :  { %v546_v37 = vadd.f32 %v532_v25, %v445_v29 }
 0x103   :  { %v3018_v23 = vpop.f32.mrb[18].mxu1  ;;  %577 = vrot.lane.b32.xlu0 %v527_v22, %s3474_s28  ;;  %v545_v30 = vadd.f32 %v527_v22, %v444_v28 }
 0x104   :  { %v536_v24 = vpop.f32.mrb[19].mxu1  ;;  %v542_v27 = vadd.f32 %v3018_v23, %v3731_v18  ;;  %v2721_v41 = vmul.f32 -1.442695, %v546_v37  ;;  %v3811_v23 = vld [vmem:[%s4517_s0 + $0x50] sm:$0xff] }
 0x105   :  { %v537_v26 = vadd.f32 %v3731_v18, %v536_v24  ;;  %v2720_v38 = vmul.f32 -1.442695, %v545_v30  ;;  %v3816_v24 = vld [vmem:[%s4517_s0 + $0x58] sm:$0xff]  ;;  %v2280_v37 = vld [vmem:[%s4522_s6 + $0x10] sm:$0xff] }
 0x106   :  { %v548_v43 = vadd.f32 %v542_v27, %v447_v40 }
 0x107   :  { %581 = vrot.lane.b32.xlu1 %v537_v26, %s3474_s28  ;;  %579 = vrot.lane.b32.xlu0 %v532_v25, %s3474_s28  ;;  %v547_v39 = vadd.f32 %v537_v26, %v446_v31  ;;  %3260 = vpow2.f32 %v2720_v38  ;;  %v2278_v25 = vld [vmem:[%s4522_s6] sm:$0xff]  ;;  %v2279_v26 = vld [vmem:[%s4522_s6 + $0x8] sm:$0xff] }
 0x108   :  { %3262 = vpow2.f32 %v2721_v41  ;;  %v2723_v44 = vmul.f32 -1.442695, %v548_v43  ;;  %v2281_v38 = vld [vmem:[%s4522_s6 + $0x18] sm:$0xff] }
 0x109   :  { %v2722_v42 = vmul.f32 -1.442695, %v547_v39  ;;  %v46_v41 = vld [vmem:[%s4517_s0 + $0x78] sm:$0xff] }
 0x10b   :  { %583 = vrot.lane.b32.xlu1 %v542_v27, %s3474_s28  ;;  %3264 = vpow2.f32 %v2722_v42  ;;  %v43_v27 = vld [vmem:[%s4517_s0 + $0x60] sm:$0xff]  ;;  %v3249_v42 = vpack.c.bf16 %v2281_v38, %v2280_v37 }
 0x10c   :  { %3266 = vpow2.f32 %v2723_v44 }
 0x111   :  { %v3261_v45 = vpop.eup %3260 }
 0x112   :  { %v3263_v46 = vpop.eup %3262  ;;  %v561_v47 = vadd.f32 1.0, %v3261_v45 }
 0x113   :  { %v562_v49 = vadd.f32 1.0, %v3263_v46 }
 0x114   :  { %3268 = vrcp.f32 %v561_v47 }
 0x115   :  { %v3265_v48 = vpop.eup %3264  ;;  %3270 = vrcp.f32 %v562_v49 }
 0x116   :  { %v563_v50 = vadd.f32 1.0, %v3265_v48  ;;  %v3267_v51 = vpop.eup %3266 }
 0x117   :  { %v564_v52 = vadd.f32 1.0, %v3267_v51 }
 0x118   :  { %3272 = vrcp.f32 %v563_v50 }
 0x119   :  { %3274 = vrcp.f32 %v564_v52 }
 0x11e   :  { %v3742_v53 = vpop.eup %3268 }
 0x11f   :  { %v3745_v56 = vpop.eup %3270  ;;  %v617_v46 = vsub.f32 1.0, %v3742_v53 }
 0x122   :  { %v3748_v57 = vpop.eup %3272 }
 0x123   :  { %v3754_v62 = vpop.eup %3274  ;;  %v619_v52 = vsub.f32 1.0, %v3748_v57 }
 0x175   :  { %v578_v54 = vpop.permute.xlu0 %577 }
 0x176   :  { %v589_v55 = vmul.f32 %v3742_v53, %v578_v54 }
 0x178   :  { %597 = vrot.lane.b32.xlu0 %v589_v55, %s3474_s28 }
 0x179   :  { %v582_v58 = vpop.permute.xlu1 %581  ;;  %v580_v59 = vpop.permute.xlu0 %579 }
 0x17a   :  { %v591_v60 = vmul.f32 %v3748_v57, %v582_v58  ;;  %v590_v61 = vmul.f32 %v3745_v56, %v580_v59 }
 0x17c   :  { %599 = vrot.lane.b32.xlu1 %v590_v61, %s3474_s28  ;;  %601 = vrot.lane.b32.xlu0 %v591_v60, %s3474_s28 }
 0x17d   :  { %v584_v63 = vpop.permute.xlu1 %583 }
 0x17e   :  { %v592_v0 = vmul.f32 %v3754_v62, %v584_v63 }
 0x180   :  { %603 = vrot.lane.b32.xlu1 %v592_v0, %s3474_s28 }
 0x184   :  { %641 = vrot.lane.b32.xlu1 %v3654_v32, %s3475_s29 }
 0x188   :  { %643 = vrot.lane.b32.xlu1 %v3662_v33, %s3475_s29  ;;  %v3766_v33 = vld [vmem:[%s4517_s0 + $0x20] sm:$0xff] }
 0x189   :  { %2963 = vmatprep.mubr.msk.f32.mxu0 %vm74_vm0, %v3766_v33 }
 0x18c   :  { %645 = vrot.lane.b32.xlu1 %v3667_v34, %s3475_s29  ;;  %v3771_v34 = vld [vmem:[%s4517_s0 + $0x28] sm:$0xff] }
 0x18d   :  { %2964 = vmatmul.mubr.msk.f32.gmra.mrb[4].mxu0 %vm74_vm0, %v3771_v34 }
 0x190   :  { %647 = vrot.lane.b32.xlu1 %v3676_v35, %s3475_s29  ;;  %v3776_v35 = vld [vmem:[%s4517_s0 + $0x30] sm:$0xff] }
 0x191   :  { %2966 = vmatprep.mubr.msk.f32.mxu0 %vm74_vm0, %v3776_v35 }
 0x192   :  { %2967 = vmatmul.mubr.msk.f32.gmra.mrb[6].mxu0 %vm74_vm0, %v3788_v11 }
 0x193   :  { %2969 = vmatprep.mubr.msk.f32.mxu0 %vm74_vm0, %v3793_v15 }
 0x196   :  { %2970 = vmatmul.mubr.msk.f32.gmra.mrb[8].mxu0 %vm74_vm0, %v3803_v20 }
 0x197   :  { %2972 = vmatprep.mubr.msk.f32.mxu0 %vm74_vm0, %v3811_v23 }
 0x19a   :  { %2973 = vmatmul.mubr.msk.f32.gmra.mrb[10].mxu0 %vm74_vm0, %v3816_v24 }
 0x19b   :  { %2975 = vmatprep.mubr.msk.f32.mxu0 %vm74_vm0, %v43_v27 }
 0x1ea   :  { %v598_v1 = vpop.permute.xlu0 %597 }
 0x1eb   :  { %v609_v4 = vadd.f32 %v598_v1, %v444_v28  ;;  %v44_v28 = vld [vmem:[%s4517_s0 + $0x68] sm:$0xff] }
 0x1ec   :  { %2976 = vmatmul.mubr.msk.f32.gmra.mrb[12].mxu0 %vm74_vm0, %v44_v28 }
 0x1ee   :  { %v600_v2 = vpop.permute.xlu1 %599  ;;  %v602_v5 = vpop.permute.xlu0 %601 }
 0x1ef   :  { %v610_v3 = vadd.f32 %v600_v2, %v445_v29  ;;  %v611_v6 = vadd.f32 %v602_v5, %v446_v31  ;;  %v3245_v29 = vpack.c.bf16 %v2279_v26, %v2278_v25  ;;  %v618_v31 = vsub.f32 1.0, %v3745_v56 }
 0x1f1   :  { %3276 = vtanh.f32 %v610_v3  ;;  %3246 = vmatprep.subr.bf16.mxu0 %v3245_v29 }
 0x1f2   :  { %3278 = vtanh.f32 %v609_v4  ;;  %v604_v7 = vpop.permute.xlu1 %603  ;;  %3248 = vmatpush3.bf16.msra.mxu0 %v3245_v29 }
 0x1f3   :  { %3280 = vtanh.f32 %v611_v6  ;;  %v612_v8 = vadd.f32 %v604_v7, %v447_v40  ;;  %v45_v40 = vld [vmem:[%s4517_s0 + $0x70] sm:$0xff]  ;;  %3250 = vmatprep.subr.bf16.mxu0 %v3249_v42 }
 0x1f4   :  { %2978 = vmatprep.mubr.msk.f32.mxu0 %vm74_vm0, %v45_v40 }
 0x1f5   :  { %3282 = vtanh.f32 %v612_v8  ;;  %2979 = vmatmul.mubr.msk.f32.gmra.mrb[14].mxu0 %vm74_vm0, %v46_v41 }
 0x1f6   :  { %v642_v22 = vpop.permute.xlu1 %641  ;;  %3252 = vmatpush3.bf16.msra.mxu0 %v3249_v42 }
 0x1f7   :  { %v653_v49 = vmul.f32 %v3742_v53, %v642_v22  ;;  %v620_v53 = vsub.f32 1.0, %v3754_v62 }
 0x1fa   :  { %v644_v30 = vpop.permute.xlu1 %643 }
 0x1fb   :  { %v3277_v10 = vpop.eup %3276  ;;  %v654_v43 = vmul.f32 %v3745_v56, %v644_v30 }
 0x1fc   :  { %627 = vrot.lane.b32.xlu0 %v3277_v10, %s3476_s30  ;;  %v3279_v32 = vpop.eup %3278 }
 0x1fd   :  { %v3281_v13 = vpop.eup %3280 }
 0x1fe   :  { %v646_v47 = vpop.permute.xlu1 %645 }
 0x1ff   :  { %v3283_v21 = vpop.eup %3282  ;;  %v655_v55 = vmul.f32 %v3748_v57, %v646_v47 }
 0x200   :  { %625 = vrot.lane.b32.xlu0 %v3279_v32, %s3476_s30 }
 0x202   :  { %v648_v58 = vpop.permute.xlu1 %647 }
 0x203   :  { %v656_v61 = vmul.f32 %v3754_v62, %v648_v58 }
 0x204   :  { %629 = vrot.lane.b32.xlu0 %v3281_v13, %s3476_s30 }
 0x208   :  { %631 = vrot.lane.b32.xlu0 %v3283_v21, %s3476_s30 }
 0x260   :  { %v2965_v57 = vpop.f32.mrb[4].mxu0 }
 0x261   :  { %v263_v1 = vadd.f32 %v2965_v57, %v3687_v36  ;;  %v257_v2 = vpop.f32.mrb[5].mxu0 }
 0x262   :  { %v258_v3 = vadd.f32 %v3687_v36, %v257_v2 }
 0x263   :  { %402 = vst.msk [vmem:[#allocation2 + $0x28] sm:$0xff] %vm396_vm1, %v263_v1 }
 0x264   :  { %401 = vst.msk [vmem:[#allocation2 + $0x20] sm:$0xff] %vm396_vm1, %v258_v3 }
 0x265   :  { %v2968_v62 = vpop.f32.mrb[6].mxu0 }
 0x266   :  { %v273_v4 = vadd.f32 %v2968_v62, %v3687_v36  ;;  %v267_v5 = vpop.f32.mrb[7].mxu0 }
 0x267   :  { %v268_v6 = vadd.f32 %v3687_v36, %v267_v5 }
 0x268   :  { %404 = vst.msk [vmem:[#allocation2 + $0x38] sm:$0xff] %vm396_vm1, %v273_v4 }
 0x269   :  { %403 = vst.msk [vmem:[#allocation2 + $0x30] sm:$0xff] %vm396_vm1, %v268_v6  ;;  %v2971_v7 = vpop.f32.mrb[8].mxu0 }
 0x26a   :  { %v283_v8 = vadd.f32 %v2971_v7, %v3687_v36  ;;  %v277_v28 = vpop.f32.mrb[9].mxu0  ;;  %v683_v5 = vld [vmem:[#allocation2 + $0x28] sm:$0xff] }
 0x26b   :  { %v278_v40 = vadd.f32 %v3687_v36, %v277_v28  ;;  %v682_v6 = vld [vmem:[#allocation2 + $0x20] sm:$0xff] }
 0x26c   :  { %406 = vst.msk [vmem:[#allocation2 + $0x48] sm:$0xff] %vm396_vm1, %v283_v8 }
 0x26d   :  { %v2974_v29 = vpop.f32.mrb[10].mxu0  ;;  %405 = vst.msk [vmem:[#allocation2 + $0x40] sm:$0xff] %vm396_vm1, %v278_v40 }
 0x26e   :  { %v628_v39 = vpop.permute.xlu0 %627  ;;  %v287_v30 = vpop.f32.mrb[11].mxu0  ;;  %v293_v41 = vadd.f32 %v2974_v29, %v3687_v36 }
 0x26f   :  { %v638_v44 = vmul.f32 %v628_v39, %v618_v31  ;;  %v288_v42 = vadd.f32 %v3687_v36, %v287_v30 }
 0x270   :  { %408 = vst.msk [vmem:[#allocation2 + $0x58] sm:$0xff] %vm396_vm1, %v293_v41 }
 0x271   :  { %v3852_v45 = vadd.f32 %v654_v43, %v638_v44  ;;  %407 = vst.msk [vmem:[#allocation2 + $0x50] sm:$0xff] %vm396_vm1, %v288_v42 }
 0x272   :  { %v626_v48 = vpop.permute.xlu0 %625 }
 0x273   :  { %v637_v50 = vmul.f32 %v626_v48, %v617_v46  ;;  %667 = vrot.lane.b32.xlu1 %v3852_v45, %s3476_s30 }
 0x275   :  { %v3858_v51 = vadd.f32 %v653_v49, %v637_v50 }
 0x276   :  { %v630_v54 = vpop.permute.xlu0 %629 }
 0x277   :  { %v639_v56 = vmul.f32 %v630_v54, %v619_v52  ;;  %665 = vrot.lane.b32.xlu0 %v3858_v51, %s3476_s30 }
 0x279   :  { %v3864_v59 = vadd.f32 %v655_v55, %v639_v56 }
 0x27a   :  { %v632_v60 = vpop.permute.xlu0 %631 }
 0x27b   :  { %v640_v63 = vmul.f32 %v632_v60, %v620_v53  ;;  %669 = vrot.lane.b32.xlu0 %v3864_v59, %s3476_s30 }
 0x27d   :  { %v3870_v0 = vadd.f32 %v656_v61, %v640_v63 }
 0x27f   :  { %671 = vrot.lane.b32.xlu1 %v3870_v0, %s3476_s30 }
 0x2bf   :  { %v2977_v31 = vpop.f32.mrb[12].mxu0 }
 0x2c0   :  { %v297_v37 = vpop.f32.mrb[13].mxu0  ;;  %v303_v43 = vadd.f32 %v2977_v31, %v3687_v36 }
 0x2c1   :  { %v298_v44 = vadd.f32 %v3687_v36, %v297_v37 }
 0x2c2   :  { %410 = vst.msk [vmem:[#allocation2 + $0x68] sm:$0xff] %vm396_vm1, %v303_v43 }
 0x2c3   :  { %409 = vst.msk [vmem:[#allocation2 + $0x60] sm:$0xff] %vm396_vm1, %v298_v44 }
 0x2c8   :  { %v2980_v38 = vpop.f32.mrb[14].mxu0 }
 0x2c9   :  { %v307_v39 = vpop.f32.mrb[15].mxu0  ;;  %v313_v46 = vadd.f32 %v2980_v38, %v3687_v36 }
 0x2ca   :  { %v308_v47 = vadd.f32 %v3687_v36, %v307_v39  ;;  %v3921_v36 = vld [vmem:[%s4523_s7] ss:$0 sm:$0xff] }
 0x2cb   :  { %412 = vst.msk [vmem:[#allocation2 + $0x78] sm:$0xff] %vm396_vm1, %v313_v46 }
 0x2cc   :  { %411 = vst.msk [vmem:[#allocation2 + $0x70] sm:$0xff] %vm396_vm1, %v308_v47 }
 0x2e5   :  { %v668_v10 = vpop.permute.xlu1 %667 }
 0x2e6   :  { %678 = vst.msk [vmem:[#allocation3 + $0x8] sm:$0xff] %vm74_vm0, %v668_v10 }
 0x2e9   :  { %v666_v32 = vpop.permute.xlu0 %665 }
 0x2ea   :  { %677 = vst.msk [vmem:[#allocation3] sm:$0xff] %vm74_vm0, %v666_v32  ;;  %3027 = vmatprep.mubr.msk.f32.mxu1 %vm74_vm0, %v666_v32  ;;  %v685_v32 = vld [vmem:[#allocation2 + $0x38] sm:$0xff] }
 0x2eb   :  { %3028 = vmatmul.mubr.msk.f32.vlgmr.msra.gmra.mrb[20].mxu1 %vm74_vm0, %v668_v10 }
 0x2ec   :  { %3200 = vmatpush3.bf16.msra.mxu1 %v3549_v9 }
 0x2ed   :  { %v670_v13 = vpop.permute.xlu0 %669  ;;  %3202 = vmatprep.subr.bf16.mxu1 %v3576_v16  ;;  %v2247_v25 = vld [vmem:[#allocation3 + $0x8] sm:$0xff] }
 0x2ee   :  { %679 = vst.msk [vmem:[#allocation3 + $0x10] sm:$0xff] %vm74_vm0, %v670_v13  ;;  %3030 = vmatprep.mubr.msk.f32.mxu1 %vm74_vm0, %v670_v13 }
 0x2f0   :  { %3204 = vmatpush3.bf16.msra.mxu1 %v3576_v16 }
 0x2f1   :  { %v672_v21 = vpop.permute.xlu1 %671  ;;  %v2246_v22 = vld [vmem:[#allocation3] sm:$0xff]  ;;  %3206 = vmatprep.subr.bf16.mxu1 %v3549_v9 }
 0x2f2   :  { %680 = vst.msk [vmem:[#allocation3 + $0x18] sm:$0xff] %vm74_vm0, %v672_v21  ;;  %3031 = vmatmul.mubr.msk.f32.gmra.mrb[22].mxu1 %vm74_vm0, %v672_v21  ;;  %3125 = vmatprep.mubr.msk.f32.mxu0 %vm74_vm0, %v2246_v22 }
 0x2f3   :  { %3126 = vmatmul.mubr.msk.f32.vlgmr.msra.gmra.mrb[16].mxu0 %vm74_vm0, %v2247_v25 }
 0x2f5   :  { %v2248_v26 = vld [vmem:[#allocation3 + $0x10] sm:$0xff] }
 0x2f6   :  { %3128 = vmatprep.mubr.msk.f32.mxu0 %vm74_vm0, %v2248_v26 }
 0x2f9   :  { %v2249_v27 = vld [vmem:[#allocation3 + $0x18] sm:$0xff] }
 0x2fa   :  { %3129 = vmatmul.mubr.msk.f32.gmra.mrb[18].mxu0 %vm74_vm0, %v2249_v27 }
 0x3be   :  { %v3029_v48 = vpop.f32.mrb[20].mxu1 }
 0x3bf   :  { %v766_v49 = vadd.f32 %v3029_v48, %v3731_v18  ;;  %v760_v50 = vpop.f32.mrb[21].mxu1 }
 0x3c0   :  { %v761_v52 = vadd.f32 %v3731_v18, %v760_v50 }
 0x3c1   :  { %813 = vrot.lane.b32.xlu1 %v766_v49, %s3474_s28  ;;  %v780_v7 = vadd.f32 %v766_v49, %v683_v5 }
 0x3c2   :  { %811 = vrot.lane.b32.xlu0 %v761_v52, %s3474_s28  ;;  %v779_v8 = vadd.f32 %v761_v52, %v682_v6 }
 0x3c3   :  { %v2729_v10 = vmul.f32 -1.442695, %v780_v7 }
 0x3c4   :  { %v2728_v13 = vmul.f32 -1.442695, %v779_v8 }
 0x3c5   :  { %v3032_v54 = vpop.f32.mrb[22].mxu1  ;;  %3284 = vpow2.f32 %v2729_v10 }
 0x3c6   :  { %v776_v55 = vadd.f32 %v3032_v54, %v3731_v18  ;;  %v770_v56 = vpop.f32.mrb[23].mxu1  ;;  %v3127_v58 = vpop.f32.mrb[16].mxu0  ;;  %3286 = vpow2.f32 %v2728_v13 }
 0x3c7   :  { %v771_v53 = vadd.f32 %v3731_v18, %v770_v56  ;;  %v2457_v60 = vadd.f32 %v3127_v58, %v3921_v36  ;;  %v2451_v61 = vpop.f32.mrb[17].mxu0 }
 0x3c8   :  { %v2452_v63 = vadd.f32 %v3921_v36, %v2451_v61  ;;  %817 = vrot.lane.b32.xlu1 %v776_v55, %s3474_s28  ;;  %v782_v21 = vadd.f32 %v776_v55, %v685_v32 }
 0x3c9   :  { %v2611_v57 = vadd.f32 %v2457_v60, %v3570_v14  ;;  %815 = vrot.lane.b32.xlu0 %v771_v53, %s3474_s28 }
 0x3ca   :  { %v2610_v1 = vadd.f32 %v2452_v63, %v3560_v12  ;;  %v2731_v22 = vmul.f32 -1.442695, %v782_v21 }
 0x3cb   :  { %2643 = vst.msk [vmem:[%s4524_s8 + $0x8] sm:$0xff] %vm74_vm0, %v2611_v57 }
 0x3cc   :  { %2642 = vst.msk [vmem:[%s4524_s8] sm:$0xff] %vm74_vm0, %v2610_v1  ;;  %3288 = vpow2.f32 %v2731_v22 }
 0x3cd   :  { %v3130_v2 = vpop.f32.mrb[18].mxu0 }
 0x3ce   :  { %v2467_v3 = vadd.f32 %v3130_v2, %v3921_v36  ;;  %v2461_v62 = vpop.f32.mrb[19].mxu0 }
 0x3cf   :  { %v2462_v14 = vadd.f32 %v3921_v36, %v2461_v62  ;;  %v3285_v26 = vpop.eup %3284 }
 0x3d0   :  { %v2613_v4 = vadd.f32 %v2467_v3, %v3594_v19  ;;  %v684_v19 = vld [vmem:[#allocation2 + $0x30] sm:$0xff]  ;;  %v3287_v27 = vpop.eup %3286  ;;  %v796_v28 = vadd.f32 1.0, %v3285_v26 }
 0x3d1   :  { %v2612_v12 = vadd.f32 %v2462_v14, %v3581_v17  ;;  %v781_v17 = vadd.f32 %v771_v53, %v684_v19  ;;  %v795_v29 = vadd.f32 1.0, %v3287_v27 }
 0x3d2   :  { %2645 = vst.msk [vmem:[%s4524_s8 + $0x18] sm:$0xff] %vm74_vm0, %v2613_v4 }
 0x3d3   :  { %2644 = vst.msk [vmem:[%s4524_s8 + $0x10] sm:$0xff] %vm74_vm0, %v2612_v12  ;;  %v2730_v25 = vmul.f32 -1.442695, %v781_v17 }
 0x3d5   :  { %3290 = vpow2.f32 %v2730_v25 }
 0x3d6   :  { %v3289_v30 = vpop.eup %3288  ;;  %3292 = vrcp.f32 %v796_v28 }
 0x3d7   :  { %3294 = vrcp.f32 %v795_v29  ;;  %v798_v37 = vadd.f32 1.0, %v3289_v30 }
 0x3d9   :  { %3296 = vrcp.f32 %v798_v37 }
 0x3df   :  { %v3291_v31 = vpop.eup %3290 }
 0x3e0   :  { %v797_v38 = vadd.f32 1.0, %v3291_v31  ;;  %v3293_v39 = vpop.eup %3292 }
 0x3e1   :  { %v3295_v41 = vpop.eup %3294  ;;  %v852_v62 = vsub.f32 1.0, %v3293_v39  ;;  %v876_v12 = vmul.f32 %v3293_v39, %v3852_v45 }
 0x3e2   :  { %3298 = vrcp.f32 %v797_v38  ;;  %v851_v4 = vsub.f32 1.0, %v3295_v41  ;;  %v875_v7 = vmul.f32 %v3295_v41, %v3858_v51 }
 0x3e3   :  { %v3297_v46 = vpop.eup %3296 }
 0x3e4   :  { %v854_v13 = vsub.f32 1.0, %v3297_v46  ;;  %v878_v45 = vmul.f32 %v3297_v46, %v3870_v0 }
 0x3ec   :  { %v3299_v48 = vpop.eup %3298 }
 0x3ed   :  { %v853_v21 = vsub.f32 1.0, %v3299_v48  ;;  %v877_v51 = vmul.f32 %v3299_v48, %v3864_v59 }
 0x433   :  { %v814_v40 = vpop.permute.xlu1 %813 }
 0x434   :  { %v824_v42 = vmul.f32 %v3293_v39, %v814_v40  ;;  %v812_v43 = vpop.permute.xlu0 %811 }
 0x435   :  { %v823_v44 = vmul.f32 %v3295_v41, %v812_v43 }
 0x436   :  { %833 = vrot.lane.b32.xlu1 %v824_v42, %s3474_s28 }
 0x437   :  { %831 = vrot.lane.b32.xlu0 %v823_v44, %s3474_s28 }
 0x43a   :  { %v818_v47 = vpop.permute.xlu1 %817 }
 0x43b   :  { %v826_v49 = vmul.f32 %v3297_v46, %v818_v47  ;;  %v816_v50 = vpop.permute.xlu0 %815 }
 0x43c   :  { %v825_v52 = vmul.f32 %v3299_v48, %v816_v50 }
 0x43d   :  { %837 = vrot.lane.b32.xlu1 %v826_v49, %s3474_s28 }
 0x43e   :  { %835 = vrot.lane.b32.xlu0 %v825_v52, %s3474_s28 }
 0x4a8   :  { %v834_v54 = vpop.permute.xlu1 %833 }
 0x4a9   :  { %v844_v55 = vadd.f32 %v834_v54, %v683_v5  ;;  %v832_v56 = vpop.permute.xlu0 %831 }
 0x4aa   :  { %v843_v58 = vadd.f32 %v832_v56, %v682_v6 }
 0x4ab   :  { %3300 = vtanh.f32 %v844_v55 }
 0x4ac   :  { %3302 = vtanh.f32 %v843_v58 }
 0x4af   :  { %v838_v53 = vpop.permute.xlu1 %837 }
 0x4b0   :  { %v846_v60 = vadd.f32 %v838_v53, %v685_v32  ;;  %v836_v61 = vpop.permute.xlu0 %835 }
 0x4b1   :  { %v845_v63 = vadd.f32 %v836_v61, %v684_v19  ;;  %v906_v61 = vld [vmem:[#allocation2 + $0x48] sm:$0xff] }
 0x4b2   :  { %3304 = vtanh.f32 %v846_v60 }
 0x4b3   :  { %3306 = vtanh.f32 %v845_v63  ;;  %v905_v63 = vld [vmem:[#allocation2 + $0x40] sm:$0xff] }
 0x4b5   :  { %v3301_v57 = vpop.eup %3300 }
 0x4b6   :  { %v3303_v1 = vpop.eup %3302  ;;  %861 = vrot.lane.b32.xlu1 %v3301_v57, %s3476_s30 }
 0x4b7   :  { %859 = vrot.lane.b32.xlu0 %v3303_v1, %s3476_s30 }
 0x4bc   :  { %v3305_v2 = vpop.eup %3304 }
 0x4bd   :  { %v3307_v3 = vpop.eup %3306  ;;  %865 = vrot.lane.b32.xlu1 %v3305_v2, %s3476_s30 }
 0x4be   :  { %863 = vrot.lane.b32.xlu0 %v3307_v3, %s3476_s30  ;;  %v908_v3 = vld [vmem:[#allocation2 + $0x58] sm:$0xff] }
 0x528   :  { %v862_v14 = vpop.permute.xlu1 %861 }
 0x529   :  { %v872_v5 = vmul.f32 %v862_v14, %v852_v62  ;;  %v860_v6 = vpop.permute.xlu0 %859 }
 0x52a   :  { %v871_v8 = vmul.f32 %v860_v6, %v851_v4 }
 0x52b   :  { %v3961_v10 = vadd.f32 %v876_v12, %v872_v5 }
 0x52c   :  { %v3963_v32 = vadd.f32 %v875_v7, %v871_v8 }
 0x52d   :  { %889 = vrot.lane.b32.xlu1 %v3961_v10, %s3476_s30 }
 0x52e   :  { %887 = vrot.lane.b32.xlu0 %v3963_v32, %s3476_s30 }
 0x52f   :  { %v866_v19 = vpop.permute.xlu1 %865 }
 0x530   :  { %v874_v17 = vmul.f32 %v866_v19, %v854_v13  ;;  %v864_v22 = vpop.permute.xlu0 %863 }
 0x531   :  { %v873_v25 = vmul.f32 %v864_v22, %v853_v21 }
 0x532   :  { %v3971_v26 = vadd.f32 %v878_v45, %v874_v17 }
 0x533   :  { %v3973_v27 = vadd.f32 %v877_v51, %v873_v25 }
 0x534   :  { %893 = vrot.lane.b32.xlu1 %v3971_v26, %s3476_s30 }
 0x535   :  { %891 = vrot.lane.b32.xlu0 %v3973_v27, %s3476_s30 }
 0x59f   :  { %v890_v28 = vpop.permute.xlu1 %889 }
 0x5a0   :  { %901 = vst.msk [vmem:[#allocation3 + $0x28] sm:$0xff] %vm74_vm0, %v890_v28  ;;  %v888_v29 = vpop.permute.xlu0 %887 }
 0x5a1   :  { %900 = vst.msk [vmem:[#allocation3 + $0x20] sm:$0xff] %vm74_vm0, %v888_v29  ;;  %3041 = vmatprep.mubr.msk.f32.mxu1 %vm74_vm0, %v888_v29 }
 0x5a2   :  { %3042 = vmatmul.mubr.msk.f32.vlgmr.msra.gmra.mrb[24].mxu1 %vm74_vm0, %v890_v28 }
 0x5a3   :  { %3208 = vmatpush3.bf16.msra.mxu1 %v3549_v9 }
 0x5a4   :  { %3210 = vmatprep.subr.bf16.mxu1 %v3576_v16 }
 0x5a6   :  { %v894_v59 = vpop.permute.xlu1 %893 }
 0x5a7   :  { %903 = vst.msk [vmem:[#allocation3 + $0x38] sm:$0xff] %vm74_vm0, %v894_v59  ;;  %v892_v0 = vpop.permute.xlu0 %891  ;;  %3212 = vmatpush3.bf16.msra.mxu1 %v3576_v16  ;;  %v2251_v31 = vld [vmem:[#allocation3 + $0x28] sm:$0xff] }
 0x5a8   :  { %902 = vst.msk [vmem:[#allocation3 + $0x30] sm:$0xff] %vm74_vm0, %v892_v0  ;;  %3044 = vmatprep.mubr.msk.f32.mxu1 %vm74_vm0, %v892_v0  ;;  %v2250_v30 = vld [vmem:[#allocation3 + $0x20] sm:$0xff]  ;;  %3214 = vmatprep.subr.bf16.mxu1 %v3549_v9 }
 0x5a9   :  { %3045 = vmatmul.mubr.msk.f32.gmra.mrb[26].mxu1 %vm74_vm0, %v894_v59  ;;  %3131 = vmatprep.mubr.msk.f32.mxu0 %vm74_vm0, %v2250_v30 }
 0x5aa   :  { %3132 = vmatmul.mubr.msk.f32.gmra.mrb[20].mxu0 %vm74_vm0, %v2251_v31 }
 0x5ae   :  { %v2253_v38 = vld [vmem:[#allocation3 + $0x38] sm:$0xff] }
 0x5af   :  { %v2252_v37 = vld [vmem:[#allocation3 + $0x30] sm:$0xff] }
 0x5b0   :  { %3134 = vmatprep.mubr.msk.f32.mxu0 %vm74_vm0, %v2252_v37 }
 0x5b1   :  { %3135 = vmatmul.mubr.msk.f32.gmra.mrb[22].mxu0 %vm74_vm0, %v2253_v38 }
 0x675   :  { %v3043_v39 = vpop.f32.mrb[24].mxu1 }
 0x676   :  { %v989_v40 = vadd.f32 %v3043_v39, %v3731_v18  ;;  %v983_v41 = vpop.f32.mrb[25].mxu1 }
 0x677   :  { %v984_v42 = vadd.f32 %v3731_v18, %v983_v41 }
 0x678   :  { %1036 = vrot.lane.b32.xlu1 %v989_v40, %s3474_s28  ;;  %v1003_v57 = vadd.f32 %v989_v40, %v906_v61 }
 0x679   :  { %1034 = vrot.lane.b32.xlu0 %v984_v42, %s3474_s28  ;;  %v1002_v1 = vadd.f32 %v984_v42, %v905_v63 }
 0x67a   :  { %v2737_v2 = vmul.f32 -1.442695, %v1003_v57 }
 0x67b   :  { %v2736_v62 = vmul.f32 -1.442695, %v1002_v1 }
 0x67c   :  { %v3046_v43 = vpop.f32.mrb[26].mxu1  ;;  %3308 = vpow2.f32 %v2737_v2 }
 0x67d   :  { %v999_v44 = vadd.f32 %v3046_v43, %v3731_v18  ;;  %v993_v46 = vpop.f32.mrb[27].mxu1  ;;  %v3133_v47 = vpop.f32.mrb[20].mxu0  ;;  %3310 = vpow2.f32 %v2736_v62 }
 0x67e   :  { %v994_v48 = vadd.f32 %v3731_v18, %v993_v46  ;;  %v2477_v49 = vadd.f32 %v3133_v47, %v3921_v36  ;;  %v2471_v50 = vpop.f32.mrb[21].mxu0 }
 0x67f   :  { %v2472_v52 = vadd.f32 %v3921_v36, %v2471_v50  ;;  %1040 = vrot.lane.b32.xlu1 %v999_v44, %s3474_s28  ;;  %v1005_v14 = vadd.f32 %v999_v44, %v908_v3 }
 0x680   :  { %v2615_v54 = vadd.f32 %v2477_v49, %v3771_v34  ;;  %1038 = vrot.lane.b32.xlu0 %v994_v48, %s3474_s28 }
 0x681   :  { %v2614_v55 = vadd.f32 %v2472_v52, %v3766_v33  ;;  %v2739_v4 = vmul.f32 -1.442695, %v1005_v14 }
 0x682   :  { %2647 = vst.msk [vmem:[%s4524_s8 + $0x28] sm:$0xff] %vm74_vm0, %v2615_v54 }
 0x683   :  { %2646 = vst.msk [vmem:[%s4524_s8 + $0x20] sm:$0xff] %vm74_vm0, %v2614_v55  ;;  %3312 = vpow2.f32 %v2739_v4 }
 0x684   :  { %v3136_v56 = vpop.f32.mrb[22].mxu0 }
 0x685   :  { %v2487_v58 = vadd.f32 %v3136_v56, %v3921_v36  ;;  %v2481_v53 = vpop.f32.mrb[23].mxu0 }
 0x686   :  { %v2482_v34 = vadd.f32 %v3921_v36, %v2481_v53  ;;  %v3309_v5 = vpop.eup %3308 }
 0x687   :  { %v2617_v60 = vadd.f32 %v2487_v58, %v3788_v11  ;;  %v907_v11 = vld [vmem:[#allocation2 + $0x50] sm:$0xff]  ;;  %v3311_v6 = vpop.eup %3310  ;;  %v1019_v7 = vadd.f32 1.0, %v3309_v5 }
 0x688   :  { %v2616_v33 = vadd.f32 %v2482_v34, %v3776_v35  ;;  %v1004_v35 = vadd.f32 %v994_v48, %v907_v11  ;;  %v1018_v8 = vadd.f32 1.0, %v3311_v6 }
 0x689   :  { %2649 = vst.msk [vmem:[%s4524_s8 + $0x38] sm:$0xff] %vm74_vm0, %v2617_v60 }
 0x68a   :  { %2648 = vst.msk [vmem:[%s4524_s8 + $0x30] sm:$0xff] %vm74_vm0, %v2616_v33  ;;  %v2738_v12 = vmul.f32 -1.442695, %v1004_v35 }
 0x68c   :  { %3314 = vpow2.f32 %v2738_v12 }
 0x68d   :  { %v3313_v13 = vpop.eup %3312  ;;  %3316 = vrcp.f32 %v1019_v7 }
 0x68e   :  { %3318 = vrcp.f32 %v1018_v8  ;;  %v1021_v21 = vadd.f32 1.0, %v3313_v13 }
 0x690   :  { %3320 = vrcp.f32 %v1021_v21 }
 0x696   :  { %v3315_v19 = vpop.eup %3314 }
 0x697   :  { %v1020_v45 = vadd.f32 1.0, %v3315_v19  ;;  %v3317_v17 = vpop.eup %3316 }
 0x698   :  { %v3319_v51 = vpop.eup %3318  ;;  %v1075_v54 = vsub.f32 1.0, %v3317_v17  ;;  %v1099_v58 = vmul.f32 %v3317_v17, %v3961_v10 }
 0x699   :  { %3322 = vrcp.f32 %v1020_v45  ;;  %v1074_v56 = vsub.f32 1.0, %v3319_v51  ;;  %v1098_v60 = vmul.f32 %v3319_v51, %v3963_v32 }
 0x69a   :  { %v3321_v59 = vpop.eup %3320 }
 0x69b   :  { %v1077_v57 = vsub.f32 1.0, %v3321_v59  ;;  %v1101_v10 = vmul.f32 %v3321_v59, %v3971_v26 }
 0x6a3   :  { %v3323_v30 = vpop.eup %3322 }
 0x6a4   :  { %v1076_v2 = vsub.f32 1.0, %v3323_v30  ;;  %v1100_v32 = vmul.f32 %v3323_v30, %v3973_v27 }
 0x6ea   :  { %v1037_v22 = vpop.permute.xlu1 %1036 }
 0x6eb   :  { %v1047_v25 = vmul.f32 %v3317_v17, %v1037_v22  ;;  %v1035_v28 = vpop.permute.xlu0 %1034 }
 0x6ec   :  { %v1046_v29 = vmul.f32 %v3319_v51, %v1035_v28 }
 0x6ed   :  { %1056 = vrot.lane.b32.xlu1 %v1047_v25, %s3474_s28 }
 0x6ee   :  { %1054 = vrot.lane.b32.xlu0 %v1046_v29, %s3474_s28 }
 0x6f1   :  { %v1041_v0 = vpop.permute.xlu1 %1040 }
 0x6f2   :  { %v1049_v31 = vmul.f32 %v3321_v59, %v1041_v0  ;;  %v1039_v37 = vpop.permute.xlu0 %1038 }
 0x6f3   :  { %v1048_v38 = vmul.f32 %v3323_v30, %v1039_v37 }
 0x6f4   :  { %1060 = vrot.lane.b32.xlu1 %v1049_v31, %s3474_s28 }
 0x6f5   :  { %1058 = vrot.lane.b32.xlu0 %v1048_v38, %s3474_s28 }
 0x75f   :  { %v1057_v39 = vpop.permute.xlu1 %1056 }
 0x760   :  { %v1067_v40 = vadd.f32 %v1057_v39, %v906_v61  ;;  %v1055_v41 = vpop.permute.xlu0 %1054 }
 0x761   :  { %v1066_v42 = vadd.f32 %v1055_v41, %v905_v63  ;;  %v1128_v41 = vld [vmem:[#allocation2 + $0x60] sm:$0xff] }
 0x762   :  { %3324 = vtanh.f32 %v1067_v40  ;;  %v1129_v40 = vld [vmem:[#allocation2 + $0x68] sm:$0xff] }
 0x763   :  { %3326 = vtanh.f32 %v1066_v42 }
 0x766   :  { %v1061_v43 = vpop.permute.xlu1 %1060 }
 0x767   :  { %v1069_v44 = vadd.f32 %v1061_v43, %v908_v3  ;;  %v1059_v46 = vpop.permute.xlu0 %1058 }
 0x768   :  { %v1068_v47 = vadd.f32 %v1059_v46, %v907_v11  ;;  %v1131_v46 = vld [vmem:[#allocation2 + $0x78] sm:$0xff] }
 0x769   :  { %3328 = vtanh.f32 %v1069_v44 }
 0x76a   :  { %3330 = vtanh.f32 %v1068_v47 }
 0x76c   :  { %v3325_v48 = vpop.eup %3324 }
 0x76d   :  { %v3327_v49 = vpop.eup %3326  ;;  %1084 = vrot.lane.b32.xlu1 %v3325_v48, %s3476_s30 }
 0x76e   :  { %1082 = vrot.lane.b32.xlu0 %v3327_v49, %s3476_s30 }
 0x773   :  { %v3329_v50 = vpop.eup %3328 }
 0x774   :  { %v3331_v52 = vpop.eup %3330  ;;  %1088 = vrot.lane.b32.xlu1 %v3329_v50, %s3476_s30 }
 0x775   :  { %1086 = vrot.lane.b32.xlu0 %v3331_v52, %s3476_s30 }
 0x7df   :  { %v1085_v55 = vpop.permute.xlu1 %1084 }
 0x7e0   :  { %v1095_v53 = vmul.f32 %v1085_v55, %v1075_v54  ;;  %v1083_v34 = vpop.permute.xlu0 %1082 }
 0x7e1   :  { %v1094_v33 = vmul.f32 %v1083_v34, %v1074_v56 }
 0x7e2   :  { %v4037_v61 = vadd.f32 %v1099_v58, %v1095_v53 }
 0x7e3   :  { %v4039_v63 = vadd.f32 %v1098_v60, %v1094_v33 }
 0x7e4   :  { %1112 = vrot.lane.b32.xlu1 %v4037_v61, %s3476_s30 }
 0x7e5   :  { %1110 = vrot.lane.b32.xlu0 %v4039_v63, %s3476_s30 }
 0x7e6   :  { %v1089_v1 = vpop.permute.xlu1 %1088 }
 0x7e7   :  { %v1097_v3 = vmul.f32 %v1089_v1, %v1077_v57  ;;  %v1087_v62 = vpop.permute.xlu0 %1086 }
 0x7e8   :  { %v1096_v11 = vmul.f32 %v1087_v62, %v1076_v2 }
 0x7e9   :  { %v4047_v14 = vadd.f32 %v1101_v10, %v1097_v3 }
 0x7ea   :  { %v4049_v35 = vadd.f32 %v1100_v32, %v1096_v11 }
 0x7eb   :  { %1116 = vrot.lane.b32.xlu1 %v4047_v14, %s3476_s30 }
 0x7ec   :  { %1114 = vrot.lane.b32.xlu0 %v4049_v35, %s3476_s30 }
 0x856   :  { %v1113_v4 = vpop.permute.xlu1 %1112 }
 0x857   :  { %1124 = vst.msk [vmem:[#allocation3 + $0x48] sm:$0xff] %vm74_vm0, %v1113_v4  ;;  %v1111_v12 = vpop.permute.xlu0 %1110 }
 0x858   :  { %1123 = vst.msk [vmem:[#allocation3 + $0x40] sm:$0xff] %vm74_vm0, %v1111_v12  ;;  %3055 = vmatprep.mubr.msk.f32.mxu1 %vm74_vm0, %v1111_v12 }
 0x859   :  { %3056 = vmatmul.mubr.msk.f32.vlgmr.msra.gmra.mrb[28].mxu1 %vm74_vm0, %v1113_v4 }
 0x85a   :  { %3216 = vmatpush3.bf16.msra.mxu1 %v3549_v9 }
 0x85b   :  { %3218 = vmatprep.subr.bf16.mxu1 %v3576_v16 }
 0x85d   :  { %v1117_v26 = vpop.permute.xlu1 %1116 }
 0x85e   :  { %1126 = vst.msk [vmem:[#allocation3 + $0x58] sm:$0xff] %vm74_vm0, %v1117_v26  ;;  %v1115_v27 = vpop.permute.xlu0 %1114  ;;  %3220 = vmatpush3.bf16.msra.mxu1 %v3576_v16  ;;  %v2255_v6 = vld [vmem:[#allocation3 + $0x48] sm:$0xff] }
 0x85f   :  { %1125 = vst.msk [vmem:[#allocation3 + $0x50] sm:$0xff] %vm74_vm0, %v1115_v27  ;;  %3058 = vmatprep.mubr.msk.f32.mxu1 %vm74_vm0, %v1115_v27  ;;  %v2254_v5 = vld [vmem:[#allocation3 + $0x40] sm:$0xff]  ;;  %3222 = vmatprep.subr.bf16.mxu1 %v3549_v9 }
 0x860   :  { %3059 = vmatmul.mubr.msk.f32.gmra.mrb[30].mxu1 %vm74_vm0, %v1117_v26  ;;  %3137 = vmatprep.mubr.msk.f32.mxu0 %vm74_vm0, %v2254_v5 }
 0x861   :  { %3138 = vmatmul.mubr.msk.f32.gmra.mrb[24].mxu0 %vm74_vm0, %v2255_v6 }
 0x865   :  { %v2257_v8 = vld [vmem:[#allocation3 + $0x58] sm:$0xff] }
 0x866   :  { %v2256_v7 = vld [vmem:[#allocation3 + $0x50] sm:$0xff] }
 0x867   :  { %3140 = vmatprep.mubr.msk.f32.mxu0 %vm74_vm0, %v2256_v7 }
 0x868   :  { %3141 = vmatmul.mubr.msk.f32.gmra.mrb[26].mxu0 %vm74_vm0, %v2257_v8 }
 0x92c   :  { %v3057_v13 = vpop.f32.mrb[28].mxu1 }
 0x92d   :  { %v1212_v19 = vadd.f32 %v3057_v13, %v3731_v18  ;;  %v1206_v21 = vpop.f32.mrb[29].mxu1 }
 0x92e   :  { %v1207_v45 = vadd.f32 %v3731_v18, %v1206_v21 }
 0x92f   :  { %1259 = vrot.lane.b32.xlu1 %v1212_v19, %s3474_s28  ;;  %v1226_v42 = vadd.f32 %v1212_v19, %v1129_v40 }
 0x930   :  { %1257 = vrot.lane.b32.xlu0 %v1207_v45, %s3474_s28  ;;  %v1225_v43 = vadd.f32 %v1207_v45, %v1128_v41 }
 0x931   :  { %v2745_v44 = vmul.f32 -1.442695, %v1226_v42 }
 0x932   :  { %v2744_v47 = vmul.f32 -1.442695, %v1225_v43 }
 0x933   :  { %v3060_v17 = vpop.f32.mrb[30].mxu1  ;;  %3332 = vpow2.f32 %v2745_v44 }
 0x934   :  { %v1222_v22 = vadd.f32 %v3060_v17, %v3731_v18  ;;  %v1216_v51 = vpop.f32.mrb[31].mxu1  ;;  %v3139_v25 = vpop.f32.mrb[24].mxu0  ;;  %3334 = vpow2.f32 %v2744_v47 }
 0x935   :  { %v1217_v28 = vadd.f32 %v3731_v18, %v1216_v51  ;;  %v2497_v29 = vadd.f32 %v3139_v25, %v3921_v36  ;;  %v2491_v59 = vpop.f32.mrb[25].mxu0 }
 0x936   :  { %v2492_v0 = vadd.f32 %v3921_v36, %v2491_v59  ;;  %1263 = vrot.lane.b32.xlu1 %v1222_v22, %s3474_s28  ;;  %v1228_v48 = vadd.f32 %v1222_v22, %v1131_v46 }
 0x937   :  { %v2619_v30 = vadd.f32 %v2497_v29, %v3803_v20  ;;  %1261 = vrot.lane.b32.xlu0 %v1217_v28, %s3474_s28 }
 0x938   :  { %v2618_v31 = vadd.f32 %v2492_v0, %v3793_v15  ;;  %v2747_v49 = vmul.f32 -1.442695, %v1228_v48 }
 0x939   :  { %2651 = vst.msk [vmem:[%s4524_s8 + $0x48] sm:$0xff] %vm74_vm0, %v2619_v30 }
 0x93a   :  { %2650 = vst.msk [vmem:[%s4524_s8 + $0x40] sm:$0xff] %vm74_vm0, %v2618_v31  ;;  %3336 = vpow2.f32 %v2747_v49 }
 0x93b   :  { %v3142_v18 = vpop.f32.mrb[26].mxu0 }
 0x93c   :  { %v2507_v37 = vadd.f32 %v3142_v18, %v3921_v36  ;;  %v2501_v38 = vpop.f32.mrb[27].mxu0 }
 0x93d   :  { %v2502_v20 = vadd.f32 %v3921_v36, %v2501_v38  ;;  %v3333_v52 = vpop.eup %3332 }
 0x93e   :  { %v2621_v39 = vadd.f32 %v2507_v37, %v3816_v24  ;;  %v1130_v24 = vld [vmem:[#allocation2 + $0x70] sm:$0xff]  ;;  %v3335_v54 = vpop.eup %3334  ;;  %v1242_v55 = vadd.f32 1.0, %v3333_v52  ;;  %v4150_v52 = vld [vmem:[%s4521_s5] ss:$0 sm:$0xff] }
 0x93f   :  { %v2620_v15 = vadd.f32 %v2502_v20, %v3811_v23  ;;  %v1227_v23 = vadd.f32 %v1217_v28, %v1130_v24  ;;  %v1241_v56 = vadd.f32 1.0, %v3335_v54 }
 0x940   :  { %2653 = vst.msk [vmem:[%s4524_s8 + $0x58] sm:$0xff] %vm74_vm0, %v2621_v39 }
 0x941   :  { %2652 = vst.msk [vmem:[%s4524_s8 + $0x50] sm:$0xff] %vm74_vm0, %v2620_v15  ;;  %v2746_v50 = vmul.f32 -1.442695, %v1227_v23 }
 0x943   :  { %3338 = vpow2.f32 %v2746_v50 }
 0x944   :  { %v3337_v58 = vpop.eup %3336  ;;  %3340 = vrcp.f32 %v1242_v55 }
 0x945   :  { %3342 = vrcp.f32 %v1241_v56  ;;  %v1244_v34 = vadd.f32 1.0, %v3337_v58 }
 0x947   :  { %3344 = vrcp.f32 %v1244_v34 }
 0x94d   :  { %v3339_v53 = vpop.eup %3338 }
 0x94e   :  { %v1243_v60 = vadd.f32 1.0, %v3339_v53  ;;  %v3341_v33 = vpop.eup %3340 }
 0x94f   :  { %v3343_v1 = vpop.eup %3342  ;;  %v1298_v25 = vsub.f32 1.0, %v3341_v33  ;;  %v1322_v59 = vmul.f32 %v3341_v33, %v4037_v61 }
 0x950   :  { %3346 = vrcp.f32 %v1243_v60  ;;  %v1297_v29 = vsub.f32 1.0, %v3343_v1  ;;  %v1321_v31 = vmul.f32 %v3343_v1, %v4039_v63 }
 0x951   :  { %v3345_v62 = vpop.eup %3344 }
 0x952   :  { %v1300_v20 = vsub.f32 1.0, %v3345_v62  ;;  %v1324_v61 = vmul.f32 %v3345_v62, %v4047_v14 }
 0x95a   :  { %v3347_v11 = vpop.eup %3346 }
 0x95b   :  { %v1299_v15 = vsub.f32 1.0, %v3347_v11  ;;  %v1323_v63 = vmul.f32 %v3347_v11, %v4049_v35 }
 0x9a1   :  { %v1260_v57 = vpop.permute.xlu1 %1259 }
 0x9a2   :  { %v1270_v2 = vmul.f32 %v3341_v33, %v1260_v57  ;;  %v1258_v10 = vpop.permute.xlu0 %1257 }
 0x9a3   :  { %v1269_v3 = vmul.f32 %v3343_v1, %v1258_v10  ;;  %v3453_v10 = vld [vmem:[%s4517_s0 + $0x68] sm:$0xff] }
 0x9a4   :  { %1279 = vrot.lane.b32.xlu1 %v1270_v2, %s3474_s28 }
 0x9a5   :  { %1277 = vrot.lane.b32.xlu0 %v1269_v3, %s3474_s28 }
 0x9a8   :  { %v1264_v32 = vpop.permute.xlu1 %1263 }
 0x9a9   :  { %v1272_v4 = vmul.f32 %v3345_v62, %v1264_v32  ;;  %v1262_v12 = vpop.permute.xlu0 %1261  ;;  %v3454_v62 = vld [vmem:[%s4517_s0 + $0x60] sm:$0xff] }
 0x9aa   :  { %v1271_v26 = vmul.f32 %v3347_v11, %v1262_v12 }
 0x9ab   :  { %1283 = vrot.lane.b32.xlu1 %v1272_v4, %s3474_s28 }
 0x9ac   :  { %1281 = vrot.lane.b32.xlu0 %v1271_v26, %s3474_s28 }
 0xa16   :  { %v1280_v27 = vpop.permute.xlu1 %1279 }
 0xa17   :  { %v1290_v5 = vadd.f32 %v1280_v27, %v1129_v40  ;;  %v1278_v6 = vpop.permute.xlu0 %1277  ;;  %v3455_v27 = vld [vmem:[%s4517_s0 + $0x78] sm:$0xff] }
 0xa18   :  { %v1289_v7 = vadd.f32 %v1278_v6, %v1128_v41  ;;  %v3456_v6 = vld [vmem:[%s4517_s0 + $0x70] sm:$0xff] }
 0xa19   :  { %3348 = vtanh.f32 %v1290_v5 }
 0xa1a   :  { %3350 = vtanh.f32 %v1289_v7 }
 0xa1d   :  { %v1284_v8 = vpop.permute.xlu1 %1283 }
 0xa1e   :  { %v1292_v13 = vadd.f32 %v1284_v8, %v1131_v46  ;;  %v1282_v19 = vpop.permute.xlu0 %1281 }
 0xa1f   :  { %v1291_v21 = vadd.f32 %v1282_v19, %v1130_v24 }
 0xa20   :  { %3352 = vtanh.f32 %v1292_v13  ;;  %v1351_v13 = vld [vmem:[#allocation2 + $0x80] sm:$0xff] }
 0xa21   :  { %3354 = vtanh.f32 %v1291_v21 }
 0xa23   :  { %v3349_v45 = vpop.eup %3348 }
 0xa24   :  { %v3351_v17 = vpop.eup %3350  ;;  %1307 = vrot.lane.b32.xlu1 %v3349_v45, %s3476_s30 }
 0xa25   :  { %1305 = vrot.lane.b32.xlu0 %v3351_v17, %s3476_s30  ;;  %v1354_v17 = vld [vmem:[#allocation2 + $0x98] sm:$0xff] }
 0xa2a   :  { %v3353_v22 = vpop.eup %3352 }
 0xa2b   :  { %v3355_v51 = vpop.eup %3354  ;;  %1311 = vrot.lane.b32.xlu1 %v3353_v22, %s3476_s30 }
 0xa2c   :  { %1309 = vrot.lane.b32.xlu0 %v3355_v51, %s3476_s30  ;;  %v1353_v51 = vld [vmem:[#allocation2 + $0x90] sm:$0xff] }
 0xa96   :  { %v1308_v28 = vpop.permute.xlu1 %1307 }
 0xa97   :  { %v1318_v0 = vmul.f32 %v1308_v28, %v1298_v25  ;;  %v1306_v30 = vpop.permute.xlu0 %1305 }
 0xa98   :  { %v1317_v18 = vmul.f32 %v1306_v30, %v1297_v29 }
 0xa99   :  { %v4113_v37 = vadd.f32 %v1322_v59, %v1318_v0 }
 0xa9a   :  { %v4115_v38 = vadd.f32 %v1321_v31, %v1317_v18 }
 0xa9b   :  { %1335 = vrot.lane.b32.xlu1 %v4113_v37, %s3476_s30 }
 0xa9c   :  { %1333 = vrot.lane.b32.xlu0 %v4115_v38, %s3476_s30 }
 0xa9d   :  { %v1312_v39 = vpop.permute.xlu1 %1311 }
 0xa9e   :  { %v1320_v40 = vmul.f32 %v1312_v39, %v1300_v20  ;;  %v1310_v41 = vpop.permute.xlu0 %1309 }
 0xa9f   :  { %v1319_v42 = vmul.f32 %v1310_v41, %v1299_v15 }
 0xaa0   :  { %v4123_v43 = vadd.f32 %v1324_v61, %v1320_v40 }
 0xaa1   :  { %v4125_v44 = vadd.f32 %v1323_v63, %v1319_v42 }
 0xaa2   :  { %1339 = vrot.lane.b32.xlu1 %v4123_v43, %s3476_s30 }
 0xaa3   :  { %1337 = vrot.lane.b32.xlu0 %v4125_v44, %s3476_s30 }
 0xb0d   :  { %v1336_v46 = vpop.permute.xlu1 %1335 }
 0xb0e   :  { %1347 = vst.msk [vmem:[#allocation3 + $0x68] sm:$0xff] %vm74_vm0, %v1336_v46  ;;  %v1334_v47 = vpop.permute.xlu0 %1333 }
 0xb0f   :  { %1346 = vst.msk [vmem:[#allocation3 + $0x60] sm:$0xff] %vm74_vm0, %v1334_v47  ;;  %3069 = vmatprep.mubr.msk.f32.mxu1 %vm74_vm0, %v1334_v47 }
 0xb10   :  { %3070 = vmatmul.mubr.msk.f32.vlgmr.msra.gmra.mrb[32].mxu1 %vm74_vm0, %v1336_v46 }
 0xb11   :  { %3224 = vmatpush3.bf16.msra.mxu1 %v3549_v9 }
 0xb12   :  { %3226 = vmatprep.subr.bf16.mxu1 %v3576_v16 }
 0xb14   :  { %v1340_v14 = vpop.permute.xlu1 %1339 }
 0xb15   :  { %1349 = vst.msk [vmem:[#allocation3 + $0x78] sm:$0xff] %vm74_vm0, %v1340_v14  ;;  %v1338_v35 = vpop.permute.xlu0 %1337  ;;  %3228 = vmatpush3.bf16.msra.mxu1 %v3576_v16  ;;  %v2259_v48 = vld [vmem:[#allocation3 + $0x68] sm:$0xff] }
 0xb16   :  { %1348 = vst.msk [vmem:[#allocation3 + $0x70] sm:$0xff] %vm74_vm0, %v1338_v35  ;;  %3072 = vmatprep.mubr.msk.f32.mxu1 %vm74_vm0, %v1338_v35  ;;  %v2258_v24 = vld [vmem:[#allocation3 + $0x60] sm:$0xff]  ;;  %3230 = vmatprep.subr.bf16.mxu1 %v3549_v9 }
 0xb17   :  { %3073 = vmatmul.mubr.msk.f32.gmra.mrb[34].mxu1 %vm74_vm0, %v1340_v14  ;;  %3143 = vmatprep.mubr.msk.f32.mxu0 %vm74_vm0, %v2258_v24 }
 0xb18   :  { %3144 = vmatmul.mubr.msk.f32.gmra.mrb[28].mxu0 %vm74_vm0, %v2259_v48 }
 0xb1c   :  { %v2261_v49 = vld [vmem:[#allocation3 + $0x78] sm:$0xff] }
 0xb1d   :  { %v2260_v23 = vld [vmem:[#allocation3 + $0x70] sm:$0xff] }
 0xb1e   :  { %3146 = vmatprep.mubr.msk.f32.mxu0 %vm74_vm0, %v2260_v23 }
 0xb1f   :  { %3147 = vmatmul.mubr.msk.f32.gmra.mrb[30].mxu0 %vm74_vm0, %v2261_v49 }
 0xbe3   :  { %v3071_v50 = vpop.f32.mrb[32].mxu1 }
 0xbe4   :  { %v1435_v54 = vadd.f32 %v4150_v52, %v3071_v50  ;;  %v1429_v55 = vpop.f32.mrb[33].mxu1 }
 0xbe5   :  { %v1430_v56 = vadd.f32 %v4150_v52, %v1429_v55 }
 0xbe6   :  { %1482 = vrot.lane.b32.xlu1 %v1435_v54, %s3474_s28 }
 0xbe7   :  { %1480 = vrot.lane.b32.xlu0 %v1430_v56, %s3474_s28  ;;  %v1448_v19 = vadd.f32 %v1430_v56, %v1351_v13 }
 0xbe9   :  { %v2752_v45 = vmul.f32 -1.442695, %v1448_v19 }
 0xbea   :  { %v3074_v58 = vpop.f32.mrb[34].mxu1 }
 0xbeb   :  { %v1445_v53 = vadd.f32 %v4150_v52, %v3074_v58  ;;  %v1439_v34 = vpop.f32.mrb[35].mxu1  ;;  %v3145_v60 = vpop.f32.mrb[28].mxu0 }
 0xbec   :  { %v1440_v33 = vadd.f32 %v4150_v52, %v1439_v34  ;;  %v2517_v57 = vadd.f32 %v3145_v60, %v3921_v36  ;;  %v2511_v1 = vpop.f32.mrb[29].mxu0 }
 0xbed   :  { %v2512_v2 = vadd.f32 %v3921_v36, %v2511_v1  ;;  %1486 = vrot.lane.b32.xlu1 %v1445_v53, %s3474_s28  ;;  %v1451_v22 = vadd.f32 %v1445_v53, %v1354_v17 }
 0xbee   :  { %v2623_v3 = vadd.f32 %v3453_v10, %v2517_v57  ;;  %1484 = vrot.lane.b32.xlu0 %v1440_v33, %s3474_s28  ;;  %v1450_v25 = vadd.f32 %v1440_v33, %v1353_v51 }
 0xbef   :  { %v2622_v32 = vadd.f32 %v3454_v62, %v2512_v2  ;;  %v2755_v28 = vmul.f32 -1.442695, %v1451_v22 }
 0xbf0   :  { %2655 = vst.msk [vmem:[%s4524_s8 + $0x68] sm:$0xff] %vm74_vm0, %v2623_v3  ;;  %v2754_v29 = vmul.f32 -1.442695, %v1450_v25 }
 0xbf1   :  { %2654 = vst.msk [vmem:[%s4524_s8 + $0x60] sm:$0xff] %vm74_vm0, %v2622_v32 }
 0xbf2   :  { %v3148_v11 = vpop.f32.mrb[30].mxu0 }
 0xbf3   :  { %v2527_v4 = vadd.f32 %v3148_v11, %v3921_v36  ;;  %v2521_v12 = vpop.f32.mrb[31].mxu0 }
 0xbf4   :  { %v2522_v26 = vadd.f32 %v3921_v36, %v2521_v12  ;;  %v1352_v36 = vld [vmem:[#allocation2 + $0x88] sm:$0xff] }
 0xbf5   :  { %v2625_v5 = vadd.f32 %v3455_v27, %v2527_v4  ;;  %v1449_v8 = vadd.f32 %v1435_v54, %v1352_v36 }
 0xbf6   :  { %v2624_v7 = vadd.f32 %v3456_v6, %v2522_v26 }
 0xbf7   :  { %2657 = vst.msk [vmem:[%s4524_s8 + $0x78] sm:$0xff] %vm74_vm0, %v2625_v5  ;;  %v2753_v21 = vmul.f32 -1.442695, %v1449_v8 }
 0xbf8   :  { %2656 = vst.msk [vmem:[%s4524_s8 + $0x70] sm:$0xff] %vm74_vm0, %v2624_v7 }
 0xbf9   :  { %3356 = vpow2.f32 %v2753_v21 }
 0xbfa   :  { %3358 = vpow2.f32 %v2752_v45 }
 0xbfb   :  { %3360 = vpow2.f32 %v2755_v28 }
 0xbfc   :  { %3362 = vpow2.f32 %v2754_v29 }
 0xc03   :  { %v3357_v59 = vpop.eup %3356 }
 0xc04   :  { %v3359_v0 = vpop.eup %3358  ;;  %v1465_v30 = vadd.f32 1.0, %v3357_v59 }
 0xc05   :  { %v1464_v31 = vadd.f32 1.0, %v3359_v0  ;;  %v3361_v18 = vpop.eup %3360 }
 0xc06   :  { %3364 = vrcp.f32 %v1465_v30  ;;  %v3363_v20 = vpop.eup %3362  ;;  %v1467_v39 = vadd.f32 1.0, %v3361_v18 }
 0xc07   :  { %3366 = vrcp.f32 %v1464_v31  ;;  %v1466_v15 = vadd.f32 1.0, %v3363_v20 }
 0xc08   :  { %3368 = vrcp.f32 %v1467_v39 }
 0xc09   :  { %3370 = vrcp.f32 %v1466_v15 }
 0xc10   :  { %v3365_v61 = vpop.eup %3364 }
 0xc11   :  { %v3367_v41 = vpop.eup %3366  ;;  %v1521_v2 = vsub.f32 1.0, %v3365_v61  ;;  %v1545_v62 = vmul.f32 %v3365_v61, %v4113_v37 }
 0xc12   :  { %v3369_v47 = vpop.eup %3368  ;;  %v1520_v3 = vsub.f32 1.0, %v3367_v41  ;;  %v1544_v4 = vmul.f32 %v3367_v41, %v4115_v38 }
 0xc13   :  { %v3371_v35 = vpop.eup %3370  ;;  %v1523_v5 = vsub.f32 1.0, %v3369_v47  ;;  %v1547_v37 = vmul.f32 %v3369_v47, %v4123_v43 }
 0xc14   :  { %v1522_v7 = vsub.f32 1.0, %v3371_v35  ;;  %v1546_v38 = vmul.f32 %v3371_v35, %v4125_v44 }
 0xc58   :  { %v1483_v40 = vpop.permute.xlu1 %1482 }
 0xc59   :  { %v1493_v63 = vmul.f32 %v3365_v61, %v1483_v40  ;;  %v1481_v42 = vpop.permute.xlu0 %1480  ;;  %v4245_v61 = vld [vmem:[%s4523_s7] ss:$0 sm:$0xff] }
 0xc5a   :  { %v1492_v46 = vmul.f32 %v3367_v41, %v1481_v42  ;;  %v3458_v42 = vld [vmem:[%s4517_s0 + $0x88] sm:$0xff] }
 0xc5b   :  { %1502 = vrot.lane.b32.xlu1 %v1493_v63, %s3474_s28 }
 0xc5c   :  { %1500 = vrot.lane.b32.xlu0 %v1492_v46, %s3474_s28 }
 0xc5f   :  { %v1487_v14 = vpop.permute.xlu1 %1486 }
 0xc60   :  { %v1495_v24 = vmul.f32 %v3369_v47, %v1487_v14  ;;  %v1485_v48 = vpop.permute.xlu0 %1484  ;;  %v3459_v47 = vld [vmem:[%s4517_s0 + $0x80] sm:$0xff] }
 0xc61   :  { %v1494_v23 = vmul.f32 %v3371_v35, %v1485_v48 }
 0xc62   :  { %1506 = vrot.lane.b32.xlu1 %v1495_v24, %s3474_s28 }
 0xc63   :  { %1504 = vrot.lane.b32.xlu0 %v1494_v23, %s3474_s28 }
 0xccd   :  { %v1503_v49 = vpop.permute.xlu1 %1502 }
 0xcce   :  { %v1513_v50 = vadd.f32 %v1503_v49, %v1352_v36  ;;  %v1501_v54 = vpop.permute.xlu0 %1500  ;;  %v3460_v49 = vld [vmem:[%s4517_s0 + $0x98] sm:$0xff] }
 0xccf   :  { %v1512_v55 = vadd.f32 %v1501_v54, %v1351_v13  ;;  %v3461_v54 = vld [vmem:[%s4517_s0 + $0x90] sm:$0xff] }
 0xcd0   :  { %3372 = vtanh.f32 %v1513_v50 }
 0xcd1   :  { %3374 = vtanh.f32 %v1512_v55 }
 0xcd4   :  { %v1507_v56 = vpop.permute.xlu1 %1506 }
 0xcd5   :  { %v1515_v58 = vadd.f32 %v1507_v56, %v1354_v17  ;;  %v1505_v53 = vpop.permute.xlu0 %1504  ;;  %v1575_v56 = vld [vmem:[#allocation2 + $0xa8] sm:$0xff] }
 0xcd6   :  { %v1514_v34 = vadd.f32 %v1505_v53, %v1353_v51  ;;  %v1574_v53 = vld [vmem:[#allocation2 + $0xa0] sm:$0xff] }
 0xcd7   :  { %3376 = vtanh.f32 %v1515_v58 }
 0xcd8   :  { %3378 = vtanh.f32 %v1514_v34 }
 0xcda   :  { %v3373_v60 = vpop.eup %3372 }
 0xcdb   :  { %v3375_v33 = vpop.eup %3374  ;;  %1530 = vrot.lane.b32.xlu1 %v3373_v60, %s3476_s30 }
 0xcdc   :  { %1528 = vrot.lane.b32.xlu0 %v3375_v33, %s3476_s30 }
 0xce1   :  { %v3377_v57 = vpop.eup %3376 }
 0xce2   :  { %v3379_v1 = vpop.eup %3378  ;;  %1534 = vrot.lane.b32.xlu1 %v3377_v57, %s3476_s30  ;;  %v1577_v57 = vld [vmem:[#allocation2 + $0xb8] sm:$0xff] }
 0xce3   :  { %1532 = vrot.lane.b32.xlu0 %v3379_v1, %s3476_s30 }
 0xd4d   :  { %v1531_v10 = vpop.permute.xlu1 %1530 }
 0xd4e   :  { %v1541_v32 = vmul.f32 %v1531_v10, %v1521_v2  ;;  %v1529_v11 = vpop.permute.xlu0 %1528  ;;  %v1576_v2 = vld [vmem:[#allocation2 + $0xb0] sm:$0xff] }
 0xd4f   :  { %v1540_v12 = vmul.f32 %v1529_v11, %v1520_v3 }
 0xd50   :  { %v4202_v26 = vadd.f32 %v1545_v62, %v1541_v32 }
 0xd51   :  { %v4204_v27 = vadd.f32 %v1544_v4, %v1540_v12 }
 0xd52   :  { %1558 = vrot.lane.b32.xlu1 %v4202_v26, %s3476_s30 }
 0xd53   :  { %1556 = vrot.lane.b32.xlu0 %v4204_v27, %s3476_s30 }
 0xd54   :  { %v1535_v6 = vpop.permute.xlu1 %1534 }
 0xd55   :  { %v1543_v36 = vmul.f32 %v1535_v6, %v1523_v5  ;;  %v1533_v8 = vpop.permute.xlu0 %1532 }
 0xd56   :  { %v1542_v13 = vmul.f32 %v1533_v8, %v1522_v7 }
 0xd57   :  { %v4212_v19 = vadd.f32 %v1547_v37, %v1543_v36 }
 0xd58   :  { %v4214_v21 = vadd.f32 %v1546_v38, %v1542_v13 }
 0xd59   :  { %1562 = vrot.lane.b32.xlu1 %v4212_v19, %s3476_s30 }
 0xd5a   :  { %1560 = vrot.lane.b32.xlu0 %v4214_v21, %s3476_s30 }
 0xdc4   :  { %v1559_v45 = vpop.permute.xlu1 %1558 }
 0xdc5   :  { %1570 = vst.msk [vmem:[#allocation3 + $0x88] sm:$0xff] %vm74_vm0, %v1559_v45  ;;  %v1557_v17 = vpop.permute.xlu0 %1556 }
 0xdc6   :  { %1569 = vst.msk [vmem:[#allocation3 + $0x80] sm:$0xff] %vm74_vm0, %v1557_v17  ;;  %3083 = vmatprep.mubr.msk.f32.mxu1 %vm74_vm0, %v1557_v17 }
 0xdc7   :  { %3084 = vmatmul.mubr.msk.f32.vlgmr.msra.gmra.mrb[36].mxu1 %vm74_vm0, %v1559_v45 }
 0xdc8   :  { %3232 = vmatpush3.bf16.msra.mxu1 %v3549_v9 }
 0xdc9   :  { %3234 = vmatprep.subr.bf16.mxu1 %v3576_v16 }
 0xdcb   :  { %v1563_v43 = vpop.permute.xlu1 %1562 }
 0xdcc   :  { %1572 = vst.msk [vmem:[#allocation3 + $0x98] sm:$0xff] %vm74_vm0, %v1563_v43  ;;  %v1561_v44 = vpop.permute.xlu0 %1560  ;;  %3236 = vmatpush3.bf16.msra.mxu1 %v3576_v16  ;;  %v2263_v51 = vld [vmem:[#allocation3 + $0x88] sm:$0xff] }
 0xdcd   :  { %1571 = vst.msk [vmem:[#allocation3 + $0x90] sm:$0xff] %vm74_vm0, %v1561_v44  ;;  %3086 = vmatprep.mubr.msk.f32.mxu1 %vm74_vm0, %v1561_v44  ;;  %v2262_v22 = vld [vmem:[#allocation3 + $0x80] sm:$0xff]  ;;  %3238 = vmatprep.subr.bf16.mxu1 %v3549_v9 }
 0xdce   :  { %3087 = vmatmul.mubr.msk.f32.gmra.mrb[38].mxu1 %vm74_vm0, %v1563_v43  ;;  %3149 = vmatprep.mubr.msk.f32.mxu0 %vm74_vm0, %v2262_v22 }
 0xdcf   :  { %3150 = vmatmul.mubr.msk.f32.gmra.mrb[32].mxu0 %vm74_vm0, %v2263_v51 }
 0xdd3   :  { %v2265_v28 = vld [vmem:[#allocation3 + $0x98] sm:$0xff] }
 0xdd4   :  { %v2264_v25 = vld [vmem:[#allocation3 + $0x90] sm:$0xff] }
 0xdd5   :  { %3152 = vmatprep.mubr.msk.f32.mxu0 %vm74_vm0, %v2264_v25 }
 0xdd6   :  { %3153 = vmatmul.mubr.msk.f32.gmra.mrb[34].mxu0 %vm74_vm0, %v2265_v28 }
 0xe9a   :  { %v3085_v29 = vpop.f32.mrb[36].mxu1 }
 0xe9b   :  { %v1658_v59 = vadd.f32 %v4150_v52, %v3085_v29  ;;  %v1652_v0 = vpop.f32.mrb[37].mxu1 }
 0xe9c   :  { %v1653_v30 = vadd.f32 %v4150_v52, %v1652_v0 }
 0xe9d   :  { %1705 = vrot.lane.b32.xlu1 %v1658_v59, %s3474_s28  ;;  %v1672_v58 = vadd.f32 %v1658_v59, %v1575_v56 }
 0xe9e   :  { %1703 = vrot.lane.b32.xlu0 %v1653_v30, %s3474_s28  ;;  %v1671_v34 = vadd.f32 %v1653_v30, %v1574_v53 }
 0xe9f   :  { %v2761_v60 = vmul.f32 -1.442695, %v1672_v58 }
 0xea0   :  { %v2760_v33 = vmul.f32 -1.442695, %v1671_v34 }
 0xea1   :  { %v3088_v31 = vpop.f32.mrb[38].mxu1  ;;  %3380 = vpow2.f32 %v2761_v60 }
 0xea2   :  { %v1668_v18 = vadd.f32 %v4150_v52, %v3088_v31  ;;  %v1662_v20 = vpop.f32.mrb[39].mxu1  ;;  %v3151_v39 = vpop.f32.mrb[32].mxu0  ;;  %3382 = vpow2.f32 %v2760_v33 }
 0xea3   :  { %v1663_v15 = vadd.f32 %v4150_v52, %v1662_v20  ;;  %v2537_v40 = vadd.f32 %v4245_v61, %v3151_v39  ;;  %v2531_v41 = vpop.f32.mrb[33].mxu0 }
 0xea4   :  { %v2532_v63 = vadd.f32 %v4245_v61, %v2531_v41  ;;  %1709 = vrot.lane.b32.xlu1 %v1668_v18, %s3474_s28  ;;  %v1674_v1 = vadd.f32 %v1668_v18, %v1577_v57 }
 0xea5   :  { %v2627_v46 = vadd.f32 %v3458_v42, %v2537_v40  ;;  %1707 = vrot.lane.b32.xlu0 %v1663_v15, %s3474_s28  ;;  %v1673_v10 = vadd.f32 %v1663_v15, %v1576_v2 }
 0xea6   :  { %v2626_v14 = vadd.f32 %v3459_v47, %v2532_v63  ;;  %v2763_v3 = vmul.f32 -1.442695, %v1674_v1 }
 0xea7   :  { %2659 = vst.msk [vmem:[%s4524_s8 + $0x88] sm:$0xff] %vm74_vm0, %v2627_v46  ;;  %v2762_v62 = vmul.f32 -1.442695, %v1673_v10 }
 0xea8   :  { %2658 = vst.msk [vmem:[%s4524_s8 + $0x80] sm:$0xff] %vm74_vm0, %v2626_v14  ;;  %3384 = vpow2.f32 %v2763_v3 }
 0xea9   :  { %v3154_v35 = vpop.f32.mrb[34].mxu0  ;;  %3386 = vpow2.f32 %v2762_v62 }
 0xeaa   :  { %v2547_v24 = vadd.f32 %v4245_v61, %v3154_v35  ;;  %v2541_v48 = vpop.f32.mrb[35].mxu0 }
 0xeab   :  { %v2542_v23 = vadd.f32 %v4245_v61, %v2541_v48  ;;  %v3381_v32 = vpop.eup %3380 }
 0xeac   :  { %v2629_v50 = vadd.f32 %v3460_v49, %v2547_v24  ;;  %v3383_v11 = vpop.eup %3382  ;;  %v1688_v4 = vadd.f32 1.0, %v3381_v32 }
 0xead   :  { %v2628_v55 = vadd.f32 %v3461_v54, %v2542_v23  ;;  %v1687_v12 = vadd.f32 1.0, %v3383_v11 }
 0xeae   :  { %2661 = vst.msk [vmem:[%s4524_s8 + $0x98] sm:$0xff] %vm74_vm0, %v2629_v50  ;;  %3388 = vrcp.f32 %v1688_v4 }
 0xeaf   :  { %2660 = vst.msk [vmem:[%s4524_s8 + $0x90] sm:$0xff] %vm74_vm0, %v2628_v55  ;;  %3390 = vrcp.f32 %v1687_v12 }
 0xeb2   :  { %v3385_v5 = vpop.eup %3384 }
 0xeb3   :  { %v3387_v6 = vpop.eup %3386  ;;  %v1690_v7 = vadd.f32 1.0, %v3385_v5 }
 0xeb4   :  { %v1689_v37 = vadd.f32 1.0, %v3387_v6 }
 0xeb5   :  { %3392 = vrcp.f32 %v1690_v7 }
 0xeb6   :  { %3394 = vrcp.f32 %v1689_v37 }
 0xeb8   :  { %v3389_v36 = vpop.eup %3388 }
 0xeb9   :  { %v3391_v38 = vpop.eup %3390  ;;  %v1744_v42 = vsub.f32 1.0, %v3389_v36  ;;  %v1768_v14 = vmul.f32 %v3389_v36, %v4202_v26 }
 0xeba   :  { %v1743_v47 = vsub.f32 1.0, %v3391_v38  ;;  %v1767_v48 = vmul.f32 %v3391_v38, %v4204_v27 }
 0xebf   :  { %v3393_v43 = vpop.eup %3392 }
 0xec0   :  { %v3395_v22 = vpop.eup %3394  ;;  %v1746_v54 = vsub.f32 1.0, %v3393_v43  ;;  %v1770_v26 = vmul.f32 %v3393_v43, %v4212_v19 }
 0xec1   :  { %v1769_v27 = vmul.f32 %v3395_v22, %v4214_v21 }
 0xf0f   :  { %v1706_v8 = vpop.permute.xlu1 %1705 }
 0xf10   :  { %v1716_v13 = vmul.f32 %v3389_v36, %v1706_v8  ;;  %v1704_v45 = vpop.permute.xlu0 %1703 }
 0xf11   :  { %v1715_v17 = vmul.f32 %v3391_v38, %v1704_v45  ;;  %v3462_v38 = vld [vmem:[%s4517_s0 + $0xa8] sm:$0xff]  ;;  %v3463_v45 = vld [vmem:[%s4517_s0 + $0xa0] sm:$0xff] }
 0xf12   :  { %1725 = vrot.lane.b32.xlu1 %v1716_v13, %s3474_s28 }
 0xf13   :  { %1723 = vrot.lane.b32.xlu0 %v1715_v17, %s3474_s28 }
 0xf16   :  { %v1710_v44 = vpop.permute.xlu1 %1709 }
 0xf17   :  { %v1718_v51 = vmul.f32 %v3393_v43, %v1710_v44  ;;  %v1708_v25 = vpop.permute.xlu0 %1707 }
 0xf18   :  { %v1717_v28 = vmul.f32 %v3395_v22, %v1708_v25  ;;  %v3464_v25 = vld [vmem:[%s4517_s0 + $0xb8] sm:$0xff] }
 0xf19   :  { %1729 = vrot.lane.b32.xlu1 %v1718_v51, %s3474_s28 }
 0xf1a   :  { %1727 = vrot.lane.b32.xlu0 %v1717_v28, %s3474_s28 }
 0xf84   :  { %v1726_v29 = vpop.permute.xlu1 %1725 }
 0xf85   :  { %v1736_v59 = vadd.f32 %v1726_v29, %v1575_v56  ;;  %v1724_v0 = vpop.permute.xlu0 %1723  ;;  %v1745_v56 = vsub.f32 1.0, %v3395_v22  ;;  %v3465_v29 = vld [vmem:[%s4517_s0 + $0xb0] sm:$0xff] }
 0xf86   :  { %v1735_v30 = vadd.f32 %v1724_v0, %v1574_v53  ;;  %v1798_v0 = vld [vmem:[#allocation2 + $0xc8] sm:$0xff] }
 0xf87   :  { %3396 = vtanh.f32 %v1736_v59 }
 0xf88   :  { %3398 = vtanh.f32 %v1735_v30 }
 0xf8b   :  { %v1730_v31 = vpop.permute.xlu1 %1729 }
 0xf8c   :  { %v1738_v18 = vadd.f32 %v1730_v31, %v1577_v57  ;;  %v1728_v20 = vpop.permute.xlu0 %1727  ;;  %v1797_v31 = vld [vmem:[#allocation2 + $0xc0] sm:$0xff] }
 0xf8d   :  { %v1737_v39 = vadd.f32 %v1728_v20, %v1576_v2 }
 0xf8e   :  { %3400 = vtanh.f32 %v1738_v18 }
 0xf8f   :  { %3402 = vtanh.f32 %v1737_v39 }
 0xf91   :  { %v3397_v15 = vpop.eup %3396 }
 0xf92   :  { %v3399_v40 = vpop.eup %3398  ;;  %1753 = vrot.lane.b32.xlu1 %v3397_v15, %s3476_s30  ;;  %v1800_v15 = vld [vmem:[#allocation2 + $0xd8] sm:$0xff] }
 0xf93   :  { %1751 = vrot.lane.b32.xlu0 %v3399_v40, %s3476_s30 }
 0xf98   :  { %v3401_v41 = vpop.eup %3400 }
 0xf99   :  { %v3403_v63 = vpop.eup %3402  ;;  %1757 = vrot.lane.b32.xlu1 %v3401_v41, %s3476_s30  ;;  %v1799_v41 = vld [vmem:[#allocation2 + $0xd0] sm:$0xff] }
 0xf9a   :  { %1755 = vrot.lane.b32.xlu0 %v3403_v63, %s3476_s30 }
0x1004   :  { %v1754_v46 = vpop.permute.xlu1 %1753 }
0x1005   :  { %v1764_v35 = vmul.f32 %v1754_v46, %v1744_v42  ;;  %v1752_v24 = vpop.permute.xlu0 %1751 }
0x1006   :  { %v1763_v23 = vmul.f32 %v1752_v24, %v1743_v47 }
0x1007   :  { %v4291_v49 = vadd.f32 %v1768_v14, %v1764_v35 }
0x1008   :  { %v4293_v50 = vadd.f32 %v1767_v48, %v1763_v23 }
0x1009   :  { %1781 = vrot.lane.b32.xlu1 %v4291_v49, %s3476_s30 }
0x100a   :  { %1779 = vrot.lane.b32.xlu0 %v4293_v50, %s3476_s30 }
0x100b   :  { %v1758_v55 = vpop.permute.xlu1 %1757 }
0x100c   :  { %v1766_v58 = vmul.f32 %v1758_v55, %v1746_v54  ;;  %v1756_v53 = vpop.permute.xlu0 %1755 }
0x100d   :  { %v1765_v34 = vmul.f32 %v1756_v53, %v1745_v56 }
0x100e   :  { %v4301_v60 = vadd.f32 %v1770_v26, %v1766_v58 }
0x100f   :  { %v4303_v33 = vadd.f32 %v1769_v27, %v1765_v34 }
0x1010   :  { %1785 = vrot.lane.b32.xlu1 %v4301_v60, %s3476_s30 }
0x1011   :  { %1783 = vrot.lane.b32.xlu0 %v4303_v33, %s3476_s30 }
0x107b   :  { %v1782_v57 = vpop.permute.xlu1 %1781 }
0x107c   :  { %1793 = vst.msk [vmem:[#allocation3 + $0xa8] sm:$0xff] %vm74_vm0, %v1782_v57  ;;  %v1780_v1 = vpop.permute.xlu0 %1779 }
0x107d   :  { %1792 = vst.msk [vmem:[#allocation3 + $0xa0] sm:$0xff] %vm74_vm0, %v1780_v1  ;;  %3097 = vmatprep.mubr.msk.f32.mxu1 %vm74_vm0, %v1780_v1 }
0x107e   :  { %3098 = vmatmul.mubr.msk.f32.vlgmr.msra.gmra.mrb[40].mxu1 %vm74_vm0, %v1782_v57 }
0x107f   :  { %3240 = vmatpush3.bf16.msra.mxu1 %v3549_v9 }
0x1080   :  { %3242 = vmatprep.subr.bf16.mxu1 %v3576_v16 }
0x1082   :  { %v1786_v19 = vpop.permute.xlu1 %1785 }
0x1083   :  { %1795 = vst.msk [vmem:[#allocation3 + $0xb8] sm:$0xff] %vm74_vm0, %v1786_v19  ;;  %v1784_v21 = vpop.permute.xlu0 %1783  ;;  %3244 = vmatpush3.bf16.msra.mxu1 %v3576_v16  ;;  %v2267_v10 = vld [vmem:[#allocation3 + $0xa8] sm:$0xff] }
0x1084   :  { %1794 = vst.msk [vmem:[#allocation3 + $0xb0] sm:$0xff] %vm74_vm0, %v1784_v21  ;;  %3100 = vmatprep.mubr.msk.f32.mxu1 %vm74_vm0, %v1784_v21  ;;  %v2266_v2 = vld [vmem:[#allocation3 + $0xa0] sm:$0xff] }
0x1085   :  { %3101 = vmatmul.mubr.msk.f32.gmra.mrb[42].mxu1 %vm74_vm0, %v1786_v19  ;;  %3155 = vmatprep.mubr.msk.f32.mxu0 %vm74_vm0, %v2266_v2 }
0x1086   :  { %3156 = vmatmul.mubr.msk.f32.gmra.mrb[36].mxu0 %vm74_vm0, %v2267_v10 }
0x108a   :  { %v2269_v3 = vld [vmem:[#allocation3 + $0xb8] sm:$0xff] }
0x108b   :  { %v2268_v9 = vld [vmem:[#allocation3 + $0xb0] sm:$0xff] }
0x108c   :  { %3158 = vmatprep.mubr.msk.f32.mxu0 %vm74_vm0, %v2268_v9 }
0x108d   :  { %3159 = vmatmul.mubr.msk.f32.gmra.mrb[38].mxu0 %vm74_vm0, %v2269_v3 }
0x1151   :  { %v3099_v62 = vpop.f32.mrb[40].mxu1 }
0x1152   :  { %v1881_v16 = vadd.f32 %v4150_v52, %v3099_v62  ;;  %v1875_v32 = vpop.f32.mrb[41].mxu1 }
0x1153   :  { %v1876_v11 = vadd.f32 %v4150_v52, %v1875_v32 }
0x1154   :  { %1928 = vrot.lane.b32.xlu1 %v1881_v16, %s3474_s28  ;;  %v1895_v30 = vadd.f32 %v1881_v16, %v1798_v0 }
0x1155   :  { %1926 = vrot.lane.b32.xlu0 %v1876_v11, %s3474_s28  ;;  %v1894_v18 = vadd.f32 %v1876_v11, %v1797_v31 }
0x1156   :  { %v2769_v20 = vmul.f32 -1.442695, %v1895_v30 }
0x1157   :  { %v2768_v39 = vmul.f32 -1.442695, %v1894_v18 }
0x1158   :  { %v3102_v4 = vpop.f32.mrb[42].mxu1  ;;  %3404 = vpow2.f32 %v2769_v20 }
0x1159   :  { %v1891_v12 = vadd.f32 %v4150_v52, %v3102_v4  ;;  %v1885_v5 = vpop.f32.mrb[43].mxu1  ;;  %v3157_v6 = vpop.f32.mrb[36].mxu0  ;;  %3406 = vpow2.f32 %v2768_v39 }
0x115a   :  { %v1886_v7 = vadd.f32 %v4150_v52, %v1885_v5  ;;  %v2557_v37 = vadd.f32 %v4245_v61, %v3157_v6  ;;  %v2551_v36 = vpop.f32.mrb[37].mxu0 }
0x115b   :  { %v2552_v8 = vadd.f32 %v4245_v61, %v2551_v36  ;;  %1932 = vrot.lane.b32.xlu1 %v1891_v12, %s3474_s28  ;;  %v1897_v40 = vadd.f32 %v1891_v12, %v1800_v15 }
0x115c   :  { %v2631_v13 = vadd.f32 %v3462_v38, %v2557_v37  ;;  %1930 = vrot.lane.b32.xlu0 %v1886_v7, %s3474_s28  ;;  %v1896_v63 = vadd.f32 %v1886_v7, %v1799_v41 }
0x115d   :  { %v2630_v17 = vadd.f32 %v3463_v45, %v2552_v8  ;;  %v2771_v42 = vmul.f32 -1.442695, %v1897_v40 }
0x115e   :  { %2663 = vst.msk [vmem:[%s4524_s8 + $0xa8] sm:$0xff] %vm74_vm0, %v2631_v13  ;;  %v2770_v46 = vmul.f32 -1.442695, %v1896_v63 }
0x115f   :  { %2662 = vst.msk [vmem:[%s4524_s8 + $0xa0] sm:$0xff] %vm74_vm0, %v2630_v17  ;;  %3408 = vpow2.f32 %v2771_v42 }
0x1160   :  { %v3160_v43 = vpop.f32.mrb[38].mxu0  ;;  %3410 = vpow2.f32 %v2770_v46 }
0x1161   :  { %v2567_v44 = vadd.f32 %v4245_v61, %v3160_v43  ;;  %v2561_v22 = vpop.f32.mrb[39].mxu0 }
0x1162   :  { %v2562_v51 = vadd.f32 %v4245_v61, %v2561_v22  ;;  %v3405_v47 = vpop.eup %3404 }
0x1163   :  { %v2633_v28 = vadd.f32 %v3464_v25, %v2567_v44  ;;  %v3407_v14 = vpop.eup %3406  ;;  %v1911_v35 = vadd.f32 1.0, %v3405_v47 }
0x1164   :  { %v2632_v59 = vadd.f32 %v3465_v29, %v2562_v51  ;;  %v1910_v24 = vadd.f32 1.0, %v3407_v14 }
0x1165   :  { %2665 = vst.msk [vmem:[%s4524_s8 + $0xb8] sm:$0xff] %vm74_vm0, %v2633_v28  ;;  %3412 = vrcp.f32 %v1911_v35 }
0x1166   :  { %2664 = vst.msk [vmem:[%s4524_s8 + $0xb0] sm:$0xff] %vm74_vm0, %v2632_v59  ;;  %3414 = vrcp.f32 %v1910_v24 }
0x1169   :  { %v3409_v48 = vpop.eup %3408 }
0x116a   :  { %v3411_v23 = vpop.eup %3410  ;;  %v1913_v54 = vadd.f32 1.0, %v3409_v48 }
0x116b   :  { %v1912_v55 = vadd.f32 1.0, %v3411_v23 }
0x116c   :  { %3416 = vrcp.f32 %v1913_v54 }
0x116d   :  { %3418 = vrcp.f32 %v1912_v55 }
0x116f   :  { %v3413_v56 = vpop.eup %3412 }
0x1170   :  { %v3415_v58 = vpop.eup %3414  ;;  %v1967_v36 = vsub.f32 1.0, %v3413_v56  ;;  %v1991_v13 = vmul.f32 %v3413_v56, %v4291_v49 }
0x1171   :  { %v1966_v38 = vsub.f32 1.0, %v3415_v58  ;;  %v1990_v43 = vmul.f32 %v3415_v58, %v4293_v50 }
0x1176   :  { %v3417_v57 = vpop.eup %3416 }
0x1177   :  { %v3419_v19 = vpop.eup %3418  ;;  %v1969_v25 = vsub.f32 1.0, %v3417_v57  ;;  %v1993_v49 = vmul.f32 %v3417_v57, %v4301_v60 }
0x1178   :  { %v1968_v29 = vsub.f32 1.0, %v3419_v19  ;;  %v1992_v50 = vmul.f32 %v3419_v19, %v4303_v33 }
0x11c6   :  { %v1929_v26 = vpop.permute.xlu1 %1928 }
0x11c7   :  { %v1939_v53 = vmul.f32 %v3413_v56, %v1929_v26  ;;  %v1927_v27 = vpop.permute.xlu0 %1926 }
0x11c8   :  { %v1938_v34 = vmul.f32 %v3415_v58, %v1927_v27  ;;  %v3466_v58 = vld [vmem:[%s4517_s0 + $0xc8] sm:$0xff]  ;;  %v3467_v27 = vld [vmem:[%s4517_s0 + $0xc0] sm:$0xff] }
0x11c9   :  { %1948 = vrot.lane.b32.xlu1 %v1939_v53, %s3474_s28 }
0x11ca   :  { %1946 = vrot.lane.b32.xlu0 %v1938_v34, %s3474_s28 }
0x11cd   :  { %v1933_v1 = vpop.permute.xlu1 %1932 }
0x11ce   :  { %v1941_v21 = vmul.f32 %v3417_v57, %v1933_v1  ;;  %v1931_v2 = vpop.permute.xlu0 %1930 }
0x11cf   :  { %v1940_v10 = vmul.f32 %v3419_v19, %v1931_v2 }
0x11d0   :  { %1952 = vrot.lane.b32.xlu1 %v1941_v21, %s3474_s28  ;;  %v3468_v21 = vld [vmem:[%s4517_s0 + $0xd8] sm:$0xff] }
0x11d1   :  { %1950 = vrot.lane.b32.xlu0 %v1940_v10, %s3474_s28  ;;  %v3469_v10 = vld [vmem:[%s4517_s0 + $0xd0] sm:$0xff] }
0x123b   :  { %v1949_v9 = vpop.permute.xlu1 %1948 }
0x123c   :  { %v1959_v3 = vadd.f32 %v1949_v9, %v1798_v0  ;;  %v1947_v62 = vpop.permute.xlu0 %1946 }
0x123d   :  { %v1958_v16 = vadd.f32 %v1947_v62, %v1797_v31 }
0x123e   :  { %3420 = vtanh.f32 %v1959_v3  ;;  %v2021_v3 = vld [vmem:[#allocation2 + $0xe8] sm:$0xff] }
0x123f   :  { %3422 = vtanh.f32 %v1958_v16  ;;  %v2020_v16 = vld [vmem:[#allocation2 + $0xe0] sm:$0xff] }
0x1242   :  { %v1953_v32 = vpop.permute.xlu1 %1952 }
0x1243   :  { %v1961_v11 = vadd.f32 %v1953_v32, %v1800_v15  ;;  %v1951_v4 = vpop.permute.xlu0 %1950 }
0x1244   :  { %v1960_v12 = vadd.f32 %v1951_v4, %v1799_v41 }
0x1245   :  { %3424 = vtanh.f32 %v1961_v11 }
0x1246   :  { %3426 = vtanh.f32 %v1960_v12  ;;  %v2023_v12 = vld [vmem:[#allocation2 + $0xf8] sm:$0xff] }
0x1248   :  { %v3421_v5 = vpop.eup %3420 }
0x1249   :  { %v3423_v6 = vpop.eup %3422  ;;  %1976 = vrot.lane.b32.xlu1 %v3421_v5, %s3476_s30 }
0x124a   :  { %1974 = vrot.lane.b32.xlu0 %v3423_v6, %s3476_s30  ;;  %v2022_v6 = vld [vmem:[#allocation2 + $0xf0] sm:$0xff] }
0x124f   :  { %v3425_v7 = vpop.eup %3424 }
0x1250   :  { %v3427_v37 = vpop.eup %3426  ;;  %1980 = vrot.lane.b32.xlu1 %v3425_v7, %s3476_s30 }
0x1251   :  { %1978 = vrot.lane.b32.xlu0 %v3427_v37, %s3476_s30 }
0x12bb   :  { %v1977_v8 = vpop.permute.xlu1 %1976 }
0x12bc   :  { %v1987_v45 = vmul.f32 %v1977_v8, %v1967_v36  ;;  %v1975_v17 = vpop.permute.xlu0 %1974 }
0x12bd   :  { %v1986_v44 = vmul.f32 %v1975_v17, %v1966_v38 }
0x12be   :  { %v4374_v22 = vadd.f32 %v1991_v13, %v1987_v45 }
0x12bf   :  { %v4376_v51 = vadd.f32 %v1990_v43, %v1986_v44 }
0x12c0   :  { %2004 = vrot.lane.b32.xlu1 %v4374_v22, %s3476_s30 }
0x12c1   :  { %2002 = vrot.lane.b32.xlu0 %v4376_v51, %s3476_s30 }
0x12c2   :  { %v1981_v28 = vpop.permute.xlu1 %1980 }
0x12c3   :  { %v1989_v59 = vmul.f32 %v1981_v28, %v1969_v25  ;;  %v1979_v0 = vpop.permute.xlu0 %1978 }
0x12c4   :  { %v1988_v30 = vmul.f32 %v1979_v0, %v1968_v29 }
0x12c5   :  { %v4384_v31 = vadd.f32 %v1993_v49, %v1989_v59 }
0x12c6   :  { %v4386_v18 = vadd.f32 %v1992_v50, %v1988_v30 }
0x12c7   :  { %2008 = vrot.lane.b32.xlu1 %v4384_v31, %s3476_s30 }
0x12c8   :  { %2006 = vrot.lane.b32.xlu0 %v4386_v18, %s3476_s30 }
0x1332   :  { %v2005_v20 = vpop.permute.xlu1 %2004 }
0x1333   :  { %2016 = vst.msk [vmem:[#allocation3 + $0xc8] sm:$0xff] %vm74_vm0, %v2005_v20  ;;  %v2003_v39 = vpop.permute.xlu0 %2002 }
0x1334   :  { %2015 = vst.msk [vmem:[#allocation3 + $0xc0] sm:$0xff] %vm74_vm0, %v2003_v39  ;;  %3111 = vmatprep.mubr.msk.f32.mxu1 %vm74_vm0, %v2003_v39 }
0x1335   :  { %3112 = vmatmul.mubr.msk.f32.vlgmr.msra.gmra.mrb[44].mxu1 %vm74_vm0, %v2005_v20 }
0x1339   :  { %v2009_v60 = vpop.permute.xlu1 %2008 }
0x133a   :  { %2018 = vst.msk [vmem:[#allocation3 + $0xd8] sm:$0xff] %vm74_vm0, %v2009_v60  ;;  %v2007_v33 = vpop.permute.xlu0 %2006  ;;  %v2271_v40 = vld [vmem:[#allocation3 + $0xc8] sm:$0xff] }
0x133b   :  { %2017 = vst.msk [vmem:[#allocation3 + $0xd0] sm:$0xff] %vm74_vm0, %v2007_v33  ;;  %3114 = vmatprep.mubr.msk.f32.mxu1 %vm74_vm0, %v2007_v33  ;;  %v2270_v15 = vld [vmem:[#allocation3 + $0xc0] sm:$0xff] }
0x133c   :  { %3115 = vmatmul.mubr.msk.f32.gmra.mrb[46].mxu1 %vm74_vm0, %v2009_v60  ;;  %3161 = vmatprep.mubr.msk.f32.mxu0 %vm74_vm0, %v2270_v15 }
0x133d   :  { %3162 = vmatmul.mubr.msk.f32.gmra.mrb[40].mxu0 %vm74_vm0, %v2271_v40 }
0x1341   :  { %v2273_v63 = vld [vmem:[#allocation3 + $0xd8] sm:$0xff] }
0x1342   :  { %v2272_v41 = vld [vmem:[#allocation3 + $0xd0] sm:$0xff] }
0x1343   :  { %3164 = vmatprep.mubr.msk.f32.mxu0 %vm74_vm0, %v2272_v41 }
0x1344   :  { %3165 = vmatmul.mubr.msk.f32.gmra.mrb[42].mxu0 %vm74_vm0, %v2273_v63 }
0x1408   :  { %v3113_v42 = vpop.f32.mrb[44].mxu1 }
0x1409   :  { %v2104_v46 = vadd.f32 %v4150_v52, %v3113_v42  ;;  %v2098_v47 = vpop.f32.mrb[45].mxu1 }
0x140a   :  { %v2099_v14 = vadd.f32 %v4150_v52, %v2098_v47 }
0x140b   :  { %2151 = vrot.lane.b32.xlu1 %v2104_v46, %s3474_s28  ;;  %v2118_v62 = vadd.f32 %v2104_v46, %v2021_v3 }
0x140c   :  { %2149 = vrot.lane.b32.xlu0 %v2099_v14, %s3474_s28  ;;  %v2117_v32 = vadd.f32 %v2099_v14, %v2020_v16 }
0x140d   :  { %v2777_v11 = vmul.f32 -1.442695, %v2118_v62 }
0x140e   :  { %v2776_v4 = vmul.f32 -1.442695, %v2117_v32 }
0x140f   :  { %v3116_v35 = vpop.f32.mrb[46].mxu1  ;;  %3428 = vpow2.f32 %v2777_v11 }
0x1410   :  { %v2114_v24 = vadd.f32 %v4150_v52, %v3116_v35  ;;  %v2108_v48 = vpop.f32.mrb[47].mxu1  ;;  %v3163_v23 = vpop.f32.mrb[40].mxu0  ;;  %3430 = vpow2.f32 %v2776_v4 }
0x1411   :  { %v2109_v54 = vadd.f32 %v4150_v52, %v2108_v48  ;;  %v2577_v55 = vadd.f32 %v4245_v61, %v3163_v23  ;;  %v2571_v56 = vpop.f32.mrb[41].mxu0 }
0x1412   :  { %v2572_v26 = vadd.f32 %v4245_v61, %v2571_v56  ;;  %2155 = vrot.lane.b32.xlu1 %v2114_v24, %s3474_s28  ;;  %v2120_v5 = vadd.f32 %v2114_v24, %v2023_v12 }
0x1413   :  { %v2635_v53 = vadd.f32 %v3466_v58, %v2577_v55  ;;  %2153 = vrot.lane.b32.xlu0 %v2109_v54, %s3474_s28  ;;  %v2119_v7 = vadd.f32 %v2109_v54, %v2022_v6 }
0x1414   :  { %v2634_v34 = vadd.f32 %v3467_v27, %v2572_v26  ;;  %v2779_v37 = vmul.f32 -1.442695, %v2120_v5 }
0x1415   :  { %2667 = vst.msk [vmem:[%s4524_s8 + $0xc8] sm:$0xff] %vm74_vm0, %v2635_v53  ;;  %v2778_v36 = vmul.f32 -1.442695, %v2119_v7 }
0x1416   :  { %2666 = vst.msk [vmem:[%s4524_s8 + $0xc0] sm:$0xff] %vm74_vm0, %v2634_v34  ;;  %3432 = vpow2.f32 %v2779_v37 }
0x1417   :  { %v3166_v52 = vpop.f32.mrb[42].mxu0  ;;  %3434 = vpow2.f32 %v2778_v36 }
0x1418   :  { %v2587_v57 = vadd.f32 %v4245_v61, %v3166_v52  ;;  %v2581_v1 = vpop.f32.mrb[43].mxu0 }
0x1419   :  { %v2582_v19 = vadd.f32 %v4245_v61, %v2581_v1  ;;  %v3429_v8 = vpop.eup %3428 }
0x141a   :  { %v2637_v2 = vadd.f32 %v3468_v21, %v2587_v57  ;;  %v3431_v38 = vpop.eup %3430  ;;  %v2134_v13 = vadd.f32 1.0, %v3429_v8 }
0x141b   :  { %v2636_v9 = vadd.f32 %v3469_v10, %v2582_v19  ;;  %v2133_v45 = vadd.f32 1.0, %v3431_v38  ;;  %v3470_v38 = vld [vmem:[%s4517_s0 + $0xe8] sm:$0xff] }
0x141c   :  { %2669 = vst.msk [vmem:[%s4524_s8 + $0xd8] sm:$0xff] %vm74_vm0, %v2637_v2  ;;  %3436 = vrcp.f32 %v2134_v13 }
0x141d   :  { %2668 = vst.msk [vmem:[%s4524_s8 + $0xd0] sm:$0xff] %vm74_vm0, %v2636_v9  ;;  %3438 = vrcp.f32 %v2133_v45  ;;  %v3471_v45 = vld [vmem:[%s4517_s0 + $0xe0] sm:$0xff] }
0x1420   :  { %v3433_v17 = vpop.eup %3432 }
0x1421   :  { %v3435_v43 = vpop.eup %3434  ;;  %v2136_v44 = vadd.f32 1.0, %v3433_v17 }
0x1422   :  { %v2135_v25 = vadd.f32 1.0, %v3435_v43 }
0x1423   :  { %3440 = vrcp.f32 %v2136_v44 }
0x1424   :  { %3442 = vrcp.f32 %v2135_v25 }
0x1426   :  { %v3437_v28 = vpop.eup %3436 }
0x1427   :  { %v3439_v49 = vpop.eup %3438  ;;  %v2190_v55 = vsub.f32 1.0, %v3437_v28  ;;  %v2214_v58 = vmul.f32 %v3437_v28, %v4374_v22 }
0x1428   :  { %v2189_v26 = vsub.f32 1.0, %v3439_v49  ;;  %v2213_v34 = vmul.f32 %v3439_v49, %v4376_v51 }
0x142d   :  { %v3441_v30 = vpop.eup %3440 }
0x142e   :  { %v3443_v39 = vpop.eup %3442  ;;  %v2192_v19 = vsub.f32 1.0, %v3441_v30  ;;  %v2216_v10 = vmul.f32 %v3441_v30, %v4384_v31 }
0x142f   :  { %v2191_v2 = vsub.f32 1.0, %v3443_v39  ;;  %v2215_v22 = vmul.f32 %v3443_v39, %v4386_v18 }
0x147d   :  { %v2152_v29 = vpop.permute.xlu1 %2151 }
0x147e   :  { %v2162_v59 = vmul.f32 %v3437_v28, %v2152_v29  ;;  %v2150_v0 = vpop.permute.xlu0 %2149  ;;  %v3472_v29 = vld [vmem:[%s4517_s0 + $0xf8] sm:$0xff] }
0x147f   :  { %v2161_v50 = vmul.f32 %v3439_v49, %v2150_v0 }
0x1480   :  { %2171 = vrot.lane.b32.xlu1 %v2162_v59, %s3474_s28  ;;  %v3473_v59 = vld [vmem:[%s4517_s0 + $0xf0] sm:$0xff] }
0x1481   :  { %2169 = vrot.lane.b32.xlu0 %v2161_v50, %s3474_s28 }
0x1484   :  { %v2156_v20 = vpop.permute.xlu1 %2155 }
0x1485   :  { %v2164_v60 = vmul.f32 %v3441_v30, %v2156_v20  ;;  %v2154_v33 = vpop.permute.xlu0 %2153 }
0x1486   :  { %v2163_v15 = vmul.f32 %v3443_v39, %v2154_v33 }
0x1487   :  { %2175 = vrot.lane.b32.xlu1 %v2164_v60, %s3474_s28 }
0x1488   :  { %2173 = vrot.lane.b32.xlu0 %v2163_v15, %s3474_s28 }
0x14f2   :  { %v2172_v40 = vpop.permute.xlu1 %2171 }
0x14f3   :  { %v2182_v41 = vadd.f32 %v2172_v40, %v2021_v3  ;;  %v2170_v63 = vpop.permute.xlu0 %2169 }
0x14f4   :  { %v2181_v42 = vadd.f32 %v2170_v63, %v2020_v16 }
0x14f5   :  { %3444 = vtanh.f32 %v2182_v41 }
0x14f6   :  { %3446 = vtanh.f32 %v2181_v42 }
0x14f9   :  { %v2176_v46 = vpop.permute.xlu1 %2175 }
0x14fa   :  { %v2184_v47 = vadd.f32 %v2176_v46, %v2023_v12  ;;  %v2174_v14 = vpop.permute.xlu0 %2173 }
0x14fb   :  { %v2183_v35 = vadd.f32 %v2174_v14, %v2022_v6 }
0x14fc   :  { %3448 = vtanh.f32 %v2184_v47 }
0x14fd   :  { %3450 = vtanh.f32 %v2183_v35 }
0x14ff   :  { %v3445_v24 = vpop.eup %3444 }
0x1500   :  { %v3447_v48 = vpop.eup %3446  ;;  %2199 = vrot.lane.b32.xlu1 %v3445_v24, %s3476_s30 }
0x1501   :  { %2197 = vrot.lane.b32.xlu0 %v3447_v48, %s3476_s30 }
0x1506   :  { %v3449_v23 = vpop.eup %3448 }
0x1507   :  { %v3451_v54 = vpop.eup %3450  ;;  %2203 = vrot.lane.b32.xlu1 %v3449_v23, %s3476_s30 }
0x1508   :  { %2201 = vrot.lane.b32.xlu0 %v3451_v54, %s3476_s30 }
0x1572   :  { %v2200_v56 = vpop.permute.xlu1 %2199 }
0x1573   :  { %v2210_v53 = vmul.f32 %v2200_v56, %v2190_v55  ;;  %v2198_v27 = vpop.permute.xlu0 %2197 }
0x1574   :  { %v2209_v52 = vmul.f32 %v2198_v27, %v2189_v26 }
0x1575   :  { %v2218_v57 = vadd.f32 %v2214_v58, %v2210_v53 }
0x1576   :  { %v2217_v1 = vadd.f32 %v2213_v34, %v2209_v52 }
0x1577   :  { %2227 = vrot.lane.b32.xlu1 %v2218_v57, %s3476_s30 }
0x1578   :  { %2225 = vrot.lane.b32.xlu0 %v2217_v1, %s3476_s30 }
0x1579   :  { %v2204_v21 = vpop.permute.xlu1 %2203 }
0x157a   :  { %v2212_v9 = vmul.f32 %v2204_v21, %v2192_v19  ;;  %v2202_v3 = vpop.permute.xlu0 %2201 }
0x157b   :  { %v2211_v62 = vmul.f32 %v2202_v3, %v2191_v2 }
0x157c   :  { %v2220_v16 = vadd.f32 %v2216_v10, %v2212_v9 }
0x157d   :  { %v2219_v32 = vadd.f32 %v2215_v22, %v2211_v62 }
0x157e   :  { %2231 = vrot.lane.b32.xlu1 %v2220_v16, %s3476_s30 }
0x157f   :  { %2229 = vrot.lane.b32.xlu0 %v2219_v32, %s3476_s30 }
0x15e9   :  { %v2228_v51 = vpop.permute.xlu1 %2227 }
0x15ea   :  { %2239 = vst.msk [vmem:[#allocation3 + $0xe8] sm:$0xff] %vm74_vm0, %v2228_v51  ;;  %2243 = vst.msk [vmem:[%s4525_s9 + $0x8] sm:$0xff] %vm74_vm0, %v2228_v51  ;;  %v2226_v31 = vpop.permute.xlu0 %2225 }
0x15eb   :  { %2238 = vst.msk [vmem:[#allocation3 + $0xe0] sm:$0xff] %vm74_vm0, %v2226_v31  ;;  %2242 = vst.msk [vmem:[%s4525_s9] sm:$0xff] %vm74_vm0, %v2226_v31 }
0x15f0   :  { %v2232_v18 = vpop.permute.xlu1 %2231 }
0x15f1   :  { %2241 = vst.msk [vmem:[#allocation3 + $0xf8] sm:$0xff] %vm74_vm0, %v2232_v18  ;;  %2245 = vst.msk [vmem:[%s4525_s9 + $0x18] sm:$0xff] %vm74_vm0, %v2232_v18  ;;  %v2230_v11 = vpop.permute.xlu0 %2229  ;;  %v2275_v12 = vld [vmem:[#allocation3 + $0xe8] sm:$0xff] }
0x15f2   :  { %2240 = vst.msk [vmem:[#allocation3 + $0xf0] sm:$0xff] %vm74_vm0, %v2230_v11  ;;  %2244 = vst.msk [vmem:[%s4525_s9 + $0x10] sm:$0xff] %vm74_vm0, %v2230_v11  ;;  %v2274_v4 = vld [vmem:[#allocation3 + $0xe0] sm:$0xff] }
0x15f3   :  { %3167 = vmatprep.mubr.msk.f32.mxu0 %vm74_vm0, %v2274_v4 }
0x15f4   :  { %3168 = vmatmul.mubr.msk.f32.gmra.mrb[44].mxu0 %vm74_vm0, %v2275_v12 }
0x15f8   :  { %v2277_v6 = vld [vmem:[#allocation3 + $0xf8] sm:$0xff] }
0x15f9   :  { %v2276_v5 = vld [vmem:[#allocation3 + $0xf0] sm:$0xff] }
0x15fa   :  { %3170 = vmatprep.mubr.msk.f32.mxu0 %vm74_vm0, %v2276_v5 }
0x15fb   :  { %3171 = vmatmul.mubr.msk.f32.gmra.mrb[46].mxu0 %vm74_vm0, %v2277_v6 }
0x16c7   :  { %v3169_v7 = vpop.f32.mrb[44].mxu0 }
0x16c8   :  { %v2597_v37 = vadd.f32 %v4245_v61, %v3169_v7  ;;  %v2591_v36 = vpop.f32.mrb[45].mxu0 }
0x16c9   :  { %v2592_v8 = vadd.f32 %v4245_v61, %v2591_v36 }
0x16ca   :  { %v2639_v13 = vadd.f32 %v3470_v38, %v2597_v37 }
0x16cb   :  { %v2638_v17 = vadd.f32 %v3471_v45, %v2592_v8 }
0x16cc   :  { %2671 = vst.msk [vmem:[%s4524_s8 + $0xe8] sm:$0xff] %vm74_vm0, %v2639_v13 }
0x16cd   :  { %2670 = vst.msk [vmem:[%s4524_s8 + $0xe0] sm:$0xff] %vm74_vm0, %v2638_v17 }
0x16ce   :  { %v3172_v43 = vpop.f32.mrb[46].mxu0 }
0x16cf   :  { %v2607_v44 = vadd.f32 %v4245_v61, %v3172_v43  ;;  %v2601_v25 = vpop.f32.mrb[47].mxu0 }
0x16d0   :  { %v2602_v28 = vadd.f32 %v4245_v61, %v2601_v25 }
0x16d1   :  { %v2641_v49 = vadd.f32 %v3472_v29, %v2607_v44 }
0x16d2   :  { %v2640_v0 = vadd.f32 %v3473_v59, %v2602_v28 }
0x16d3   :  { %2673 = vst.msk [vmem:[%s4524_s8 + $0xf8] sm:$0xff] %vm74_vm0, %v2641_v49 }
0x16d4   :  { %2672 = vst.msk [vmem:[%s4524_s8 + $0xf0] sm:$0xff] %vm74_vm0, %v2640_v0 }

// kernel: dual_path_extension_rnn.2
= control target key start
LH: loop header
LB: loop body
LE: loop exit
PB: predicated region body
PF: predicated region fallthrough
CT: control target
= control target key end

     0   :  { %vm90_vm0 = vcmask 261120   ;;  %v8662_v3 = vmov 0.0   ;;  %vm412_vm1 = vcmask 785408   ;;  %s8663_s19 = smov 64   ;;  %s10779_s1 = inlined_call_operand.vmem [shape: f32[32,96], index: 1, kind: input, shape index: {}]   ;;  %s10780_s0 = inlined_call_operand.vmem [shape: f32[256,32], index: 0, kind: input, shape index: {}]   ;;  %s10781_s5 = inlined_call_operand.vmem [shape: f32[32,96], index: 5, kind: input, shape index: {}]   ;;  %s10782_s2 = inlined_call_operand.vmem [shape: f32[32,96], index: 2, kind: input, shape index: {}]   ;;  %s10783_s6 = inlined_call_operand.vmem [shape: f32[32,96], index: 6, kind: input, shape index: {}]   ;;  %s10784_s3 = inlined_call_operand.vmem [shape: f32[1,96], index: 3, kind: input, shape index: {}]   ;;  %s10785_s7 = inlined_call_operand.vmem [shape: f32[1,96], index: 7, kind: input, shape index: {}]   ;;  %s10786_s8 = inlined_call_operand.vmem [shape: f32[1,96], index: 8, kind: input, shape index: {}]   ;;  %s10787_s4 = inlined_call_operand.vmem [shape: f32[1,96], index: 4, kind: input, shape index: {}]   ;;  %s10788_s10 = inlined_call_operand.vmem [shape: f32[32,32], index: 10, kind: input, shape index: {}]   ;;  %s10789_s9 = inlined_call_operand.vmem [shape: f32[32,32], index: 9, kind: input, shape index: {}]   ;;  %s10790_s11 = inlined_call_operand.vmem [shape: f32[1,32], index: 11, kind: input, shape index: {}]   ;;  %s10791_s12 = inlined_call_operand.vmem [shape: f32[1,32], index: 12, kind: input, shape index: {}]   ;;  %s10792_s13 = inlined_call_operand.vmem [shape: f32[1,32], index: 13, kind: input, shape index: {}]   ;;  %s10793_s14 = inlined_call_operand.vmem [shape: f32[256,32], index: 14, kind: output, shape index: {}]  }
   0x1   :  { %v79_v0 = vld [vmem:[%s10779_s1] sm:$0xff]  ;;  %v80_v1 = vld [vmem:[%s10779_s1 + $0x8] sm:$0xff]  ;;  %v81_v2 = vld [vmem:[%s10779_s1 + $0x10] sm:$0xff]  ;;  %7397 = vmatprep.mubr.f32.mxu0 %v8662_v3 }
   0x2   :  { %v7853_v4 = vpack.c.bf16 %v80_v1, %v79_v0  ;;  %v82_v5 = vld [vmem:[%s10779_s1 + $0x18] sm:$0xff]  ;;  %v8756_v6 = vld [vmem:[%s10780_s0] sm:$0xff]  ;;  %v446_v9 = vld [vmem:[%s10781_s5 + $0x8] sm:$0xff] }
   0x3   :  { %v7857_v7 = vpack.c.bf16 %v82_v5, %v81_v2  ;;  %7285 = vmatprep.mubr.msk.f32.mxu1 %vm90_vm0, %v8756_v6  ;;  %v445_v8 = vld [vmem:[%s10781_s5] sm:$0xff]  ;;  %v714_v11 = vld [vmem:[%s10782_s2 + $0x8] sm:$0xff]  ;;  %v715_v13 = vld [vmem:[%s10782_s2 + $0x10] sm:$0xff] }
   0x4   :  { %v713_v10 = vld [vmem:[%s10782_s2] sm:$0xff]  ;;  %7854 = vmatprep.subr.bf16.mxu1 %v7853_v4  ;;  %v716_v14 = vld [vmem:[%s10782_s2 + $0x18] sm:$0xff]  ;;  %v7861_v15 = vpack.c.bf16 %v446_v9, %v445_v8  ;;  %v8787_v17 = vld [vmem:[%s10780_s0 + $0x8] sm:$0xff]  ;;  %s8664_s2 = smov 96  }
   0x5   :  { %7856 = vmatpush3.bf16.msra.mxu1 %v7853_v4  ;;  %v8772_v12 = vpack.c.bf16 %v714_v11, %v713_v10  ;;  %v8780_v16 = vpack.c.bf16 %v716_v14, %v715_v13  ;;  %v8793_v18 = vld [vmem:[%s10780_s0 + $0x10] sm:$0xff]  ;;  %v448_v20 = vld [vmem:[%s10781_s5 + $0x18] sm:$0xff]  ;;  %v8814_v23 = vld [vmem:[%s10780_s0 + $0x20] sm:$0xff] }
   0x6   :  { %7858 = vmatprep.subr.bf16.mxu1 %v7857_v7  ;;  %v447_v19 = vld [vmem:[%s10781_s5 + $0x10] sm:$0xff]  ;;  %v8809_v22 = vld [vmem:[%s10780_s0 + $0x18] sm:$0xff]  ;;  %v717_v24 = vld [vmem:[%s10783_s6] sm:$0xff] }
   0x7   :  { %7870 = vmatprep.subr.bf16.mxu0 %v8772_v12  ;;  %v7865_v21 = vpack.c.bf16 %v448_v20, %v447_v19  ;;  %v718_v25 = vld [vmem:[%s10783_s6 + $0x8] sm:$0xff]  ;;  %v8839_v28 = vld [vmem:[%s10780_s0 + $0x30] sm:$0xff]  ;;  %v8851_v29 = vld [vmem:[%s10780_s0 + $0x38] sm:$0xff] }
   0x8   :  { %7872 = vmatpush3.bf16.msra.mxu0 %v8772_v12  ;;  %v8832_v26 = vld [vmem:[%s10780_s0 + $0x28] sm:$0xff]  ;;  %v8834_v27 = vpack.c.bf16 %v718_v25, %v717_v24  ;;  %v8857_v30 = vld [vmem:[%s10780_s0 + $0x40] sm:$0xff]  ;;  %v57_v32 = vld [vmem:[%s10780_s0 + $0x50] sm:$0xff] }
   0x9   :  { %7860 = vmatpush3.bf16.msra.mxu1 %v7857_v7  ;;  %7874 = vmatprep.subr.bf16.mxu0 %v8780_v16  ;;  %v56_v31 = vld [vmem:[%s10780_s0 + $0x48] sm:$0xff]  ;;  %v58_v33 = vld [vmem:[%s10780_s0 + $0x58] sm:$0xff]  ;;  %v59_v34 = vld [vmem:[%s10780_s0 + $0x60] sm:$0xff] }
   0xa   :  { %7862 = vmatprep.subr.bf16.mxu1 %v7861_v15  ;;  %v60_v35 = vld [vmem:[%s10780_s0 + $0x68] sm:$0xff]  ;;  %v61_v36 = vld [vmem:[%s10780_s0 + $0x70] sm:$0xff]  ;;  %v62_v37 = vld [vmem:[%s10780_s0 + $0x78] sm:$0xff] }
   0xb   :  { %v63_v38 = vld [vmem:[%s10780_s0 + $0x80] sm:$0xff]  ;;  %v64_v39 = vld [vmem:[%s10780_s0 + $0x88] sm:$0xff]  ;;  %v65_v40 = vld [vmem:[%s10780_s0 + $0x90] sm:$0xff] }
   0xc   :  { %7286 = vmatmul.mubr.msk.f32.vlgmr.msra.gmra.mrb[0].mxu1 %vm90_vm0, %v8787_v17  ;;  %7876 = vmatpush3.bf16.msra.mxu0 %v8780_v16  ;;  %v66_v41 = vld [vmem:[%s10780_s0 + $0x98] sm:$0xff]  ;;  %v67_v42 = vld [vmem:[%s10780_s0 + $0xa0] sm:$0xff]  ;;  %v68_v43 = vld [vmem:[%s10780_s0 + $0xa8] sm:$0xff] }
   0xd   :  { %7864 = vmatpush3.bf16.msra.mxu1 %v7861_v15  ;;  %7288 = vmatprep.mubr.msk.f32.mxu1 %vm90_vm0, %v8793_v18  ;;  %v69_v44 = vld [vmem:[%s10780_s0 + $0xb0] sm:$0xff]  ;;  %v70_v45 = vld [vmem:[%s10780_s0 + $0xb8] sm:$0xff]  ;;  %v71_v46 = vld [vmem:[%s10780_s0 + $0xc0] sm:$0xff] }
   0xe   :  { %7866 = vmatprep.subr.bf16.mxu1 %v7865_v21  ;;  %7886 = vmatprep.subr.bf16.mxu0 %v8772_v12  ;;  %v72_v47 = vld [vmem:[%s10780_s0 + $0xc8] sm:$0xff]  ;;  %v73_v48 = vld [vmem:[%s10780_s0 + $0xd0] sm:$0xff]  ;;  %v74_v49 = vld [vmem:[%s10780_s0 + $0xd8] sm:$0xff] }
   0xf   :  { %7398 = vmatmul.mubr.f32.vlgmr.msra.gmra.mrb[0].mxu0 %v8662_v3  ;;  %v75_v50 = vld [vmem:[%s10780_s0 + $0xe0] sm:$0xff]  ;;  %v76_v51 = vld [vmem:[%s10780_s0 + $0xe8] sm:$0xff]  ;;  %v77_v52 = vld [vmem:[%s10780_s0 + $0xf0] sm:$0xff] }
  0x10   :  { %7289 = vmatmul.mubr.msk.f32.gmra.mrb[2].mxu1 %vm90_vm0, %v8809_v22  ;;  %7888 = vmatpush3.bf16.msra.mxu0 %v8772_v12  ;;  %v78_v53 = vld [vmem:[%s10780_s0 + $0xf8] sm:$0xff]  ;;  %v719_v54 = vld [vmem:[%s10783_s6 + $0x10] sm:$0xff]  ;;  %v9017_v57 = vld [vmem:[%s10784_s3] ss:$0 sm:$0xff] }
  0x11   :  { %7291 = vmatprep.mubr.msk.f32.mxu1 %vm90_vm0, %v8814_v23  ;;  %7868 = vmatpush3.bf16.msra.mxu1 %v7865_v21  ;;  %v720_v55 = vld [vmem:[%s10783_s6 + $0x18] sm:$0xff] }
  0x12   :  { %7890 = vmatprep.subr.bf16.mxu0 %v8780_v16  ;;  %7878 = vmatprep.subr.bf16.mxu1 %v8834_v27  ;;  %v8963_v56 = vpack.c.bf16 %v720_v55, %v719_v54 }
  0x14   :  { %7292 = vmatmul.mubr.msk.f32.gmra.mrb[4].mxu1 %vm90_vm0, %v8832_v26  ;;  %7892 = vmatpush3.bf16.msra.mxu0 %v8780_v16 }
  0x15   :  { %7294 = vmatprep.mubr.msk.f32.mxu1 %vm90_vm0, %v8839_v28  ;;  %7902 = vmatprep.subr.bf16.mxu0 %v8772_v12 }
  0x18   :  { %7295 = vmatmul.mubr.msk.f32.gmra.mrb[6].mxu1 %vm90_vm0, %v8851_v29 }
  0x19   :  { %7297 = vmatprep.mubr.msk.f32.mxu1 %vm90_vm0, %v8857_v30 }
  0x1c   :  { %7298 = vmatmul.mubr.msk.f32.gmra.mrb[8].mxu1 %vm90_vm0, %v56_v31 }
  0x1d   :  { %7300 = vmatprep.mubr.msk.f32.mxu1 %vm90_vm0, %v57_v32 }
  0x20   :  { %7301 = vmatmul.mubr.msk.f32.gmra.mrb[10].mxu1 %vm90_vm0, %v58_v33 }
  0x21   :  { %7303 = vmatprep.mubr.msk.f32.mxu1 %vm90_vm0, %v59_v34 }
  0x24   :  { %7304 = vmatmul.mubr.msk.f32.gmra.mrb[12].mxu1 %vm90_vm0, %v60_v35 }
  0x25   :  { %7306 = vmatprep.mubr.msk.f32.mxu1 %vm90_vm0, %v61_v36 }
  0x28   :  { %7307 = vmatmul.mubr.msk.f32.gmra.mrb[14].mxu1 %vm90_vm0, %v62_v37 }
  0x29   :  { %7309 = vmatprep.mubr.msk.f32.mxu1 %vm90_vm0, %v63_v38 }
  0x2c   :  { %7310 = vmatmul.mubr.msk.f32.gmra.mrb[16].mxu1 %vm90_vm0, %v64_v39 }
  0x2d   :  { %7312 = vmatprep.mubr.msk.f32.mxu1 %vm90_vm0, %v65_v40 }
  0x30   :  { %7313 = vmatmul.mubr.msk.f32.gmra.mrb[18].mxu1 %vm90_vm0, %v66_v41 }
  0x31   :  { %7315 = vmatprep.mubr.msk.f32.mxu1 %vm90_vm0, %v67_v42 }
  0x34   :  { %7316 = vmatmul.mubr.msk.f32.gmra.mrb[20].mxu1 %vm90_vm0, %v68_v43 }
  0x35   :  { %7318 = vmatprep.mubr.msk.f32.mxu1 %vm90_vm0, %v69_v44 }
  0x38   :  { %7319 = vmatmul.mubr.msk.f32.gmra.mrb[22].mxu1 %vm90_vm0, %v70_v45 }
  0x39   :  { %7321 = vmatprep.mubr.msk.f32.mxu1 %vm90_vm0, %v71_v46 }
  0x3c   :  { %7322 = vmatmul.mubr.msk.f32.gmra.mrb[24].mxu1 %vm90_vm0, %v72_v47 }
  0x3d   :  { %7324 = vmatprep.mubr.msk.f32.mxu1 %vm90_vm0, %v73_v48 }
  0x40   :  { %7325 = vmatmul.mubr.msk.f32.gmra.mrb[26].mxu1 %vm90_vm0, %v74_v49 }
  0x41   :  { %7327 = vmatprep.mubr.msk.f32.mxu1 %vm90_vm0, %v75_v50 }
  0x44   :  { %7328 = vmatmul.mubr.msk.f32.gmra.mrb[28].mxu1 %vm90_vm0, %v76_v51 }
  0x45   :  { %7330 = vmatprep.mubr.msk.f32.mxu1 %vm90_vm0, %v77_v52 }
  0x48   :  { %7331 = vmatmul.mubr.msk.f32.gmra.mrb[30].mxu1 %vm90_vm0, %v78_v53 }
  0x49   :  { %7341 = vmatprep.mubr.msk.f32.mxu1 %vm90_vm0, %v8756_v6 }
  0x4c   :  { %7342 = vmatmul.mubr.msk.f32.vlgmr.msra.gmra.mrb[32].mxu1 %vm90_vm0, %v8787_v17 }
  0x4d   :  { %7880 = vmatpush3.bf16.msra.mxu1 %v8834_v27  ;;  %7344 = vmatprep.mubr.msk.f32.mxu1 %vm90_vm0, %v8793_v18 }
  0x4e   :  { %7882 = vmatprep.subr.bf16.mxu1 %v8963_v56 }
  0x50   :  { %7345 = vmatmul.mubr.msk.f32.gmra.mrb[34].mxu1 %vm90_vm0, %v8809_v22 }
  0x51   :  { %7347 = vmatprep.mubr.msk.f32.mxu1 %vm90_vm0, %v8814_v23  ;;  %7884 = vmatpush3.bf16.msra.mxu1 %v8963_v56 }
  0x52   :  { %7894 = vmatprep.subr.bf16.mxu1 %v8834_v27 }
  0x54   :  { %7348 = vmatmul.mubr.msk.f32.gmra.mrb[36].mxu1 %vm90_vm0, %v8832_v26 }
  0x55   :  { %7350 = vmatprep.mubr.msk.f32.mxu1 %vm90_vm0, %v8839_v28 }
  0x58   :  { %7351 = vmatmul.mubr.msk.f32.gmra.mrb[38].mxu1 %vm90_vm0, %v8851_v29 }
  0x59   :  { %7353 = vmatprep.mubr.msk.f32.mxu1 %vm90_vm0, %v8857_v30 }
  0x5c   :  { %7354 = vmatmul.mubr.msk.f32.gmra.mrb[40].mxu1 %vm90_vm0, %v56_v31 }
  0x5d   :  { %7356 = vmatprep.mubr.msk.f32.mxu1 %vm90_vm0, %v57_v32 }
  0x60   :  { %7357 = vmatmul.mubr.msk.f32.gmra.mrb[42].mxu1 %vm90_vm0, %v58_v33 }
  0x61   :  { %7359 = vmatprep.mubr.msk.f32.mxu1 %vm90_vm0, %v59_v34 }
  0x64   :  { %7360 = vmatmul.mubr.msk.f32.gmra.mrb[44].mxu1 %vm90_vm0, %v60_v35 }
  0x65   :  { %7362 = vmatprep.mubr.msk.f32.mxu1 %vm90_vm0, %v61_v36 }
  0x68   :  { %7363 = vmatmul.mubr.msk.f32.gmra.mrb[46].mxu1 %vm90_vm0, %v62_v37 }
  0x69   :  { %7365 = vmatprep.mubr.msk.f32.mxu1 %vm90_vm0, %v63_v38 }
  0x6c   :  { %7366 = vmatmul.mubr.msk.f32.gmra.mrb[48].mxu1 %vm90_vm0, %v64_v39 }
  0x6d   :  { %7368 = vmatprep.mubr.msk.f32.mxu1 %vm90_vm0, %v65_v40 }
  0x70   :  { %7369 = vmatmul.mubr.msk.f32.gmra.mrb[50].mxu1 %vm90_vm0, %v66_v41 }
  0x71   :  { %7371 = vmatprep.mubr.msk.f32.mxu1 %vm90_vm0, %v67_v42 }
  0x74   :  { %7372 = vmatmul.mubr.msk.f32.gmra.mrb[52].mxu1 %vm90_vm0, %v68_v43 }
  0x75   :  { %7374 = vmatprep.mubr.msk.f32.mxu1 %vm90_vm0, %v69_v44 }
  0x78   :  { %7375 = vmatmul.mubr.msk.f32.gmra.mrb[54].mxu1 %vm90_vm0, %v70_v45 }
  0x79   :  { %7377 = vmatprep.mubr.msk.f32.mxu1 %vm90_vm0, %v71_v46 }
  0x7c   :  { %7378 = vmatmul.mubr.msk.f32.gmra.mrb[56].mxu1 %vm90_vm0, %v72_v47 }
  0x7d   :  { %7380 = vmatprep.mubr.msk.f32.mxu1 %vm90_vm0, %v73_v48 }
  0x80   :  { %7381 = vmatmul.mubr.msk.f32.gmra.mrb[58].mxu1 %vm90_vm0, %v74_v49 }
  0x81   :  { %7383 = vmatprep.mubr.msk.f32.mxu1 %vm90_vm0, %v75_v50 }
  0x84   :  { %7384 = vmatmul.mubr.msk.f32.gmra.mrb[60].mxu1 %vm90_vm0, %v76_v51 }
  0x85   :  { %7386 = vmatprep.mubr.msk.f32.mxu1 %vm90_vm0, %v77_v52 }
  0x88   :  { %7387 = vmatmul.mubr.msk.f32.gmra.mrb[62].mxu1 %vm90_vm0, %v78_v53 }
  0x89   :  { %7408 = vmatprep.mubr.f32.mxu1 %v8662_v3 }
  0x8c   :  { %7409 = vmatmul.mubr.f32.vlgmr.msra.gmra.mrb[64].mxu1 %v8662_v3 }
  0x8d   :  { %7896 = vmatpush3.bf16.msra.mxu1 %v8834_v27 }
  0x8e   :  { %7898 = vmatprep.subr.bf16.mxu1 %v8963_v56 }
  0x91   :  { %7900 = vmatpush3.bf16.msra.mxu1 %v8963_v56 }
  0x92   :  { %7910 = vmatprep.subr.bf16.mxu1 %v8834_v27 }
  0xdf   :  { %v7287_v58 = vpop.f32.mrb[0].mxu1 }
  0xe0   :  { %v259_v59 = vadd.f32 %v7287_v58, %v9017_v57  ;;  %v253_v60 = vpop.f32.mrb[1].mxu1 }
  0xe1   :  { %v254_v61 = vadd.f32 %v9017_v57, %v253_v60 }
  0xe2   :  { %414 = vst.msk [vmem:[#allocation2 + $0x8] sm:$0xff] %vm412_vm1, %v259_v59  ;;  %v9022_v62 = vpop.f32.mrb[0].mxu0 }
  0xe3   :  { %413 = vst.msk [vmem:[#allocation2] sm:$0xff] %vm412_vm1, %v254_v61  ;;  %v7290_v63 = vpop.f32.mrb[2].mxu1  ;;  %v9025_v0 = vpop.f32.mrb[1].mxu0 }
  0xe4   :  { %v269_v1 = vadd.f32 %v7290_v63, %v9017_v57  ;;  %v263_v2 = vpop.f32.mrb[3].mxu1 }
  0xe5   :  { %v264_v3 = vadd.f32 %v9017_v57, %v263_v2 }
  0xe6   :  { %416 = vst.msk [vmem:[#allocation2 + $0x18] sm:$0xff] %vm412_vm1, %v269_v1 }
  0xe7   :  { %415 = vst.msk [vmem:[#allocation2 + $0x10] sm:$0xff] %vm412_vm1, %v264_v3  ;;  %v7293_v4 = vpop.f32.mrb[4].mxu1  ;;  %v9088_v3 = vld [vmem:[%s10785_s7] ss:$0 sm:$0xff] }
  0xe8   :  { %v279_v5 = vadd.f32 %v7293_v4, %v9017_v57  ;;  %v273_v6 = vpop.f32.mrb[5].mxu1 }
  0xe9   :  { %v274_v7 = vadd.f32 %v9017_v57, %v273_v6 }
  0xea   :  { %418 = vst.msk [vmem:[#allocation2 + $0x28] sm:$0xff] %vm412_vm1, %v279_v5 }
  0xeb   :  { %417 = vst.msk [vmem:[#allocation2 + $0x20] sm:$0xff] %vm412_vm1, %v274_v7  ;;  %v7296_v8 = vpop.f32.mrb[6].mxu1 }
  0xec   :  { %v289_v9 = vadd.f32 %v7296_v8, %v9017_v57  ;;  %v283_v10 = vpop.f32.mrb[7].mxu1 }
  0xed   :  { %v284_v11 = vadd.f32 %v9017_v57, %v283_v10 }
  0xee   :  { %420 = vst.msk [vmem:[#allocation2 + $0x38] sm:$0xff] %vm412_vm1, %v289_v9 }
  0xef   :  { %419 = vst.msk [vmem:[#allocation2 + $0x30] sm:$0xff] %vm412_vm1, %v284_v11  ;;  %v7299_v13 = vpop.f32.mrb[8].mxu1 }
  0xf0   :  { %v299_v14 = vadd.f32 %v7299_v13, %v9017_v57  ;;  %v293_v15 = vpop.f32.mrb[9].mxu1 }
  0xf1   :  { %v294_v17 = vadd.f32 %v9017_v57, %v293_v15 }
  0xf2   :  { %422 = vst.msk [vmem:[#allocation2 + $0x48] sm:$0xff] %vm412_vm1, %v299_v14 }
  0xf3   :  { %421 = vst.msk [vmem:[#allocation2 + $0x40] sm:$0xff] %vm412_vm1, %v294_v17  ;;  %v7302_v18 = vpop.f32.mrb[10].mxu1 }
  0xf4   :  { %v309_v19 = vadd.f32 %v7302_v18, %v9017_v57  ;;  %v303_v20 = vpop.f32.mrb[11].mxu1 }
  0xf5   :  { %v304_v21 = vadd.f32 %v9017_v57, %v303_v20 }
  0xf6   :  { %424 = vst.msk [vmem:[#allocation2 + $0x58] sm:$0xff] %vm412_vm1, %v309_v19 }
  0xf7   :  { %423 = vst.msk [vmem:[#allocation2 + $0x50] sm:$0xff] %vm412_vm1, %v304_v21  ;;  %v7305_v22 = vpop.f32.mrb[12].mxu1 }
  0xf8   :  { %v319_v23 = vadd.f32 %v7305_v22, %v9017_v57  ;;  %v313_v24 = vpop.f32.mrb[13].mxu1 }
  0xf9   :  { %v314_v25 = vadd.f32 %v9017_v57, %v313_v24 }
  0xfa   :  { %426 = vst.msk [vmem:[#allocation2 + $0x68] sm:$0xff] %vm412_vm1, %v319_v23 }
  0xfb   :  { %425 = vst.msk [vmem:[#allocation2 + $0x60] sm:$0xff] %vm412_vm1, %v314_v25  ;;  %v7308_v26 = vpop.f32.mrb[14].mxu1 }
  0xfc   :  { %v329_v28 = vadd.f32 %v7308_v26, %v9017_v57  ;;  %v323_v29 = vpop.f32.mrb[15].mxu1 }
  0xfd   :  { %v324_v30 = vadd.f32 %v9017_v57, %v323_v29 }
  0xfe   :  { %428 = vst.msk [vmem:[#allocation2 + $0x78] sm:$0xff] %vm412_vm1, %v329_v28 }
  0xff   :  { %427 = vst.msk [vmem:[#allocation2 + $0x70] sm:$0xff] %vm412_vm1, %v324_v30  ;;  %v7311_v31 = vpop.f32.mrb[16].mxu1 }
 0x100   :  { %v339_v32 = vadd.f32 %v7311_v31, %v9017_v57  ;;  %v333_v33 = vpop.f32.mrb[17].mxu1 }
 0x101   :  { %v334_v34 = vadd.f32 %v9017_v57, %v333_v33 }
 0x102   :  { %430 = vst.msk [vmem:[#allocation2 + $0x88] sm:$0xff] %vm412_vm1, %v339_v32 }
 0x103   :  { %429 = vst.msk [vmem:[#allocation2 + $0x80] sm:$0xff] %vm412_vm1, %v334_v34  ;;  %v7314_v35 = vpop.f32.mrb[18].mxu1 }
 0x104   :  { %v349_v36 = vadd.f32 %v7314_v35, %v9017_v57  ;;  %v343_v37 = vpop.f32.mrb[19].mxu1 }
 0x105   :  { %v344_v38 = vadd.f32 %v9017_v57, %v343_v37 }
 0x106   :  { %432 = vst.msk [vmem:[#allocation2 + $0x98] sm:$0xff] %vm412_vm1, %v349_v36 }
 0x107   :  { %431 = vst.msk [vmem:[#allocation2 + $0x90] sm:$0xff] %vm412_vm1, %v344_v38  ;;  %v7317_v39 = vpop.f32.mrb[20].mxu1 }
 0x108   :  { %v359_v40 = vadd.f32 %v7317_v39, %v9017_v57  ;;  %v353_v41 = vpop.f32.mrb[21].mxu1 }
 0x109   :  { %v354_v42 = vadd.f32 %v9017_v57, %v353_v41 }
 0x10a   :  { %434 = vst.msk [vmem:[#allocation2 + $0xa8] sm:$0xff] %vm412_vm1, %v359_v40 }
 0x10b   :  { %433 = vst.msk [vmem:[#allocation2 + $0xa0] sm:$0xff] %vm412_vm1, %v354_v42  ;;  %v7320_v43 = vpop.f32.mrb[22].mxu1 }
 0x10c   :  { %v369_v44 = vadd.f32 %v7320_v43, %v9017_v57  ;;  %v363_v45 = vpop.f32.mrb[23].mxu1 }
 0x10d   :  { %v364_v46 = vadd.f32 %v9017_v57, %v363_v45 }
 0x10e   :  { %436 = vst.msk [vmem:[#allocation2 + $0xb8] sm:$0xff] %vm412_vm1, %v369_v44 }
 0x10f   :  { %435 = vst.msk [vmem:[#allocation2 + $0xb0] sm:$0xff] %vm412_vm1, %v364_v46  ;;  %v7323_v47 = vpop.f32.mrb[24].mxu1 }
 0x110   :  { %v379_v48 = vadd.f32 %v7323_v47, %v9017_v57  ;;  %v373_v49 = vpop.f32.mrb[25].mxu1 }
 0x111   :  { %v374_v50 = vadd.f32 %v9017_v57, %v373_v49 }
 0x112   :  { %438 = vst.msk [vmem:[#allocation2 + $0xc8] sm:$0xff] %vm412_vm1, %v379_v48 }
 0x113   :  { %437 = vst.msk [vmem:[#allocation2 + $0xc0] sm:$0xff] %vm412_vm1, %v374_v50  ;;  %v7326_v51 = vpop.f32.mrb[26].mxu1 }
 0x114   :  { %v389_v52 = vadd.f32 %v7326_v51, %v9017_v57  ;;  %v383_v53 = vpop.f32.mrb[27].mxu1 }
 0x115   :  { %v384_v54 = vadd.f32 %v9017_v57, %v383_v53 }
 0x116   :  { %440 = vst.msk [vmem:[#allocation2 + $0xd8] sm:$0xff] %vm412_vm1, %v389_v52 }
 0x117   :  { %439 = vst.msk [vmem:[#allocation2 + $0xd0] sm:$0xff] %vm412_vm1, %v384_v54  ;;  %v7329_v55 = vpop.f32.mrb[28].mxu1 }
 0x118   :  { %v399_v58 = vadd.f32 %v7329_v55, %v9017_v57  ;;  %v393_v59 = vpop.f32.mrb[29].mxu1 }
 0x119   :  { %v394_v60 = vadd.f32 %v9017_v57, %v393_v59 }
 0x11a   :  { %442 = vst.msk [vmem:[#allocation2 + $0xe8] sm:$0xff] %vm412_vm1, %v399_v58 }
 0x11b   :  { %441 = vst.msk [vmem:[#allocation2 + $0xe0] sm:$0xff] %vm412_vm1, %v394_v60  ;;  %v7332_v61 = vpop.f32.mrb[30].mxu1 }
 0x11c   :  { %v409_v63 = vadd.f32 %v7332_v61, %v9017_v57  ;;  %v403_v1 = vpop.f32.mrb[31].mxu1 }
 0x11d   :  { %v404_v2 = vadd.f32 %v9017_v57, %v403_v1 }
 0x11e   :  { %444 = vst.msk [vmem:[#allocation2 + $0xf8] sm:$0xff] %vm412_vm1, %v409_v63 }
 0x11f   :  { %443 = vst.msk [vmem:[#allocation2 + $0xf0] sm:$0xff] %vm412_vm1, %v404_v2  ;;  %v7343_v4 = vpop.f32.mrb[32].mxu1 }
 0x120   :  { %v528_v5 = vadd.f32 %v7343_v4, %v9088_v3  ;;  %v522_v6 = vpop.f32.mrb[33].mxu1 }
 0x121   :  { %v523_v7 = vadd.f32 %v9088_v3, %v522_v6 }
 0x122   :  { %682 = vst.msk [vmem:[#allocation3 + $0x8] sm:$0xff] %vm412_vm1, %v528_v5 }
 0x123   :  { %681 = vst.msk [vmem:[#allocation3] sm:$0xff] %vm412_vm1, %v523_v7  ;;  %v7346_v57 = vpop.f32.mrb[34].mxu1 }
 0x124   :  { %v538_v8 = vadd.f32 %v7346_v57, %v9088_v3  ;;  %v532_v9 = vpop.f32.mrb[35].mxu1 }
 0x125   :  { %v533_v10 = vadd.f32 %v9088_v3, %v532_v9 }
 0x126   :  { %684 = vst.msk [vmem:[#allocation3 + $0x18] sm:$0xff] %vm412_vm1, %v538_v8 }
 0x127   :  { %683 = vst.msk [vmem:[#allocation3 + $0x10] sm:$0xff] %vm412_vm1, %v533_v10  ;;  %v7349_v11 = vpop.f32.mrb[36].mxu1  ;;  %v9158_v10 = vld [vmem:[%s10786_s8] ss:$0 sm:$0xff] }
 0x128   :  { %v548_v13 = vadd.f32 %v7349_v11, %v9088_v3  ;;  %v542_v14 = vpop.f32.mrb[37].mxu1 }
 0x129   :  { %v543_v15 = vadd.f32 %v9088_v3, %v542_v14 }
 0x12a   :  { %686 = vst.msk [vmem:[#allocation3 + $0x28] sm:$0xff] %vm412_vm1, %v548_v13 }
 0x12b   :  { %685 = vst.msk [vmem:[#allocation3 + $0x20] sm:$0xff] %vm412_vm1, %v543_v15  ;;  %v7352_v17 = vpop.f32.mrb[38].mxu1 }
 0x12c   :  { %v558_v18 = vadd.f32 %v7352_v17, %v9088_v3  ;;  %v552_v19 = vpop.f32.mrb[39].mxu1 }
 0x12d   :  { %v553_v20 = vadd.f32 %v9088_v3, %v552_v19 }
 0x12e   :  { %688 = vst.msk [vmem:[#allocation3 + $0x38] sm:$0xff] %vm412_vm1, %v558_v18 }
 0x12f   :  { %687 = vst.msk [vmem:[#allocation3 + $0x30] sm:$0xff] %vm412_vm1, %v553_v20  ;;  %v7355_v21 = vpop.f32.mrb[40].mxu1 }
 0x130   :  { %v568_v22 = vadd.f32 %v7355_v21, %v9088_v3  ;;  %v562_v23 = vpop.f32.mrb[41].mxu1 }
 0x131   :  { %v563_v24 = vadd.f32 %v9088_v3, %v562_v23 }
 0x132   :  { %690 = vst.msk [vmem:[#allocation3 + $0x48] sm:$0xff] %vm412_vm1, %v568_v22 }
 0x133   :  { %689 = vst.msk [vmem:[#allocation3 + $0x40] sm:$0xff] %vm412_vm1, %v563_v24  ;;  %v7358_v25 = vpop.f32.mrb[42].mxu1 }
 0x134   :  { %v578_v26 = vadd.f32 %v7358_v25, %v9088_v3  ;;  %v572_v28 = vpop.f32.mrb[43].mxu1 }
 0x135   :  { %v573_v29 = vadd.f32 %v9088_v3, %v572_v28 }
 0x136   :  { %692 = vst.msk [vmem:[#allocation3 + $0x58] sm:$0xff] %vm412_vm1, %v578_v26 }
 0x137   :  { %691 = vst.msk [vmem:[#allocation3 + $0x50] sm:$0xff] %vm412_vm1, %v573_v29  ;;  %v7361_v30 = vpop.f32.mrb[44].mxu1 }
 0x138   :  { %v588_v31 = vadd.f32 %v7361_v30, %v9088_v3  ;;  %v582_v32 = vpop.f32.mrb[45].mxu1 }
 0x139   :  { %v583_v33 = vadd.f32 %v9088_v3, %v582_v32 }
 0x13a   :  { %694 = vst.msk [vmem:[#allocation3 + $0x68] sm:$0xff] %vm412_vm1, %v588_v31 }
 0x13b   :  { %693 = vst.msk [vmem:[#allocation3 + $0x60] sm:$0xff] %vm412_vm1, %v583_v33  ;;  %v7364_v34 = vpop.f32.mrb[46].mxu1 }
 0x13c   :  { %v598_v35 = vadd.f32 %v7364_v34, %v9088_v3  ;;  %v592_v36 = vpop.f32.mrb[47].mxu1 }
 0x13d   :  { %v593_v37 = vadd.f32 %v9088_v3, %v592_v36 }
 0x13e   :  { %696 = vst.msk [vmem:[#allocation3 + $0x78] sm:$0xff] %vm412_vm1, %v598_v35  ;;  %v735_v35 = vld [vmem:[#allocation2] sm:$0xff] }
 0x13f   :  { %695 = vst.msk [vmem:[#allocation3 + $0x70] sm:$0xff] %vm412_vm1, %v593_v37  ;;  %v7367_v38 = vpop.f32.mrb[48].mxu1  ;;  %v736_v37 = vld [vmem:[#allocation2 + $0x8] sm:$0xff] }
 0x140   :  { %v608_v39 = vadd.f32 %v7367_v38, %v9088_v3  ;;  %v602_v40 = vpop.f32.mrb[49].mxu1 }
 0x141   :  { %v603_v41 = vadd.f32 %v9088_v3, %v602_v40 }
 0x142   :  { %698 = vst.msk [vmem:[#allocation3 + $0x88] sm:$0xff] %vm412_vm1, %v608_v39 }
 0x143   :  { %697 = vst.msk [vmem:[#allocation3 + $0x80] sm:$0xff] %vm412_vm1, %v603_v41  ;;  %v7370_v42 = vpop.f32.mrb[50].mxu1 }
 0x144   :  { %v618_v43 = vadd.f32 %v7370_v42, %v9088_v3  ;;  %v612_v44 = vpop.f32.mrb[51].mxu1 }
 0x145   :  { %v613_v45 = vadd.f32 %v9088_v3, %v612_v44 }
 0x146   :  { %700 = vst.msk [vmem:[#allocation3 + $0x98] sm:$0xff] %vm412_vm1, %v618_v43 }
 0x147   :  { %699 = vst.msk [vmem:[#allocation3 + $0x90] sm:$0xff] %vm412_vm1, %v613_v45  ;;  %v7373_v46 = vpop.f32.mrb[52].mxu1 }
 0x148   :  { %v628_v47 = vadd.f32 %v7373_v46, %v9088_v3  ;;  %v622_v48 = vpop.f32.mrb[53].mxu1 }
 0x149   :  { %v623_v49 = vadd.f32 %v9088_v3, %v622_v48 }
 0x14a   :  { %702 = vst.msk [vmem:[#allocation3 + $0xa8] sm:$0xff] %vm412_vm1, %v628_v47 }
 0x14b   :  { %701 = vst.msk [vmem:[#allocation3 + $0xa0] sm:$0xff] %vm412_vm1, %v623_v49  ;;  %v7376_v50 = vpop.f32.mrb[54].mxu1 }
 0x14c   :  { %v638_v51 = vadd.f32 %v7376_v50, %v9088_v3  ;;  %v632_v52 = vpop.f32.mrb[55].mxu1 }
 0x14d   :  { %v633_v53 = vadd.f32 %v9088_v3, %v632_v52 }
 0x14e   :  { %704 = vst.msk [vmem:[#allocation3 + $0xb8] sm:$0xff] %vm412_vm1, %v638_v51 }
 0x14f   :  { %703 = vst.msk [vmem:[#allocation3 + $0xb0] sm:$0xff] %vm412_vm1, %v633_v53  ;;  %v7379_v54 = vpop.f32.mrb[56].mxu1 }
 0x150   :  { %v648_v55 = vadd.f32 %v7379_v54, %v9088_v3  ;;  %v642_v58 = vpop.f32.mrb[57].mxu1 }
 0x151   :  { %v643_v59 = vadd.f32 %v9088_v3, %v642_v58 }
 0x152   :  { %706 = vst.msk [vmem:[#allocation3 + $0xc8] sm:$0xff] %vm412_vm1, %v648_v55 }
 0x153   :  { %705 = vst.msk [vmem:[#allocation3 + $0xc0] sm:$0xff] %vm412_vm1, %v643_v59  ;;  %v7382_v60 = vpop.f32.mrb[58].mxu1 }
 0x154   :  { %v658_v61 = vadd.f32 %v7382_v60, %v9088_v3  ;;  %v652_v63 = vpop.f32.mrb[59].mxu1 }
 0x155   :  { %v653_v1 = vadd.f32 %v9088_v3, %v652_v63 }
 0x156   :  { %708 = vst.msk [vmem:[#allocation3 + $0xd8] sm:$0xff] %vm412_vm1, %v658_v61 }
 0x157   :  { %707 = vst.msk [vmem:[#allocation3 + $0xd0] sm:$0xff] %vm412_vm1, %v653_v1  ;;  %v7385_v2 = vpop.f32.mrb[60].mxu1 }
 0x158   :  { %v668_v4 = vadd.f32 %v7385_v2, %v9088_v3  ;;  %v662_v5 = vpop.f32.mrb[61].mxu1 }
 0x159   :  { %v663_v6 = vadd.f32 %v9088_v3, %v662_v5 }
 0x15a   :  { %710 = vst.msk [vmem:[#allocation3 + $0xe8] sm:$0xff] %vm412_vm1, %v668_v4 }
 0x15b   :  { %709 = vst.msk [vmem:[#allocation3 + $0xe0] sm:$0xff] %vm412_vm1, %v663_v6  ;;  %v7388_v7 = vpop.f32.mrb[62].mxu1 }
 0x15c   :  { %v678_v57 = vadd.f32 %v7388_v7, %v9088_v3  ;;  %v672_v8 = vpop.f32.mrb[63].mxu1 }
 0x15d   :  { %v673_v9 = vadd.f32 %v9088_v3, %v672_v8  ;;  %v9167_v3 = vld [vmem:[%s10787_s4] ss:$0 sm:$0xff] }
 0x15e   :  { %712 = vst.msk [vmem:[#allocation3 + $0xf8] sm:$0xff] %vm412_vm1, %v678_v57  ;;  %v807_v17 = vadd.f32 %v9167_v3, %v9025_v0  ;;  %v812_v34 = vadd.f32 %v9022_v62, %v9167_v3 }
 0x15f   :  { %711 = vst.msk [vmem:[#allocation3 + $0xf0] sm:$0xff] %vm412_vm1, %v673_v9  ;;  %v7410_v11 = vpop.f32.mrb[64].mxu1 }
 0x160   :  { %v936_v13 = vpop.f32.mrb[65].mxu1  ;;  %v942_v15 = vadd.f32 %v7410_v11, %v9158_v10  ;;  %v815_v36 = vadd.f32 %v807_v17, %v735_v35  ;;  %v816_v38 = vadd.f32 %v812_v34, %v736_v37 }
 0x161   :  { %v937_v14 = vadd.f32 %v9158_v10, %v936_v13 }
 0x162   :  { %v6750_v39 = vmul.f32 -1.442695, %v815_v36  ;;  %v6751_v40 = vmul.f32 -1.442695, %v816_v38 }
 0x163   :  { %961 = vrot.lane.b32.xlu0 %v937_v14, %s8663_s19 }
 0x165   :  { %v869_v20 = vld [vmem:[#allocation3 + $0xf8] sm:$0xff] }
 0x166   :  { %v868_v18 = vld [vmem:[#allocation3 + $0xf0] sm:$0xff]  ;;  %v946_v21 = vadd.f32 %v942_v15, %v869_v20 }
 0x167   :  { %963 = vrot.lane.b32.xlu0 %v942_v15, %s8663_s19  ;;  %v945_v19 = vadd.f32 %v937_v14, %v868_v18 }
 0x168   :  { %v6753_v23 = vmul.f32 -1.442695, %v946_v21 }
 0x169   :  { %v6752_v22 = vmul.f32 -1.442695, %v945_v19 }
 0x16b   :  { %831 = vrot.lane.b32.xlu0 %v807_v17, %s8663_s19  ;;  %8176 = vpow2.f32 %v6752_v22 }
 0x16c   :  { %8178 = vpow2.f32 %v6753_v23 }
 0x175   :  { %v8177_v24 = vpop.eup %8176 }
 0x176   :  { %v953_v25 = vadd.f32 1.0, %v8177_v24  ;;  %v8179_v26 = vpop.eup %8178 }
 0x177   :  { %v954_v28 = vadd.f32 1.0, %v8179_v26 }
 0x178   :  { %8180 = vrcp.f32 %v953_v25 }
 0x179   :  { %8182 = vrcp.f32 %v954_v28 }
 0x17a   :  { %8184 = vpow2.f32 %v6750_v39 }
 0x17b   :  { %8186 = vpow2.f32 %v6751_v40 }
 0x182   :  { %v8181_v29 = vpop.eup %8180 }
 0x183   :  { %v8183_v0 = vpop.eup %8182  ;;  %v981_v58 = vsub.f32 1.0, %v8181_v29  ;;  %v993_v60 = vmul.f32 0.0, %v8181_v29 }
 0x184   :  { %v8185_v41 = vpop.eup %8184  ;;  %v982_v1 = vsub.f32 1.0, %v8183_v0  ;;  %v994_v5 = vmul.f32 0.0, %v8183_v0 }
 0x185   :  { %v823_v43 = vadd.f32 1.0, %v8185_v41  ;;  %v8187_v45 = vpop.eup %8186 }
 0x186   :  { %v824_v47 = vadd.f32 1.0, %v8187_v45 }
 0x1d5   :  { %v962_v30 = vpop.permute.xlu0 %961 }
 0x1d6   :  { %v967_v31 = vmul.f32 %v8181_v29, %v962_v30 }
 0x1d8   :  { %971 = vrot.lane.b32.xlu1 %v967_v31, %s8663_s19 }
 0x1d9   :  { %v964_v32 = vpop.permute.xlu0 %963 }
 0x1da   :  { %v968_v33 = vmul.f32 %v8183_v0, %v964_v32 }
 0x1dc   :  { %973 = vrot.lane.b32.xlu1 %v968_v33, %s8663_s19  ;;  %v1154_v33 = vld [vmem:[#allocation3 + $0xe8] sm:$0xff] }
 0x1dd   :  { %v832_v49 = vpop.permute.xlu0 %831 }
 0x1e0   :  { %833 = vrot.lane.b32.xlu1 %v812_v34, %s8663_s19 }
 0x24a   :  { %v972_v42 = vpop.permute.xlu1 %971 }
 0x24b   :  { %v977_v44 = vadd.f32 %v972_v42, %v868_v18 }
 0x24d   :  { %8188 = vtanh.f32 %v977_v44 }
 0x24e   :  { %v974_v46 = vpop.permute.xlu1 %973  ;;  %8190 = vrcp.f32 %v823_v43 }
 0x24f   :  { %v978_v62 = vadd.f32 %v974_v46, %v869_v20 }
 0x251   :  { %8192 = vtanh.f32 %v978_v62 }
 0x252   :  { %8194 = vrcp.f32 %v824_v47  ;;  %v834_v53 = vpop.permute.xlu1 %833 }
 0x257   :  { %v8189_v48 = vpop.eup %8188 }
 0x258   :  { %985 = vrot.lane.b32.xlu0 %v8189_v48, %s8664_s2  ;;  %v8191_v50 = vpop.eup %8190 }
 0x259   :  { %v837_v51 = vmul.f32 %v8191_v50, %v832_v49  ;;  %v851_v17 = vsub.f32 1.0, %v8191_v50  ;;  %v863_v19 = vmul.f32 0.0, %v8191_v50 }
 0x25b   :  { %v8193_v52 = vpop.eup %8192 }
 0x25c   :  { %987 = vrot.lane.b32.xlu1 %v8193_v52, %s8664_s2  ;;  %841 = vrot.lane.b32.xlu0 %v837_v51, %s8663_s19  ;;  %v8195_v54 = vpop.eup %8194  ;;  %v1020_v52 = vld [vmem:[#allocation2 + $0x18] sm:$0xff] }
 0x25d   :  { %v838_v55 = vmul.f32 %v8195_v54, %v834_v53  ;;  %v852_v22 = vsub.f32 1.0, %v8195_v54  ;;  %v864_v24 = vmul.f32 0.0, %v8195_v54  ;;  %v1019_v54 = vld [vmem:[#allocation2 + $0x10] sm:$0xff] }
 0x260   :  { %843 = vrot.lane.b32.xlu1 %v838_v55, %s8663_s19 }
 0x2ca   :  { %v986_v59 = vpop.permute.xlu0 %985 }
 0x2cb   :  { %v991_v61 = vmul.f32 %v986_v59, %v981_v58 }
 0x2cd   :  { %v9182_v63 = vadd.f32 %v993_v60, %v991_v61 }
 0x2ce   :  { %v988_v2 = vpop.permute.xlu1 %987  ;;  %v842_v4 = vpop.permute.xlu0 %841 }
 0x2cf   :  { %v992_v6 = vmul.f32 %v988_v2, %v982_v1  ;;  %v847_v7 = vadd.f32 %v842_v4, %v735_v35  ;;  %1009 = vrot.lane.b32.xlu0 %v9182_v63, %s8664_s2  ;;  %v1153_v35 = vld [vmem:[#allocation3 + $0xe0] sm:$0xff] }
 0x2d1   :  { %v9186_v57 = vadd.f32 %v994_v5, %v992_v6  ;;  %8196 = vtanh.f32 %v847_v7 }
 0x2d2   :  { %v844_v8 = vpop.permute.xlu1 %843 }
 0x2d3   :  { %v848_v9 = vadd.f32 %v844_v8, %v736_v37  ;;  %1011 = vrot.lane.b32.xlu1 %v9186_v57, %s8664_s2 }
 0x2d5   :  { %8198 = vtanh.f32 %v848_v9 }
 0x2db   :  { %v8197_v11 = vpop.eup %8196 }
 0x2dc   :  { %855 = vrot.lane.b32.xlu0 %v8197_v11, %s8664_s2 }
 0x2df   :  { %v8199_v13 = vpop.eup %8198 }
 0x2e0   :  { %857 = vrot.lane.b32.xlu1 %v8199_v13, %s8664_s2 }
 0x341   :  { %v1010_v14 = vpop.permute.xlu0 %1009 }
 0x342   :  { %1016 = vst.msk [vmem:[#allocation5 + $0xf0] sm:$0xff] %vm90_vm0, %v1010_v14  ;;  %7430 = vmatprep.mubr.msk.f32.mxu1 %vm90_vm0, %v1010_v14 }
 0x345   :  { %v1012_v15 = vpop.permute.xlu1 %1011 }
 0x346   :  { %1017 = vst.msk [vmem:[#allocation5 + $0xf8] sm:$0xff] %vm90_vm0, %v1012_v15  ;;  %7431 = vmatmul.mubr.msk.f32.vlgmr.msra.gmra.mrb[66].mxu1 %vm90_vm0, %v1012_v15 }
 0x347   :  { %7912 = vmatpush3.bf16.msra.mxu1 %v8834_v27 }
 0x348   :  { %7914 = vmatprep.subr.bf16.mxu1 %v8963_v56 }
 0x34b   :  { %7916 = vmatpush3.bf16.msra.mxu1 %v8963_v56 }
 0x34c   :  { %7926 = vmatprep.subr.bf16.mxu1 %v8834_v27 }
 0x34e   :  { %v856_v18 = vpop.permute.xlu0 %855 }
 0x34f   :  { %v861_v20 = vmul.f32 %v856_v18, %v851_v17 }
 0x351   :  { %v9200_v21 = vadd.f32 %v863_v19, %v861_v20 }
 0x352   :  { %v858_v23 = vpop.permute.xlu1 %857 }
 0x353   :  { %v862_v25 = vmul.f32 %v858_v23, %v852_v22  ;;  %999 = vrot.lane.b32.xlu0 %v9200_v21, %s8664_s2 }
 0x355   :  { %v9204_v26 = vadd.f32 %v864_v24, %v862_v25 }
 0x357   :  { %1001 = vrot.lane.b32.xlu1 %v9204_v26, %s8664_s2 }
 0x3c5   :  { %v1000_v28 = vpop.permute.xlu0 %999 }
 0x3c6   :  { %1005 = vst.msk [vmem:[#allocation4] sm:$0xff] %vm90_vm0, %v1000_v28  ;;  %7419 = vmatprep.mubr.msk.f32.mxu0 %vm90_vm0, %v1000_v28 }
 0x3c9   :  { %v1002_v29 = vpop.permute.xlu1 %1001 }
 0x3ca   :  { %1006 = vst.msk [vmem:[#allocation4 + $0x8] sm:$0xff] %vm90_vm0, %v1002_v29  ;;  %7420 = vmatmul.mubr.msk.f32.vlgmr.msra.gmra.mrb[2].mxu0 %vm90_vm0, %v1002_v29 }
 0x3cb   :  { %7904 = vmatpush3.bf16.msra.mxu0 %v8772_v12 }
 0x3cc   :  { %7906 = vmatprep.subr.bf16.mxu0 %v8780_v16 }
 0x3cf   :  { %7908 = vmatpush3.bf16.msra.mxu0 %v8780_v16 }
 0x3d0   :  { %7918 = vmatprep.subr.bf16.mxu0 %v8772_v12 }
 0x419   :  { %v7432_v30 = vpop.f32.mrb[66].mxu1 }
 0x41a   :  { %v1231_v31 = vadd.f32 %v7432_v30, %v9158_v10  ;;  %v1225_v0 = vpop.f32.mrb[67].mxu1 }
 0x41b   :  { %v1226_v32 = vadd.f32 %v9158_v10, %v1225_v0 }
 0x41c   :  { %1252 = vrot.lane.b32.xlu1 %v1231_v31, %s8663_s19  ;;  %v1235_v34 = vadd.f32 %v1231_v31, %v1154_v33 }
 0x41d   :  { %1250 = vrot.lane.b32.xlu0 %v1226_v32, %s8663_s19  ;;  %v1234_v36 = vadd.f32 %v1226_v32, %v1153_v35 }
 0x41e   :  { %v6761_v37 = vmul.f32 -1.442695, %v1235_v34 }
 0x41f   :  { %v6760_v38 = vmul.f32 -1.442695, %v1234_v36 }
 0x420   :  { %8200 = vpow2.f32 %v6761_v37 }
 0x421   :  { %8202 = vpow2.f32 %v6760_v38 }
 0x42a   :  { %v8201_v39 = vpop.eup %8200 }
 0x42b   :  { %v8203_v40 = vpop.eup %8202  ;;  %v1243_v41 = vadd.f32 1.0, %v8201_v39 }
 0x42c   :  { %v1242_v42 = vadd.f32 1.0, %v8203_v40 }
 0x42d   :  { %8204 = vrcp.f32 %v1243_v41 }
 0x42e   :  { %8206 = vrcp.f32 %v1242_v42 }
 0x437   :  { %v8205_v43 = vpop.eup %8204 }
 0x438   :  { %v8207_v45 = vpop.eup %8206  ;;  %v1271_v19 = vsub.f32 1.0, %v8205_v43  ;;  %v1283_v23 = vmul.f32 %v8205_v43, %v9186_v57 }
 0x439   :  { %v1270_v22 = vsub.f32 1.0, %v8207_v45  ;;  %v1282_v28 = vmul.f32 %v8207_v45, %v9182_v63 }
 0x48e   :  { %v1253_v44 = vpop.permute.xlu1 %1252 }
 0x48f   :  { %v1257_v46 = vmul.f32 %v8205_v43, %v1253_v44  ;;  %v1251_v47 = vpop.permute.xlu0 %1250 }
 0x490   :  { %v1256_v62 = vmul.f32 %v8207_v45, %v1251_v47 }
 0x491   :  { %1262 = vrot.lane.b32.xlu1 %v1257_v46, %s8663_s19 }
 0x492   :  { %1260 = vrot.lane.b32.xlu0 %v1256_v62, %s8663_s19 }
 0x49d   :  { %v7421_v48 = vpop.f32.mrb[2].mxu0 }
 0x49e   :  { %v1097_v49 = vadd.f32 %v7421_v48, %v9167_v3  ;;  %v1091_v50 = vpop.f32.mrb[3].mxu0 }
 0x49f   :  { %v1092_v51 = vadd.f32 %v9167_v3, %v1091_v50  ;;  %v1444_v50 = vld [vmem:[#allocation3 + $0xd8] sm:$0xff] }
 0x4a0   :  { %1118 = vrot.lane.b32.xlu1 %v1097_v49, %s8663_s19  ;;  %v1101_v53 = vadd.f32 %v1097_v49, %v1020_v52 }
 0x4a1   :  { %1116 = vrot.lane.b32.xlu0 %v1092_v51, %s8663_s19  ;;  %v1100_v55 = vadd.f32 %v1092_v51, %v1019_v54 }
 0x4a2   :  { %v6757_v58 = vmul.f32 -1.442695, %v1101_v53 }
 0x4a3   :  { %v6756_v59 = vmul.f32 -1.442695, %v1100_v55 }
 0x4a4   :  { %8208 = vpow2.f32 %v6757_v58 }
 0x4a5   :  { %8210 = vpow2.f32 %v6756_v59 }
 0x4ae   :  { %v8209_v60 = vpop.eup %8208 }
 0x4af   :  { %v8211_v61 = vpop.eup %8210  ;;  %v1109_v2 = vadd.f32 1.0, %v8209_v60 }
 0x4b0   :  { %v1108_v6 = vadd.f32 1.0, %v8211_v61 }
 0x503   :  { %v1263_v1 = vpop.permute.xlu1 %1262 }
 0x504   :  { %v1267_v4 = vadd.f32 %v1263_v1, %v1154_v33  ;;  %v1261_v5 = vpop.permute.xlu0 %1260 }
 0x505   :  { %v1266_v7 = vadd.f32 %v1261_v5, %v1153_v35 }
 0x506   :  { %8212 = vtanh.f32 %v1267_v4 }
 0x507   :  { %8214 = vtanh.f32 %v1266_v7 }
 0x508   :  { %8216 = vrcp.f32 %v1109_v2 }
 0x509   :  { %8218 = vrcp.f32 %v1108_v6 }
 0x510   :  { %v8213_v8 = vpop.eup %8212 }
 0x511   :  { %v8215_v9 = vpop.eup %8214  ;;  %1276 = vrot.lane.b32.xlu1 %v8213_v8, %s8664_s2 }
 0x512   :  { %v8217_v11 = vpop.eup %8216  ;;  %v1119_v13 = vpop.permute.xlu1 %1118  ;;  %1274 = vrot.lane.b32.xlu0 %v8215_v9, %s8664_s2 }
 0x513   :  { %v8219_v14 = vpop.eup %8218  ;;  %v1123_v15 = vmul.f32 %v8217_v11, %v1119_v13  ;;  %v1117_v17 = vpop.permute.xlu0 %1116  ;;  %v1137_v37 = vsub.f32 1.0, %v8217_v11  ;;  %v1149_v40 = vmul.f32 %v8217_v11, %v9204_v26 }
 0x514   :  { %v1122_v18 = vmul.f32 %v8219_v14, %v1117_v17  ;;  %v1136_v39 = vsub.f32 1.0, %v8219_v14  ;;  %v1148_v43 = vmul.f32 %v8219_v14, %v9200_v21  ;;  %v1310_v14 = vld [vmem:[#allocation2 + $0x28] sm:$0xff]  ;;  %v1309_v17 = vld [vmem:[#allocation2 + $0x20] sm:$0xff] }
 0x515   :  { %1128 = vrot.lane.b32.xlu1 %v1123_v15, %s8663_s19 }
 0x516   :  { %1126 = vrot.lane.b32.xlu0 %v1122_v18, %s8663_s19 }
 0x583   :  { %v1277_v20 = vpop.permute.xlu1 %1276 }
 0x584   :  { %v1281_v24 = vmul.f32 %v1277_v20, %v1271_v19  ;;  %v1275_v25 = vpop.permute.xlu0 %1274 }
 0x585   :  { %v1280_v29 = vmul.f32 %v1275_v25, %v1270_v22 }
 0x586   :  { %v9232_v30 = vadd.f32 %v1283_v23, %v1281_v24 }
 0x587   :  { %v9234_v31 = vadd.f32 %v1282_v28, %v1280_v29  ;;  %v1129_v0 = vpop.permute.xlu1 %1128 }
 0x588   :  { %v1133_v32 = vadd.f32 %v1129_v0, %v1020_v52  ;;  %1301 = vrot.lane.b32.xlu1 %v9232_v30, %s8664_s2  ;;  %v1127_v33 = vpop.permute.xlu0 %1126  ;;  %v1443_v52 = vld [vmem:[#allocation3 + $0xd0] sm:$0xff] }
 0x589   :  { %v1132_v34 = vadd.f32 %v1127_v33, %v1019_v54  ;;  %1299 = vrot.lane.b32.xlu0 %v9234_v31, %s8664_s2 }
 0x58a   :  { %8220 = vtanh.f32 %v1133_v32 }
 0x58b   :  { %8222 = vtanh.f32 %v1132_v34 }
 0x594   :  { %v8221_v57 = vpop.eup %8220 }
 0x595   :  { %v8223_v35 = vpop.eup %8222  ;;  %1142 = vrot.lane.b32.xlu1 %v8221_v57, %s8664_s2 }
 0x596   :  { %1140 = vrot.lane.b32.xlu0 %v8223_v35, %s8664_s2 }
 0x5fa   :  { %v1302_v63 = vpop.permute.xlu1 %1301 }
 0x5fb   :  { %1307 = vst.msk [vmem:[#allocation5 + $0xe8] sm:$0xff] %vm90_vm0, %v1302_v63  ;;  %v1300_v36 = vpop.permute.xlu0 %1299 }
 0x5fc   :  { %1306 = vst.msk [vmem:[#allocation5 + $0xe0] sm:$0xff] %vm90_vm0, %v1300_v36  ;;  %7452 = vmatprep.mubr.msk.f32.mxu1 %vm90_vm0, %v1300_v36 }
 0x5fd   :  { %7453 = vmatmul.mubr.msk.f32.vlgmr.msra.gmra.mrb[68].mxu1 %vm90_vm0, %v1302_v63 }
 0x5fe   :  { %7928 = vmatpush3.bf16.msra.mxu1 %v8834_v27 }
 0x5ff   :  { %7930 = vmatprep.subr.bf16.mxu1 %v8963_v56 }
 0x602   :  { %7932 = vmatpush3.bf16.msra.mxu1 %v8963_v56 }
 0x603   :  { %7942 = vmatprep.subr.bf16.mxu1 %v8834_v27 }
 0x607   :  { %v1143_v38 = vpop.permute.xlu1 %1142 }
 0x608   :  { %v1147_v41 = vmul.f32 %v1143_v38, %v1137_v37  ;;  %v1141_v42 = vpop.permute.xlu0 %1140 }
 0x609   :  { %v1146_v44 = vmul.f32 %v1141_v42, %v1136_v39 }
 0x60a   :  { %v9252_v45 = vadd.f32 %v1149_v40, %v1147_v41 }
 0x60b   :  { %v9254_v46 = vadd.f32 %v1148_v43, %v1146_v44 }
 0x60c   :  { %1290 = vrot.lane.b32.xlu1 %v9252_v45, %s8664_s2 }
 0x60d   :  { %1288 = vrot.lane.b32.xlu0 %v9254_v46, %s8664_s2 }
 0x67e   :  { %v1291_v47 = vpop.permute.xlu1 %1290 }
 0x67f   :  { %1296 = vst.msk [vmem:[#allocation4 + $0x18] sm:$0xff] %vm90_vm0, %v1291_v47  ;;  %v1289_v62 = vpop.permute.xlu0 %1288 }
 0x680   :  { %1295 = vst.msk [vmem:[#allocation4 + $0x10] sm:$0xff] %vm90_vm0, %v1289_v62  ;;  %7441 = vmatprep.mubr.msk.f32.mxu0 %vm90_vm0, %v1289_v62 }
 0x681   :  { %7442 = vmatmul.mubr.msk.f32.vlgmr.msra.gmra.mrb[4].mxu0 %vm90_vm0, %v1291_v47 }
 0x682   :  { %7920 = vmatpush3.bf16.msra.mxu0 %v8772_v12 }
 0x683   :  { %7922 = vmatprep.subr.bf16.mxu0 %v8780_v16 }
 0x686   :  { %7924 = vmatpush3.bf16.msra.mxu0 %v8780_v16 }
 0x687   :  { %7934 = vmatprep.subr.bf16.mxu0 %v8772_v12 }
 0x6d0   :  { %v7454_v21 = vpop.f32.mrb[68].mxu1 }
 0x6d1   :  { %v1521_v26 = vadd.f32 %v7454_v21, %v9158_v10  ;;  %v1515_v48 = vpop.f32.mrb[69].mxu1 }
 0x6d2   :  { %v1516_v49 = vadd.f32 %v9158_v10, %v1515_v48 }
 0x6d3   :  { %1542 = vrot.lane.b32.xlu1 %v1521_v26, %s8663_s19  ;;  %v1525_v51 = vadd.f32 %v1521_v26, %v1444_v50 }
 0x6d4   :  { %1540 = vrot.lane.b32.xlu0 %v1516_v49, %s8663_s19  ;;  %v1524_v53 = vadd.f32 %v1516_v49, %v1443_v52 }
 0x6d5   :  { %v6769_v54 = vmul.f32 -1.442695, %v1525_v51 }
 0x6d6   :  { %v6768_v55 = vmul.f32 -1.442695, %v1524_v53 }
 0x6d7   :  { %8224 = vpow2.f32 %v6769_v54 }
 0x6d8   :  { %8226 = vpow2.f32 %v6768_v55 }
 0x6e1   :  { %v8225_v58 = vpop.eup %8224 }
 0x6e2   :  { %v8227_v59 = vpop.eup %8226  ;;  %v1533_v60 = vadd.f32 1.0, %v8225_v58 }
 0x6e3   :  { %v1532_v61 = vadd.f32 1.0, %v8227_v59 }
 0x6e4   :  { %8228 = vrcp.f32 %v1533_v60 }
 0x6e5   :  { %8230 = vrcp.f32 %v1532_v61 }
 0x6ee   :  { %v8229_v1 = vpop.eup %8228 }
 0x6ef   :  { %v8231_v4 = vpop.eup %8230  ;;  %v1561_v39 = vsub.f32 1.0, %v8229_v1  ;;  %v1573_v42 = vmul.f32 %v8229_v1, %v9232_v30 }
 0x6f0   :  { %v1560_v41 = vsub.f32 1.0, %v8231_v4  ;;  %v1572_v47 = vmul.f32 %v8231_v4, %v9234_v31 }
 0x745   :  { %v1543_v2 = vpop.permute.xlu1 %1542 }
 0x746   :  { %v1547_v5 = vmul.f32 %v8229_v1, %v1543_v2  ;;  %v1541_v6 = vpop.permute.xlu0 %1540 }
 0x747   :  { %v1546_v7 = vmul.f32 %v8231_v4, %v1541_v6 }
 0x748   :  { %1552 = vrot.lane.b32.xlu1 %v1547_v5, %s8663_s19 }
 0x749   :  { %1550 = vrot.lane.b32.xlu0 %v1546_v7, %s8663_s19 }
 0x754   :  { %v7443_v8 = vpop.f32.mrb[4].mxu0 }
 0x755   :  { %v1387_v9 = vadd.f32 %v7443_v8, %v9167_v3  ;;  %v1381_v11 = vpop.f32.mrb[5].mxu0 }
 0x756   :  { %v1382_v13 = vadd.f32 %v9167_v3, %v1381_v11  ;;  %v1734_v11 = vld [vmem:[#allocation3 + $0xc8] sm:$0xff] }
 0x757   :  { %1408 = vrot.lane.b32.xlu1 %v1387_v9, %s8663_s19  ;;  %v1391_v15 = vadd.f32 %v1387_v9, %v1310_v14 }
 0x758   :  { %1406 = vrot.lane.b32.xlu0 %v1382_v13, %s8663_s19  ;;  %v1390_v18 = vadd.f32 %v1382_v13, %v1309_v17 }
 0x759   :  { %v6765_v19 = vmul.f32 -1.442695, %v1391_v15 }
 0x75a   :  { %v6764_v20 = vmul.f32 -1.442695, %v1390_v18 }
 0x75b   :  { %8232 = vpow2.f32 %v6765_v19 }
 0x75c   :  { %8234 = vpow2.f32 %v6764_v20 }
 0x765   :  { %v8233_v22 = vpop.eup %8232 }
 0x766   :  { %v8235_v23 = vpop.eup %8234  ;;  %v1399_v25 = vadd.f32 1.0, %v8233_v22 }
 0x767   :  { %v1398_v0 = vadd.f32 1.0, %v8235_v23 }
 0x7ba   :  { %v1553_v24 = vpop.permute.xlu1 %1552 }
 0x7bb   :  { %v1557_v28 = vadd.f32 %v1553_v24, %v1444_v50  ;;  %v1551_v29 = vpop.permute.xlu0 %1550 }
 0x7bc   :  { %v1556_v32 = vadd.f32 %v1551_v29, %v1443_v52 }
 0x7bd   :  { %8236 = vtanh.f32 %v1557_v28 }
 0x7be   :  { %8238 = vtanh.f32 %v1556_v32 }
 0x7bf   :  { %8240 = vrcp.f32 %v1399_v25 }
 0x7c0   :  { %8242 = vrcp.f32 %v1398_v0 }
 0x7c7   :  { %v8237_v33 = vpop.eup %8236 }
 0x7c8   :  { %v8239_v34 = vpop.eup %8238  ;;  %1566 = vrot.lane.b32.xlu1 %v8237_v33, %s8664_s2 }
 0x7c9   :  { %v8241_v57 = vpop.eup %8240  ;;  %v1409_v35 = vpop.permute.xlu1 %1408  ;;  %1564 = vrot.lane.b32.xlu0 %v8239_v34, %s8664_s2 }
 0x7ca   :  { %v8243_v63 = vpop.eup %8242  ;;  %v1413_v36 = vmul.f32 %v8241_v57, %v1409_v35  ;;  %v1407_v37 = vpop.permute.xlu0 %1406  ;;  %v1427_v54 = vsub.f32 1.0, %v8241_v57  ;;  %v1439_v59 = vmul.f32 %v8241_v57, %v9252_v45 }
 0x7cb   :  { %v1412_v38 = vmul.f32 %v8243_v63, %v1407_v37  ;;  %v1426_v58 = vsub.f32 1.0, %v8243_v63  ;;  %v1438_v1 = vmul.f32 %v8243_v63, %v9254_v46  ;;  %v1600_v63 = vld [vmem:[#allocation2 + $0x38] sm:$0xff]  ;;  %v1599_v37 = vld [vmem:[#allocation2 + $0x30] sm:$0xff] }
 0x7cc   :  { %1418 = vrot.lane.b32.xlu1 %v1413_v36, %s8663_s19 }
 0x7cd   :  { %1416 = vrot.lane.b32.xlu0 %v1412_v38, %s8663_s19 }
 0x83a   :  { %v1567_v40 = vpop.permute.xlu1 %1566 }
 0x83b   :  { %v1571_v43 = vmul.f32 %v1567_v40, %v1561_v39  ;;  %v1565_v44 = vpop.permute.xlu0 %1564 }
 0x83c   :  { %v1570_v62 = vmul.f32 %v1565_v44, %v1560_v41 }
 0x83d   :  { %v9284_v21 = vadd.f32 %v1573_v42, %v1571_v43 }
 0x83e   :  { %v9286_v26 = vadd.f32 %v1572_v47, %v1570_v62  ;;  %v1419_v48 = vpop.permute.xlu1 %1418 }
 0x83f   :  { %v1423_v49 = vadd.f32 %v1419_v48, %v1310_v14  ;;  %1591 = vrot.lane.b32.xlu1 %v9284_v21, %s8664_s2  ;;  %v1417_v50 = vpop.permute.xlu0 %1416  ;;  %v1733_v14 = vld [vmem:[#allocation3 + $0xc0] sm:$0xff] }
 0x840   :  { %v1422_v51 = vadd.f32 %v1417_v50, %v1309_v17  ;;  %1589 = vrot.lane.b32.xlu0 %v9286_v26, %s8664_s2 }
 0x841   :  { %8244 = vtanh.f32 %v1423_v49 }
 0x842   :  { %8246 = vtanh.f32 %v1422_v51 }
 0x84b   :  { %v8245_v30 = vpop.eup %8244 }
 0x84c   :  { %v8247_v52 = vpop.eup %8246  ;;  %1432 = vrot.lane.b32.xlu1 %v8245_v30, %s8664_s2 }
 0x84d   :  { %1430 = vrot.lane.b32.xlu0 %v8247_v52, %s8664_s2 }
 0x8b1   :  { %v1592_v31 = vpop.permute.xlu1 %1591 }
 0x8b2   :  { %1597 = vst.msk [vmem:[#allocation5 + $0xd8] sm:$0xff] %vm90_vm0, %v1592_v31  ;;  %v1590_v53 = vpop.permute.xlu0 %1589 }
 0x8b3   :  { %1596 = vst.msk [vmem:[#allocation5 + $0xd0] sm:$0xff] %vm90_vm0, %v1590_v53  ;;  %7474 = vmatprep.mubr.msk.f32.mxu1 %vm90_vm0, %v1590_v53 }
 0x8b4   :  { %7475 = vmatmul.mubr.msk.f32.vlgmr.msra.gmra.mrb[70].mxu1 %vm90_vm0, %v1592_v31 }
 0x8b5   :  { %7944 = vmatpush3.bf16.msra.mxu1 %v8834_v27 }
 0x8b6   :  { %7946 = vmatprep.subr.bf16.mxu1 %v8963_v56 }
 0x8b9   :  { %7948 = vmatpush3.bf16.msra.mxu1 %v8963_v56 }
 0x8ba   :  { %7958 = vmatprep.subr.bf16.mxu1 %v8834_v27 }
 0x8be   :  { %v1433_v55 = vpop.permute.xlu1 %1432 }
 0x8bf   :  { %v1437_v60 = vmul.f32 %v1433_v55, %v1427_v54  ;;  %v1431_v61 = vpop.permute.xlu0 %1430 }
 0x8c0   :  { %v1436_v2 = vmul.f32 %v1431_v61, %v1426_v58 }
 0x8c1   :  { %v9304_v4 = vadd.f32 %v1439_v59, %v1437_v60 }
 0x8c2   :  { %v9306_v5 = vadd.f32 %v1438_v1, %v1436_v2 }
 0x8c3   :  { %1580 = vrot.lane.b32.xlu1 %v9304_v4, %s8664_s2 }
 0x8c4   :  { %1578 = vrot.lane.b32.xlu0 %v9306_v5, %s8664_s2 }
 0x935   :  { %v1581_v6 = vpop.permute.xlu1 %1580 }
 0x936   :  { %1586 = vst.msk [vmem:[#allocation4 + $0x28] sm:$0xff] %vm90_vm0, %v1581_v6  ;;  %v1579_v7 = vpop.permute.xlu0 %1578 }
 0x937   :  { %1585 = vst.msk [vmem:[#allocation4 + $0x20] sm:$0xff] %vm90_vm0, %v1579_v7  ;;  %7463 = vmatprep.mubr.msk.f32.mxu0 %vm90_vm0, %v1579_v7 }
 0x938   :  { %7464 = vmatmul.mubr.msk.f32.vlgmr.msra.gmra.mrb[6].mxu0 %vm90_vm0, %v1581_v6 }
 0x939   :  { %7936 = vmatpush3.bf16.msra.mxu0 %v8772_v12 }
 0x93a   :  { %7938 = vmatprep.subr.bf16.mxu0 %v8780_v16 }
 0x93d   :  { %7940 = vmatpush3.bf16.msra.mxu0 %v8780_v16 }
 0x93e   :  { %7950 = vmatprep.subr.bf16.mxu0 %v8772_v12 }
 0x987   :  { %v7476_v45 = vpop.f32.mrb[70].mxu1 }
 0x988   :  { %v1811_v46 = vadd.f32 %v7476_v45, %v9158_v10  ;;  %v1805_v8 = vpop.f32.mrb[71].mxu1 }
 0x989   :  { %v1806_v9 = vadd.f32 %v9158_v10, %v1805_v8 }
 0x98a   :  { %1832 = vrot.lane.b32.xlu1 %v1811_v46, %s8663_s19  ;;  %v1815_v13 = vadd.f32 %v1811_v46, %v1734_v11 }
 0x98b   :  { %1830 = vrot.lane.b32.xlu0 %v1806_v9, %s8663_s19  ;;  %v1814_v15 = vadd.f32 %v1806_v9, %v1733_v14 }
 0x98c   :  { %v6777_v17 = vmul.f32 -1.442695, %v1815_v13 }
 0x98d   :  { %v6776_v18 = vmul.f32 -1.442695, %v1814_v15 }
 0x98e   :  { %8248 = vpow2.f32 %v6777_v17 }
 0x98f   :  { %8250 = vpow2.f32 %v6776_v18 }
 0x998   :  { %v8249_v19 = vpop.eup %8248 }
 0x999   :  { %v8251_v20 = vpop.eup %8250  ;;  %v1823_v22 = vadd.f32 1.0, %v8249_v19 }
 0x99a   :  { %v1822_v23 = vadd.f32 1.0, %v8251_v20 }
 0x99b   :  { %8252 = vrcp.f32 %v1823_v22 }
 0x99c   :  { %8254 = vrcp.f32 %v1822_v23 }
 0x9a5   :  { %v8253_v24 = vpop.eup %8252 }
 0x9a6   :  { %v8255_v28 = vpop.eup %8254  ;;  %v1851_v58 = vsub.f32 1.0, %v8253_v24  ;;  %v1863_v61 = vmul.f32 %v8253_v24, %v9284_v21 }
 0x9a7   :  { %v1850_v60 = vsub.f32 1.0, %v8255_v28  ;;  %v1862_v6 = vmul.f32 %v8255_v28, %v9286_v26 }
 0x9fc   :  { %v1833_v25 = vpop.permute.xlu1 %1832 }
 0x9fd   :  { %v1837_v29 = vmul.f32 %v8253_v24, %v1833_v25  ;;  %v1831_v0 = vpop.permute.xlu0 %1830 }
 0x9fe   :  { %v1836_v32 = vmul.f32 %v8255_v28, %v1831_v0 }
 0x9ff   :  { %1842 = vrot.lane.b32.xlu1 %v1837_v29, %s8663_s19 }
 0xa00   :  { %1840 = vrot.lane.b32.xlu0 %v1836_v32, %s8663_s19 }
 0xa0b   :  { %v7465_v33 = vpop.f32.mrb[6].mxu0 }
 0xa0c   :  { %v1677_v34 = vadd.f32 %v7465_v33, %v9167_v3  ;;  %v1671_v57 = vpop.f32.mrb[7].mxu0 }
 0xa0d   :  { %v1672_v35 = vadd.f32 %v9167_v3, %v1671_v57  ;;  %v2024_v57 = vld [vmem:[#allocation3 + $0xb8] sm:$0xff] }
 0xa0e   :  { %1698 = vrot.lane.b32.xlu1 %v1677_v34, %s8663_s19  ;;  %v1681_v36 = vadd.f32 %v1677_v34, %v1600_v63 }
 0xa0f   :  { %1696 = vrot.lane.b32.xlu0 %v1672_v35, %s8663_s19  ;;  %v1680_v38 = vadd.f32 %v1672_v35, %v1599_v37 }
 0xa10   :  { %v6773_v39 = vmul.f32 -1.442695, %v1681_v36 }
 0xa11   :  { %v6772_v40 = vmul.f32 -1.442695, %v1680_v38 }
 0xa12   :  { %8256 = vpow2.f32 %v6773_v39 }
 0xa13   :  { %8258 = vpow2.f32 %v6772_v40 }
 0xa1c   :  { %v8257_v41 = vpop.eup %8256 }
 0xa1d   :  { %v8259_v42 = vpop.eup %8258  ;;  %v1689_v44 = vadd.f32 1.0, %v8257_v41 }
 0xa1e   :  { %v1688_v48 = vadd.f32 1.0, %v8259_v42 }
 0xa71   :  { %v1843_v43 = vpop.permute.xlu1 %1842 }
 0xa72   :  { %v1847_v47 = vadd.f32 %v1843_v43, %v1734_v11  ;;  %v1841_v62 = vpop.permute.xlu0 %1840 }
 0xa73   :  { %v1846_v49 = vadd.f32 %v1841_v62, %v1733_v14 }
 0xa74   :  { %8260 = vtanh.f32 %v1847_v47 }
 0xa75   :  { %8262 = vtanh.f32 %v1846_v49 }
 0xa76   :  { %8264 = vrcp.f32 %v1689_v44 }
 0xa77   :  { %8266 = vrcp.f32 %v1688_v48 }
 0xa7e   :  { %v8261_v50 = vpop.eup %8260 }
 0xa7f   :  { %v8263_v51 = vpop.eup %8262  ;;  %1856 = vrot.lane.b32.xlu1 %v8261_v50, %s8664_s2 }
 0xa80   :  { %v8265_v30 = vpop.eup %8264  ;;  %v1699_v52 = vpop.permute.xlu1 %1698  ;;  %1854 = vrot.lane.b32.xlu0 %v8263_v51, %s8664_s2 }
 0xa81   :  { %v8267_v31 = vpop.eup %8266  ;;  %v1703_v53 = vmul.f32 %v8265_v30, %v1699_v52  ;;  %v1697_v54 = vpop.permute.xlu0 %1696  ;;  %v1717_v17 = vsub.f32 1.0, %v8265_v30  ;;  %v1729_v20 = vmul.f32 %v8265_v30, %v9304_v4  ;;  %v1890_v52 = vld [vmem:[#allocation2 + $0x48] sm:$0xff] }
 0xa82   :  { %v1702_v55 = vmul.f32 %v8267_v31, %v1697_v54  ;;  %v1716_v19 = vsub.f32 1.0, %v8267_v31  ;;  %v1728_v24 = vmul.f32 %v8267_v31, %v9306_v5 }
 0xa83   :  { %1708 = vrot.lane.b32.xlu1 %v1703_v53, %s8663_s19  ;;  %v1889_v53 = vld [vmem:[#allocation2 + $0x40] sm:$0xff] }
 0xa84   :  { %1706 = vrot.lane.b32.xlu0 %v1702_v55, %s8663_s19 }
 0xaf1   :  { %v1857_v59 = vpop.permute.xlu1 %1856 }
 0xaf2   :  { %v1861_v1 = vmul.f32 %v1857_v59, %v1851_v58  ;;  %v1855_v2 = vpop.permute.xlu0 %1854 }
 0xaf3   :  { %v1860_v7 = vmul.f32 %v1855_v2, %v1850_v60 }
 0xaf4   :  { %v9336_v45 = vadd.f32 %v1863_v61, %v1861_v1 }
 0xaf5   :  { %v9338_v46 = vadd.f32 %v1862_v6, %v1860_v7  ;;  %v1709_v8 = vpop.permute.xlu1 %1708 }
 0xaf6   :  { %v1713_v9 = vadd.f32 %v1709_v8, %v1600_v63  ;;  %1881 = vrot.lane.b32.xlu1 %v9336_v45, %s8664_s2  ;;  %v1707_v11 = vpop.permute.xlu0 %1706  ;;  %v2023_v63 = vld [vmem:[#allocation3 + $0xb0] sm:$0xff] }
 0xaf7   :  { %v1712_v13 = vadd.f32 %v1707_v11, %v1599_v37  ;;  %1879 = vrot.lane.b32.xlu0 %v9338_v46, %s8664_s2 }
 0xaf8   :  { %8268 = vtanh.f32 %v1713_v9 }
 0xaf9   :  { %8270 = vtanh.f32 %v1712_v13 }
 0xb02   :  { %v8269_v21 = vpop.eup %8268 }
 0xb03   :  { %v8271_v14 = vpop.eup %8270  ;;  %1722 = vrot.lane.b32.xlu1 %v8269_v21, %s8664_s2 }
 0xb04   :  { %1720 = vrot.lane.b32.xlu0 %v8271_v14, %s8664_s2 }
 0xb68   :  { %v1882_v26 = vpop.permute.xlu1 %1881 }
 0xb69   :  { %1887 = vst.msk [vmem:[#allocation5 + $0xc8] sm:$0xff] %vm90_vm0, %v1882_v26  ;;  %v1880_v15 = vpop.permute.xlu0 %1879 }
 0xb6a   :  { %1886 = vst.msk [vmem:[#allocation5 + $0xc0] sm:$0xff] %vm90_vm0, %v1880_v15  ;;  %7496 = vmatprep.mubr.msk.f32.mxu1 %vm90_vm0, %v1880_v15 }
 0xb6b   :  { %7497 = vmatmul.mubr.msk.f32.vlgmr.msra.gmra.mrb[72].mxu1 %vm90_vm0, %v1882_v26 }
 0xb6c   :  { %7960 = vmatpush3.bf16.msra.mxu1 %v8834_v27 }
 0xb6d   :  { %7962 = vmatprep.subr.bf16.mxu1 %v8963_v56 }
 0xb70   :  { %7964 = vmatpush3.bf16.msra.mxu1 %v8963_v56 }
 0xb71   :  { %7974 = vmatprep.subr.bf16.mxu1 %v8834_v27 }
 0xb75   :  { %v1723_v18 = vpop.permute.xlu1 %1722 }
 0xb76   :  { %v1727_v22 = vmul.f32 %v1723_v18, %v1717_v17  ;;  %v1721_v23 = vpop.permute.xlu0 %1720 }
 0xb77   :  { %v1726_v25 = vmul.f32 %v1721_v23, %v1716_v19 }
 0xb78   :  { %v9356_v28 = vadd.f32 %v1729_v20, %v1727_v22 }
 0xb79   :  { %v9358_v29 = vadd.f32 %v1728_v24, %v1726_v25 }
 0xb7a   :  { %1870 = vrot.lane.b32.xlu1 %v9356_v28, %s8664_s2 }
 0xb7b   :  { %1868 = vrot.lane.b32.xlu0 %v9358_v29, %s8664_s2 }
 0xbec   :  { %v1871_v0 = vpop.permute.xlu1 %1870 }
 0xbed   :  { %1876 = vst.msk [vmem:[#allocation4 + $0x38] sm:$0xff] %vm90_vm0, %v1871_v0  ;;  %v1869_v32 = vpop.permute.xlu0 %1868 }
 0xbee   :  { %1875 = vst.msk [vmem:[#allocation4 + $0x30] sm:$0xff] %vm90_vm0, %v1869_v32  ;;  %7485 = vmatprep.mubr.msk.f32.mxu0 %vm90_vm0, %v1869_v32 }
 0xbef   :  { %7486 = vmatmul.mubr.msk.f32.vlgmr.msra.gmra.mrb[8].mxu0 %vm90_vm0, %v1871_v0 }
 0xbf0   :  { %7952 = vmatpush3.bf16.msra.mxu0 %v8772_v12 }
 0xbf1   :  { %7954 = vmatprep.subr.bf16.mxu0 %v8780_v16 }
 0xbf4   :  { %7956 = vmatpush3.bf16.msra.mxu0 %v8780_v16 }
 0xbf5   :  { %7966 = vmatprep.subr.bf16.mxu0 %v8772_v12 }
 0xc3e   :  { %v7498_v4 = vpop.f32.mrb[72].mxu1 }
 0xc3f   :  { %v2101_v5 = vadd.f32 %v7498_v4, %v9158_v10  ;;  %v2095_v33 = vpop.f32.mrb[73].mxu1 }
 0xc40   :  { %v2096_v34 = vadd.f32 %v9158_v10, %v2095_v33 }
 0xc41   :  { %2122 = vrot.lane.b32.xlu1 %v2101_v5, %s8663_s19  ;;  %v2105_v35 = vadd.f32 %v2101_v5, %v2024_v57 }
 0xc42   :  { %2120 = vrot.lane.b32.xlu0 %v2096_v34, %s8663_s19  ;;  %v2104_v36 = vadd.f32 %v2096_v34, %v2023_v63 }
 0xc43   :  { %v6785_v37 = vmul.f32 -1.442695, %v2105_v35 }
 0xc44   :  { %v6784_v38 = vmul.f32 -1.442695, %v2104_v36 }
 0xc45   :  { %8272 = vpow2.f32 %v6785_v37 }
 0xc46   :  { %8274 = vpow2.f32 %v6784_v38 }
 0xc4f   :  { %v8273_v39 = vpop.eup %8272 }
 0xc50   :  { %v8275_v40 = vpop.eup %8274  ;;  %v2113_v41 = vadd.f32 1.0, %v8273_v39 }
 0xc51   :  { %v2112_v42 = vadd.f32 1.0, %v8275_v40 }
 0xc52   :  { %8276 = vrcp.f32 %v2113_v41 }
 0xc53   :  { %8278 = vrcp.f32 %v2112_v42 }
 0xc5c   :  { %v8277_v43 = vpop.eup %8276 }
 0xc5d   :  { %v8279_v44 = vpop.eup %8278  ;;  %v2141_v17 = vsub.f32 1.0, %v8277_v43  ;;  %v2153_v20 = vmul.f32 %v8277_v43, %v9336_v45 }
 0xc5e   :  { %v2140_v19 = vsub.f32 1.0, %v8279_v44  ;;  %v2152_v24 = vmul.f32 %v8279_v44, %v9338_v46 }
 0xcb3   :  { %v2123_v10 = vpop.permute.xlu1 %2122 }
 0xcb4   :  { %v2127_v47 = vmul.f32 %v8277_v43, %v2123_v10  ;;  %v2121_v62 = vpop.permute.xlu0 %2120 }
 0xcb5   :  { %v2126_v48 = vmul.f32 %v8279_v44, %v2121_v62 }
 0xcb6   :  { %2132 = vrot.lane.b32.xlu1 %v2127_v47, %s8663_s19 }
 0xcb7   :  { %2130 = vrot.lane.b32.xlu0 %v2126_v48, %s8663_s19 }
 0xcc2   :  { %v7487_v49 = vpop.f32.mrb[8].mxu0 }
 0xcc3   :  { %v1967_v50 = vadd.f32 %v7487_v49, %v9167_v3  ;;  %v1961_v51 = vpop.f32.mrb[9].mxu0 }
 0xcc4   :  { %v1962_v30 = vadd.f32 %v9167_v3, %v1961_v51 }
 0xcc5   :  { %1988 = vrot.lane.b32.xlu1 %v1967_v50, %s8663_s19  ;;  %v1971_v31 = vadd.f32 %v1967_v50, %v1890_v52  ;;  %v2314_v50 = vld [vmem:[#allocation3 + $0xa8] sm:$0xff] }
 0xcc6   :  { %1986 = vrot.lane.b32.xlu0 %v1962_v30, %s8663_s19  ;;  %v1970_v54 = vadd.f32 %v1962_v30, %v1889_v53  ;;  %v2313_v30 = vld [vmem:[#allocation3 + $0xa0] sm:$0xff] }
 0xcc7   :  { %v6781_v55 = vmul.f32 -1.442695, %v1971_v31 }
 0xcc8   :  { %v6780_v58 = vmul.f32 -1.442695, %v1970_v54 }
 0xcc9   :  { %8280 = vpow2.f32 %v6781_v55 }
 0xcca   :  { %8282 = vpow2.f32 %v6780_v58 }
 0xcd3   :  { %v8281_v59 = vpop.eup %8280 }
 0xcd4   :  { %v8283_v60 = vpop.eup %8282  ;;  %v1979_v1 = vadd.f32 1.0, %v8281_v59 }
 0xcd5   :  { %v1978_v7 = vadd.f32 1.0, %v8283_v60 }
 0xd28   :  { %v2133_v61 = vpop.permute.xlu1 %2132 }
 0xd29   :  { %v2137_v2 = vadd.f32 %v2133_v61, %v2024_v57  ;;  %v2131_v6 = vpop.permute.xlu0 %2130 }
 0xd2a   :  { %v2136_v3 = vadd.f32 %v2131_v6, %v2023_v63 }
 0xd2b   :  { %8284 = vtanh.f32 %v2137_v2 }
 0xd2c   :  { %8286 = vtanh.f32 %v2136_v3 }
 0xd2d   :  { %8288 = vrcp.f32 %v1979_v1 }
 0xd2e   :  { %8290 = vrcp.f32 %v1978_v7 }
 0xd35   :  { %v8285_v8 = vpop.eup %8284 }
 0xd36   :  { %v8287_v9 = vpop.eup %8286  ;;  %2146 = vrot.lane.b32.xlu1 %v8285_v8, %s8664_s2  ;;  %v9438_v8 = vld [vmem:[%s10787_s4] ss:$0 sm:$0xff] }
 0xd37   :  { %v8289_v11 = vpop.eup %8288  ;;  %v1989_v13 = vpop.permute.xlu1 %1988  ;;  %2144 = vrot.lane.b32.xlu0 %v8287_v9, %s8664_s2 }
 0xd38   :  { %v8291_v21 = vpop.eup %8290  ;;  %v1993_v14 = vmul.f32 %v8289_v11, %v1989_v13  ;;  %v1987_v26 = vpop.permute.xlu0 %1986  ;;  %v2007_v63 = vsub.f32 1.0, %v8289_v11  ;;  %v2019_v38 = vmul.f32 %v8289_v11, %v9356_v28 }
 0xd39   :  { %v1992_v15 = vmul.f32 %v8291_v21, %v1987_v26  ;;  %v2006_v37 = vsub.f32 1.0, %v8291_v21  ;;  %v2018_v41 = vmul.f32 %v8291_v21, %v9358_v29  ;;  %v9427_v29 = vld [vmem:[%s10786_s8] ss:$0 sm:$0xff]  ;;  %v2180_v21 = vld [vmem:[#allocation2 + $0x58] sm:$0xff]  ;;  %v2179_v26 = vld [vmem:[#allocation2 + $0x50] sm:$0xff] }
 0xd3a   :  { %1998 = vrot.lane.b32.xlu1 %v1993_v14, %s8663_s19 }
 0xd3b   :  { %1996 = vrot.lane.b32.xlu0 %v1992_v15, %s8663_s19 }
 0xda8   :  { %v2147_v18 = vpop.permute.xlu1 %2146 }
 0xda9   :  { %v2151_v22 = vmul.f32 %v2147_v18, %v2141_v17  ;;  %v2145_v23 = vpop.permute.xlu0 %2144 }
 0xdaa   :  { %v2150_v25 = vmul.f32 %v2145_v23, %v2140_v19 }
 0xdab   :  { %v9388_v0 = vadd.f32 %v2153_v20, %v2151_v22 }
 0xdac   :  { %v9390_v32 = vadd.f32 %v2152_v24, %v2150_v25  ;;  %v1999_v4 = vpop.permute.xlu1 %1998 }
 0xdad   :  { %v2003_v5 = vadd.f32 %v1999_v4, %v1890_v52  ;;  %2171 = vrot.lane.b32.xlu1 %v9388_v0, %s8664_s2  ;;  %v1997_v33 = vpop.permute.xlu0 %1996 }
 0xdae   :  { %v2002_v34 = vadd.f32 %v1997_v33, %v1889_v53  ;;  %2169 = vrot.lane.b32.xlu0 %v9390_v32, %s8664_s2 }
 0xdaf   :  { %8292 = vtanh.f32 %v2003_v5 }
 0xdb0   :  { %8294 = vtanh.f32 %v2002_v34 }
 0xdb9   :  { %v8293_v45 = vpop.eup %8292 }
 0xdba   :  { %v8295_v57 = vpop.eup %8294  ;;  %2012 = vrot.lane.b32.xlu1 %v8293_v45, %s8664_s2 }
 0xdbb   :  { %2010 = vrot.lane.b32.xlu0 %v8295_v57, %s8664_s2 }
 0xe1f   :  { %v2172_v46 = vpop.permute.xlu1 %2171 }
 0xe20   :  { %2177 = vst.msk [vmem:[#allocation5 + $0xb8] sm:$0xff] %vm90_vm0, %v2172_v46  ;;  %v2170_v35 = vpop.permute.xlu0 %2169 }
 0xe21   :  { %2176 = vst.msk [vmem:[#allocation5 + $0xb0] sm:$0xff] %vm90_vm0, %v2170_v35  ;;  %7518 = vmatprep.mubr.msk.f32.mxu1 %vm90_vm0, %v2170_v35 }
 0xe22   :  { %7519 = vmatmul.mubr.msk.f32.vlgmr.msra.gmra.mrb[74].mxu1 %vm90_vm0, %v2172_v46 }
 0xe23   :  { %7976 = vmatpush3.bf16.msra.mxu1 %v8834_v27 }
 0xe24   :  { %7978 = vmatprep.subr.bf16.mxu1 %v8963_v56 }
 0xe27   :  { %7980 = vmatpush3.bf16.msra.mxu1 %v8963_v56 }
 0xe28   :  { %7990 = vmatprep.subr.bf16.mxu1 %v8834_v27 }
 0xe2c   :  { %v2013_v36 = vpop.permute.xlu1 %2012 }
 0xe2d   :  { %v2017_v39 = vmul.f32 %v2013_v36, %v2007_v63  ;;  %v2011_v40 = vpop.permute.xlu0 %2010 }
 0xe2e   :  { %v2016_v42 = vmul.f32 %v2011_v40, %v2006_v37 }
 0xe2f   :  { %v9408_v43 = vadd.f32 %v2019_v38, %v2017_v39 }
 0xe30   :  { %v9410_v10 = vadd.f32 %v2018_v41, %v2016_v42 }
 0xe31   :  { %2160 = vrot.lane.b32.xlu1 %v9408_v43, %s8664_s2 }
 0xe32   :  { %2158 = vrot.lane.b32.xlu0 %v9410_v10, %s8664_s2 }
 0xea3   :  { %v2161_v44 = vpop.permute.xlu1 %2160 }
 0xea4   :  { %2166 = vst.msk [vmem:[#allocation4 + $0x48] sm:$0xff] %vm90_vm0, %v2161_v44  ;;  %v2159_v47 = vpop.permute.xlu0 %2158 }
 0xea5   :  { %2165 = vst.msk [vmem:[#allocation4 + $0x40] sm:$0xff] %vm90_vm0, %v2159_v47  ;;  %7507 = vmatprep.mubr.msk.f32.mxu0 %vm90_vm0, %v2159_v47 }
 0xea6   :  { %7508 = vmatmul.mubr.msk.f32.vlgmr.msra.gmra.mrb[10].mxu0 %vm90_vm0, %v2161_v44 }
 0xea7   :  { %7968 = vmatpush3.bf16.msra.mxu0 %v8772_v12 }
 0xea8   :  { %7970 = vmatprep.subr.bf16.mxu0 %v8780_v16 }
 0xeab   :  { %7972 = vmatpush3.bf16.msra.mxu0 %v8780_v16 }
 0xeac   :  { %7982 = vmatprep.subr.bf16.mxu0 %v8772_v12 }
 0xef5   :  { %v7520_v28 = vpop.f32.mrb[74].mxu1 }
 0xef6   :  { %v2391_v62 = vadd.f32 %v9427_v29, %v7520_v28  ;;  %v2385_v48 = vpop.f32.mrb[75].mxu1 }
 0xef7   :  { %v2386_v49 = vadd.f32 %v9427_v29, %v2385_v48 }
 0xef8   :  { %2412 = vrot.lane.b32.xlu1 %v2391_v62, %s8663_s19  ;;  %v2395_v51 = vadd.f32 %v2391_v62, %v2314_v50 }
 0xef9   :  { %2410 = vrot.lane.b32.xlu0 %v2386_v49, %s8663_s19  ;;  %v2394_v52 = vadd.f32 %v2386_v49, %v2313_v30 }
 0xefa   :  { %v6793_v31 = vmul.f32 -1.442695, %v2395_v51 }
 0xefb   :  { %v6792_v53 = vmul.f32 -1.442695, %v2394_v52 }
 0xefc   :  { %8296 = vpow2.f32 %v6793_v31 }
 0xefd   :  { %8298 = vpow2.f32 %v6792_v53 }
 0xf06   :  { %v8297_v54 = vpop.eup %8296 }
 0xf07   :  { %v8299_v55 = vpop.eup %8298  ;;  %v2403_v58 = vadd.f32 1.0, %v8297_v54 }
 0xf08   :  { %v2402_v59 = vadd.f32 1.0, %v8299_v55 }
 0xf09   :  { %8300 = vrcp.f32 %v2403_v58 }
 0xf0a   :  { %8302 = vrcp.f32 %v2402_v59 }
 0xf13   :  { %v8301_v60 = vpop.eup %8300 }
 0xf14   :  { %v8303_v1 = vpop.eup %8302  ;;  %v2431_v37 = vsub.f32 1.0, %v8301_v60  ;;  %v2443_v40 = vmul.f32 %v8301_v60, %v9388_v0 }
 0xf15   :  { %v2430_v39 = vsub.f32 1.0, %v8303_v1  ;;  %v2442_v44 = vmul.f32 %v8303_v1, %v9390_v32 }
 0xf6a   :  { %v2413_v61 = vpop.permute.xlu1 %2412 }
 0xf6b   :  { %v2417_v2 = vmul.f32 %v8301_v60, %v2413_v61  ;;  %v2411_v6 = vpop.permute.xlu0 %2410 }
 0xf6c   :  { %v2416_v7 = vmul.f32 %v8303_v1, %v2411_v6 }
 0xf6d   :  { %2422 = vrot.lane.b32.xlu1 %v2417_v2, %s8663_s19 }
 0xf6e   :  { %2420 = vrot.lane.b32.xlu0 %v2416_v7, %s8663_s19 }
 0xf79   :  { %v7509_v3 = vpop.f32.mrb[10].mxu0 }
 0xf7a   :  { %v2257_v9 = vadd.f32 %v9438_v8, %v7509_v3  ;;  %v2251_v11 = vpop.f32.mrb[11].mxu0 }
 0xf7b   :  { %v2252_v13 = vadd.f32 %v9438_v8, %v2251_v11  ;;  %v2604_v11 = vld [vmem:[#allocation3 + $0x98] sm:$0xff] }
 0xf7c   :  { %2278 = vrot.lane.b32.xlu1 %v2257_v9, %s8663_s19  ;;  %v2261_v14 = vadd.f32 %v2257_v9, %v2180_v21 }
 0xf7d   :  { %2276 = vrot.lane.b32.xlu0 %v2252_v13, %s8663_s19  ;;  %v2260_v15 = vadd.f32 %v2252_v13, %v2179_v26 }
 0xf7e   :  { %v6789_v17 = vmul.f32 -1.442695, %v2261_v14 }
 0xf7f   :  { %v6788_v18 = vmul.f32 -1.442695, %v2260_v15 }
 0xf80   :  { %8304 = vpow2.f32 %v6789_v17 }
 0xf81   :  { %8306 = vpow2.f32 %v6788_v18 }
 0xf8a   :  { %v8305_v19 = vpop.eup %8304 }
 0xf8b   :  { %v8307_v20 = vpop.eup %8306  ;;  %v2269_v23 = vadd.f32 1.0, %v8305_v19 }
 0xf8c   :  { %v2268_v4 = vadd.f32 1.0, %v8307_v20 }
 0xfdf   :  { %v2423_v22 = vpop.permute.xlu1 %2422 }
 0xfe0   :  { %v2427_v24 = vadd.f32 %v2423_v22, %v2314_v50  ;;  %v2421_v25 = vpop.permute.xlu0 %2420 }
 0xfe1   :  { %v2426_v5 = vadd.f32 %v2421_v25, %v2313_v30 }
 0xfe2   :  { %8308 = vtanh.f32 %v2427_v24 }
 0xfe3   :  { %8310 = vtanh.f32 %v2426_v5 }
 0xfe4   :  { %8312 = vrcp.f32 %v2269_v23 }
 0xfe5   :  { %8314 = vrcp.f32 %v2268_v4 }
 0xfec   :  { %v8309_v33 = vpop.eup %8308 }
 0xfed   :  { %v8311_v34 = vpop.eup %8310  ;;  %2436 = vrot.lane.b32.xlu1 %v8309_v33, %s8664_s2 }
 0xfee   :  { %v8313_v45 = vpop.eup %8312  ;;  %v2279_v57 = vpop.permute.xlu1 %2278  ;;  %2434 = vrot.lane.b32.xlu0 %v8311_v34, %s8664_s2 }
 0xfef   :  { %v8315_v46 = vpop.eup %8314  ;;  %v2283_v35 = vmul.f32 %v8313_v45, %v2279_v57  ;;  %v2277_v63 = vpop.permute.xlu0 %2276  ;;  %v2297_v31 = vsub.f32 1.0, %v8313_v45  ;;  %v2309_v55 = vmul.f32 %v8313_v45, %v9408_v43 }
 0xff0   :  { %v2282_v36 = vmul.f32 %v8315_v46, %v2277_v63  ;;  %v2296_v54 = vsub.f32 1.0, %v8315_v46  ;;  %v2308_v60 = vmul.f32 %v8315_v46, %v9410_v10  ;;  %v2470_v46 = vld [vmem:[#allocation2 + $0x68] sm:$0xff]  ;;  %v2469_v63 = vld [vmem:[#allocation2 + $0x60] sm:$0xff] }
 0xff1   :  { %2288 = vrot.lane.b32.xlu1 %v2283_v35, %s8663_s19 }
 0xff2   :  { %2286 = vrot.lane.b32.xlu0 %v2282_v36, %s8663_s19 }
0x105f   :  { %v2437_v38 = vpop.permute.xlu1 %2436 }
0x1060   :  { %v2441_v41 = vmul.f32 %v2437_v38, %v2431_v37  ;;  %v2435_v42 = vpop.permute.xlu0 %2434 }
0x1061   :  { %v2440_v47 = vmul.f32 %v2435_v42, %v2430_v39 }
0x1062   :  { %v9450_v28 = vadd.f32 %v2443_v40, %v2441_v41 }
0x1063   :  { %v9452_v62 = vadd.f32 %v2442_v44, %v2440_v47  ;;  %v2289_v48 = vpop.permute.xlu1 %2288 }
0x1064   :  { %v2293_v49 = vadd.f32 %v2289_v48, %v2180_v21  ;;  %2461 = vrot.lane.b32.xlu1 %v9450_v28, %s8664_s2  ;;  %v2287_v50 = vpop.permute.xlu0 %2286  ;;  %v2603_v21 = vld [vmem:[#allocation3 + $0x90] sm:$0xff] }
0x1065   :  { %v2292_v51 = vadd.f32 %v2287_v50, %v2179_v26  ;;  %2459 = vrot.lane.b32.xlu0 %v9452_v62, %s8664_s2 }
0x1066   :  { %8316 = vtanh.f32 %v2293_v49 }
0x1067   :  { %8318 = vtanh.f32 %v2292_v51 }
0x1070   :  { %v8317_v0 = vpop.eup %8316 }
0x1071   :  { %v8319_v30 = vpop.eup %8318  ;;  %2302 = vrot.lane.b32.xlu1 %v8317_v0, %s8664_s2 }
0x1072   :  { %2300 = vrot.lane.b32.xlu0 %v8319_v30, %s8664_s2 }
0x10d6   :  { %v2462_v32 = vpop.permute.xlu1 %2461 }
0x10d7   :  { %2467 = vst.msk [vmem:[#allocation5 + $0xa8] sm:$0xff] %vm90_vm0, %v2462_v32  ;;  %v2460_v52 = vpop.permute.xlu0 %2459 }
0x10d8   :  { %2466 = vst.msk [vmem:[#allocation5 + $0xa0] sm:$0xff] %vm90_vm0, %v2460_v52  ;;  %7540 = vmatprep.mubr.msk.f32.mxu1 %vm90_vm0, %v2460_v52 }
0x10d9   :  { %7541 = vmatmul.mubr.msk.f32.vlgmr.msra.gmra.mrb[76].mxu1 %vm90_vm0, %v2462_v32 }
0x10da   :  { %7992 = vmatpush3.bf16.msra.mxu1 %v8834_v27 }
0x10db   :  { %7994 = vmatprep.subr.bf16.mxu1 %v8963_v56 }
0x10de   :  { %7996 = vmatpush3.bf16.msra.mxu1 %v8963_v56 }
0x10df   :  { %8006 = vmatprep.subr.bf16.mxu1 %v8834_v27 }
0x10e3   :  { %v2303_v53 = vpop.permute.xlu1 %2302 }
0x10e4   :  { %v2307_v58 = vmul.f32 %v2303_v53, %v2297_v31  ;;  %v2301_v59 = vpop.permute.xlu0 %2300 }
0x10e5   :  { %v2306_v61 = vmul.f32 %v2301_v59, %v2296_v54 }
0x10e6   :  { %v9470_v1 = vadd.f32 %v2309_v55, %v2307_v58 }
0x10e7   :  { %v9472_v2 = vadd.f32 %v2308_v60, %v2306_v61 }
0x10e8   :  { %2450 = vrot.lane.b32.xlu1 %v9470_v1, %s8664_s2 }
0x10e9   :  { %2448 = vrot.lane.b32.xlu0 %v9472_v2, %s8664_s2 }
0x115a   :  { %v2451_v6 = vpop.permute.xlu1 %2450 }
0x115b   :  { %2456 = vst.msk [vmem:[#allocation4 + $0x58] sm:$0xff] %vm90_vm0, %v2451_v6  ;;  %v2449_v7 = vpop.permute.xlu0 %2448 }
0x115c   :  { %2455 = vst.msk [vmem:[#allocation4 + $0x50] sm:$0xff] %vm90_vm0, %v2449_v7  ;;  %7529 = vmatprep.mubr.msk.f32.mxu0 %vm90_vm0, %v2449_v7 }
0x115d   :  { %7530 = vmatmul.mubr.msk.f32.vlgmr.msra.gmra.mrb[12].mxu0 %vm90_vm0, %v2451_v6 }
0x115e   :  { %7984 = vmatpush3.bf16.msra.mxu0 %v8772_v12 }
0x115f   :  { %7986 = vmatprep.subr.bf16.mxu0 %v8780_v16 }
0x1162   :  { %7988 = vmatpush3.bf16.msra.mxu0 %v8780_v16 }
0x1163   :  { %7998 = vmatprep.subr.bf16.mxu0 %v8772_v12 }
0x11ac   :  { %v7542_v43 = vpop.f32.mrb[76].mxu1 }
0x11ad   :  { %v2681_v10 = vadd.f32 %v9427_v29, %v7542_v43  ;;  %v2675_v3 = vpop.f32.mrb[77].mxu1 }
0x11ae   :  { %v2676_v9 = vadd.f32 %v9427_v29, %v2675_v3 }
0x11af   :  { %2702 = vrot.lane.b32.xlu1 %v2681_v10, %s8663_s19  ;;  %v2685_v13 = vadd.f32 %v2681_v10, %v2604_v11 }
0x11b0   :  { %2700 = vrot.lane.b32.xlu0 %v2676_v9, %s8663_s19  ;;  %v2684_v14 = vadd.f32 %v2676_v9, %v2603_v21 }
0x11b1   :  { %v6801_v26 = vmul.f32 -1.442695, %v2685_v13 }
0x11b2   :  { %v6800_v15 = vmul.f32 -1.442695, %v2684_v14 }
0x11b3   :  { %8320 = vpow2.f32 %v6801_v26 }
0x11b4   :  { %8322 = vpow2.f32 %v6800_v15 }
0x11bd   :  { %v8321_v17 = vpop.eup %8320 }
0x11be   :  { %v8323_v18 = vpop.eup %8322  ;;  %v2693_v19 = vadd.f32 1.0, %v8321_v17 }
0x11bf   :  { %v2692_v20 = vadd.f32 1.0, %v8323_v18 }
0x11c0   :  { %8324 = vrcp.f32 %v2693_v19 }
0x11c1   :  { %8326 = vrcp.f32 %v2692_v20 }
0x11ca   :  { %v8325_v22 = vpop.eup %8324 }
0x11cb   :  { %v8327_v24 = vpop.eup %8326  ;;  %v2721_v54 = vsub.f32 1.0, %v8325_v22  ;;  %v2733_v59 = vmul.f32 %v8325_v22, %v9450_v28 }
0x11cc   :  { %v2720_v58 = vsub.f32 1.0, %v8327_v24  ;;  %v2732_v6 = vmul.f32 %v8327_v24, %v9452_v62 }
0x1221   :  { %v2703_v23 = vpop.permute.xlu1 %2702 }
0x1222   :  { %v2707_v25 = vmul.f32 %v8325_v22, %v2703_v23  ;;  %v2701_v4 = vpop.permute.xlu0 %2700 }
0x1223   :  { %v2706_v5 = vmul.f32 %v8327_v24, %v2701_v4 }
0x1224   :  { %2712 = vrot.lane.b32.xlu1 %v2707_v25, %s8663_s19 }
0x1225   :  { %2710 = vrot.lane.b32.xlu0 %v2706_v5, %s8663_s19 }
0x1230   :  { %v7531_v33 = vpop.f32.mrb[12].mxu0 }
0x1231   :  { %v2547_v34 = vadd.f32 %v9438_v8, %v7531_v33  ;;  %v2541_v45 = vpop.f32.mrb[13].mxu0 }
0x1232   :  { %v2542_v57 = vadd.f32 %v9438_v8, %v2541_v45  ;;  %v2894_v45 = vld [vmem:[#allocation3 + $0x88] sm:$0xff] }
0x1233   :  { %2568 = vrot.lane.b32.xlu1 %v2547_v34, %s8663_s19  ;;  %v2551_v35 = vadd.f32 %v2547_v34, %v2470_v46 }
0x1234   :  { %2566 = vrot.lane.b32.xlu0 %v2542_v57, %s8663_s19  ;;  %v2550_v36 = vadd.f32 %v2542_v57, %v2469_v63 }
0x1235   :  { %v6797_v37 = vmul.f32 -1.442695, %v2551_v35 }
0x1236   :  { %v6796_v38 = vmul.f32 -1.442695, %v2550_v36 }
0x1237   :  { %8328 = vpow2.f32 %v6797_v37 }
0x1238   :  { %8330 = vpow2.f32 %v6796_v38 }
0x1241   :  { %v8329_v39 = vpop.eup %8328 }
0x1242   :  { %v8331_v40 = vpop.eup %8330  ;;  %v2559_v42 = vadd.f32 1.0, %v8329_v39 }
0x1243   :  { %v2558_v48 = vadd.f32 1.0, %v8331_v40 }
0x1296   :  { %v2713_v41 = vpop.permute.xlu1 %2712 }
0x1297   :  { %v2717_v44 = vadd.f32 %v2713_v41, %v2604_v11  ;;  %v2711_v47 = vpop.permute.xlu0 %2710 }
0x1298   :  { %v2716_v49 = vadd.f32 %v2711_v47, %v2603_v21 }
0x1299   :  { %8332 = vtanh.f32 %v2717_v44 }
0x129a   :  { %8334 = vtanh.f32 %v2716_v49 }
0x129b   :  { %8336 = vrcp.f32 %v2559_v42 }
0x129c   :  { %8338 = vrcp.f32 %v2558_v48 }
0x12a3   :  { %v8333_v50 = vpop.eup %8332 }
0x12a4   :  { %v8335_v51 = vpop.eup %8334  ;;  %2726 = vrot.lane.b32.xlu1 %v8333_v50, %s8664_s2 }
0x12a5   :  { %v8337_v0 = vpop.eup %8336  ;;  %v2569_v30 = vpop.permute.xlu1 %2568  ;;  %2724 = vrot.lane.b32.xlu0 %v8335_v51, %s8664_s2 }
0x12a6   :  { %v8339_v32 = vpop.eup %8338  ;;  %v2573_v52 = vmul.f32 %v8337_v0, %v2569_v30  ;;  %v2567_v31 = vpop.permute.xlu0 %2566  ;;  %v2587_v26 = vsub.f32 1.0, %v8337_v0  ;;  %v2599_v18 = vmul.f32 %v8337_v0, %v9470_v1 }
0x12a7   :  { %v2572_v53 = vmul.f32 %v8339_v32, %v2567_v31  ;;  %v2586_v17 = vsub.f32 1.0, %v8339_v32  ;;  %v2598_v22 = vmul.f32 %v8339_v32, %v9472_v2  ;;  %v2760_v32 = vld [vmem:[#allocation2 + $0x78] sm:$0xff]  ;;  %v2759_v31 = vld [vmem:[#allocation2 + $0x70] sm:$0xff] }
0x12a8   :  { %2578 = vrot.lane.b32.xlu1 %v2573_v52, %s8663_s19 }
0x12a9   :  { %2576 = vrot.lane.b32.xlu0 %v2572_v53, %s8663_s19 }
0x1316   :  { %v2727_v55 = vpop.permute.xlu1 %2726 }
0x1317   :  { %v2731_v60 = vmul.f32 %v2727_v55, %v2721_v54  ;;  %v2725_v61 = vpop.permute.xlu0 %2724 }
0x1318   :  { %v2730_v7 = vmul.f32 %v2725_v61, %v2720_v58 }
0x1319   :  { %v9502_v43 = vadd.f32 %v2733_v59, %v2731_v60 }
0x131a   :  { %v9504_v10 = vadd.f32 %v2732_v6, %v2730_v7  ;;  %v2579_v3 = vpop.permute.xlu1 %2578 }
0x131b   :  { %v2583_v9 = vadd.f32 %v2579_v3, %v2470_v46  ;;  %2751 = vrot.lane.b32.xlu1 %v9502_v43, %s8664_s2  ;;  %v2577_v11 = vpop.permute.xlu0 %2576  ;;  %v2893_v46 = vld [vmem:[#allocation3 + $0x80] sm:$0xff] }
0x131c   :  { %v2582_v13 = vadd.f32 %v2577_v11, %v2469_v63  ;;  %2749 = vrot.lane.b32.xlu0 %v9504_v10, %s8664_s2 }
0x131d   :  { %8340 = vtanh.f32 %v2583_v9 }
0x131e   :  { %8342 = vtanh.f32 %v2582_v13 }
0x1327   :  { %v8341_v28 = vpop.eup %8340 }
0x1328   :  { %v8343_v21 = vpop.eup %8342  ;;  %2592 = vrot.lane.b32.xlu1 %v8341_v28, %s8664_s2 }
0x1329   :  { %2590 = vrot.lane.b32.xlu0 %v8343_v21, %s8664_s2 }
0x138d   :  { %v2752_v62 = vpop.permute.xlu1 %2751 }
0x138e   :  { %2757 = vst.msk [vmem:[#allocation5 + $0x98] sm:$0xff] %vm90_vm0, %v2752_v62  ;;  %v2750_v14 = vpop.permute.xlu0 %2749 }
0x138f   :  { %2756 = vst.msk [vmem:[#allocation5 + $0x90] sm:$0xff] %vm90_vm0, %v2750_v14  ;;  %7562 = vmatprep.mubr.msk.f32.mxu1 %vm90_vm0, %v2750_v14 }
0x1390   :  { %7563 = vmatmul.mubr.msk.f32.vlgmr.msra.gmra.mrb[78].mxu1 %vm90_vm0, %v2752_v62 }
0x1391   :  { %8008 = vmatpush3.bf16.msra.mxu1 %v8834_v27 }
0x1392   :  { %8010 = vmatprep.subr.bf16.mxu1 %v8963_v56 }
0x1395   :  { %8012 = vmatpush3.bf16.msra.mxu1 %v8963_v56 }
0x1396   :  { %8022 = vmatprep.subr.bf16.mxu1 %v8834_v27 }
0x139a   :  { %v2593_v15 = vpop.permute.xlu1 %2592 }
0x139b   :  { %v2597_v19 = vmul.f32 %v2593_v15, %v2587_v26  ;;  %v2591_v20 = vpop.permute.xlu0 %2590 }
0x139c   :  { %v2596_v23 = vmul.f32 %v2591_v20, %v2586_v17 }
0x139d   :  { %v9522_v24 = vadd.f32 %v2599_v18, %v2597_v19 }
0x139e   :  { %v9524_v25 = vadd.f32 %v2598_v22, %v2596_v23 }
0x139f   :  { %2740 = vrot.lane.b32.xlu1 %v9522_v24, %s8664_s2 }
0x13a0   :  { %2738 = vrot.lane.b32.xlu0 %v9524_v25, %s8664_s2 }
0x1411   :  { %v2741_v4 = vpop.permute.xlu1 %2740 }
0x1412   :  { %2746 = vst.msk [vmem:[#allocation4 + $0x68] sm:$0xff] %vm90_vm0, %v2741_v4  ;;  %v2739_v5 = vpop.permute.xlu0 %2738 }
0x1413   :  { %2745 = vst.msk [vmem:[#allocation4 + $0x60] sm:$0xff] %vm90_vm0, %v2739_v5  ;;  %7551 = vmatprep.mubr.msk.f32.mxu0 %vm90_vm0, %v2739_v5 }
0x1414   :  { %7552 = vmatmul.mubr.msk.f32.vlgmr.msra.gmra.mrb[14].mxu0 %vm90_vm0, %v2741_v4 }
0x1415   :  { %8000 = vmatpush3.bf16.msra.mxu0 %v8772_v12 }
0x1416   :  { %8002 = vmatprep.subr.bf16.mxu0 %v8780_v16 }
0x1419   :  { %8004 = vmatpush3.bf16.msra.mxu0 %v8780_v16 }
0x141a   :  { %8014 = vmatprep.subr.bf16.mxu0 %v8772_v12 }
0x1463   :  { %v7564_v1 = vpop.f32.mrb[78].mxu1 }
0x1464   :  { %v2971_v2 = vadd.f32 %v9427_v29, %v7564_v1  ;;  %v2965_v33 = vpop.f32.mrb[79].mxu1 }
0x1465   :  { %v2966_v34 = vadd.f32 %v9427_v29, %v2965_v33 }
0x1466   :  { %2992 = vrot.lane.b32.xlu1 %v2971_v2, %s8663_s19  ;;  %v2975_v57 = vadd.f32 %v2971_v2, %v2894_v45 }
0x1467   :  { %2990 = vrot.lane.b32.xlu0 %v2966_v34, %s8663_s19  ;;  %v2974_v35 = vadd.f32 %v2966_v34, %v2893_v46 }
0x1468   :  { %v6809_v63 = vmul.f32 -1.442695, %v2975_v57 }
0x1469   :  { %v6808_v36 = vmul.f32 -1.442695, %v2974_v35 }
0x146a   :  { %8344 = vpow2.f32 %v6809_v63 }
0x146b   :  { %8346 = vpow2.f32 %v6808_v36 }
0x1474   :  { %v8345_v37 = vpop.eup %8344 }
0x1475   :  { %v8347_v38 = vpop.eup %8346  ;;  %v2983_v39 = vadd.f32 1.0, %v8345_v37 }
0x1476   :  { %v2982_v40 = vadd.f32 1.0, %v8347_v38 }
0x1477   :  { %8348 = vrcp.f32 %v2983_v39 }
0x1478   :  { %8350 = vrcp.f32 %v2982_v40 }
0x1481   :  { %v8349_v41 = vpop.eup %8348 }
0x1482   :  { %v8351_v44 = vpop.eup %8350  ;;  %v3011_v17 = vsub.f32 1.0, %v8349_v41  ;;  %v3023_v20 = vmul.f32 %v8349_v41, %v9502_v43 }
0x1483   :  { %v3010_v19 = vsub.f32 1.0, %v8351_v44  ;;  %v3022_v4 = vmul.f32 %v8351_v44, %v9504_v10 }
0x14d8   :  { %v2993_v42 = vpop.permute.xlu1 %2992 }
0x14d9   :  { %v2997_v47 = vmul.f32 %v8349_v41, %v2993_v42  ;;  %v2991_v48 = vpop.permute.xlu0 %2990 }
0x14da   :  { %v2996_v49 = vmul.f32 %v8351_v44, %v2991_v48 }
0x14db   :  { %3002 = vrot.lane.b32.xlu1 %v2997_v47, %s8663_s19 }
0x14dc   :  { %3000 = vrot.lane.b32.xlu0 %v2996_v49, %s8663_s19 }
0x14e7   :  { %v7553_v50 = vpop.f32.mrb[14].mxu0 }
0x14e8   :  { %v2837_v51 = vadd.f32 %v9438_v8, %v7553_v50  ;;  %v2831_v0 = vpop.f32.mrb[15].mxu0 }
0x14e9   :  { %v2832_v30 = vadd.f32 %v9438_v8, %v2831_v0  ;;  %v3184_v0 = vld [vmem:[#allocation3 + $0x78] sm:$0xff] }
0x14ea   :  { %2858 = vrot.lane.b32.xlu1 %v2837_v51, %s8663_s19  ;;  %v2841_v52 = vadd.f32 %v2837_v51, %v2760_v32 }
0x14eb   :  { %2856 = vrot.lane.b32.xlu0 %v2832_v30, %s8663_s19  ;;  %v2840_v53 = vadd.f32 %v2832_v30, %v2759_v31 }
0x14ec   :  { %v6805_v54 = vmul.f32 -1.442695, %v2841_v52 }
0x14ed   :  { %v6804_v55 = vmul.f32 -1.442695, %v2840_v53 }
0x14ee   :  { %8352 = vpow2.f32 %v6805_v54 }
0x14ef   :  { %8354 = vpow2.f32 %v6804_v55 }
0x14f8   :  { %v8353_v58 = vpop.eup %8352 }
0x14f9   :  { %v8355_v59 = vpop.eup %8354  ;;  %v2849_v61 = vadd.f32 1.0, %v8353_v58 }
0x14fa   :  { %v2848_v3 = vadd.f32 1.0, %v8355_v59 }
0x154d   :  { %v3003_v60 = vpop.permute.xlu1 %3002 }
0x154e   :  { %v3007_v6 = vadd.f32 %v3003_v60, %v2894_v45  ;;  %v3001_v7 = vpop.permute.xlu0 %3000 }
0x154f   :  { %v3006_v9 = vadd.f32 %v3001_v7, %v2893_v46 }
0x1550   :  { %8356 = vtanh.f32 %v3007_v6 }
0x1551   :  { %8358 = vtanh.f32 %v3006_v9 }
0x1552   :  { %8360 = vrcp.f32 %v2849_v61 }
0x1553   :  { %8362 = vrcp.f32 %v2848_v3 }
0x155a   :  { %v8357_v11 = vpop.eup %8356 }
0x155b   :  { %v8359_v13 = vpop.eup %8358  ;;  %3016 = vrot.lane.b32.xlu1 %v8357_v11, %s8664_s2 }
0x155c   :  { %v8361_v28 = vpop.eup %8360  ;;  %v2859_v21 = vpop.permute.xlu1 %2858  ;;  %3014 = vrot.lane.b32.xlu0 %v8359_v13, %s8664_s2 }
0x155d   :  { %v8363_v62 = vpop.eup %8362  ;;  %v2863_v14 = vmul.f32 %v8361_v28, %v2859_v21  ;;  %v2857_v26 = vpop.permute.xlu0 %2856  ;;  %v2877_v63 = vsub.f32 1.0, %v8361_v28  ;;  %v2889_v38 = vmul.f32 %v8361_v28, %v9522_v24 }
0x155e   :  { %v2862_v15 = vmul.f32 %v8363_v62, %v2857_v26  ;;  %v2876_v37 = vsub.f32 1.0, %v8363_v62  ;;  %v2888_v41 = vmul.f32 %v8363_v62, %v9524_v25  ;;  %v3050_v62 = vld [vmem:[#allocation2 + $0x88] sm:$0xff]  ;;  %v3049_v26 = vld [vmem:[#allocation2 + $0x80] sm:$0xff] }
0x155f   :  { %2868 = vrot.lane.b32.xlu1 %v2863_v14, %s8663_s19 }
0x1560   :  { %2866 = vrot.lane.b32.xlu0 %v2862_v15, %s8663_s19 }
0x15cd   :  { %v3017_v18 = vpop.permute.xlu1 %3016 }
0x15ce   :  { %v3021_v22 = vmul.f32 %v3017_v18, %v3011_v17  ;;  %v3015_v23 = vpop.permute.xlu0 %3014 }
0x15cf   :  { %v3020_v5 = vmul.f32 %v3015_v23, %v3010_v19 }
0x15d0   :  { %v9554_v1 = vadd.f32 %v3023_v20, %v3021_v22 }
0x15d1   :  { %v9556_v2 = vadd.f32 %v3022_v4, %v3020_v5  ;;  %v2869_v33 = vpop.permute.xlu1 %2868 }
0x15d2   :  { %v2873_v34 = vadd.f32 %v2869_v33, %v2760_v32  ;;  %3041 = vrot.lane.b32.xlu1 %v9554_v1, %s8664_s2  ;;  %v2867_v45 = vpop.permute.xlu0 %2866  ;;  %v3183_v32 = vld [vmem:[#allocation3 + $0x70] sm:$0xff] }
0x15d3   :  { %v2872_v57 = vadd.f32 %v2867_v45, %v2759_v31  ;;  %3039 = vrot.lane.b32.xlu0 %v9556_v2, %s8664_s2 }
0x15d4   :  { %8364 = vtanh.f32 %v2873_v34 }
0x15d5   :  { %8366 = vtanh.f32 %v2872_v57 }
0x15de   :  { %v8365_v43 = vpop.eup %8364 }
0x15df   :  { %v8367_v46 = vpop.eup %8366  ;;  %2882 = vrot.lane.b32.xlu1 %v8365_v43, %s8664_s2 }
0x15e0   :  { %2880 = vrot.lane.b32.xlu0 %v8367_v46, %s8664_s2 }
0x1644   :  { %v3042_v10 = vpop.permute.xlu1 %3041 }
0x1645   :  { %3047 = vst.msk [vmem:[#allocation5 + $0x88] sm:$0xff] %vm90_vm0, %v3042_v10  ;;  %v3040_v35 = vpop.permute.xlu0 %3039 }
0x1646   :  { %3046 = vst.msk [vmem:[#allocation5 + $0x80] sm:$0xff] %vm90_vm0, %v3040_v35  ;;  %7584 = vmatprep.mubr.msk.f32.mxu1 %vm90_vm0, %v3040_v35 }
0x1647   :  { %7585 = vmatmul.mubr.msk.f32.vlgmr.msra.gmra.mrb[80].mxu1 %vm90_vm0, %v3042_v10 }
0x1648   :  { %8024 = vmatpush3.bf16.msra.mxu1 %v8834_v27 }
0x1649   :  { %8026 = vmatprep.subr.bf16.mxu1 %v8963_v56 }
0x164c   :  { %8028 = vmatpush3.bf16.msra.mxu1 %v8963_v56 }
0x164d   :  { %8038 = vmatprep.subr.bf16.mxu1 %v8834_v27 }
0x1651   :  { %v2883_v36 = vpop.permute.xlu1 %2882 }
0x1652   :  { %v2887_v39 = vmul.f32 %v2883_v36, %v2877_v63  ;;  %v2881_v40 = vpop.permute.xlu0 %2880 }
0x1653   :  { %v2886_v42 = vmul.f32 %v2881_v40, %v2876_v37 }
0x1654   :  { %v9574_v44 = vadd.f32 %v2889_v38, %v2887_v39 }
0x1655   :  { %v9576_v47 = vadd.f32 %v2888_v41, %v2886_v42 }
0x1656   :  { %3030 = vrot.lane.b32.xlu1 %v9574_v44, %s8664_s2 }
0x1657   :  { %3028 = vrot.lane.b32.xlu0 %v9576_v47, %s8664_s2 }
0x16c8   :  { %v3031_v48 = vpop.permute.xlu1 %3030 }
0x16c9   :  { %3036 = vst.msk [vmem:[#allocation4 + $0x78] sm:$0xff] %vm90_vm0, %v3031_v48  ;;  %v3029_v49 = vpop.permute.xlu0 %3028 }
0x16ca   :  { %3035 = vst.msk [vmem:[#allocation4 + $0x70] sm:$0xff] %vm90_vm0, %v3029_v49  ;;  %7573 = vmatprep.mubr.msk.f32.mxu0 %vm90_vm0, %v3029_v49 }
0x16cb   :  { %7574 = vmatmul.mubr.msk.f32.vlgmr.msra.gmra.mrb[16].mxu0 %vm90_vm0, %v3031_v48 }
0x16cc   :  { %8016 = vmatpush3.bf16.msra.mxu0 %v8772_v12 }
0x16cd   :  { %8018 = vmatprep.subr.bf16.mxu0 %v8780_v16 }
0x16d0   :  { %8020 = vmatpush3.bf16.msra.mxu0 %v8780_v16 }
0x16d1   :  { %8030 = vmatprep.subr.bf16.mxu0 %v8772_v12 }
0x171a   :  { %v7586_v24 = vpop.f32.mrb[80].mxu1 }
0x171b   :  { %v3261_v25 = vadd.f32 %v9427_v29, %v7586_v24  ;;  %v3255_v50 = vpop.f32.mrb[81].mxu1 }
0x171c   :  { %v3256_v51 = vadd.f32 %v9427_v29, %v3255_v50 }
0x171d   :  { %3282 = vrot.lane.b32.xlu1 %v3261_v25, %s8663_s19  ;;  %v3265_v30 = vadd.f32 %v3261_v25, %v3184_v0 }
0x171e   :  { %3280 = vrot.lane.b32.xlu0 %v3256_v51, %s8663_s19  ;;  %v3264_v52 = vadd.f32 %v3256_v51, %v3183_v32 }
0x171f   :  { %v6817_v31 = vmul.f32 -1.442695, %v3265_v30 }
0x1720   :  { %v6816_v53 = vmul.f32 -1.442695, %v3264_v52 }
0x1721   :  { %8368 = vpow2.f32 %v6817_v31 }
0x1722   :  { %8370 = vpow2.f32 %v6816_v53 }
0x172b   :  { %v8369_v54 = vpop.eup %8368 }
0x172c   :  { %v8371_v55 = vpop.eup %8370  ;;  %v3273_v58 = vadd.f32 1.0, %v8369_v54 }
0x172d   :  { %v3272_v59 = vadd.f32 1.0, %v8371_v55 }
0x172e   :  { %8372 = vrcp.f32 %v3273_v58 }
0x172f   :  { %8374 = vrcp.f32 %v3272_v59 }
0x1738   :  { %v8373_v60 = vpop.eup %8372 }
0x1739   :  { %v8375_v6 = vpop.eup %8374  ;;  %v3301_v37 = vsub.f32 1.0, %v8373_v60  ;;  %v3313_v40 = vmul.f32 %v8373_v60, %v9554_v1 }
0x173a   :  { %v3300_v39 = vsub.f32 1.0, %v8375_v6  ;;  %v3312_v48 = vmul.f32 %v8375_v6, %v9556_v2 }
0x178f   :  { %v3283_v61 = vpop.permute.xlu1 %3282 }
0x1790   :  { %v3287_v7 = vmul.f32 %v8373_v60, %v3283_v61  ;;  %v3281_v3 = vpop.permute.xlu0 %3280 }
0x1791   :  { %v3286_v9 = vmul.f32 %v8375_v6, %v3281_v3 }
0x1792   :  { %3292 = vrot.lane.b32.xlu1 %v3287_v7, %s8663_s19 }
0x1793   :  { %3290 = vrot.lane.b32.xlu0 %v3286_v9, %s8663_s19 }
0x179e   :  { %v7575_v11 = vpop.f32.mrb[16].mxu0 }
0x179f   :  { %v3127_v13 = vadd.f32 %v9438_v8, %v7575_v11  ;;  %v3121_v28 = vpop.f32.mrb[17].mxu0 }
0x17a0   :  { %v3122_v21 = vadd.f32 %v9438_v8, %v3121_v28  ;;  %v3474_v28 = vld [vmem:[#allocation3 + $0x68] sm:$0xff] }
0x17a1   :  { %3148 = vrot.lane.b32.xlu1 %v3127_v13, %s8663_s19  ;;  %v3131_v14 = vadd.f32 %v3127_v13, %v3050_v62 }
0x17a2   :  { %3146 = vrot.lane.b32.xlu0 %v3122_v21, %s8663_s19  ;;  %v3130_v15 = vadd.f32 %v3122_v21, %v3049_v26 }
0x17a3   :  { %v6813_v17 = vmul.f32 -1.442695, %v3131_v14 }
0x17a4   :  { %v6812_v18 = vmul.f32 -1.442695, %v3130_v15 }
0x17a5   :  { %8376 = vpow2.f32 %v6813_v17 }
0x17a6   :  { %8378 = vpow2.f32 %v6812_v18 }
0x17af   :  { %v8377_v19 = vpop.eup %8376 }
0x17b0   :  { %v8379_v20 = vpop.eup %8378  ;;  %v3139_v23 = vadd.f32 1.0, %v8377_v19 }
0x17b1   :  { %v3138_v33 = vadd.f32 1.0, %v8379_v20 }
0x1804   :  { %v3293_v22 = vpop.permute.xlu1 %3292 }
0x1805   :  { %v3297_v4 = vadd.f32 %v3293_v22, %v3184_v0  ;;  %v3291_v5 = vpop.permute.xlu0 %3290 }
0x1806   :  { %v3296_v34 = vadd.f32 %v3291_v5, %v3183_v32 }
0x1807   :  { %8380 = vtanh.f32 %v3297_v4 }
0x1808   :  { %8382 = vtanh.f32 %v3296_v34 }
0x1809   :  { %8384 = vrcp.f32 %v3139_v23 }
0x180a   :  { %8386 = vrcp.f32 %v3138_v33 }
0x1811   :  { %v8381_v45 = vpop.eup %8380 }
0x1812   :  { %v8383_v57 = vpop.eup %8382  ;;  %3306 = vrot.lane.b32.xlu1 %v8381_v45, %s8664_s2 }
0x1813   :  { %v8385_v43 = vpop.eup %8384  ;;  %v3149_v46 = vpop.permute.xlu1 %3148  ;;  %3304 = vrot.lane.b32.xlu0 %v8383_v57, %s8664_s2 }
0x1814   :  { %v8387_v10 = vpop.eup %8386  ;;  %v3153_v35 = vmul.f32 %v8385_v43, %v3149_v46  ;;  %v3147_v63 = vpop.permute.xlu0 %3146  ;;  %v3167_v31 = vsub.f32 1.0, %v8385_v43  ;;  %v3179_v55 = vmul.f32 %v8385_v43, %v9574_v44  ;;  %v3340_v46 = vld [vmem:[#allocation2 + $0x98] sm:$0xff] }
0x1815   :  { %v3152_v36 = vmul.f32 %v8387_v10, %v3147_v63  ;;  %v3166_v54 = vsub.f32 1.0, %v8387_v10  ;;  %v3178_v60 = vmul.f32 %v8387_v10, %v9576_v47 }
0x1816   :  { %3158 = vrot.lane.b32.xlu1 %v3153_v35, %s8663_s19  ;;  %v3339_v35 = vld [vmem:[#allocation2 + $0x90] sm:$0xff] }
0x1817   :  { %3156 = vrot.lane.b32.xlu0 %v3152_v36, %s8663_s19 }
0x1884   :  { %v3307_v38 = vpop.permute.xlu1 %3306 }
0x1885   :  { %v3311_v41 = vmul.f32 %v3307_v38, %v3301_v37  ;;  %v3305_v42 = vpop.permute.xlu0 %3304 }
0x1886   :  { %v3310_v49 = vmul.f32 %v3305_v42, %v3300_v39 }
0x1887   :  { %v9606_v24 = vadd.f32 %v3313_v40, %v3311_v41 }
0x1888   :  { %v9608_v25 = vadd.f32 %v3312_v48, %v3310_v49  ;;  %v3159_v50 = vpop.permute.xlu1 %3158 }
0x1889   :  { %v3163_v51 = vadd.f32 %v3159_v50, %v3050_v62  ;;  %3331 = vrot.lane.b32.xlu1 %v9606_v24, %s8664_s2  ;;  %v3157_v0 = vpop.permute.xlu0 %3156  ;;  %v3473_v62 = vld [vmem:[#allocation3 + $0x60] sm:$0xff] }
0x188a   :  { %v3162_v30 = vadd.f32 %v3157_v0, %v3049_v26  ;;  %3329 = vrot.lane.b32.xlu0 %v9608_v25, %s8664_s2 }
0x188b   :  { %8388 = vtanh.f32 %v3163_v51 }
0x188c   :  { %8390 = vtanh.f32 %v3162_v30 }
0x1895   :  { %v8389_v1 = vpop.eup %8388 }
0x1896   :  { %v8391_v32 = vpop.eup %8390  ;;  %3172 = vrot.lane.b32.xlu1 %v8389_v1, %s8664_s2 }
0x1897   :  { %3170 = vrot.lane.b32.xlu0 %v8391_v32, %s8664_s2 }
0x18fb   :  { %v3332_v2 = vpop.permute.xlu1 %3331 }
0x18fc   :  { %3337 = vst.msk [vmem:[#allocation5 + $0x78] sm:$0xff] %vm90_vm0, %v3332_v2  ;;  %v3330_v52 = vpop.permute.xlu0 %3329 }
0x18fd   :  { %3336 = vst.msk [vmem:[#allocation5 + $0x70] sm:$0xff] %vm90_vm0, %v3330_v52  ;;  %7606 = vmatprep.mubr.msk.f32.mxu1 %vm90_vm0, %v3330_v52 }
0x18fe   :  { %7607 = vmatmul.mubr.msk.f32.vlgmr.msra.gmra.mrb[82].mxu1 %vm90_vm0, %v3332_v2 }
0x18ff   :  { %8040 = vmatpush3.bf16.msra.mxu1 %v8834_v27 }
0x1900   :  { %8042 = vmatprep.subr.bf16.mxu1 %v8963_v56 }
0x1903   :  { %8044 = vmatpush3.bf16.msra.mxu1 %v8963_v56 }
0x1904   :  { %8054 = vmatprep.subr.bf16.mxu1 %v8834_v27 }
0x1908   :  { %v3173_v53 = vpop.permute.xlu1 %3172 }
0x1909   :  { %v3177_v58 = vmul.f32 %v3173_v53, %v3167_v31  ;;  %v3171_v59 = vpop.permute.xlu0 %3170 }
0x190a   :  { %v3176_v61 = vmul.f32 %v3171_v59, %v3166_v54 }
0x190b   :  { %v9626_v6 = vadd.f32 %v3179_v55, %v3177_v58 }
0x190c   :  { %v9628_v7 = vadd.f32 %v3178_v60, %v3176_v61 }
0x190d   :  { %3320 = vrot.lane.b32.xlu1 %v9626_v6, %s8664_s2 }
0x190e   :  { %3318 = vrot.lane.b32.xlu0 %v9628_v7, %s8664_s2 }
0x197f   :  { %v3321_v3 = vpop.permute.xlu1 %3320 }
0x1980   :  { %3326 = vst.msk [vmem:[#allocation4 + $0x88] sm:$0xff] %vm90_vm0, %v3321_v3  ;;  %v3319_v9 = vpop.permute.xlu0 %3318 }
0x1981   :  { %3325 = vst.msk [vmem:[#allocation4 + $0x80] sm:$0xff] %vm90_vm0, %v3319_v9  ;;  %7595 = vmatprep.mubr.msk.f32.mxu0 %vm90_vm0, %v3319_v9 }
0x1982   :  { %7596 = vmatmul.mubr.msk.f32.vlgmr.msra.gmra.mrb[18].mxu0 %vm90_vm0, %v3321_v3 }
0x1983   :  { %8032 = vmatpush3.bf16.msra.mxu0 %v8772_v12 }
0x1984   :  { %8034 = vmatprep.subr.bf16.mxu0 %v8780_v16 }
0x1987   :  { %8036 = vmatpush3.bf16.msra.mxu0 %v8780_v16 }
0x1988   :  { %8046 = vmatprep.subr.bf16.mxu0 %v8772_v12 }
0x19d1   :  { %v7608_v44 = vpop.f32.mrb[82].mxu1 }
0x19d2   :  { %v3551_v47 = vadd.f32 %v9427_v29, %v7608_v44  ;;  %v3545_v11 = vpop.f32.mrb[83].mxu1 }
0x19d3   :  { %v3546_v13 = vadd.f32 %v9427_v29, %v3545_v11 }
0x19d4   :  { %3572 = vrot.lane.b32.xlu1 %v3551_v47, %s8663_s19  ;;  %v3555_v21 = vadd.f32 %v3551_v47, %v3474_v28 }
0x19d5   :  { %3570 = vrot.lane.b32.xlu0 %v3546_v13, %s8663_s19  ;;  %v3554_v14 = vadd.f32 %v3546_v13, %v3473_v62 }
0x19d6   :  { %v6825_v26 = vmul.f32 -1.442695, %v3555_v21 }
0x19d7   :  { %v6824_v15 = vmul.f32 -1.442695, %v3554_v14 }
0x19d8   :  { %8392 = vpow2.f32 %v6825_v26 }
0x19d9   :  { %8394 = vpow2.f32 %v6824_v15 }
0x19e2   :  { %v8393_v17 = vpop.eup %8392 }
0x19e3   :  { %v8395_v18 = vpop.eup %8394  ;;  %v3563_v19 = vadd.f32 1.0, %v8393_v17 }
0x19e4   :  { %v3562_v20 = vadd.f32 1.0, %v8395_v18 }
0x19e5   :  { %8396 = vrcp.f32 %v3563_v19 }
0x19e6   :  { %8398 = vrcp.f32 %v3562_v20 }
0x19ef   :  { %v8397_v22 = vpop.eup %8396 }
0x19f0   :  { %v8399_v23 = vpop.eup %8398  ;;  %v3591_v31 = vsub.f32 1.0, %v8397_v22  ;;  %v3603_v55 = vmul.f32 %v8397_v22, %v9606_v24 }
0x19f1   :  { %v3590_v54 = vsub.f32 1.0, %v8399_v23  ;;  %v3602_v60 = vmul.f32 %v8399_v23, %v9608_v25 }
0x1a46   :  { %v3573_v29 = vpop.permute.xlu1 %3572 }
0x1a47   :  { %v3577_v4 = vmul.f32 %v8397_v22, %v3573_v29  ;;  %v3571_v5 = vpop.permute.xlu0 %3570 }
0x1a48   :  { %v3576_v33 = vmul.f32 %v8399_v23, %v3571_v5 }
0x1a49   :  { %3582 = vrot.lane.b32.xlu1 %v3577_v4, %s8663_s19 }
0x1a4a   :  { %3580 = vrot.lane.b32.xlu0 %v3576_v33, %s8663_s19 }
0x1a55   :  { %v7597_v34 = vpop.f32.mrb[18].mxu0 }
0x1a56   :  { %v3417_v45 = vadd.f32 %v9438_v8, %v7597_v34  ;;  %v3411_v57 = vpop.f32.mrb[19].mxu0 }
0x1a57   :  { %v3412_v43 = vadd.f32 %v9438_v8, %v3411_v57 }
0x1a58   :  { %3438 = vrot.lane.b32.xlu1 %v3417_v45, %s8663_s19  ;;  %v3421_v10 = vadd.f32 %v3417_v45, %v3340_v46  ;;  %v3764_v45 = vld [vmem:[#allocation3 + $0x58] sm:$0xff] }
0x1a59   :  { %3436 = vrot.lane.b32.xlu0 %v3412_v43, %s8663_s19  ;;  %v3420_v63 = vadd.f32 %v3412_v43, %v3339_v35  ;;  %v3763_v43 = vld [vmem:[#allocation3 + $0x50] sm:$0xff] }
0x1a5a   :  { %v6821_v36 = vmul.f32 -1.442695, %v3421_v10 }
0x1a5b   :  { %v6820_v37 = vmul.f32 -1.442695, %v3420_v63 }
0x1a5c   :  { %8400 = vpow2.f32 %v6821_v36 }
0x1a5d   :  { %8402 = vpow2.f32 %v6820_v37 }
0x1a66   :  { %v8401_v38 = vpop.eup %8400 }
0x1a67   :  { %v8403_v39 = vpop.eup %8402  ;;  %v3429_v41 = vadd.f32 1.0, %v8401_v38 }
0x1a68   :  { %v3428_v49 = vadd.f32 1.0, %v8403_v39 }
0x1abb   :  { %v3583_v40 = vpop.permute.xlu1 %3582 }
0x1abc   :  { %v3587_v42 = vadd.f32 %v3583_v40, %v3474_v28  ;;  %v3581_v48 = vpop.permute.xlu0 %3580 }
0x1abd   :  { %v3586_v8 = vadd.f32 %v3581_v48, %v3473_v62 }
0x1abe   :  { %8404 = vtanh.f32 %v3587_v42 }
0x1abf   :  { %8406 = vtanh.f32 %v3586_v8 }
0x1ac0   :  { %8408 = vrcp.f32 %v3429_v41 }
0x1ac1   :  { %8410 = vrcp.f32 %v3428_v49 }
0x1ac8   :  { %v8405_v50 = vpop.eup %8404 }
0x1ac9   :  { %v8407_v51 = vpop.eup %8406  ;;  %3596 = vrot.lane.b32.xlu1 %v8405_v50, %s8664_s2  ;;  %v9708_v50 = vld [vmem:[%s10787_s4] ss:$0 sm:$0xff] }
0x1aca   :  { %v8409_v0 = vpop.eup %8408  ;;  %v3439_v30 = vpop.permute.xlu1 %3438  ;;  %3594 = vrot.lane.b32.xlu0 %v8407_v51, %s8664_s2 }
0x1acb   :  { %v8411_v1 = vpop.eup %8410  ;;  %v3443_v32 = vmul.f32 %v8409_v0, %v3439_v30  ;;  %v3437_v2 = vpop.permute.xlu0 %3436  ;;  %v3457_v62 = vsub.f32 1.0, %v8409_v0  ;;  %v3469_v15 = vmul.f32 %v8409_v0, %v9626_v6 }
0x1acc   :  { %v3442_v52 = vmul.f32 %v8411_v1, %v3437_v2  ;;  %v3456_v26 = vsub.f32 1.0, %v8411_v1  ;;  %v3468_v19 = vmul.f32 %v8411_v1, %v9628_v7  ;;  %v9697_v7 = vld [vmem:[%s10786_s8] ss:$0 sm:$0xff]  ;;  %v3630_v1 = vld [vmem:[#allocation2 + $0xa8] sm:$0xff] }
0x1acd   :  { %3448 = vrot.lane.b32.xlu1 %v3443_v32, %s8663_s19  ;;  %v3629_v2 = vld [vmem:[#allocation2 + $0xa0] sm:$0xff] }
0x1ace   :  { %3446 = vrot.lane.b32.xlu0 %v3442_v52, %s8663_s19 }
0x1b3b   :  { %v3597_v53 = vpop.permute.xlu1 %3596 }
0x1b3c   :  { %v3601_v58 = vmul.f32 %v3597_v53, %v3591_v31  ;;  %v3595_v59 = vpop.permute.xlu0 %3594 }
0x1b3d   :  { %v3600_v61 = vmul.f32 %v3595_v59, %v3590_v54 }
0x1b3e   :  { %v9658_v3 = vadd.f32 %v3603_v55, %v3601_v58 }
0x1b3f   :  { %v9660_v9 = vadd.f32 %v3602_v60, %v3600_v61  ;;  %v3449_v44 = vpop.permute.xlu1 %3448 }
0x1b40   :  { %v3453_v47 = vadd.f32 %v3449_v44, %v3340_v46  ;;  %3621 = vrot.lane.b32.xlu1 %v9658_v3, %s8664_s2  ;;  %v3447_v11 = vpop.permute.xlu0 %3446 }
0x1b41   :  { %v3452_v13 = vadd.f32 %v3447_v11, %v3339_v35  ;;  %3619 = vrot.lane.b32.xlu0 %v9660_v9, %s8664_s2 }
0x1b42   :  { %8412 = vtanh.f32 %v3453_v47 }
0x1b43   :  { %8414 = vtanh.f32 %v3452_v13 }
0x1b4c   :  { %v8413_v24 = vpop.eup %8412 }
0x1b4d   :  { %v8415_v28 = vpop.eup %8414  ;;  %3462 = vrot.lane.b32.xlu1 %v8413_v24, %s8664_s2 }
0x1b4e   :  { %3460 = vrot.lane.b32.xlu0 %v8415_v28, %s8664_s2 }
0x1bb2   :  { %v3622_v25 = vpop.permute.xlu1 %3621 }
0x1bb3   :  { %3627 = vst.msk [vmem:[#allocation5 + $0x68] sm:$0xff] %vm90_vm0, %v3622_v25  ;;  %v3620_v21 = vpop.permute.xlu0 %3619 }
0x1bb4   :  { %3626 = vst.msk [vmem:[#allocation5 + $0x60] sm:$0xff] %vm90_vm0, %v3620_v21  ;;  %7628 = vmatprep.mubr.msk.f32.mxu1 %vm90_vm0, %v3620_v21 }
0x1bb5   :  { %7629 = vmatmul.mubr.msk.f32.vlgmr.msra.gmra.mrb[84].mxu1 %vm90_vm0, %v3622_v25 }
0x1bb6   :  { %8056 = vmatpush3.bf16.msra.mxu1 %v8834_v27 }
0x1bb7   :  { %8058 = vmatprep.subr.bf16.mxu1 %v8963_v56 }
0x1bba   :  { %8060 = vmatpush3.bf16.msra.mxu1 %v8963_v56 }
0x1bbb   :  { %8070 = vmatprep.subr.bf16.mxu1 %v8834_v27 }
0x1bbf   :  { %v3463_v14 = vpop.permute.xlu1 %3462 }
0x1bc0   :  { %v3467_v17 = vmul.f32 %v3463_v14, %v3457_v62  ;;  %v3461_v18 = vpop.permute.xlu0 %3460 }
0x1bc1   :  { %v3466_v20 = vmul.f32 %v3461_v18, %v3456_v26 }
0x1bc2   :  { %v9678_v22 = vadd.f32 %v3469_v15, %v3467_v17 }
0x1bc3   :  { %v9680_v29 = vadd.f32 %v3468_v19, %v3466_v20 }
0x1bc4   :  { %3610 = vrot.lane.b32.xlu1 %v9678_v22, %s8664_s2 }
0x1bc5   :  { %3608 = vrot.lane.b32.xlu0 %v9680_v29, %s8664_s2 }
0x1c36   :  { %v3611_v23 = vpop.permute.xlu1 %3610 }
0x1c37   :  { %3616 = vst.msk [vmem:[#allocation4 + $0x98] sm:$0xff] %vm90_vm0, %v3611_v23  ;;  %v3609_v4 = vpop.permute.xlu0 %3608 }
0x1c38   :  { %3615 = vst.msk [vmem:[#allocation4 + $0x90] sm:$0xff] %vm90_vm0, %v3609_v4  ;;  %7617 = vmatprep.mubr.msk.f32.mxu0 %vm90_vm0, %v3609_v4 }
0x1c39   :  { %7618 = vmatmul.mubr.msk.f32.vlgmr.msra.gmra.mrb[20].mxu0 %vm90_vm0, %v3611_v23 }
0x1c3a   :  { %8048 = vmatpush3.bf16.msra.mxu0 %v8772_v12 }
0x1c3b   :  { %8050 = vmatprep.subr.bf16.mxu0 %v8780_v16 }
0x1c3e   :  { %8052 = vmatpush3.bf16.msra.mxu0 %v8780_v16 }
0x1c3f   :  { %8062 = vmatprep.subr.bf16.mxu0 %v8772_v12 }
0x1c88   :  { %v7630_v6 = vpop.f32.mrb[84].mxu1 }
0x1c89   :  { %v3841_v5 = vadd.f32 %v9697_v7, %v7630_v6  ;;  %v3835_v33 = vpop.f32.mrb[85].mxu1 }
0x1c8a   :  { %v3836_v34 = vadd.f32 %v9697_v7, %v3835_v33 }
0x1c8b   :  { %3862 = vrot.lane.b32.xlu1 %v3841_v5, %s8663_s19  ;;  %v3845_v57 = vadd.f32 %v3841_v5, %v3764_v45 }
0x1c8c   :  { %3860 = vrot.lane.b32.xlu0 %v3836_v34, %s8663_s19  ;;  %v3844_v46 = vadd.f32 %v3836_v34, %v3763_v43 }
0x1c8d   :  { %v6833_v10 = vmul.f32 -1.442695, %v3845_v57 }
0x1c8e   :  { %v6832_v35 = vmul.f32 -1.442695, %v3844_v46 }
0x1c8f   :  { %8416 = vpow2.f32 %v6833_v10 }
0x1c90   :  { %8418 = vpow2.f32 %v6832_v35 }
0x1c99   :  { %v8417_v63 = vpop.eup %8416 }
0x1c9a   :  { %v8419_v36 = vpop.eup %8418  ;;  %v3853_v37 = vadd.f32 1.0, %v8417_v63 }
0x1c9b   :  { %v3852_v38 = vadd.f32 1.0, %v8419_v36 }
0x1c9c   :  { %8420 = vrcp.f32 %v3853_v37 }
0x1c9d   :  { %8422 = vrcp.f32 %v3852_v38 }
0x1ca6   :  { %v8421_v39 = vpop.eup %8420 }
0x1ca7   :  { %v8423_v41 = vpop.eup %8422  ;;  %v3881_v26 = vsub.f32 1.0, %v8421_v39  ;;  %v3893_v18 = vmul.f32 %v8421_v39, %v9658_v3 }
0x1ca8   :  { %v3880_v17 = vsub.f32 1.0, %v8423_v41  ;;  %v3892_v23 = vmul.f32 %v8423_v41, %v9660_v9 }
0x1cfd   :  { %v3863_v40 = vpop.permute.xlu1 %3862 }
0x1cfe   :  { %v3867_v42 = vmul.f32 %v8421_v39, %v3863_v40  ;;  %v3861_v48 = vpop.permute.xlu0 %3860 }
0x1cff   :  { %v3866_v49 = vmul.f32 %v8423_v41, %v3861_v48 }
0x1d00   :  { %3872 = vrot.lane.b32.xlu1 %v3867_v42, %s8663_s19 }
0x1d01   :  { %3870 = vrot.lane.b32.xlu0 %v3866_v49, %s8663_s19 }
0x1d0c   :  { %v7619_v8 = vpop.f32.mrb[20].mxu0 }
0x1d0d   :  { %v3707_v51 = vadd.f32 %v9708_v50, %v7619_v8  ;;  %v3701_v0 = vpop.f32.mrb[21].mxu0 }
0x1d0e   :  { %v3702_v30 = vadd.f32 %v9708_v50, %v3701_v0  ;;  %v4054_v0 = vld [vmem:[#allocation3 + $0x48] sm:$0xff] }
0x1d0f   :  { %3728 = vrot.lane.b32.xlu1 %v3707_v51, %s8663_s19  ;;  %v3711_v32 = vadd.f32 %v3707_v51, %v3630_v1 }
0x1d10   :  { %3726 = vrot.lane.b32.xlu0 %v3702_v30, %s8663_s19  ;;  %v3710_v52 = vadd.f32 %v3702_v30, %v3629_v2 }
0x1d11   :  { %v6829_v31 = vmul.f32 -1.442695, %v3711_v32 }
0x1d12   :  { %v6828_v53 = vmul.f32 -1.442695, %v3710_v52 }
0x1d13   :  { %8424 = vpow2.f32 %v6829_v31 }
0x1d14   :  { %8426 = vpow2.f32 %v6828_v53 }
0x1d1d   :  { %v8425_v54 = vpop.eup %8424 }
0x1d1e   :  { %v8427_v55 = vpop.eup %8426  ;;  %v3719_v59 = vadd.f32 1.0, %v8425_v54 }
0x1d1f   :  { %v3718_v44 = vadd.f32 1.0, %v8427_v55 }
0x1d72   :  { %v3873_v58 = vpop.permute.xlu1 %3872 }
0x1d73   :  { %v3877_v60 = vadd.f32 %v3873_v58, %v3764_v45  ;;  %v3871_v61 = vpop.permute.xlu0 %3870 }
0x1d74   :  { %v3876_v47 = vadd.f32 %v3871_v61, %v3763_v43 }
0x1d75   :  { %8428 = vtanh.f32 %v3877_v60 }
0x1d76   :  { %8430 = vtanh.f32 %v3876_v47 }
0x1d77   :  { %8432 = vrcp.f32 %v3719_v59 }
0x1d78   :  { %8434 = vrcp.f32 %v3718_v44 }
0x1d7f   :  { %v8429_v11 = vpop.eup %8428 }
0x1d80   :  { %v8431_v13 = vpop.eup %8430  ;;  %3886 = vrot.lane.b32.xlu1 %v8429_v11, %s8664_s2 }
0x1d81   :  { %v8433_v24 = vpop.eup %8432  ;;  %v3729_v28 = vpop.permute.xlu1 %3728  ;;  %3884 = vrot.lane.b32.xlu0 %v8431_v13, %s8664_s2 }
0x1d82   :  { %v8435_v25 = vpop.eup %8434  ;;  %v3733_v21 = vmul.f32 %v8433_v24, %v3729_v28  ;;  %v3727_v62 = vpop.permute.xlu0 %3726  ;;  %v3747_v10 = vsub.f32 1.0, %v8433_v24  ;;  %v3759_v36 = vmul.f32 %v8433_v24, %v9678_v22 }
0x1d83   :  { %v3732_v14 = vmul.f32 %v8435_v25, %v3727_v62  ;;  %v3746_v63 = vsub.f32 1.0, %v8435_v25  ;;  %v3758_v39 = vmul.f32 %v8435_v25, %v9680_v29  ;;  %v3920_v25 = vld [vmem:[#allocation2 + $0xb8] sm:$0xff]  ;;  %v3919_v62 = vld [vmem:[#allocation2 + $0xb0] sm:$0xff] }
0x1d84   :  { %3738 = vrot.lane.b32.xlu1 %v3733_v21, %s8663_s19 }
0x1d85   :  { %3736 = vrot.lane.b32.xlu0 %v3732_v14, %s8663_s19 }
0x1df2   :  { %v3887_v15 = vpop.permute.xlu1 %3886 }
0x1df3   :  { %v3891_v19 = vmul.f32 %v3887_v15, %v3881_v26  ;;  %v3885_v20 = vpop.permute.xlu0 %3884 }
0x1df4   :  { %v3890_v4 = vmul.f32 %v3885_v20, %v3880_v17 }
0x1df5   :  { %v9720_v6 = vadd.f32 %v3893_v18, %v3891_v19 }
0x1df6   :  { %v9722_v5 = vadd.f32 %v3892_v23, %v3890_v4  ;;  %v3739_v33 = vpop.permute.xlu1 %3738 }
0x1df7   :  { %v3743_v34 = vadd.f32 %v3739_v33, %v3630_v1  ;;  %3911 = vrot.lane.b32.xlu1 %v9720_v6, %s8664_s2  ;;  %v3737_v45 = vpop.permute.xlu0 %3736  ;;  %v4053_v1 = vld [vmem:[#allocation3 + $0x40] sm:$0xff] }
0x1df8   :  { %v3742_v57 = vadd.f32 %v3737_v45, %v3629_v2  ;;  %3909 = vrot.lane.b32.xlu0 %v9722_v5, %s8664_s2 }
0x1df9   :  { %8436 = vtanh.f32 %v3743_v34 }
0x1dfa   :  { %8438 = vtanh.f32 %v3742_v57 }
0x1e03   :  { %v8437_v3 = vpop.eup %8436 }
0x1e04   :  { %v8439_v43 = vpop.eup %8438  ;;  %3752 = vrot.lane.b32.xlu1 %v8437_v3, %s8664_s2 }
0x1e05   :  { %3750 = vrot.lane.b32.xlu0 %v8439_v43, %s8664_s2 }
0x1e69   :  { %v3912_v9 = vpop.permute.xlu1 %3911 }
0x1e6a   :  { %3917 = vst.msk [vmem:[#allocation5 + $0x58] sm:$0xff] %vm90_vm0, %v3912_v9  ;;  %v3910_v46 = vpop.permute.xlu0 %3909 }
0x1e6b   :  { %3916 = vst.msk [vmem:[#allocation5 + $0x50] sm:$0xff] %vm90_vm0, %v3910_v46  ;;  %7650 = vmatprep.mubr.msk.f32.mxu1 %vm90_vm0, %v3910_v46 }
0x1e6c   :  { %7651 = vmatmul.mubr.msk.f32.vlgmr.msra.gmra.mrb[86].mxu1 %vm90_vm0, %v3912_v9 }
0x1e6d   :  { %8072 = vmatpush3.bf16.msra.mxu1 %v8834_v27 }
0x1e6e   :  { %8074 = vmatprep.subr.bf16.mxu1 %v8963_v56 }
0x1e71   :  { %8076 = vmatpush3.bf16.msra.mxu1 %v8963_v56 }
0x1e72   :  { %8086 = vmatprep.subr.bf16.mxu1 %v8834_v27 }
0x1e76   :  { %v3753_v35 = vpop.permute.xlu1 %3752 }
0x1e77   :  { %v3757_v37 = vmul.f32 %v3753_v35, %v3747_v10  ;;  %v3751_v38 = vpop.permute.xlu0 %3750 }
0x1e78   :  { %v3756_v40 = vmul.f32 %v3751_v38, %v3746_v63 }
0x1e79   :  { %v9740_v41 = vadd.f32 %v3759_v36, %v3757_v37 }
0x1e7a   :  { %v9742_v42 = vadd.f32 %v3758_v39, %v3756_v40 }
0x1e7b   :  { %3900 = vrot.lane.b32.xlu1 %v9740_v41, %s8664_s2 }
0x1e7c   :  { %3898 = vrot.lane.b32.xlu0 %v9742_v42, %s8664_s2 }
0x1eed   :  { %v3901_v48 = vpop.permute.xlu1 %3900 }
0x1eee   :  { %3906 = vst.msk [vmem:[#allocation4 + $0xa8] sm:$0xff] %vm90_vm0, %v3901_v48  ;;  %v3899_v49 = vpop.permute.xlu0 %3898 }
0x1eef   :  { %3905 = vst.msk [vmem:[#allocation4 + $0xa0] sm:$0xff] %vm90_vm0, %v3899_v49  ;;  %7639 = vmatprep.mubr.msk.f32.mxu0 %vm90_vm0, %v3899_v49 }
0x1ef0   :  { %7640 = vmatmul.mubr.msk.f32.vlgmr.msra.gmra.mrb[22].mxu0 %vm90_vm0, %v3901_v48 }
0x1ef1   :  { %8064 = vmatpush3.bf16.msra.mxu0 %v8772_v12 }
0x1ef2   :  { %8066 = vmatprep.subr.bf16.mxu0 %v8780_v16 }
0x1ef5   :  { %8068 = vmatpush3.bf16.msra.mxu0 %v8780_v16 }
0x1ef6   :  { %8078 = vmatprep.subr.bf16.mxu0 %v8772_v12 }
0x1f3f   :  { %v7652_v22 = vpop.f32.mrb[86].mxu1 }
0x1f40   :  { %v4131_v29 = vadd.f32 %v9697_v7, %v7652_v22  ;;  %v4125_v8 = vpop.f32.mrb[87].mxu1 }
0x1f41   :  { %v4126_v51 = vadd.f32 %v9697_v7, %v4125_v8 }
0x1f42   :  { %4152 = vrot.lane.b32.xlu1 %v4131_v29, %s8663_s19  ;;  %v4135_v30 = vadd.f32 %v4131_v29, %v4054_v0 }
0x1f43   :  { %4150 = vrot.lane.b32.xlu0 %v4126_v51, %s8663_s19  ;;  %v4134_v32 = vadd.f32 %v4126_v51, %v4053_v1 }
0x1f44   :  { %v6841_v2 = vmul.f32 -1.442695, %v4135_v30 }
0x1f45   :  { %v6840_v52 = vmul.f32 -1.442695, %v4134_v32 }
0x1f46   :  { %8440 = vpow2.f32 %v6841_v2 }
0x1f47   :  { %8442 = vpow2.f32 %v6840_v52 }
0x1f50   :  { %v8441_v31 = vpop.eup %8440 }
0x1f51   :  { %v8443_v53 = vpop.eup %8442  ;;  %v4143_v54 = vadd.f32 1.0, %v8441_v31 }
0x1f52   :  { %v4142_v55 = vadd.f32 1.0, %v8443_v53 }
0x1f53   :  { %8444 = vrcp.f32 %v4143_v54 }
0x1f54   :  { %8446 = vrcp.f32 %v4142_v55 }
0x1f5d   :  { %v8445_v58 = vpop.eup %8444 }
0x1f5e   :  { %v8447_v60 = vpop.eup %8446  ;;  %v4171_v63 = vsub.f32 1.0, %v8445_v58  ;;  %v4183_v38 = vmul.f32 %v8445_v58, %v9720_v6 }
0x1f5f   :  { %v4170_v37 = vsub.f32 1.0, %v8447_v60  ;;  %v4182_v48 = vmul.f32 %v8447_v60, %v9722_v5 }
0x1fb4   :  { %v4153_v59 = vpop.permute.xlu1 %4152 }
0x1fb5   :  { %v4157_v61 = vmul.f32 %v8445_v58, %v4153_v59  ;;  %v4151_v44 = vpop.permute.xlu0 %4150 }
0x1fb6   :  { %v4156_v47 = vmul.f32 %v8447_v60, %v4151_v44 }
0x1fb7   :  { %4162 = vrot.lane.b32.xlu1 %v4157_v61, %s8663_s19 }
0x1fb8   :  { %4160 = vrot.lane.b32.xlu0 %v4156_v47, %s8663_s19 }
0x1fc3   :  { %v7641_v11 = vpop.f32.mrb[22].mxu0 }
0x1fc4   :  { %v3997_v13 = vadd.f32 %v9708_v50, %v7641_v11  ;;  %v3991_v24 = vpop.f32.mrb[23].mxu0 }
0x1fc5   :  { %v3992_v28 = vadd.f32 %v9708_v50, %v3991_v24  ;;  %v4344_v24 = vld [vmem:[#allocation3 + $0x38] sm:$0xff] }
0x1fc6   :  { %4018 = vrot.lane.b32.xlu1 %v3997_v13, %s8663_s19  ;;  %v4001_v21 = vadd.f32 %v3997_v13, %v3920_v25 }
0x1fc7   :  { %4016 = vrot.lane.b32.xlu0 %v3992_v28, %s8663_s19  ;;  %v4000_v14 = vadd.f32 %v3992_v28, %v3919_v62 }
0x1fc8   :  { %v6837_v26 = vmul.f32 -1.442695, %v4001_v21 }
0x1fc9   :  { %v6836_v15 = vmul.f32 -1.442695, %v4000_v14 }
0x1fca   :  { %8448 = vpow2.f32 %v6837_v26 }
0x1fcb   :  { %8450 = vpow2.f32 %v6836_v15 }
0x1fd4   :  { %v8449_v17 = vpop.eup %8448 }
0x1fd5   :  { %v8451_v18 = vpop.eup %8450  ;;  %v4009_v20 = vadd.f32 1.0, %v8449_v17 }
0x1fd6   :  { %v4008_v33 = vadd.f32 1.0, %v8451_v18 }
0x2029   :  { %v4163_v19 = vpop.permute.xlu1 %4162 }
0x202a   :  { %v4167_v23 = vadd.f32 %v4163_v19, %v4054_v0  ;;  %v4161_v4 = vpop.permute.xlu0 %4160 }
0x202b   :  { %v4166_v34 = vadd.f32 %v4161_v4, %v4053_v1 }
0x202c   :  { %8452 = vtanh.f32 %v4167_v23 }
0x202d   :  { %8454 = vtanh.f32 %v4166_v34 }
0x202e   :  { %8456 = vrcp.f32 %v4009_v20 }
0x202f   :  { %8458 = vrcp.f32 %v4008_v33 }
0x2036   :  { %v8453_v45 = vpop.eup %8452 }
0x2037   :  { %v8455_v57 = vpop.eup %8454  ;;  %4176 = vrot.lane.b32.xlu1 %v8453_v45, %s8664_s2 }
0x2038   :  { %v8457_v3 = vpop.eup %8456  ;;  %v4019_v43 = vpop.permute.xlu1 %4018  ;;  %4174 = vrot.lane.b32.xlu0 %v8455_v57, %s8664_s2 }
0x2039   :  { %v8459_v9 = vpop.eup %8458  ;;  %v4023_v46 = vmul.f32 %v8457_v3, %v4019_v43  ;;  %v4017_v10 = vpop.permute.xlu0 %4016  ;;  %v4037_v2 = vsub.f32 1.0, %v8457_v3  ;;  %v4049_v53 = vmul.f32 %v8457_v3, %v9740_v41 }
0x203a   :  { %v4022_v35 = vmul.f32 %v8459_v9, %v4017_v10  ;;  %v4036_v31 = vsub.f32 1.0, %v8459_v9  ;;  %v4048_v58 = vmul.f32 %v8459_v9, %v9742_v42  ;;  %v4210_v9 = vld [vmem:[#allocation2 + $0xc8] sm:$0xff]  ;;  %v4209_v10 = vld [vmem:[#allocation2 + $0xc0] sm:$0xff] }
0x203b   :  { %4028 = vrot.lane.b32.xlu1 %v4023_v46, %s8663_s19 }
0x203c   :  { %4026 = vrot.lane.b32.xlu0 %v4022_v35, %s8663_s19 }
0x20a9   :  { %v4177_v36 = vpop.permute.xlu1 %4176 }
0x20aa   :  { %v4181_v39 = vmul.f32 %v4177_v36, %v4171_v63  ;;  %v4175_v40 = vpop.permute.xlu0 %4174 }
0x20ab   :  { %v4180_v49 = vmul.f32 %v4175_v40, %v4170_v37 }
0x20ac   :  { %v9772_v22 = vadd.f32 %v4183_v38, %v4181_v39 }
0x20ad   :  { %v9774_v29 = vadd.f32 %v4182_v48, %v4180_v49  ;;  %v4029_v8 = vpop.permute.xlu1 %4028 }
0x20ae   :  { %v4033_v51 = vadd.f32 %v4029_v8, %v3920_v25  ;;  %4201 = vrot.lane.b32.xlu1 %v9772_v22, %s8664_s2  ;;  %v4027_v0 = vpop.permute.xlu0 %4026  ;;  %v4343_v25 = vld [vmem:[#allocation3 + $0x30] sm:$0xff] }
0x20af   :  { %v4032_v30 = vadd.f32 %v4027_v0, %v3919_v62  ;;  %4199 = vrot.lane.b32.xlu0 %v9774_v29, %s8664_s2 }
0x20b0   :  { %8460 = vtanh.f32 %v4033_v51 }
0x20b1   :  { %8462 = vtanh.f32 %v4032_v30 }
0x20ba   :  { %v8461_v6 = vpop.eup %8460 }
0x20bb   :  { %v8463_v1 = vpop.eup %8462  ;;  %4042 = vrot.lane.b32.xlu1 %v8461_v6, %s8664_s2 }
0x20bc   :  { %4040 = vrot.lane.b32.xlu0 %v8463_v1, %s8664_s2 }
0x2120   :  { %v4202_v5 = vpop.permute.xlu1 %4201 }
0x2121   :  { %4207 = vst.msk [vmem:[#allocation5 + $0x48] sm:$0xff] %vm90_vm0, %v4202_v5  ;;  %v4200_v32 = vpop.permute.xlu0 %4199 }
0x2122   :  { %4206 = vst.msk [vmem:[#allocation5 + $0x40] sm:$0xff] %vm90_vm0, %v4200_v32  ;;  %7672 = vmatprep.mubr.msk.f32.mxu1 %vm90_vm0, %v4200_v32 }
0x2123   :  { %7673 = vmatmul.mubr.msk.f32.vlgmr.msra.gmra.mrb[88].mxu1 %vm90_vm0, %v4202_v5 }
0x2124   :  { %8088 = vmatpush3.bf16.msra.mxu1 %v8834_v27 }
0x2125   :  { %8090 = vmatprep.subr.bf16.mxu1 %v8963_v56 }
0x2128   :  { %8092 = vmatpush3.bf16.msra.mxu1 %v8963_v56 }
0x2129   :  { %8102 = vmatprep.subr.bf16.mxu1 %v8834_v27 }
0x212d   :  { %v4043_v52 = vpop.permute.xlu1 %4042 }
0x212e   :  { %v4047_v54 = vmul.f32 %v4043_v52, %v4037_v2  ;;  %v4041_v55 = vpop.permute.xlu0 %4040 }
0x212f   :  { %v4046_v59 = vmul.f32 %v4041_v55, %v4036_v31 }
0x2130   :  { %v9792_v60 = vadd.f32 %v4049_v53, %v4047_v54 }
0x2131   :  { %v9794_v61 = vadd.f32 %v4048_v58, %v4046_v59 }
0x2132   :  { %4190 = vrot.lane.b32.xlu1 %v9792_v60, %s8664_s2 }
0x2133   :  { %4188 = vrot.lane.b32.xlu0 %v9794_v61, %s8664_s2 }
0x21a4   :  { %v4191_v44 = vpop.permute.xlu1 %4190 }
0x21a5   :  { %4196 = vst.msk [vmem:[#allocation4 + $0xb8] sm:$0xff] %vm90_vm0, %v4191_v44  ;;  %v4189_v47 = vpop.permute.xlu0 %4188 }
0x21a6   :  { %4195 = vst.msk [vmem:[#allocation4 + $0xb0] sm:$0xff] %vm90_vm0, %v4189_v47  ;;  %7661 = vmatprep.mubr.msk.f32.mxu0 %vm90_vm0, %v4189_v47 }
0x21a7   :  { %7662 = vmatmul.mubr.msk.f32.vlgmr.msra.gmra.mrb[24].mxu0 %vm90_vm0, %v4191_v44 }
0x21a8   :  { %8080 = vmatpush3.bf16.msra.mxu0 %v8772_v12 }
0x21a9   :  { %8082 = vmatprep.subr.bf16.mxu0 %v8780_v16 }
0x21ac   :  { %8084 = vmatpush3.bf16.msra.mxu0 %v8780_v16 }
0x21ad   :  { %8094 = vmatprep.subr.bf16.mxu0 %v8772_v12 }
0x21f6   :  { %v7674_v41 = vpop.f32.mrb[88].mxu1 }
0x21f7   :  { %v4421_v42 = vadd.f32 %v9697_v7, %v7674_v41  ;;  %v4415_v11 = vpop.f32.mrb[89].mxu1 }
0x21f8   :  { %v4416_v13 = vadd.f32 %v9697_v7, %v4415_v11 }
0x21f9   :  { %4442 = vrot.lane.b32.xlu1 %v4421_v42, %s8663_s19  ;;  %v4425_v28 = vadd.f32 %v4421_v42, %v4344_v24 }
0x21fa   :  { %4440 = vrot.lane.b32.xlu0 %v4416_v13, %s8663_s19  ;;  %v4424_v21 = vadd.f32 %v4416_v13, %v4343_v25 }
0x21fb   :  { %v6849_v62 = vmul.f32 -1.442695, %v4425_v28 }
0x21fc   :  { %v6848_v14 = vmul.f32 -1.442695, %v4424_v21 }
0x21fd   :  { %8464 = vpow2.f32 %v6849_v62 }
0x21fe   :  { %8466 = vpow2.f32 %v6848_v14 }
0x2207   :  { %v8465_v26 = vpop.eup %8464 }
0x2208   :  { %v8467_v15 = vpop.eup %8466  ;;  %v4433_v17 = vadd.f32 1.0, %v8465_v26 }
0x2209   :  { %v4432_v18 = vadd.f32 1.0, %v8467_v15 }
0x220a   :  { %8468 = vrcp.f32 %v4433_v17 }
0x220b   :  { %8470 = vrcp.f32 %v4432_v18 }
0x2214   :  { %v8469_v19 = vpop.eup %8468 }
0x2215   :  { %v8471_v23 = vpop.eup %8470  ;;  %v4461_v31 = vsub.f32 1.0, %v8469_v19  ;;  %v4473_v55 = vmul.f32 %v8469_v19, %v9772_v22 }
0x2216   :  { %v4460_v54 = vsub.f32 1.0, %v8471_v23  ;;  %v4472_v44 = vmul.f32 %v8471_v23, %v9774_v29 }
0x226b   :  { %v4443_v20 = vpop.permute.xlu1 %4442 }
0x226c   :  { %v4447_v4 = vmul.f32 %v8469_v19, %v4443_v20  ;;  %v4441_v33 = vpop.permute.xlu0 %4440 }
0x226d   :  { %v4446_v34 = vmul.f32 %v8471_v23, %v4441_v33 }
0x226e   :  { %4452 = vrot.lane.b32.xlu1 %v4447_v4, %s8663_s19 }
0x226f   :  { %4450 = vrot.lane.b32.xlu0 %v4446_v34, %s8663_s19 }
0x227a   :  { %v7663_v45 = vpop.f32.mrb[24].mxu0 }
0x227b   :  { %v4287_v57 = vadd.f32 %v9708_v50, %v7663_v45  ;;  %v4281_v3 = vpop.f32.mrb[25].mxu0 }
0x227c   :  { %v4282_v43 = vadd.f32 %v9708_v50, %v4281_v3  ;;  %v4634_v3 = vld [vmem:[#allocation3 + $0x28] sm:$0xff] }
0x227d   :  { %4308 = vrot.lane.b32.xlu1 %v4287_v57, %s8663_s19  ;;  %v4291_v46 = vadd.f32 %v4287_v57, %v4210_v9 }
0x227e   :  { %4306 = vrot.lane.b32.xlu0 %v4282_v43, %s8663_s19  ;;  %v4290_v35 = vadd.f32 %v4282_v43, %v4209_v10 }
0x227f   :  { %v6845_v63 = vmul.f32 -1.442695, %v4291_v46 }
0x2280   :  { %v6844_v36 = vmul.f32 -1.442695, %v4290_v35 }
0x2281   :  { %8472 = vpow2.f32 %v6845_v63 }
0x2282   :  { %8474 = vpow2.f32 %v6844_v36 }
0x228b   :  { %v8473_v37 = vpop.eup %8472 }
0x228c   :  { %v8475_v38 = vpop.eup %8474  ;;  %v4299_v40 = vadd.f32 1.0, %v8473_v37 }
0x228d   :  { %v4298_v8 = vadd.f32 1.0, %v8475_v38 }
0x22e0   :  { %v4453_v39 = vpop.permute.xlu1 %4452 }
0x22e1   :  { %v4457_v48 = vadd.f32 %v4453_v39, %v4344_v24  ;;  %v4451_v49 = vpop.permute.xlu0 %4450 }
0x22e2   :  { %v4456_v51 = vadd.f32 %v4451_v49, %v4343_v25 }
0x22e3   :  { %8476 = vtanh.f32 %v4457_v48 }
0x22e4   :  { %8478 = vtanh.f32 %v4456_v51 }
0x22e5   :  { %8480 = vrcp.f32 %v4299_v40 }
0x22e6   :  { %8482 = vrcp.f32 %v4298_v8 }
0x22ed   :  { %v8477_v0 = vpop.eup %8476 }
0x22ee   :  { %v8479_v30 = vpop.eup %8478  ;;  %4466 = vrot.lane.b32.xlu1 %v8477_v0, %s8664_s2 }
0x22ef   :  { %v8481_v6 = vpop.eup %8480  ;;  %v4309_v1 = vpop.permute.xlu1 %4308  ;;  %4464 = vrot.lane.b32.xlu0 %v8479_v30, %s8664_s2 }
0x22f0   :  { %v8483_v5 = vpop.eup %8482  ;;  %v4313_v32 = vmul.f32 %v8481_v6, %v4309_v1  ;;  %v4307_v2 = vpop.permute.xlu0 %4306  ;;  %v4327_v62 = vsub.f32 1.0, %v8481_v6  ;;  %v4339_v15 = vmul.f32 %v8481_v6, %v9792_v60 }
0x22f1   :  { %v4312_v52 = vmul.f32 %v8483_v5, %v4307_v2  ;;  %v4326_v26 = vsub.f32 1.0, %v8483_v5  ;;  %v4338_v19 = vmul.f32 %v8483_v5, %v9794_v61  ;;  %v4500_v5 = vld [vmem:[#allocation2 + $0xd8] sm:$0xff]  ;;  %v4499_v2 = vld [vmem:[#allocation2 + $0xd0] sm:$0xff] }
0x22f2   :  { %4318 = vrot.lane.b32.xlu1 %v4313_v32, %s8663_s19 }
0x22f3   :  { %4316 = vrot.lane.b32.xlu0 %v4312_v52, %s8663_s19 }
0x2360   :  { %v4467_v53 = vpop.permute.xlu1 %4466 }
0x2361   :  { %v4471_v58 = vmul.f32 %v4467_v53, %v4461_v31  ;;  %v4465_v59 = vpop.permute.xlu0 %4464 }
0x2362   :  { %v4470_v47 = vmul.f32 %v4465_v59, %v4460_v54 }
0x2363   :  { %v9824_v41 = vadd.f32 %v4473_v55, %v4471_v58 }
0x2364   :  { %v9826_v42 = vadd.f32 %v4472_v44, %v4470_v47  ;;  %v4319_v11 = vpop.permute.xlu1 %4318 }
0x2365   :  { %v4323_v13 = vadd.f32 %v4319_v11, %v4210_v9  ;;  %4491 = vrot.lane.b32.xlu1 %v9824_v41, %s8664_s2  ;;  %v4317_v24 = vpop.permute.xlu0 %4316  ;;  %v4633_v9 = vld [vmem:[#allocation3 + $0x20] sm:$0xff] }
0x2366   :  { %v4322_v28 = vadd.f32 %v4317_v24, %v4209_v10  ;;  %4489 = vrot.lane.b32.xlu0 %v9826_v42, %s8664_s2 }
0x2367   :  { %8484 = vtanh.f32 %v4323_v13 }
0x2368   :  { %8486 = vtanh.f32 %v4322_v28 }
0x2371   :  { %v8485_v22 = vpop.eup %8484 }
0x2372   :  { %v8487_v25 = vpop.eup %8486  ;;  %4332 = vrot.lane.b32.xlu1 %v8485_v22, %s8664_s2 }
0x2373   :  { %4330 = vrot.lane.b32.xlu0 %v8487_v25, %s8664_s2 }
0x23d7   :  { %v4492_v29 = vpop.permute.xlu1 %4491 }
0x23d8   :  { %4497 = vst.msk [vmem:[#allocation5 + $0x38] sm:$0xff] %vm90_vm0, %v4492_v29  ;;  %v4490_v21 = vpop.permute.xlu0 %4489 }
0x23d9   :  { %4496 = vst.msk [vmem:[#allocation5 + $0x30] sm:$0xff] %vm90_vm0, %v4490_v21  ;;  %7694 = vmatprep.mubr.msk.f32.mxu1 %vm90_vm0, %v4490_v21 }
0x23da   :  { %7695 = vmatmul.mubr.msk.f32.vlgmr.msra.gmra.mrb[90].mxu1 %vm90_vm0, %v4492_v29 }
0x23db   :  { %8104 = vmatpush3.bf16.msra.mxu1 %v8834_v27 }
0x23dc   :  { %8106 = vmatprep.subr.bf16.mxu1 %v8963_v56 }
0x23df   :  { %8108 = vmatpush3.bf16.msra.mxu1 %v8963_v56 }
0x23e0   :  { %8118 = vmatprep.subr.bf16.mxu1 %v8834_v27 }
0x23e4   :  { %v4333_v14 = vpop.permute.xlu1 %4332 }
0x23e5   :  { %v4337_v17 = vmul.f32 %v4333_v14, %v4327_v62  ;;  %v4331_v18 = vpop.permute.xlu0 %4330 }
0x23e6   :  { %v4336_v20 = vmul.f32 %v4331_v18, %v4326_v26 }
0x23e7   :  { %v9844_v23 = vadd.f32 %v4339_v15, %v4337_v17 }
0x23e8   :  { %v9846_v4 = vadd.f32 %v4338_v19, %v4336_v20 }
0x23e9   :  { %4480 = vrot.lane.b32.xlu1 %v9844_v23, %s8664_s2 }
0x23ea   :  { %4478 = vrot.lane.b32.xlu0 %v9846_v4, %s8664_s2 }
0x245b   :  { %v4481_v33 = vpop.permute.xlu1 %4480 }
0x245c   :  { %4486 = vst.msk [vmem:[#allocation4 + $0xc8] sm:$0xff] %vm90_vm0, %v4481_v33  ;;  %v4479_v34 = vpop.permute.xlu0 %4478 }
0x245d   :  { %4485 = vst.msk [vmem:[#allocation4 + $0xc0] sm:$0xff] %vm90_vm0, %v4479_v34  ;;  %7683 = vmatprep.mubr.msk.f32.mxu0 %vm90_vm0, %v4479_v34 }
0x245e   :  { %7684 = vmatmul.mubr.msk.f32.vlgmr.msra.gmra.mrb[26].mxu0 %vm90_vm0, %v4481_v33 }
0x245f   :  { %8096 = vmatpush3.bf16.msra.mxu0 %v8772_v12 }
0x2460   :  { %8098 = vmatprep.subr.bf16.mxu0 %v8780_v16 }
0x2463   :  { %8100 = vmatpush3.bf16.msra.mxu0 %v8780_v16 }
0x2464   :  { %8110 = vmatprep.subr.bf16.mxu0 %v8772_v12 }
0x24ad   :  { %v7696_v60 = vpop.f32.mrb[90].mxu1 }
0x24ae   :  { %v4711_v61 = vadd.f32 %v9697_v7, %v7696_v60  ;;  %v4705_v45 = vpop.f32.mrb[91].mxu1 }
0x24af   :  { %v4706_v57 = vadd.f32 %v9697_v7, %v4705_v45 }
0x24b0   :  { %4732 = vrot.lane.b32.xlu1 %v4711_v61, %s8663_s19  ;;  %v4715_v43 = vadd.f32 %v4711_v61, %v4634_v3 }
0x24b1   :  { %4730 = vrot.lane.b32.xlu0 %v4706_v57, %s8663_s19  ;;  %v4714_v46 = vadd.f32 %v4706_v57, %v4633_v9 }
0x24b2   :  { %v6857_v10 = vmul.f32 -1.442695, %v4715_v43 }
0x24b3   :  { %v6856_v35 = vmul.f32 -1.442695, %v4714_v46 }
0x24b4   :  { %8488 = vpow2.f32 %v6857_v10 }
0x24b5   :  { %8490 = vpow2.f32 %v6856_v35 }
0x24be   :  { %v8489_v63 = vpop.eup %8488 }
0x24bf   :  { %v8491_v36 = vpop.eup %8490  ;;  %v4723_v37 = vadd.f32 1.0, %v8489_v63 }
0x24c0   :  { %v4722_v38 = vadd.f32 1.0, %v8491_v36 }
0x24c1   :  { %8492 = vrcp.f32 %v4723_v37 }
0x24c2   :  { %8494 = vrcp.f32 %v4722_v38 }
0x24cb   :  { %v8493_v39 = vpop.eup %8492 }
0x24cc   :  { %v8495_v48 = vpop.eup %8494  ;;  %v4751_v26 = vsub.f32 1.0, %v8493_v39  ;;  %v4763_v18 = vmul.f32 %v8493_v39, %v9824_v41 }
0x24cd   :  { %v4750_v17 = vsub.f32 1.0, %v8495_v48  ;;  %v4762_v33 = vmul.f32 %v8495_v48, %v9826_v42 }
0x2522   :  { %v4733_v40 = vpop.permute.xlu1 %4732 }
0x2523   :  { %v4737_v49 = vmul.f32 %v8493_v39, %v4733_v40  ;;  %v4731_v8 = vpop.permute.xlu0 %4730 }
0x2524   :  { %v4736_v51 = vmul.f32 %v8495_v48, %v4731_v8 }
0x2525   :  { %4742 = vrot.lane.b32.xlu1 %v4737_v49, %s8663_s19 }
0x2526   :  { %4740 = vrot.lane.b32.xlu0 %v4736_v51, %s8663_s19 }
0x2531   :  { %v7685_v0 = vpop.f32.mrb[26].mxu0 }
0x2532   :  { %v4577_v30 = vadd.f32 %v9708_v50, %v7685_v0  ;;  %v4571_v6 = vpop.f32.mrb[27].mxu0  ;;  %v4924_v0 = vld [vmem:[#allocation3 + $0x18] sm:$0xff] }
0x2533   :  { %v4572_v1 = vadd.f32 %v9708_v50, %v4571_v6  ;;  %v4923_v6 = vld [vmem:[#allocation3 + $0x10] sm:$0xff] }
0x2534   :  { %4598 = vrot.lane.b32.xlu1 %v4577_v30, %s8663_s19  ;;  %v4581_v32 = vadd.f32 %v4577_v30, %v4500_v5 }
0x2535   :  { %4596 = vrot.lane.b32.xlu0 %v4572_v1, %s8663_s19  ;;  %v4580_v52 = vadd.f32 %v4572_v1, %v4499_v2 }
0x2536   :  { %v6853_v31 = vmul.f32 -1.442695, %v4581_v32 }
0x2537   :  { %v6852_v53 = vmul.f32 -1.442695, %v4580_v52 }
0x2538   :  { %8496 = vpow2.f32 %v6853_v31 }
0x2539   :  { %8498 = vpow2.f32 %v6852_v53 }
0x2542   :  { %v8497_v54 = vpop.eup %8496 }
0x2543   :  { %v8499_v55 = vpop.eup %8498  ;;  %v4589_v59 = vadd.f32 1.0, %v8497_v54 }
0x2544   :  { %v4588_v11 = vadd.f32 1.0, %v8499_v55 }
0x2597   :  { %v4743_v58 = vpop.permute.xlu1 %4742 }
0x2598   :  { %v4747_v44 = vadd.f32 %v4743_v58, %v4634_v3  ;;  %v4741_v47 = vpop.permute.xlu0 %4740 }
0x2599   :  { %v4746_v13 = vadd.f32 %v4741_v47, %v4633_v9 }
0x259a   :  { %8500 = vtanh.f32 %v4747_v44 }
0x259b   :  { %8502 = vtanh.f32 %v4746_v13  ;;  %v4790_v13 = vld [vmem:[#allocation2 + $0xe8] sm:$0xff] }
0x259c   :  { %8504 = vrcp.f32 %v4589_v59 }
0x259d   :  { %8506 = vrcp.f32 %v4588_v11 }
0x25a4   :  { %v8501_v24 = vpop.eup %8500 }
0x25a5   :  { %v8503_v28 = vpop.eup %8502  ;;  %4756 = vrot.lane.b32.xlu1 %v8501_v24, %s8664_s2 }
0x25a6   :  { %v8505_v22 = vpop.eup %8504  ;;  %v4599_v25 = vpop.permute.xlu1 %4598  ;;  %4754 = vrot.lane.b32.xlu0 %v8503_v28, %s8664_s2  ;;  %v4789_v28 = vld [vmem:[#allocation2 + $0xe0] sm:$0xff] }
0x25a7   :  { %v8507_v29 = vpop.eup %8506  ;;  %v4603_v21 = vmul.f32 %v8505_v22, %v4599_v25  ;;  %v4597_v62 = vpop.permute.xlu0 %4596  ;;  %v4617_v10 = vsub.f32 1.0, %v8505_v22  ;;  %v4629_v36 = vmul.f32 %v8505_v22, %v9844_v23 }
0x25a8   :  { %v4602_v14 = vmul.f32 %v8507_v29, %v4597_v62  ;;  %v4616_v63 = vsub.f32 1.0, %v8507_v29  ;;  %v4628_v39 = vmul.f32 %v8507_v29, %v9846_v4 }
0x25a9   :  { %4608 = vrot.lane.b32.xlu1 %v4603_v21, %s8663_s19 }
0x25aa   :  { %4606 = vrot.lane.b32.xlu0 %v4602_v14, %s8663_s19 }
0x2617   :  { %v4757_v15 = vpop.permute.xlu1 %4756 }
0x2618   :  { %v4761_v19 = vmul.f32 %v4757_v15, %v4751_v26  ;;  %v4755_v20 = vpop.permute.xlu0 %4754 }
0x2619   :  { %v4760_v34 = vmul.f32 %v4755_v20, %v4750_v17 }
0x261a   :  { %v9876_v60 = vadd.f32 %v4763_v18, %v4761_v19 }
0x261b   :  { %v9878_v61 = vadd.f32 %v4762_v33, %v4760_v34  ;;  %v4609_v45 = vpop.permute.xlu1 %4608 }
0x261c   :  { %v4613_v57 = vadd.f32 %v4609_v45, %v4500_v5  ;;  %4781 = vrot.lane.b32.xlu1 %v9876_v60, %s8664_s2  ;;  %v4607_v3 = vpop.permute.xlu0 %4606 }
0x261d   :  { %v4612_v43 = vadd.f32 %v4607_v3, %v4499_v2  ;;  %4779 = vrot.lane.b32.xlu0 %v9878_v61, %s8664_s2 }
0x261e   :  { %8508 = vtanh.f32 %v4613_v57 }
0x261f   :  { %8510 = vtanh.f32 %v4612_v43 }
0x2628   :  { %v8509_v41 = vpop.eup %8508 }
0x2629   :  { %v8511_v9 = vpop.eup %8510  ;;  %4622 = vrot.lane.b32.xlu1 %v8509_v41, %s8664_s2 }
0x262a   :  { %4620 = vrot.lane.b32.xlu0 %v8511_v9, %s8664_s2 }
0x268e   :  { %v4782_v42 = vpop.permute.xlu1 %4781 }
0x268f   :  { %4787 = vst.msk [vmem:[#allocation5 + $0x28] sm:$0xff] %vm90_vm0, %v4782_v42  ;;  %v4780_v46 = vpop.permute.xlu0 %4779 }
0x2690   :  { %4786 = vst.msk [vmem:[#allocation5 + $0x20] sm:$0xff] %vm90_vm0, %v4780_v46  ;;  %7716 = vmatprep.mubr.msk.f32.mxu1 %vm90_vm0, %v4780_v46 }
0x2691   :  { %7717 = vmatmul.mubr.msk.f32.vlgmr.msra.gmra.mrb[92].mxu1 %vm90_vm0, %v4782_v42 }
0x2692   :  { %8120 = vmatpush3.bf16.msra.mxu1 %v8834_v27 }
0x2693   :  { %8122 = vmatprep.subr.bf16.mxu1 %v8963_v56 }
0x2696   :  { %8124 = vmatpush3.bf16.msra.mxu1 %v8963_v56 }
0x269b   :  { %v4623_v35 = vpop.permute.xlu1 %4622 }
0x269c   :  { %v4627_v37 = vmul.f32 %v4623_v35, %v4617_v10  ;;  %v4621_v38 = vpop.permute.xlu0 %4620 }
0x269d   :  { %v4626_v40 = vmul.f32 %v4621_v38, %v4616_v63 }
0x269e   :  { %v9895_v48 = vadd.f32 %v4629_v36, %v4627_v37 }
0x269f   :  { %v9897_v49 = vadd.f32 %v4628_v39, %v4626_v40 }
0x26a0   :  { %4770 = vrot.lane.b32.xlu1 %v9895_v48, %s8664_s2 }
0x26a1   :  { %4768 = vrot.lane.b32.xlu0 %v9897_v49, %s8664_s2 }
0x2712   :  { %v4771_v27 = vpop.permute.xlu1 %4770 }
0x2713   :  { %4776 = vst.msk [vmem:[#allocation4 + $0xd8] sm:$0xff] %vm90_vm0, %v4771_v27  ;;  %v4769_v56 = vpop.permute.xlu0 %4768 }
0x2714   :  { %4775 = vst.msk [vmem:[#allocation4 + $0xd0] sm:$0xff] %vm90_vm0, %v4769_v56  ;;  %7705 = vmatprep.mubr.msk.f32.mxu0 %vm90_vm0, %v4769_v56 }
0x2715   :  { %7706 = vmatmul.mubr.msk.f32.vlgmr.msra.gmra.mrb[28].mxu0 %vm90_vm0, %v4771_v27 }
0x2716   :  { %8112 = vmatpush3.bf16.msra.mxu0 %v8772_v12 }
0x2717   :  { %8114 = vmatprep.subr.bf16.mxu0 %v8780_v16 }
0x271a   :  { %8116 = vmatpush3.bf16.msra.mxu0 %v8780_v16 }
0x2764   :  { %v7718_v23 = vpop.f32.mrb[92].mxu1 }
0x2765   :  { %v5001_v4 = vadd.f32 %v9697_v7, %v7718_v23  ;;  %v4995_v8 = vpop.f32.mrb[93].mxu1 }
0x2766   :  { %v4996_v51 = vadd.f32 %v9697_v7, %v4995_v8 }
0x2767   :  { %5022 = vrot.lane.b32.xlu1 %v5001_v4, %s8663_s19  ;;  %v5005_v30 = vadd.f32 %v5001_v4, %v4924_v0 }
0x2768   :  { %5020 = vrot.lane.b32.xlu0 %v4996_v51, %s8663_s19  ;;  %v5004_v1 = vadd.f32 %v4996_v51, %v4923_v6 }
0x2769   :  { %v6865_v5 = vmul.f32 -1.442695, %v5005_v30 }
0x276a   :  { %v6864_v12 = vmul.f32 -1.442695, %v5004_v1 }
0x276b   :  { %8512 = vpow2.f32 %v6865_v5 }
0x276c   :  { %8514 = vpow2.f32 %v6864_v12 }
0x2775   :  { %v8513_v32 = vpop.eup %8512 }
0x2776   :  { %v8515_v16 = vpop.eup %8514  ;;  %v5013_v2 = vadd.f32 1.0, %v8513_v32 }
0x2777   :  { %v5012_v52 = vadd.f32 1.0, %v8515_v16 }
0x2778   :  { %8516 = vrcp.f32 %v5013_v2 }
0x2779   :  { %8518 = vrcp.f32 %v5012_v52 }
0x2782   :  { %v8517_v31 = vpop.eup %8516 }
0x2783   :  { %v8519_v53 = vpop.eup %8518  ;;  %v5041_v41 = vsub.f32 1.0, %v8517_v31  ;;  %v5053_v46 = vmul.f32 %v8517_v31, %v9876_v60 }
0x2784   :  { %v5040_v42 = vsub.f32 1.0, %v8519_v53  ;;  %v5052_v63 = vmul.f32 %v8519_v53, %v9878_v61 }
0x27d9   :  { %v5023_v7 = vpop.permute.xlu1 %5022 }
0x27da   :  { %v5027_v54 = vmul.f32 %v8517_v31, %v5023_v7  ;;  %v5021_v55 = vpop.permute.xlu0 %5020 }
0x27db   :  { %v5026_v58 = vmul.f32 %v8519_v53, %v5021_v55 }
0x27dc   :  { %5032 = vrot.lane.b32.xlu1 %v5027_v54, %s8663_s19  ;;  %v5213_v54 = vld [vmem:[#allocation3 + $0x8] sm:$0xff] }
0x27dd   :  { %5030 = vrot.lane.b32.xlu0 %v5026_v58, %s8663_s19  ;;  %v5212_v58 = vld [vmem:[#allocation3] sm:$0xff] }
0x27e8   :  { %v7707_v59 = vpop.f32.mrb[28].mxu0 }
0x27e9   :  { %v4867_v44 = vadd.f32 %v9708_v50, %v7707_v59  ;;  %v4861_v47 = vpop.f32.mrb[29].mxu0 }
0x27ea   :  { %v4862_v11 = vadd.f32 %v9708_v50, %v4861_v47 }
0x27eb   :  { %4888 = vrot.lane.b32.xlu1 %v4867_v44, %s8663_s19  ;;  %v4871_v24 = vadd.f32 %v4867_v44, %v4790_v13 }
0x27ec   :  { %4886 = vrot.lane.b32.xlu0 %v4862_v11, %s8663_s19  ;;  %v4870_v22 = vadd.f32 %v4862_v11, %v4789_v28 }
0x27ed   :  { %v6861_v25 = vmul.f32 -1.442695, %v4871_v24 }
0x27ee   :  { %v6860_v29 = vmul.f32 -1.442695, %v4870_v22 }
0x27ef   :  { %8520 = vpow2.f32 %v6861_v25 }
0x27f0   :  { %8522 = vpow2.f32 %v6860_v29 }
0x27f9   :  { %v8521_v21 = vpop.eup %8520 }
0x27fa   :  { %v8523_v62 = vpop.eup %8522  ;;  %v4879_v26 = vadd.f32 1.0, %v8521_v21 }
0x27fb   :  { %v4878_v18 = vadd.f32 1.0, %v8523_v62 }
0x284e   :  { %v5033_v14 = vpop.permute.xlu1 %5032 }
0x284f   :  { %v5037_v15 = vadd.f32 %v5033_v14, %v4924_v0  ;;  %v5031_v17 = vpop.permute.xlu0 %5030 }
0x2850   :  { %v5036_v50 = vadd.f32 %v5031_v17, %v4923_v6 }
0x2851   :  { %8524 = vtanh.f32 %v5037_v15  ;;  %v8629_v15 = vld [vmem:[%s10787_s4] ss:$0 sm:$0xff] }
0x2852   :  { %8526 = vtanh.f32 %v5036_v50 }
0x2853   :  { %8528 = vrcp.f32 %v4879_v26 }
0x2854   :  { %8530 = vrcp.f32 %v4878_v18 }
0x285b   :  { %v8525_v19 = vpop.eup %8524 }
0x285c   :  { %v8527_v20 = vpop.eup %8526  ;;  %5046 = vrot.lane.b32.xlu1 %v8525_v19, %s8664_s2  ;;  %v5080_v19 = vld [vmem:[#allocation2 + $0xf8] sm:$0xff] }
0x285d   :  { %v8529_v33 = vpop.eup %8528  ;;  %v4889_v34 = vpop.permute.xlu1 %4888  ;;  %5044 = vrot.lane.b32.xlu0 %v8527_v20, %s8664_s2 }
0x285e   :  { %v8531_v45 = vpop.eup %8530  ;;  %v4893_v57 = vmul.f32 %v8529_v33, %v4889_v34  ;;  %v4887_v3 = vpop.permute.xlu0 %4886  ;;  %v4907_v8 = vsub.f32 1.0, %v8529_v33  ;;  %v4919_v30 = vmul.f32 %v8529_v33, %v9895_v48  ;;  %v5079_v33 = vld [vmem:[#allocation2 + $0xf0] sm:$0xff] }
0x285f   :  { %v4892_v43 = vmul.f32 %v8531_v45, %v4887_v3  ;;  %v4906_v0 = vsub.f32 1.0, %v8531_v45  ;;  %v4918_v5 = vmul.f32 %v8531_v45, %v9897_v49  ;;  %v8628_v49 = vld [vmem:[%s10786_s8] ss:$0 sm:$0xff] }
0x2860   :  { %4898 = vrot.lane.b32.xlu1 %v4893_v57, %s8663_s19 }
0x2861   :  { %4896 = vrot.lane.b32.xlu0 %v4892_v43, %s8663_s19 }
0x28ce   :  { %v5047_v9 = vpop.permute.xlu1 %5046 }
0x28cf   :  { %v5051_v10 = vmul.f32 %v5047_v9, %v5041_v41  ;;  %v5045_v35 = vpop.permute.xlu0 %5044 }
0x28d0   :  { %v5050_v36 = vmul.f32 %v5045_v35, %v5040_v42 }
0x28d1   :  { %v9926_v37 = vadd.f32 %v5053_v46, %v5051_v10 }
0x28d2   :  { %v9928_v38 = vadd.f32 %v5052_v63, %v5050_v36  ;;  %v4899_v39 = vpop.permute.xlu1 %4898 }
0x28d3   :  { %v4903_v40 = vadd.f32 %v4899_v39, %v4790_v13  ;;  %5071 = vrot.lane.b32.xlu1 %v9926_v37, %s8664_s2  ;;  %v4897_v27 = vpop.permute.xlu0 %4896 }
0x28d4   :  { %v4902_v56 = vadd.f32 %v4897_v27, %v4789_v28  ;;  %5069 = vrot.lane.b32.xlu0 %v9928_v38, %s8664_s2 }
0x28d5   :  { %8532 = vtanh.f32 %v4903_v40 }
0x28d6   :  { %8534 = vtanh.f32 %v4902_v56 }
0x28df   :  { %v8533_v60 = vpop.eup %8532 }
0x28e0   :  { %v8535_v23 = vpop.eup %8534  ;;  %4912 = vrot.lane.b32.xlu1 %v8533_v60, %s8664_s2 }
0x28e1   :  { %4910 = vrot.lane.b32.xlu0 %v8535_v23, %s8664_s2 }
0x2945   :  { %v5072_v61 = vpop.permute.xlu1 %5071 }
0x2946   :  { %5077 = vst.msk [vmem:[#allocation5 + $0x18] sm:$0xff] %vm90_vm0, %v5072_v61  ;;  %v5070_v4 = vpop.permute.xlu0 %5069 }
0x2947   :  { %5076 = vst.msk [vmem:[#allocation5 + $0x10] sm:$0xff] %vm90_vm0, %v5070_v4  ;;  %7738 = vmatprep.mubr.msk.f32.mxu1 %vm90_vm0, %v5070_v4  ;;  %v5435_v4 = vld [vmem:[%s10788_s10 + $0x8] sm:$0xff] }
0x2948   :  { %7739 = vmatmul.mubr.msk.f32.vlgmr.msra.gmra.mrb[94].mxu1 %vm90_vm0, %v5072_v61  ;;  %v5434_v61 = vld [vmem:[%s10788_s10] sm:$0xff] }
0x2952   :  { %v4913_v51 = vpop.permute.xlu1 %4912 }
0x2953   :  { %v4917_v6 = vmul.f32 %v4913_v51, %v4907_v8  ;;  %v4911_v1 = vpop.permute.xlu0 %4910  ;;  %v8125_v8 = vpack.c.bf16 %v5435_v4, %v5434_v61  ;;  %v5436_v51 = vld [vmem:[%s10788_s10 + $0x10] sm:$0xff]  ;;  %v5426_v61 = vld [vmem:[#allocation5 + $0xc0] sm:$0xff]  ;;  %v5427_v4 = vld [vmem:[#allocation5 + $0xc8] sm:$0xff] }
0x2954   :  { %v4916_v12 = vmul.f32 %v4911_v1, %v4906_v0  ;;  %v5437_v0 = vld [vmem:[%s10788_s10 + $0x18] sm:$0xff] }
0x2955   :  { %v9942_v32 = vadd.f32 %v4919_v30, %v4917_v6  ;;  %8126 = vmatprep.subr.bf16.mxu0 %v8125_v8  ;;  %v8129_v30 = vpack.c.bf16 %v5437_v0, %v5436_v51  ;;  %v5429_v51 = vld [vmem:[#allocation5 + $0xd8] sm:$0xff]  ;;  %v5430_v0 = vld [vmem:[#allocation5 + $0xe0] sm:$0xff] }
0x2956   :  { %v9944_v16 = vadd.f32 %v4918_v5, %v4916_v12 }
0x2957   :  { %5060 = vrot.lane.b32.xlu1 %v9942_v32, %s8664_s2 }
0x2958   :  { %5058 = vrot.lane.b32.xlu0 %v9944_v16, %s8664_s2 }
0x29c9   :  { %v5061_v2 = vpop.permute.xlu1 %5060 }
0x29ca   :  { %5066 = vst.msk [vmem:[#allocation4 + $0xe8] sm:$0xff] %vm90_vm0, %v5061_v2  ;;  %v5059_v52 = vpop.permute.xlu0 %5058 }
0x29cb   :  { %5065 = vst.msk [vmem:[#allocation4 + $0xe0] sm:$0xff] %vm90_vm0, %v5059_v52  ;;  %7727 = vmatprep.mubr.msk.f32.mxu0 %vm90_vm0, %v5059_v52 }
0x29cc   :  { %7728 = vmatmul.mubr.msk.f32.vlgmr.msra.gmra.mrb[30].mxu0 %vm90_vm0, %v5061_v2 }
0x29cd   :  { %8128 = vmatpush3.bf16.msra.mxu0 %v8125_v8  ;;  %v5428_v8 = vld [vmem:[#allocation5 + $0xd0] sm:$0xff] }
0x29ce   :  { %8130 = vmatprep.subr.bf16.mxu0 %v8129_v30 }
0x29d1   :  { %8132 = vmatpush3.bf16.msra.mxu0 %v8129_v30  ;;  %v5431_v30 = vld [vmem:[#allocation5 + $0xe8] sm:$0xff] }
0x2a1b   :  { %v7740_v48 = vpop.f32.mrb[94].mxu1 }
0x2a1c   :  { %v5290_v31 = vadd.f32 %v8628_v49, %v7740_v48  ;;  %v5284_v7 = vpop.f32.mrb[95].mxu1 }
0x2a1d   :  { %v5285_v53 = vadd.f32 %v8628_v49, %v5284_v7 }
0x2a1e   :  { %5311 = vrot.lane.b32.xlu1 %v5290_v31, %s8663_s19  ;;  %v5294_v55 = vadd.f32 %v5290_v31, %v5213_v54 }
0x2a1f   :  { %5309 = vrot.lane.b32.xlu0 %v5285_v53, %s8663_s19  ;;  %v5293_v59 = vadd.f32 %v5285_v53, %v5212_v58 }
0x2a20   :  { %v6873_v44 = vmul.f32 -1.442695, %v5294_v55 }
0x2a21   :  { %v6872_v47 = vmul.f32 -1.442695, %v5293_v59 }
0x2a22   :  { %8536 = vpow2.f32 %v6873_v44 }
0x2a23   :  { %8538 = vpow2.f32 %v6872_v47 }
0x2a2c   :  { %v8537_v11 = vpop.eup %8536 }
0x2a2d   :  { %v8539_v13 = vpop.eup %8538  ;;  %v5302_v24 = vadd.f32 1.0, %v8537_v11 }
0x2a2e   :  { %v5301_v28 = vadd.f32 1.0, %v8539_v13 }
0x2a2f   :  { %8540 = vrcp.f32 %v5302_v24  ;;  %v5400_v24 = vld [vmem:[%s10789_s9 + $0x10] sm:$0xff] }
0x2a30   :  { %8542 = vrcp.f32 %v5301_v28  ;;  %v5401_v28 = vld [vmem:[%s10789_s9 + $0x18] sm:$0xff] }
0x2a39   :  { %v9959_v22 = vpop.eup %8540 }
0x2a3a   :  { %v9961_v29 = vpop.eup %8542  ;;  %v5330_v6 = vsub.f32 1.0, %v9959_v22  ;;  %v5342_v12 = vmul.f32 %v9959_v22, %v9926_v37  ;;  %v5398_v37 = vld [vmem:[%s10789_s9] sm:$0xff] }
0x2a3b   :  { %v5329_v5 = vsub.f32 1.0, %v9961_v29  ;;  %v5341_v48 = vmul.f32 %v9961_v29, %v9928_v38  ;;  %v5399_v38 = vld [vmem:[%s10789_s9 + $0x8] sm:$0xff] }
0x2a3c   :  { %v8133_v59 = vpack.c.bf16 %v5399_v38, %v5398_v37  ;;  %v5378_v37 = vld [vmem:[#allocation4 + $0x60] sm:$0xff]  ;;  %v5379_v38 = vld [vmem:[#allocation4 + $0x68] sm:$0xff] }
0x2a3e   :  { %8134 = vmatprep.subr.bf16.mxu0 %v8133_v59 }
0x2a90   :  { %v5312_v25 = vpop.permute.xlu1 %5311 }
0x2a91   :  { %v5316_v21 = vmul.f32 %v9959_v22, %v5312_v25  ;;  %v5310_v62 = vpop.permute.xlu0 %5309  ;;  %v8137_v25 = vpack.c.bf16 %v5401_v28, %v5400_v24  ;;  %v5385_v24 = vld [vmem:[#allocation4 + $0x98] sm:$0xff]  ;;  %v5386_v28 = vld [vmem:[#allocation4 + $0xa0] sm:$0xff] }
0x2a92   :  { %v5315_v14 = vmul.f32 %v9961_v29, %v5310_v62 }
0x2a93   :  { %5321 = vrot.lane.b32.xlu1 %v5316_v21, %s8663_s19  ;;  %v5404_v21 = vld [vmem:[#allocation5 + $0x10] sm:$0xff] }
0x2a94   :  { %5319 = vrot.lane.b32.xlu0 %v5315_v14, %s8663_s19 }
0x2a9f   :  { %v7729_v26 = vpop.f32.mrb[30].mxu0 }
0x2aa0   :  { %v5157_v17 = vadd.f32 %v8629_v15, %v7729_v26  ;;  %v5151_v18 = vpop.f32.mrb[31].mxu0 }
0x2aa1   :  { %v5152_v50 = vadd.f32 %v8629_v15, %v5151_v18 }
0x2aa2   :  { %5178 = vrot.lane.b32.xlu1 %v5157_v17, %s8663_s19  ;;  %v5161_v20 = vadd.f32 %v5157_v17, %v5080_v19 }
0x2aa3   :  { %5176 = vrot.lane.b32.xlu0 %v5152_v50, %s8663_s19  ;;  %v5160_v34 = vadd.f32 %v5152_v50, %v5079_v33  ;;  %v5405_v50 = vld [vmem:[#allocation5 + $0x18] sm:$0xff] }
0x2aa4   :  { %v6869_v45 = vmul.f32 -1.442695, %v5161_v20 }
0x2aa5   :  { %v6868_v57 = vmul.f32 -1.442695, %v5160_v34 }
0x2aa6   :  { %8544 = vpow2.f32 %v6869_v45 }
0x2aa7   :  { %8546 = vpow2.f32 %v6868_v57  ;;  %v5407_v57 = vld [vmem:[#allocation5 + $0x28] sm:$0xff] }
0x2ab0   :  { %v8545_v3 = vpop.eup %8544 }
0x2ab1   :  { %v8547_v43 = vpop.eup %8546  ;;  %v5169_v9 = vadd.f32 1.0, %v8545_v3  ;;  %v5410_v3 = vld [vmem:[#allocation5 + $0x40] sm:$0xff] }
0x2ab2   :  { %v5168_v10 = vadd.f32 1.0, %v8547_v43  ;;  %v5411_v43 = vld [vmem:[#allocation5 + $0x48] sm:$0xff] }
0x2b05   :  { %v5322_v41 = vpop.permute.xlu1 %5321 }
0x2b06   :  { %v5326_v42 = vadd.f32 %v5322_v41, %v5213_v54  ;;  %v5320_v46 = vpop.permute.xlu0 %5319  ;;  %v5412_v41 = vld [vmem:[#allocation5 + $0x50] sm:$0xff] }
0x2b07   :  { %v5325_v35 = vadd.f32 %v5320_v46, %v5212_v58  ;;  %v5415_v46 = vld [vmem:[#allocation5 + $0x68] sm:$0xff] }
0x2b08   :  { %8548 = vtanh.f32 %v5326_v42  ;;  %v5414_v42 = vld [vmem:[#allocation5 + $0x60] sm:$0xff] }
0x2b09   :  { %8550 = vtanh.f32 %v5325_v35  ;;  %v5417_v35 = vld [vmem:[#allocation5 + $0x78] sm:$0xff] }
0x2b0a   :  { %8552 = vrcp.f32 %v5169_v9  ;;  %v5413_v9 = vld [vmem:[#allocation5 + $0x58] sm:$0xff] }
0x2b0b   :  { %8554 = vrcp.f32 %v5168_v10  ;;  %v5416_v10 = vld [vmem:[#allocation5 + $0x70] sm:$0xff] }
0x2b12   :  { %v8549_v63 = vpop.eup %8548 }
0x2b13   :  { %v8551_v36 = vpop.eup %8550  ;;  %5335 = vrot.lane.b32.xlu1 %v8549_v63, %s8664_s2  ;;  %v5418_v63 = vld [vmem:[#allocation5 + $0x80] sm:$0xff] }
0x2b14   :  { %v9973_v39 = vpop.eup %8552  ;;  %v5179_v40 = vpop.permute.xlu1 %5178  ;;  %5333 = vrot.lane.b32.xlu0 %v8551_v36, %s8664_s2  ;;  %v5419_v36 = vld [vmem:[#allocation5 + $0x88] sm:$0xff] }
0x2b15   :  { %v9976_v27 = vpop.eup %8554  ;;  %v5183_v56 = vmul.f32 %v9973_v39, %v5179_v40  ;;  %v5177_v60 = vpop.permute.xlu0 %5176  ;;  %v5197_v62 = vsub.f32 1.0, %v9973_v39  ;;  %v5209_v15 = vmul.f32 %v9973_v39, %v9942_v32  ;;  %v5408_v32 = vld [vmem:[#allocation5 + $0x30] sm:$0xff]  ;;  %v5421_v40 = vld [vmem:[#allocation5 + $0x98] sm:$0xff] }
0x2b16   :  { %v5182_v23 = vmul.f32 %v9976_v27, %v5177_v60  ;;  %v5196_v26 = vsub.f32 1.0, %v9976_v27  ;;  %v5420_v39 = vld [vmem:[#allocation5 + $0x90] sm:$0xff] }
0x2b17   :  { %5188 = vrot.lane.b32.xlu1 %v5183_v56, %s8663_s19  ;;  %v5423_v56 = vld [vmem:[#allocation5 + $0xa8] sm:$0xff]  ;;  %v5424_v60 = vld [vmem:[#allocation5 + $0xb0] sm:$0xff] }
0x2b18   :  { %5186 = vrot.lane.b32.xlu0 %v5182_v23, %s8663_s19  ;;  %v5425_v23 = vld [vmem:[#allocation5 + $0xb8] sm:$0xff] }
0x2b85   :  { %v5336_v1 = vpop.permute.xlu1 %5335 }
0x2b86   :  { %v5340_v2 = vmul.f32 %v5336_v1, %v5330_v6  ;;  %v5334_v52 = vpop.permute.xlu0 %5333  ;;  %v5432_v6 = vld [vmem:[#allocation5 + $0xf0] sm:$0xff]  ;;  %v5433_v1 = vld [vmem:[#allocation5 + $0xf8] sm:$0xff] }
0x2b87   :  { %v5339_v49 = vmul.f32 %v5334_v52, %v5329_v5  ;;  %v5366_v5 = vld [vmem:[#allocation4] sm:$0xff]  ;;  %v5369_v52 = vld [vmem:[#allocation4 + $0x18] sm:$0xff] }
0x2b88   :  { %v5344_v31 = vadd.f32 %v5342_v12, %v5340_v2  ;;  %v5367_v12 = vld [vmem:[#allocation4 + $0x8] sm:$0xff]  ;;  %v5368_v2 = vld [vmem:[#allocation4 + $0x10] sm:$0xff] }
0x2b89   :  { %v5343_v7 = vadd.f32 %v5341_v48, %v5339_v49  ;;  %v5189_v53 = vpop.permute.xlu1 %5188  ;;  %v5370_v48 = vld [vmem:[#allocation4 + $0x20] sm:$0xff]  ;;  %v5371_v49 = vld [vmem:[#allocation4 + $0x28] sm:$0xff] }
0x2b8a   :  { %v5193_v54 = vadd.f32 %v5189_v53, %v5080_v19  ;;  %5360 = vrot.lane.b32.xlu1 %v5344_v31, %s8664_s2  ;;  %v5187_v55 = vpop.permute.xlu0 %5186  ;;  %v5208_v19 = vmul.f32 %v9976_v27, %v9944_v16  ;;  %v5409_v16 = vld [vmem:[#allocation5 + $0x38] sm:$0xff]  ;;  %v5422_v27 = vld [vmem:[#allocation5 + $0xa0] sm:$0xff]  ;;  %v5372_v31 = vld [vmem:[#allocation4 + $0x30] sm:$0xff] }
0x2b8b   :  { %v5192_v58 = vadd.f32 %v5187_v55, %v5079_v33  ;;  %5358 = vrot.lane.b32.xlu0 %v5343_v7, %s8664_s2  ;;  %v5406_v33 = vld [vmem:[#allocation5 + $0x20] sm:$0xff]  ;;  %v5373_v7 = vld [vmem:[#allocation4 + $0x38] sm:$0xff]  ;;  %v5376_v55 = vld [vmem:[#allocation4 + $0x50] sm:$0xff] }
0x2b8c   :  { %8556 = vtanh.f32 %v5193_v54  ;;  %v5374_v53 = vld [vmem:[#allocation4 + $0x40] sm:$0xff]  ;;  %v5375_v54 = vld [vmem:[#allocation4 + $0x48] sm:$0xff] }
0x2b8d   :  { %8558 = vtanh.f32 %v5192_v58  ;;  %v5377_v58 = vld [vmem:[#allocation4 + $0x58] sm:$0xff] }
0x2b96   :  { %v8557_v44 = vpop.eup %8556 }
0x2b97   :  { %v8559_v47 = vpop.eup %8558  ;;  %5202 = vrot.lane.b32.xlu1 %v8557_v44, %s8664_s2  ;;  %v5381_v44 = vld [vmem:[#allocation4 + $0x78] sm:$0xff] }
0x2b98   :  { %5200 = vrot.lane.b32.xlu0 %v8559_v47, %s8664_s2  ;;  %v5382_v47 = vld [vmem:[#allocation4 + $0x80] sm:$0xff] }
0x2bfc   :  { %v5361_v11 = vpop.permute.xlu1 %5360 }
0x2bfd   :  { %5365 = vst.msk [vmem:[#allocation5 + $0x8] sm:$0xff] %vm90_vm0, %v5361_v11  ;;  %v5359_v13 = vpop.permute.xlu0 %5358  ;;  %v5383_v11 = vld [vmem:[#allocation4 + $0x88] sm:$0xff] }
0x2bfe   :  { %5364 = vst.msk [vmem:[#allocation5] sm:$0xff] %vm90_vm0, %v5359_v13  ;;  %v5384_v13 = vld [vmem:[#allocation4 + $0x90] sm:$0xff] }
0x2c04   :  { %v5403_v29 = vld [vmem:[#allocation5 + $0x8] sm:$0xff] }
0x2c05   :  { %v5402_v22 = vld [vmem:[#allocation5] sm:$0xff] }
0x2c06   :  { %7749 = vmatprep.mubr.msk.f32.mxu0 %vm90_vm0, %v5402_v22  ;;  %v5387_v22 = vld [vmem:[#allocation4 + $0xa8] sm:$0xff] }
0x2c07   :  { %7750 = vmatmul.mubr.msk.f32.vlgmr.msra.gmra.mrb[32].mxu0 %vm90_vm0, %v5403_v29  ;;  %v5389_v29 = vld [vmem:[#allocation4 + $0xb8] sm:$0xff] }
0x2c08   :  { %7752 = vmatprep.mubr.msk.f32.mxu0 %vm90_vm0, %v5404_v21  ;;  %8136 = vmatpush3.bf16.msra.mxu0 %v8133_v59  ;;  %v5380_v59 = vld [vmem:[#allocation4 + $0x70] sm:$0xff]  ;;  %v5390_v21 = vld [vmem:[#allocation4 + $0xc0] sm:$0xff] }
0x2c09   :  { %v5203_v14 = vpop.permute.xlu1 %5202  ;;  %8138 = vmatprep.subr.bf16.mxu0 %v8137_v25 }
0x2c0a   :  { %v5207_v17 = vmul.f32 %v5203_v14, %v5197_v62  ;;  %v5201_v18 = vpop.permute.xlu0 %5200  ;;  %v5391_v62 = vld [vmem:[#allocation4 + $0xc8] sm:$0xff]  ;;  %v5392_v14 = vld [vmem:[#allocation4 + $0xd0] sm:$0xff] }
0x2c0b   :  { %v5206_v20 = vmul.f32 %v5201_v18, %v5196_v26  ;;  %7753 = vmatmul.mubr.msk.f32.gmra.mrb[34].mxu0 %vm90_vm0, %v5405_v50  ;;  %v5393_v26 = vld [vmem:[#allocation4 + $0xd8] sm:$0xff] }
0x2c0c   :  { %v5211_v34 = vadd.f32 %v5209_v15, %v5207_v17  ;;  %7755 = vmatprep.mubr.msk.f32.mxu0 %vm90_vm0, %v5406_v33  ;;  %8140 = vmatpush3.bf16.msra.mxu0 %v8137_v25  ;;  %v5388_v25 = vld [vmem:[#allocation4 + $0xb0] sm:$0xff]  ;;  %v5394_v15 = vld [vmem:[#allocation4 + $0xe0] sm:$0xff]  ;;  %v5395_v17 = vld [vmem:[#allocation4 + $0xe8] sm:$0xff] }
0x2c0d   :  { %v5210_v45 = vadd.f32 %v5208_v19, %v5206_v20  ;;  %v10095_v33 = vld [vmem:[%s10790_s11] ss:$0 sm:$0xff] }
0x2c0e   :  { %5349 = vrot.lane.b32.xlu1 %v5211_v34, %s8664_s2 }
0x2c0f   :  { %7756 = vmatmul.mubr.msk.f32.gmra.mrb[36].mxu0 %vm90_vm0, %v5407_v57  ;;  %5347 = vrot.lane.b32.xlu0 %v5210_v45, %s8664_s2 }
0x2c10   :  { %7758 = vmatprep.mubr.msk.f32.mxu0 %vm90_vm0, %v5408_v32 }
0x2c13   :  { %7759 = vmatmul.mubr.msk.f32.gmra.mrb[38].mxu0 %vm90_vm0, %v5409_v16 }
0x2c14   :  { %7761 = vmatprep.mubr.msk.f32.mxu0 %vm90_vm0, %v5410_v3 }
0x2c17   :  { %7762 = vmatmul.mubr.msk.f32.gmra.mrb[40].mxu0 %vm90_vm0, %v5411_v43 }
0x2c18   :  { %7764 = vmatprep.mubr.msk.f32.mxu0 %vm90_vm0, %v5412_v41 }
0x2c1b   :  { %7765 = vmatmul.mubr.msk.f32.gmra.mrb[42].mxu0 %vm90_vm0, %v5413_v9 }
0x2c1c   :  { %7767 = vmatprep.mubr.msk.f32.mxu0 %vm90_vm0, %v5414_v42 }
0x2c1f   :  { %7768 = vmatmul.mubr.msk.f32.gmra.mrb[44].mxu0 %vm90_vm0, %v5415_v46 }
0x2c20   :  { %7770 = vmatprep.mubr.msk.f32.mxu0 %vm90_vm0, %v5416_v10 }
0x2c23   :  { %7771 = vmatmul.mubr.msk.f32.gmra.mrb[46].mxu0 %vm90_vm0, %v5417_v35 }
0x2c24   :  { %7773 = vmatprep.mubr.msk.f32.mxu0 %vm90_vm0, %v5418_v63 }
0x2c27   :  { %7774 = vmatmul.mubr.msk.f32.gmra.mrb[48].mxu0 %vm90_vm0, %v5419_v36 }
0x2c28   :  { %7776 = vmatprep.mubr.msk.f32.mxu0 %vm90_vm0, %v5420_v39 }
0x2c2b   :  { %7777 = vmatmul.mubr.msk.f32.gmra.mrb[50].mxu0 %vm90_vm0, %v5421_v40 }
0x2c2c   :  { %7779 = vmatprep.mubr.msk.f32.mxu0 %vm90_vm0, %v5422_v27 }
0x2c2f   :  { %7780 = vmatmul.mubr.msk.f32.gmra.mrb[52].mxu0 %vm90_vm0, %v5423_v56 }
0x2c30   :  { %7782 = vmatprep.mubr.msk.f32.mxu0 %vm90_vm0, %v5424_v60 }
0x2c33   :  { %7783 = vmatmul.mubr.msk.f32.gmra.mrb[54].mxu0 %vm90_vm0, %v5425_v23 }
0x2c34   :  { %7785 = vmatprep.mubr.msk.f32.mxu0 %vm90_vm0, %v5426_v61 }
0x2c37   :  { %7786 = vmatmul.mubr.msk.f32.gmra.mrb[56].mxu0 %vm90_vm0, %v5427_v4 }
0x2c38   :  { %7788 = vmatprep.mubr.msk.f32.mxu0 %vm90_vm0, %v5428_v8 }
0x2c3b   :  { %7789 = vmatmul.mubr.msk.f32.gmra.mrb[58].mxu0 %vm90_vm0, %v5429_v51 }
0x2c3c   :  { %7791 = vmatprep.mubr.msk.f32.mxu0 %vm90_vm0, %v5430_v0 }
0x2c3f   :  { %7792 = vmatmul.mubr.msk.f32.gmra.mrb[60].mxu0 %vm90_vm0, %v5431_v30 }
0x2c40   :  { %7794 = vmatprep.mubr.msk.f32.mxu0 %vm90_vm0, %v5432_v6 }
0x2c43   :  { %7795 = vmatmul.mubr.msk.f32.gmra.mrb[62].mxu0 %vm90_vm0, %v5433_v1 }
0x2c44   :  { %7805 = vmatprep.mubr.msk.f32.mxu0 %vm90_vm0, %v5366_v5 }
0x2c47   :  { %7806 = vmatmul.mubr.msk.f32.vlgmr.msra.gmra.mrb[32].mxu0 %vm90_vm0, %v5367_v12 }
0x2c48   :  { %7808 = vmatprep.mubr.msk.f32.mxu0 %vm90_vm0, %v5368_v2 }
0x2c4b   :  { %7809 = vmatmul.mubr.msk.f32.gmra.mrb[34].mxu0 %vm90_vm0, %v5369_v52 }
0x2c4c   :  { %7811 = vmatprep.mubr.msk.f32.mxu0 %vm90_vm0, %v5370_v48 }
0x2c4f   :  { %7812 = vmatmul.mubr.msk.f32.gmra.mrb[36].mxu0 %vm90_vm0, %v5371_v49 }
0x2c50   :  { %7814 = vmatprep.mubr.msk.f32.mxu0 %vm90_vm0, %v5372_v31 }
0x2c53   :  { %7815 = vmatmul.mubr.msk.f32.gmra.mrb[38].mxu0 %vm90_vm0, %v5373_v7 }
0x2c54   :  { %7817 = vmatprep.mubr.msk.f32.mxu0 %vm90_vm0, %v5374_v53 }
0x2c57   :  { %7818 = vmatmul.mubr.msk.f32.gmra.mrb[40].mxu0 %vm90_vm0, %v5375_v54 }
0x2c58   :  { %7820 = vmatprep.mubr.msk.f32.mxu0 %vm90_vm0, %v5376_v55 }
0x2c5b   :  { %7821 = vmatmul.mubr.msk.f32.gmra.mrb[42].mxu0 %vm90_vm0, %v5377_v58 }
0x2c5c   :  { %7823 = vmatprep.mubr.msk.f32.mxu0 %vm90_vm0, %v5378_v37 }
0x2c5f   :  { %7824 = vmatmul.mubr.msk.f32.gmra.mrb[44].mxu0 %vm90_vm0, %v5379_v38 }
0x2c60   :  { %7826 = vmatprep.mubr.msk.f32.mxu0 %vm90_vm0, %v5380_v59 }
0x2c63   :  { %7827 = vmatmul.mubr.msk.f32.gmra.mrb[46].mxu0 %vm90_vm0, %v5381_v44 }
0x2c64   :  { %7829 = vmatprep.mubr.msk.f32.mxu0 %vm90_vm0, %v5382_v47 }
0x2c67   :  { %7830 = vmatmul.mubr.msk.f32.gmra.mrb[48].mxu0 %vm90_vm0, %v5383_v11 }
0x2c68   :  { %7832 = vmatprep.mubr.msk.f32.mxu0 %vm90_vm0, %v5384_v13 }
0x2c6b   :  { %7833 = vmatmul.mubr.msk.f32.gmra.mrb[50].mxu0 %vm90_vm0, %v5385_v24 }
0x2c6c   :  { %7835 = vmatprep.mubr.msk.f32.mxu0 %vm90_vm0, %v5386_v28 }
0x2c6f   :  { %7836 = vmatmul.mubr.msk.f32.gmra.mrb[52].mxu0 %vm90_vm0, %v5387_v22 }
0x2c70   :  { %7838 = vmatprep.mubr.msk.f32.mxu0 %vm90_vm0, %v5388_v25 }
0x2c73   :  { %7839 = vmatmul.mubr.msk.f32.gmra.mrb[54].mxu0 %vm90_vm0, %v5389_v29 }
0x2c74   :  { %7841 = vmatprep.mubr.msk.f32.mxu0 %vm90_vm0, %v5390_v21 }
0x2c77   :  { %7842 = vmatmul.mubr.msk.f32.gmra.mrb[56].mxu0 %vm90_vm0, %v5391_v62 }
0x2c78   :  { %7844 = vmatprep.mubr.msk.f32.mxu0 %vm90_vm0, %v5392_v14 }
0x2c7b   :  { %7845 = vmatmul.mubr.msk.f32.gmra.mrb[58].mxu0 %vm90_vm0, %v5393_v26 }
0x2c7c   :  { %7847 = vmatprep.mubr.msk.f32.mxu0 %vm90_vm0, %v5394_v15 }
0x2c7f   :  { %7848 = vmatmul.mubr.msk.f32.gmra.mrb[60].mxu0 %vm90_vm0, %v5395_v17 }
0x2c80   :  { %v5350_v18 = vpop.permute.xlu1 %5349 }
0x2c81   :  { %5355 = vst.msk [vmem:[#allocation4 + $0xf8] sm:$0xff] %vm90_vm0, %v5350_v18  ;;  %v5348_v50 = vpop.permute.xlu0 %5347 }
0x2c82   :  { %5354 = vst.msk [vmem:[#allocation4 + $0xf0] sm:$0xff] %vm90_vm0, %v5348_v50 }
0x2c88   :  { %v5397_v20 = vld [vmem:[#allocation4 + $0xf8] sm:$0xff] }
0x2c89   :  { %v5396_v19 = vld [vmem:[#allocation4 + $0xf0] sm:$0xff] }
0x2c8a   :  { %7850 = vmatprep.mubr.msk.f32.mxu0 %vm90_vm0, %v5396_v19 }
0x2c8b   :  { %7851 = vmatmul.mubr.msk.f32.gmra.mrb[62].mxu0 %vm90_vm0, %v5397_v20 }
0x2d1a   :  { %v7807_v34 = vpop.f32.mrb[32].mxu0 }
0x2d1b   :  { %v10098_v45 = vadd.f32 %v7807_v34, %v10095_v33  ;;  %v5921_v57 = vpop.f32.mrb[33].mxu0 }
0x2d1c   :  { %v10101_v32 = vadd.f32 %v10095_v33, %v5921_v57 }
0x2d1d   :  { %v6122_v16 = vsel %vm90_vm0, %v10098_v45, 0.0 }
0x2d1e   :  { %6123 = vadd.xlane.f32.xlu1 %v6122_v16  ;;  %v7810_v3 = vpop.f32.mrb[34].mxu0  ;;  %v6119_v43 = vsel %vm90_vm0, %v10101_v32, 0.0 }
0x2d1f   :  { %v10108_v41 = vadd.f32 %v7810_v3, %v10095_v33  ;;  %v5931_v9 = vpop.f32.mrb[35].mxu0  ;;  %6120 = vadd.xlane.f32.xlu0 %v6119_v43 }
0x2d20   :  { %v10113_v46 = vadd.f32 %v10095_v33, %v5931_v9 }
0x2d21   :  { %v6128_v42 = vsel %vm90_vm0, %v10108_v41, 0.0 }
0x2d22   :  { %v7813_v10 = vpop.f32.mrb[36].mxu0  ;;  %v6125_v27 = vsel %vm90_vm0, %v10113_v46, 0.0 }
0x2d23   :  { %v5941_v35 = vpop.f32.mrb[37].mxu0  ;;  %6129 = vadd.xlane.f32.xlu0 %v6128_v42  ;;  %v10119_v36 = vadd.f32 %v7813_v10, %v10095_v33 }
0x2d24   :  { %v10116_v63 = vadd.f32 %v10095_v33, %v5941_v35 }
0x2d25   :  { %v6134_v8 = vsel %vm90_vm0, %v10119_v36, 0.0 }
0x2d26   :  { %v7816_v39 = vpop.f32.mrb[38].mxu0  ;;  %v6131_v40 = vsel %vm90_vm0, %v10116_v63, 0.0 }
0x2d27   :  { %6132 = vadd.xlane.f32.xlu1 %v6131_v40  ;;  %v5951_v56 = vpop.f32.mrb[39].mxu0  ;;  %6126 = vadd.xlane.f32.xlu0 %v6125_v27  ;;  %v10129_v23 = vadd.f32 %v7816_v39, %v10095_v33 }
0x2d28   :  { %v10126_v60 = vadd.f32 %v10095_v33, %v5951_v56 }
0x2d29   :  { %v6140_v5 = vsel %vm90_vm0, %v10129_v23, 0.0 }
0x2d2a   :  { %v7819_v61 = vpop.f32.mrb[40].mxu0  ;;  %v6137_v4 = vsel %vm90_vm0, %v10126_v60, 0.0 }
0x2d2b   :  { %6138 = vadd.xlane.f32.xlu1 %v6137_v4  ;;  %v5961_v51 = vpop.f32.mrb[41].mxu0  ;;  %6135 = vadd.xlane.f32.xlu0 %v6134_v8  ;;  %v10139_v30 = vadd.f32 %v7819_v61, %v10095_v33 }
0x2d2c   :  { %v10136_v0 = vadd.f32 %v10095_v33, %v5961_v51 }
0x2d2d   :  { %v6146_v31 = vsel %vm90_vm0, %v10139_v30, 0.0 }
0x2d2e   :  { %v7822_v6 = vpop.f32.mrb[42].mxu0  ;;  %v6143_v1 = vsel %vm90_vm0, %v10136_v0, 0.0 }
0x2d2f   :  { %6144 = vadd.xlane.f32.xlu1 %v6143_v1  ;;  %v5971_v12 = vpop.f32.mrb[43].mxu0  ;;  %6141 = vadd.xlane.f32.xlu0 %v6140_v5  ;;  %v10149_v52 = vadd.f32 %v7822_v6, %v10095_v33 }
0x2d30   :  { %v10146_v2 = vadd.f32 %v10095_v33, %v5971_v12 }
0x2d31   :  { %v6152_v37 = vsel %vm90_vm0, %v10149_v52, 0.0 }
0x2d32   :  { %v7825_v48 = vpop.f32.mrb[44].mxu0  ;;  %v6149_v49 = vsel %vm90_vm0, %v10146_v2, 0.0 }
0x2d33   :  { %6150 = vadd.xlane.f32.xlu1 %v6149_v49  ;;  %v5981_v7 = vpop.f32.mrb[45].mxu0  ;;  %6147 = vadd.xlane.f32.xlu0 %v6146_v31  ;;  %v10159_v54 = vadd.f32 %v7825_v48, %v10095_v33 }
0x2d34   :  { %v10156_v53 = vadd.f32 %v10095_v33, %v5981_v7 }
0x2d35   :  { %v6158_v13 = vsel %vm90_vm0, %v10159_v54, 0.0 }
0x2d36   :  { %v7828_v55 = vpop.f32.mrb[46].mxu0  ;;  %v6155_v58 = vsel %vm90_vm0, %v10156_v53, 0.0 }
0x2d37   :  { %6156 = vadd.xlane.f32.xlu1 %v6155_v58  ;;  %v5991_v38 = vpop.f32.mrb[47].mxu0  ;;  %6153 = vadd.xlane.f32.xlu0 %v6152_v37  ;;  %v10169_v44 = vadd.f32 %v7828_v55, %v10095_v33 }
0x2d38   :  { %v10166_v59 = vadd.f32 %v10095_v33, %v5991_v38 }
0x2d39   :  { %v6164_v21 = vsel %vm90_vm0, %v10169_v44, 0.0 }
0x2d3a   :  { %v7831_v47 = vpop.f32.mrb[48].mxu0  ;;  %v6161_v11 = vsel %vm90_vm0, %v10166_v59, 0.0 }
0x2d3b   :  { %6162 = vadd.xlane.f32.xlu1 %v6161_v11  ;;  %v6001_v24 = vpop.f32.mrb[49].mxu0  ;;  %6159 = vadd.xlane.f32.xlu0 %v6158_v13  ;;  %v10179_v22 = vadd.f32 %v7831_v47, %v10095_v33 }
0x2d3c   :  { %v10176_v28 = vadd.f32 %v10095_v33, %v6001_v24 }
0x2d3d   :  { %v6170_v18 = vsel %vm90_vm0, %v10179_v22, 0.0 }
0x2d3e   :  { %v7834_v25 = vpop.f32.mrb[50].mxu0  ;;  %v6167_v29 = vsel %vm90_vm0, %v10176_v28, 0.0 }
0x2d3f   :  { %6168 = vadd.xlane.f32.xlu1 %v6167_v29  ;;  %v6011_v62 = vpop.f32.mrb[51].mxu0  ;;  %6165 = vadd.xlane.f32.xlu0 %v6164_v21  ;;  %v10189_v26 = vadd.f32 %v7834_v25, %v10095_v33 }
0x2d40   :  { %v10186_v14 = vadd.f32 %v10095_v33, %v6011_v62 }
0x2d41   :  { %v6176_v16 = vsel %vm90_vm0, %v10189_v26, 0.0 }
0x2d42   :  { %v7837_v15 = vpop.f32.mrb[52].mxu0  ;;  %v6173_v17 = vsel %vm90_vm0, %v10186_v14, 0.0 }
0x2d43   :  { %6174 = vadd.xlane.f32.xlu1 %v6173_v17  ;;  %v6021_v50 = vpop.f32.mrb[53].mxu0  ;;  %6171 = vadd.xlane.f32.xlu0 %v6170_v18  ;;  %v10199_v20 = vadd.f32 %v7837_v15, %v10095_v33 }
0x2d44   :  { %v10196_v19 = vadd.f32 %v10095_v33, %v6021_v50 }
0x2d45   :  { %v6182_v35 = vsel %vm90_vm0, %v10199_v20, 0.0 }
0x2d46   :  { %v7840_v34 = vpop.f32.mrb[54].mxu0  ;;  %v6179_v57 = vsel %vm90_vm0, %v10196_v19, 0.0 }
0x2d47   :  { %6180 = vadd.xlane.f32.xlu1 %v6179_v57  ;;  %v6031_v3 = vpop.f32.mrb[55].mxu0  ;;  %6177 = vadd.xlane.f32.xlu0 %v6176_v16  ;;  %v10209_v9 = vadd.f32 %v7840_v34, %v10095_v33 }
0x2d48   :  { %v10206_v43 = vadd.f32 %v10095_v33, %v6031_v3 }
0x2d49   :  { %v6188_v4 = vsel %vm90_vm0, %v10209_v9, 0.0 }
0x2d4a   :  { %v7843_v42 = vpop.f32.mrb[56].mxu0  ;;  %v6185_v10 = vsel %vm90_vm0, %v10206_v43, 0.0 }
0x2d4b   :  { %6186 = vadd.xlane.f32.xlu1 %v6185_v10  ;;  %v6041_v39 = vpop.f32.mrb[57].mxu0  ;;  %6183 = vadd.xlane.f32.xlu0 %v6182_v35  ;;  %v10219_v27 = vadd.f32 %v7843_v42, %v10095_v33 }
0x2d4c   :  { %v10216_v40 = vadd.f32 %v10095_v33, %v6041_v39 }
0x2d4d   :  { %v6194_v12 = vsel %vm90_vm0, %v10219_v27, 0.0 }
0x2d4e   :  { %v7846_v56 = vpop.f32.mrb[58].mxu0  ;;  %v6191_v61 = vsel %vm90_vm0, %v10216_v40, 0.0 }
0x2d4f   :  { %6192 = vadd.xlane.f32.xlu1 %v6191_v61  ;;  %v6051_v8 = vpop.f32.mrb[59].mxu0  ;;  %6189 = vadd.xlane.f32.xlu0 %v6188_v4  ;;  %v10229_v6 = vadd.f32 %v7846_v56, %v10095_v33 }
0x2d50   :  { %v10226_v51 = vadd.f32 %v10095_v33, %v6051_v8 }
0x2d51   :  { %v6200_v55 = vsel %vm90_vm0, %v10229_v6, 0.0 }
0x2d52   :  { %v7849_v1 = vpop.f32.mrb[60].mxu0  ;;  %v6197_v5 = vsel %vm90_vm0, %v10226_v51, 0.0 }
0x2d53   :  { %6198 = vadd.xlane.f32.xlu1 %v6197_v5  ;;  %v6061_v48 = vpop.f32.mrb[61].mxu0  ;;  %6195 = vadd.xlane.f32.xlu0 %v6194_v12  ;;  %v10239_v31 = vadd.f32 %v7849_v1, %v10095_v33 }
0x2d54   :  { %v10236_v49 = vadd.f32 %v10095_v33, %v6061_v48 }
0x2d55   :  { %v6206_v58 = vsel %vm90_vm0, %v10239_v31, 0.0 }
0x2d56   :  { %v6203_v7 = vsel %vm90_vm0, %v10236_v49, 0.0 }
0x2d57   :  { %6204 = vadd.xlane.f32.xlu1 %v6203_v7  ;;  %6201 = vadd.xlane.f32.xlu0 %v6200_v55 }
0x2d5b   :  { %6207 = vadd.xlane.f32.xlu0 %v6206_v58 }
0x2d5e   :  { %v7852_v37 = vpop.f32.mrb[62].mxu0 }
0x2d5f   :  { %v10248_v38 = vadd.f32 %v7852_v37, %v10095_v33  ;;  %v6071_v47 = vpop.f32.mrb[63].mxu0 }
0x2d60   :  { %v10251_v11 = vadd.f32 %v10095_v33, %v6071_v47 }
0x2d61   :  { %v6212_v13 = vsel %vm90_vm0, %v10248_v38, 0.0 }
0x2d62   :  { %6213 = vadd.xlane.f32.xlu0 %v6212_v13  ;;  %v6209_v24 = vsel %vm90_vm0, %v10251_v11, 0.0 }
0x2d63   :  { %6210 = vadd.xlane.f32.xlu1 %v6209_v24 }
0x2dab   :  { %v6124_v25 = vpop.xlane.xlu1 %6123 }
0x2dac   :  { %v6217_v29 = vmul.f32 0.03125, %v6124_v25  ;;  %v6121_v21 = vpop.xlane.xlu0 %6120 }
0x2dad   :  { %v6216_v62 = vmul.f32 0.03125, %v6121_v21 }
0x2dae   :  { %v10258_v15 = vsub.f32 %v10098_v45, %v6217_v29 }
0x2daf   :  { %v10261_v17 = vsub.f32 %v10101_v32, %v6216_v62 }
0x2db0   :  { %v6130_v33 = vpop.xlane.xlu0 %6129  ;;  %v6281_v18 = vmul.f32 %v10258_v15, %v10258_v15 }
0x2db1   :  { %v6219_v50 = vmul.f32 0.03125, %v6130_v33  ;;  %v6280_v34 = vmul.f32 %v10261_v17, %v10261_v17 }
0x2db2   :  { %v6315_v57 = vsel %vm90_vm0, %v6281_v18, 0.0 }
0x2db3   :  { %v10269_v16 = vsub.f32 %v10108_v41, %v6219_v50  ;;  %6316 = vadd.xlane.f32.xlu0 %v6315_v57  ;;  %v6312_v45 = vsel %vm90_vm0, %v6280_v34, 0.0 }
0x2db4   :  { %v6133_v3 = vpop.xlane.xlu1 %6132  ;;  %6313 = vadd.xlane.f32.xlu1 %v6312_v45  ;;  %v6127_v32 = vpop.xlane.xlu0 %6126 }
0x2db5   :  { %v6220_v42 = vmul.f32 0.03125, %v6133_v3  ;;  %v6218_v10 = vmul.f32 0.03125, %v6127_v32  ;;  %v6283_v35 = vmul.f32 %v10269_v16, %v10269_v16 }
0x2db7   :  { %v10275_v39 = vsub.f32 %v10116_v63, %v6220_v42  ;;  %v10278_v56 = vsub.f32 %v10113_v46, %v6218_v10  ;;  %v6321_v41 = vsel %vm90_vm0, %v6283_v35, 0.0 }
0x2db8   :  { %v6139_v61 = vpop.xlane.xlu1 %6138  ;;  %6322 = vadd.xlane.f32.xlu0 %v6321_v41  ;;  %v6136_v4 = vpop.xlane.xlu0 %6135 }
0x2db9   :  { %v6222_v8 = vmul.f32 0.03125, %v6139_v61  ;;  %v6221_v1 = vmul.f32 0.03125, %v6136_v4  ;;  %v6282_v5 = vmul.f32 %v10278_v56, %v10278_v56  ;;  %v6284_v12 = vmul.f32 %v10275_v39, %v10275_v39 }
0x2dbb   :  { %v10286_v48 = vsub.f32 %v10126_v60, %v6222_v8  ;;  %v10289_v63 = vsub.f32 %v10119_v36, %v6221_v1  ;;  %v6318_v46 = vsel %vm90_vm0, %v6282_v5, 0.0  ;;  %v6324_v13 = vsel %vm90_vm0, %v6284_v12, 0.0 }
0x2dbc   :  { %v6145_v7 = vpop.xlane.xlu1 %6144  ;;  %6319 = vadd.xlane.f32.xlu1 %v6318_v46  ;;  %v6142_v55 = vpop.xlane.xlu0 %6141 }
0x2dbd   :  { %v6224_v58 = vmul.f32 0.03125, %v6145_v7  ;;  %v6223_v37 = vmul.f32 0.03125, %v6142_v55  ;;  %v6285_v47 = vmul.f32 %v10289_v63, %v10289_v63  ;;  %v6286_v25 = vmul.f32 %v10286_v48, %v10286_v48 }
0x2dbf   :  { %v10296_v24 = vsub.f32 %v10136_v0, %v6224_v58  ;;  %v10299_v60 = vsub.f32 %v10129_v23, %v6223_v37  ;;  %v6327_v36 = vsel %vm90_vm0, %v6285_v47, 0.0  ;;  %v6330_v34 = vsel %vm90_vm0, %v6286_v25, 0.0 }
0x2dc0   :  { %v6151_v29 = vpop.xlane.xlu1 %6150  ;;  %6325 = vadd.xlane.f32.xlu1 %v6324_v13  ;;  %6328 = vadd.xlane.f32.xlu0 %v6327_v36  ;;  %v6148_v21 = vpop.xlane.xlu0 %6147 }
0x2dc1   :  { %v6226_v62 = vmul.f32 0.03125, %v6151_v29  ;;  %v6225_v33 = vmul.f32 0.03125, %v6148_v21  ;;  %v6287_v18 = vmul.f32 %v10299_v60, %v10299_v60  ;;  %v6288_v0 = vmul.f32 %v10296_v24, %v10296_v24 }
0x2dc3   :  { %v10309_v23 = vsub.f32 %v10146_v2, %v6226_v62  ;;  %v10312_v50 = vsub.f32 %v10139_v30, %v6225_v33  ;;  %v6333_v57 = vsel %vm90_vm0, %v6287_v18, 0.0  ;;  %v6336_v35 = vsel %vm90_vm0, %v6288_v0, 0.0 }
0x2dc4   :  { %v6157_v45 = vpop.xlane.xlu1 %6156  ;;  %6331 = vadd.xlane.f32.xlu1 %v6330_v34  ;;  %6334 = vadd.xlane.f32.xlu0 %v6333_v57  ;;  %v6154_v3 = vpop.xlane.xlu0 %6153 }
0x2dc5   :  { %v6228_v32 = vmul.f32 0.03125, %v6157_v45  ;;  %v6227_v42 = vmul.f32 0.03125, %v6154_v3  ;;  %v6289_v10 = vmul.f32 %v10312_v50, %v10312_v50  ;;  %v6290_v61 = vmul.f32 %v10309_v23, %v10309_v23 }
0x2dc7   :  { %v10320_v2 = vsub.f32 %v10156_v53, %v6228_v32  ;;  %v10323_v30 = vsub.f32 %v10149_v52, %v6227_v42  ;;  %v6339_v41 = vsel %vm90_vm0, %v6289_v10, 0.0  ;;  %v6342_v7 = vsel %vm90_vm0, %v6290_v61, 0.0 }
0x2dc8   :  { %v6163_v4 = vpop.xlane.xlu1 %6162  ;;  %6337 = vadd.xlane.f32.xlu1 %v6336_v35  ;;  %6340 = vadd.xlane.f32.xlu0 %v6339_v41  ;;  %v6160_v8 = vpop.xlane.xlu0 %6159 }
0x2dc9   :  { %v6230_v1 = vmul.f32 0.03125, %v6163_v4  ;;  %v6229_v5 = vmul.f32 0.03125, %v6160_v8  ;;  %v6291_v12 = vmul.f32 %v10323_v30, %v10323_v30  ;;  %v6292_v53 = vmul.f32 %v10320_v2, %v10320_v2 }
0x2dcb   :  { %v10333_v52 = vsub.f32 %v10166_v59, %v6230_v1  ;;  %v10336_v46 = vsub.f32 %v10159_v54, %v6229_v5  ;;  %v6345_v55 = vsel %vm90_vm0, %v6291_v12, 0.0  ;;  %v6348_v25 = vsel %vm90_vm0, %v6292_v53, 0.0 }
0x2dcc   :  { %v6169_v58 = vpop.xlane.xlu1 %6168  ;;  %6343 = vadd.xlane.f32.xlu1 %v6342_v7  ;;  %6346 = vadd.xlane.f32.xlu0 %v6345_v55  ;;  %v6166_v37 = vpop.xlane.xlu0 %6165 }
0x2dcd   :  { %v6232_v47 = vmul.f32 0.03125, %v6169_v58  ;;  %v6231_v13 = vmul.f32 0.03125, %v6166_v37  ;;  %v6293_v36 = vmul.f32 %v10336_v46, %v10336_v46  ;;  %v6294_v21 = vmul.f32 %v10333_v52, %v10333_v52 }
0x2dcf   :  { %v10344_v59 = vsub.f32 %v10176_v28, %v6232_v47  ;;  %v10347_v54 = vsub.f32 %v10169_v44, %v6231_v13  ;;  %v6351_v29 = vsel %vm90_vm0, %v6293_v36, 0.0  ;;  %v6354_v45 = vsel %vm90_vm0, %v6294_v21, 0.0 }
0x2dd0   :  { %v6175_v62 = vpop.xlane.xlu1 %6174  ;;  %6349 = vadd.xlane.f32.xlu1 %v6348_v25  ;;  %6352 = vadd.xlane.f32.xlu0 %v6351_v29  ;;  %v6172_v33 = vpop.xlane.xlu0 %6171 }
0x2dd1   :  { %v6234_v18 = vmul.f32 0.03125, %v6175_v62  ;;  %v6233_v0 = vmul.f32 0.03125, %v6172_v33  ;;  %v6295_v34 = vmul.f32 %v10347_v54, %v10347_v54  ;;  %v6296_v28 = vmul.f32 %v10344_v59, %v10344_v59 }
0x2dd3   :  { %v10357_v44 = vsub.f32 %v10186_v14, %v6234_v18  ;;  %v10360_v57 = vsub.f32 %v10179_v22, %v6233_v0  ;;  %v6357_v3 = vsel %vm90_vm0, %v6295_v34, 0.0  ;;  %v6360_v61 = vsel %vm90_vm0, %v6296_v28, 0.0 }
0x2dd4   :  { %v6181_v32 = vpop.xlane.xlu1 %6180  ;;  %6355 = vadd.xlane.f32.xlu1 %v6354_v45  ;;  %6358 = vadd.xlane.f32.xlu0 %v6357_v3  ;;  %v6178_v42 = vpop.xlane.xlu0 %6177 }
0x2dd5   :  { %v6236_v10 = vmul.f32 0.03125, %v6181_v32  ;;  %v6235_v35 = vmul.f32 0.03125, %v6178_v42  ;;  %v6297_v41 = vmul.f32 %v10360_v57, %v10360_v57  ;;  %v6298_v8 = vmul.f32 %v10357_v44, %v10357_v44 }
0x2dd7   :  { %v10368_v14 = vsub.f32 %v10196_v19, %v6236_v10  ;;  %v10371_v22 = vsub.f32 %v10189_v26, %v6235_v35  ;;  %v6363_v4 = vsel %vm90_vm0, %v6297_v41, 0.0  ;;  %v6366_v58 = vsel %vm90_vm0, %v6298_v8, 0.0 }
0x2dd8   :  { %v6187_v1 = vpop.xlane.xlu1 %6186  ;;  %6361 = vadd.xlane.f32.xlu1 %v6360_v61  ;;  %6364 = vadd.xlane.f32.xlu0 %v6363_v4  ;;  %v6184_v5 = vpop.xlane.xlu0 %6183 }
0x2dd9   :  { %v6238_v12 = vmul.f32 0.03125, %v6187_v1  ;;  %v6237_v53 = vmul.f32 0.03125, %v6184_v5  ;;  %v6299_v7 = vmul.f32 %v10371_v22, %v10371_v22  ;;  %v6300_v19 = vmul.f32 %v10368_v14, %v10368_v14 }
0x2ddb   :  { %v10381_v26 = vsub.f32 %v10206_v43, %v6238_v12  ;;  %v10384_v55 = vsub.f32 %v10199_v20, %v6237_v53  ;;  %v6369_v37 = vsel %vm90_vm0, %v6299_v7, 0.0  ;;  %v6372_v21 = vsel %vm90_vm0, %v6300_v19, 0.0 }
0x2ddc   :  { %v6193_v47 = vpop.xlane.xlu1 %6192  ;;  %6367 = vadd.xlane.f32.xlu1 %v6366_v58  ;;  %6370 = vadd.xlane.f32.xlu0 %v6369_v37  ;;  %v6190_v13 = vpop.xlane.xlu0 %6189 }
0x2ddd   :  { %v6240_v36 = vmul.f32 0.03125, %v6193_v47  ;;  %v6239_v25 = vmul.f32 0.03125, %v6190_v13  ;;  %v6301_v29 = vmul.f32 %v10384_v55, %v10384_v55  ;;  %v6302_v33 = vmul.f32 %v10381_v26, %v10381_v26 }
0x2ddf   :  { %v10392_v43 = vsub.f32 %v10216_v40, %v6240_v36  ;;  %v10395_v20 = vsub.f32 %v10209_v9, %v6239_v25  ;;  %v6375_v62 = vsel %vm90_vm0, %v6301_v29, 0.0  ;;  %v6378_v32 = vsel %vm90_vm0, %v6302_v33, 0.0 }
0x2de0   :  { %v6199_v18 = vpop.xlane.xlu1 %6198  ;;  %6373 = vadd.xlane.f32.xlu1 %v6372_v21  ;;  %6376 = vadd.xlane.f32.xlu0 %v6375_v62  ;;  %v6196_v0 = vpop.xlane.xlu0 %6195 }
0x2de1   :  { %v6242_v34 = vmul.f32 0.03125, %v6199_v18  ;;  %v6241_v28 = vmul.f32 0.03125, %v6196_v0  ;;  %v6303_v45 = vmul.f32 %v10395_v20, %v10395_v20  ;;  %v6304_v40 = vmul.f32 %v10392_v43, %v10392_v43 }
0x2de3   :  { %v10405_v9 = vsub.f32 %v10226_v51, %v6242_v34  ;;  %v10408_v3 = vsub.f32 %v10219_v27, %v6241_v28  ;;  %v6381_v42 = vsel %vm90_vm0, %v6303_v45, 0.0  ;;  %v6384_v8 = vsel %vm90_vm0, %v6304_v40, 0.0 }
0x2de4   :  { %v6205_v10 = vpop.xlane.xlu1 %6204  ;;  %6379 = vadd.xlane.f32.xlu1 %v6378_v32  ;;  %6382 = vadd.xlane.f32.xlu0 %v6381_v42  ;;  %v6202_v35 = vpop.xlane.xlu0 %6201 }
0x2de5   :  { %v6244_v41 = vmul.f32 0.03125, %v6205_v10  ;;  %v6243_v61 = vmul.f32 0.03125, %v6202_v35  ;;  %v6305_v4 = vmul.f32 %v10408_v3, %v10408_v3  ;;  %v6306_v5 = vmul.f32 %v10405_v9, %v10405_v9 }
0x2de7   :  { %v10416_v51 = vsub.f32 %v10236_v49, %v6244_v41  ;;  %v10419_v27 = vsub.f32 %v10229_v6, %v6243_v61  ;;  %v6387_v1 = vsel %vm90_vm0, %v6305_v4, 0.0  ;;  %v6390_v49 = vsel %vm90_vm0, %v6306_v5, 0.0 }
0x2de8   :  { %6385 = vadd.xlane.f32.xlu1 %v6384_v8  ;;  %6388 = vadd.xlane.f32.xlu0 %v6387_v1  ;;  %v6208_v12 = vpop.xlane.xlu0 %6207 }
0x2de9   :  { %v6245_v53 = vmul.f32 0.03125, %v6208_v12  ;;  %v6307_v7 = vmul.f32 %v10419_v27, %v10419_v27  ;;  %v6308_v58 = vmul.f32 %v10416_v51, %v10416_v51 }
0x2deb   :  { %v10427_v19 = vsub.f32 %v10239_v31, %v6245_v53  ;;  %v6393_v6 = vsel %vm90_vm0, %v6307_v7, 0.0  ;;  %v6396_v13 = vsel %vm90_vm0, %v6308_v58, 0.0  ;;  %v10452_v7 = vld [vmem:[%s10791_s12] ss:$0 sm:$0xff] }
0x2dec   :  { %6391 = vadd.xlane.f32.xlu1 %v6390_v49  ;;  %6394 = vadd.xlane.f32.xlu0 %v6393_v6 }
0x2ded   :  { %v6309_v37 = vmul.f32 %v10427_v19, %v10427_v19 }
0x2def   :  { %v6214_v47 = vpop.xlane.xlu0 %6213  ;;  %v6399_v36 = vsel %vm90_vm0, %v6309_v37, 0.0 }
0x2df0   :  { %v6247_v25 = vmul.f32 0.03125, %v6214_v47  ;;  %v6211_v31 = vpop.xlane.xlu1 %6210  ;;  %6397 = vadd.xlane.f32.xlu1 %v6396_v13  ;;  %6400 = vadd.xlane.f32.xlu0 %v6399_v36  ;;  %v10458_v47 = vld [vmem:[%s10792_s13] ss:$0 sm:$0xff] }
0x2df1   :  { %v6246_v29 = vmul.f32 0.03125, %v6211_v31 }
0x2df2   :  { %v10438_v21 = vsub.f32 %v10248_v38, %v6247_v25 }
0x2df3   :  { %v10441_v62 = vsub.f32 %v10251_v11, %v6246_v29 }
0x2df4   :  { %v6311_v33 = vmul.f32 %v10438_v21, %v10438_v21 }
0x2df5   :  { %v6310_v18 = vmul.f32 %v10441_v62, %v10441_v62 }
0x2df6   :  { %v6405_v0 = vsel %vm90_vm0, %v6311_v33, 0.0 }
0x2df7   :  { %6406 = vadd.xlane.f32.xlu0 %v6405_v0  ;;  %v6402_v34 = vsel %vm90_vm0, %v6310_v18, 0.0 }
0x2df8   :  { %6403 = vadd.xlane.f32.xlu1 %v6402_v34 }
0x2e40   :  { %v6317_v28 = vpop.xlane.xlu0 %6316 }
0x2e41   :  { %v6409_v45 = vmul.f32 0.03125, %v6317_v28  ;;  %v6314_v40 = vpop.xlane.xlu1 %6313 }
0x2e42   :  { %v6408_v38 = vmul.f32 0.03125, %v6314_v40 }
0x2e43   :  { %v6441_v32 = vadd.f32 1e-05, %v6409_v45 }
0x2e44   :  { %v6440_v42 = vadd.f32 1e-05, %v6408_v38 }
0x2e45   :  { %8560 = vrsqrt.f32 %v6441_v32  ;;  %v6323_v11 = vpop.xlane.xlu0 %6322  ;;  %v8630_v32 = vld [vmem:[%s10780_s0 + $0x8] sm:$0xff] }
0x2e46   :  { %8562 = vrsqrt.f32 %v6440_v42  ;;  %v6411_v10 = vmul.f32 0.03125, %v6323_v11 }
0x2e48   :  { %v6443_v35 = vadd.f32 1e-05, %v6411_v10 }
0x2e49   :  { %v6320_v41 = vpop.xlane.xlu1 %6319 }
0x2e4a   :  { %8564 = vrsqrt.f32 %v6443_v35  ;;  %v6410_v61 = vmul.f32 0.03125, %v6320_v41  ;;  %v8631_v35 = vld [vmem:[%s10780_s0] sm:$0xff] }
0x2e4c   :  { %v6442_v4 = vadd.f32 1e-05, %v6410_v61 }
0x2e4d   :  { %v6326_v8 = vpop.xlane.xlu1 %6325  ;;  %v6329_v1 = vpop.xlane.xlu0 %6328 }
0x2e4e   :  { %8566 = vrsqrt.f32 %v6442_v4  ;;  %v6412_v5 = vmul.f32 0.03125, %v6326_v8  ;;  %v6413_v12 = vmul.f32 0.03125, %v6329_v1 }
0x2e4f   :  { %v8561_v53 = vpop.eup %8560 }
0x2e50   :  { %v8563_v49 = vpop.eup %8562  ;;  %v6505_v6 = vmul.f32 %v8561_v53, %v10258_v15  ;;  %v6444_v58 = vadd.f32 1e-05, %v6412_v5  ;;  %v6445_v37 = vadd.f32 1e-05, %v6413_v12 }
0x2e51   :  { %v6504_v13 = vmul.f32 %v8563_v49, %v10261_v17  ;;  %v6332_v36 = vpop.xlane.xlu1 %6331  ;;  %v6335_v25 = vpop.xlane.xlu0 %6334 }
0x2e52   :  { %v6544_v31 = vmul.f32 %v10452_v7, %v6505_v6  ;;  %8568 = vrsqrt.f32 %v6444_v58  ;;  %v6414_v29 = vmul.f32 0.03125, %v6332_v36  ;;  %v6415_v33 = vmul.f32 0.03125, %v6335_v25  ;;  %v8632_v58 = vld [vmem:[%s10780_s0 + $0x18] sm:$0xff] }
0x2e53   :  { %v6543_v18 = vmul.f32 %v10452_v7, %v6504_v13  ;;  %8570 = vrsqrt.f32 %v6445_v37 }
0x2e54   :  { %v8565_v15 = vpop.eup %8564  ;;  %v6583_v0 = vadd.f32 %v10458_v47, %v6544_v31  ;;  %v6446_v34 = vadd.f32 1e-05, %v6414_v29  ;;  %v6447_v28 = vadd.f32 1e-05, %v6415_v33 }
0x2e55   :  { %v6582_v45 = vadd.f32 %v10458_v47, %v6543_v18  ;;  %v6507_v40 = vmul.f32 %v8565_v15, %v10269_v16  ;;  %v6338_v17 = vpop.xlane.xlu1 %6337  ;;  %v6341_v38 = vpop.xlane.xlu0 %6340 }
0x2e56   :  { %v6615_v42 = vadd.f32 %v8630_v32, %v6583_v0  ;;  %8572 = vrsqrt.f32 %v6446_v34  ;;  %v6416_v11 = vmul.f32 0.03125, %v6338_v17  ;;  %v6417_v10 = vmul.f32 0.03125, %v6341_v38 }
0x2e57   :  { %v6614_v41 = vadd.f32 %v8631_v35, %v6582_v45  ;;  %v6546_v61 = vmul.f32 %v10452_v7, %v6507_v40  ;;  %8574 = vrsqrt.f32 %v6447_v28  ;;  %v8633_v45 = vld [vmem:[%s10780_s0 + $0x10] sm:$0xff] }
0x2e58   :  { %v8567_v4 = vpop.eup %8566  ;;  %6647 = vst.msk [vmem:[%s10793_s14 + $0x8] sm:$0xff] %vm90_vm0, %v6615_v42  ;;  %v6448_v16 = vadd.f32 1e-05, %v6416_v11  ;;  %v6449_v8 = vadd.f32 1e-05, %v6417_v10 }
0x2e59   :  { %6646 = vst.msk [vmem:[%s10793_s14] sm:$0xff] %vm90_vm0, %v6614_v41  ;;  %v6585_v1 = vadd.f32 %v10458_v47, %v6546_v61  ;;  %v6506_v5 = vmul.f32 %v8567_v4, %v10278_v56  ;;  %v6344_v12 = vpop.xlane.xlu1 %6343  ;;  %v6347_v53 = vpop.xlane.xlu0 %6346 }
0x2e5a   :  { %8576 = vrsqrt.f32 %v6448_v16  ;;  %v6418_v49 = vmul.f32 0.03125, %v6344_v12  ;;  %v6419_v6 = vmul.f32 0.03125, %v6347_v53 }
0x2e5b   :  { %v6617_v37 = vadd.f32 %v8632_v58, %v6585_v1  ;;  %v6545_v13 = vmul.f32 %v10452_v7, %v6506_v5  ;;  %8578 = vrsqrt.f32 %v6449_v8  ;;  %v8634_v8 = vld [vmem:[%s10780_s0 + $0x20] sm:$0xff] }
0x2e5c   :  { %v8569_v36 = vpop.eup %8568  ;;  %v6450_v25 = vadd.f32 1e-05, %v6418_v49  ;;  %v6451_v31 = vadd.f32 1e-05, %v6419_v6 }
0x2e5d   :  { %v8571_v29 = vpop.eup %8570  ;;  %6649 = vst.msk [vmem:[%s10793_s14 + $0x18] sm:$0xff] %vm90_vm0, %v6617_v37  ;;  %v6584_v56 = vadd.f32 %v10458_v47, %v6545_v13  ;;  %v6508_v33 = vmul.f32 %v8569_v36, %v10275_v39  ;;  %v6350_v18 = vpop.xlane.xlu1 %6349 }
0x2e5e   :  { %v6353_v15 = vpop.xlane.xlu0 %6352  ;;  %v6509_v0 = vmul.f32 %v8571_v29, %v10289_v63  ;;  %8580 = vrsqrt.f32 %v6450_v25  ;;  %v6420_v34 = vmul.f32 0.03125, %v6350_v18  ;;  %v8636_v18 = vld [vmem:[%s10780_s0 + $0x30] sm:$0xff] }
0x2e5f   :  { %v6421_v28 = vmul.f32 0.03125, %v6353_v15  ;;  %v6616_v40 = vadd.f32 %v8633_v45, %v6584_v56  ;;  %v6547_v17 = vmul.f32 %v10452_v7, %v6508_v33  ;;  %8582 = vrsqrt.f32 %v6451_v31 }
0x2e60   :  { %v8573_v38 = vpop.eup %8572  ;;  %v6548_v32 = vmul.f32 %v10452_v7, %v6509_v0  ;;  %v6452_v42 = vadd.f32 1e-05, %v6420_v34 }
0x2e61   :  { %v6453_v39 = vadd.f32 1e-05, %v6421_v28  ;;  %v8575_v11 = vpop.eup %8574  ;;  %6648 = vst.msk [vmem:[%s10793_s14 + $0x10] sm:$0xff] %vm90_vm0, %v6616_v40  ;;  %v6586_v63 = vadd.f32 %v10458_v47, %v6547_v17  ;;  %v6510_v10 = vmul.f32 %v8573_v38, %v10286_v48  ;;  %v6356_v35 = vpop.xlane.xlu1 %6355  ;;  %v8635_v48 = vld [vmem:[%s10780_s0 + $0x28] sm:$0xff]  ;;  %v8637_v28 = vld [vmem:[%s10780_s0 + $0x38] sm:$0xff] }
0x2e62   :  { %v6359_v41 = vpop.xlane.xlu0 %6358  ;;  %v6587_v61 = vadd.f32 %v10458_v47, %v6548_v32  ;;  %v6511_v4 = vmul.f32 %v8575_v11, %v10299_v60  ;;  %8584 = vrsqrt.f32 %v6452_v42  ;;  %v6422_v16 = vmul.f32 0.03125, %v6356_v35 }
0x2e63   :  { %v6618_v1 = vadd.f32 %v8634_v8, %v6586_v63  ;;  %v6549_v5 = vmul.f32 %v10452_v7, %v6510_v10  ;;  %8586 = vrsqrt.f32 %v6453_v39  ;;  %v6423_v12 = vmul.f32 0.03125, %v6359_v41  ;;  %v8638_v41 = vld [vmem:[%s10780_s0 + $0x40] sm:$0xff]  ;;  %v8639_v8 = vld [vmem:[%s10780_s0 + $0x48] sm:$0xff] }
0x2e64   :  { %v8577_v53 = vpop.eup %8576  ;;  %v6619_v49 = vadd.f32 %v8635_v48, %v6587_v61  ;;  %v6550_v6 = vmul.f32 %v10452_v7, %v6511_v4  ;;  %v6454_v60 = vadd.f32 1e-05, %v6422_v16 }
0x2e65   :  { %v8579_v58 = vpop.eup %8578  ;;  %6650 = vst.msk [vmem:[%s10793_s14 + $0x20] sm:$0xff] %vm90_vm0, %v6618_v1  ;;  %v6588_v37 = vadd.f32 %v10458_v47, %v6549_v5  ;;  %v6512_v13 = vmul.f32 %v8577_v53, %v10296_v24  ;;  %v6455_v36 = vadd.f32 1e-05, %v6423_v12  ;;  %v6362_v25 = vpop.xlane.xlu1 %6361 }
0x2e66   :  { %v6365_v31 = vpop.xlane.xlu0 %6364  ;;  %6651 = vst.msk [vmem:[%s10793_s14 + $0x28] sm:$0xff] %vm90_vm0, %v6619_v49  ;;  %v6589_v29 = vadd.f32 %v10458_v47, %v6550_v6  ;;  %v6513_v56 = vmul.f32 %v8579_v58, %v10312_v50  ;;  %8588 = vrsqrt.f32 %v6454_v60  ;;  %v6424_v33 = vmul.f32 0.03125, %v6362_v25 }
0x2e67   :  { %v6620_v15 = vadd.f32 %v8636_v18, %v6588_v37  ;;  %v6551_v24 = vmul.f32 %v10452_v7, %v6512_v13  ;;  %8590 = vrsqrt.f32 %v6455_v36  ;;  %v6425_v0 = vmul.f32 0.03125, %v6365_v31  ;;  %v8640_v36 = vld [vmem:[%s10780_s0 + $0x50] sm:$0xff] }
0x2e68   :  { %v8581_v34 = vpop.eup %8580  ;;  %v6621_v45 = vadd.f32 %v8637_v28, %v6589_v29  ;;  %v6552_v40 = vmul.f32 %v10452_v7, %v6513_v56  ;;  %v6456_v50 = vadd.f32 1e-05, %v6424_v33  ;;  %v8641_v56 = vld [vmem:[%s10780_s0 + $0x58] sm:$0xff] }
0x2e69   :  { %v8583_v17 = vpop.eup %8582  ;;  %6652 = vst.msk [vmem:[%s10793_s14 + $0x30] sm:$0xff] %vm90_vm0, %v6620_v15  ;;  %v6590_v38 = vadd.f32 %v10458_v47, %v6551_v24  ;;  %v6514_v32 = vmul.f32 %v8581_v34, %v10309_v23  ;;  %v6457_v42 = vadd.f32 1e-05, %v6425_v0  ;;  %v6368_v39 = vpop.xlane.xlu1 %6367 }
0x2e6a   :  { %v6371_v11 = vpop.xlane.xlu0 %6370  ;;  %6653 = vst.msk [vmem:[%s10793_s14 + $0x38] sm:$0xff] %vm90_vm0, %v6621_v45  ;;  %v6591_v63 = vadd.f32 %v10458_v47, %v6552_v40  ;;  %v6515_v10 = vmul.f32 %v8583_v17, %v10323_v30  ;;  %8592 = vrsqrt.f32 %v6456_v50  ;;  %v6426_v35 = vmul.f32 0.03125, %v6368_v39 }
0x2e6b   :  { %v6622_v61 = vadd.f32 %v8638_v41, %v6590_v38  ;;  %v6553_v23 = vmul.f32 %v10452_v7, %v6514_v32  ;;  %8594 = vrsqrt.f32 %v6457_v42  ;;  %v6427_v4 = vmul.f32 0.03125, %v6371_v11  ;;  %v8642_v38 = vld [vmem:[%s10780_s0 + $0x60] sm:$0xff]  ;;  %v8643_v11 = vld [vmem:[%s10780_s0 + $0x68] sm:$0xff] }
0x2e6c   :  { %v8585_v16 = vpop.eup %8584  ;;  %v6623_v1 = vadd.f32 %v8639_v8, %v6591_v63  ;;  %v6554_v5 = vmul.f32 %v10452_v7, %v6515_v10  ;;  %v6458_v30 = vadd.f32 1e-05, %v6426_v35 }
0x2e6d   :  { %v8587_v12 = vpop.eup %8586  ;;  %6654 = vst.msk [vmem:[%s10793_s14 + $0x40] sm:$0xff] %vm90_vm0, %v6622_v61  ;;  %v6592_v53 = vadd.f32 %v10458_v47, %v6553_v23  ;;  %v6516_v48 = vmul.f32 %v8585_v16, %v10320_v2  ;;  %v6459_v49 = vadd.f32 1e-05, %v6427_v4  ;;  %v6374_v6 = vpop.xlane.xlu1 %6373 }
0x2e6e   :  { %v6377_v60 = vpop.xlane.xlu0 %6376  ;;  %6655 = vst.msk [vmem:[%s10793_s14 + $0x48] sm:$0xff] %vm90_vm0, %v6623_v1  ;;  %v6593_v58 = vadd.f32 %v10458_v47, %v6554_v5  ;;  %v6517_v37 = vmul.f32 %v8587_v12, %v10336_v46  ;;  %8596 = vrsqrt.f32 %v6458_v30  ;;  %v6428_v13 = vmul.f32 0.03125, %v6374_v6  ;;  %v8644_v30 = vld [vmem:[%s10780_s0 + $0x70] sm:$0xff] }
0x2e6f   :  { %v6624_v25 = vadd.f32 %v8640_v36, %v6592_v53  ;;  %v6555_v2 = vmul.f32 %v10452_v7, %v6516_v48  ;;  %8598 = vrsqrt.f32 %v6459_v49  ;;  %v6429_v31 = vmul.f32 0.03125, %v6377_v60  ;;  %v8645_v49 = vld [vmem:[%s10780_s0 + $0x78] sm:$0xff] }
0x2e70   :  { %v8589_v29 = vpop.eup %8588  ;;  %v6625_v33 = vadd.f32 %v8641_v56, %v6593_v58  ;;  %v6556_v18 = vmul.f32 %v10452_v7, %v6517_v37  ;;  %v6460_v46 = vadd.f32 1e-05, %v6428_v13 }
0x2e71   :  { %v8591_v15 = vpop.eup %8590  ;;  %6656 = vst.msk [vmem:[%s10793_s14 + $0x50] sm:$0xff] %vm90_vm0, %v6624_v25  ;;  %v6594_v24 = vadd.f32 %v10458_v47, %v6555_v2  ;;  %v6518_v0 = vmul.f32 %v8589_v29, %v10333_v52  ;;  %v6461_v34 = vadd.f32 1e-05, %v6429_v31  ;;  %v6380_v28 = vpop.xlane.xlu1 %6379 }
0x2e72   :  { %v6383_v45 = vpop.xlane.xlu0 %6382  ;;  %6657 = vst.msk [vmem:[%s10793_s14 + $0x58] sm:$0xff] %vm90_vm0, %v6625_v33  ;;  %v6595_v40 = vadd.f32 %v10458_v47, %v6556_v18  ;;  %v6519_v50 = vmul.f32 %v8591_v15, %v10347_v54  ;;  %8600 = vrsqrt.f32 %v6460_v46  ;;  %v6430_v17 = vmul.f32 0.03125, %v6380_v28  ;;  %v8646_v33 = vld [vmem:[%s10780_s0 + $0x80] sm:$0xff] }
0x2e73   :  { %v6626_v32 = vadd.f32 %v8642_v38, %v6594_v24  ;;  %v6557_v52 = vmul.f32 %v10452_v7, %v6518_v0  ;;  %8602 = vrsqrt.f32 %v6461_v34  ;;  %v6431_v42 = vmul.f32 0.03125, %v6383_v45  ;;  %v8647_v24 = vld [vmem:[%s10780_s0 + $0x88] sm:$0xff] }
0x2e74   :  { %v8593_v39 = vpop.eup %8592  ;;  %v6627_v63 = vadd.f32 %v8643_v11, %v6595_v40  ;;  %v6558_v10 = vmul.f32 %v10452_v7, %v6519_v50  ;;  %v6462_v54 = vadd.f32 1e-05, %v6430_v17 }
0x2e75   :  { %v8595_v35 = vpop.eup %8594  ;;  %6658 = vst.msk [vmem:[%s10793_s14 + $0x60] sm:$0xff] %vm90_vm0, %v6626_v32  ;;  %v6596_v41 = vadd.f32 %v10458_v47, %v6557_v52  ;;  %v6520_v61 = vmul.f32 %v8593_v39, %v10344_v59  ;;  %v6463_v23 = vadd.f32 1e-05, %v6431_v42  ;;  %v6386_v4 = vpop.xlane.xlu1 %6385  ;;  %v8648_v39 = vld [vmem:[%s10780_s0 + $0x90] sm:$0xff] }
0x2e76   :  { %v6389_v16 = vpop.xlane.xlu0 %6388  ;;  %6659 = vst.msk [vmem:[%s10793_s14 + $0x68] sm:$0xff] %vm90_vm0, %v6627_v63  ;;  %v6597_v8 = vadd.f32 %v10458_v47, %v6558_v10  ;;  %v6521_v1 = vmul.f32 %v8595_v35, %v10360_v57  ;;  %8604 = vrsqrt.f32 %v6462_v54  ;;  %v6432_v5 = vmul.f32 0.03125, %v6386_v4  ;;  %v8649_v54 = vld [vmem:[%s10780_s0 + $0x98] sm:$0xff] }
0x2e77   :  { %v6628_v12 = vadd.f32 %v8644_v30, %v6596_v41  ;;  %v6559_v59 = vmul.f32 %v10452_v7, %v6520_v61  ;;  %8606 = vrsqrt.f32 %v6463_v23  ;;  %v6433_v53 = vmul.f32 0.03125, %v6389_v16 }
0x2e78   :  { %v8597_v48 = vpop.eup %8596  ;;  %v6629_v6 = vadd.f32 %v8645_v49, %v6597_v8  ;;  %v6560_v60 = vmul.f32 %v10452_v7, %v6521_v1  ;;  %v6464_v57 = vadd.f32 1e-05, %v6432_v5  ;;  %v8650_v5 = vld [vmem:[%s10780_s0 + $0xa0] sm:$0xff] }
0x2e79   :  { %v8599_v58 = vpop.eup %8598  ;;  %6660 = vst.msk [vmem:[%s10793_s14 + $0x70] sm:$0xff] %vm90_vm0, %v6628_v12  ;;  %v6598_v37 = vadd.f32 %v10458_v47, %v6559_v59  ;;  %v6522_v13 = vmul.f32 %v8597_v48, %v10357_v44  ;;  %v6465_v36 = vadd.f32 1e-05, %v6433_v53  ;;  %v6392_v25 = vpop.xlane.xlu1 %6391  ;;  %v8651_v59 = vld [vmem:[%s10780_s0 + $0xa8] sm:$0xff] }
0x2e7a   :  { %v6395_v2 = vpop.xlane.xlu0 %6394  ;;  %6661 = vst.msk [vmem:[%s10793_s14 + $0x78] sm:$0xff] %vm90_vm0, %v6629_v6  ;;  %v6599_v31 = vadd.f32 %v10458_v47, %v6560_v60  ;;  %v6523_v29 = vmul.f32 %v8599_v58, %v10371_v22  ;;  %8608 = vrsqrt.f32 %v6464_v57  ;;  %v6434_v56 = vmul.f32 0.03125, %v6392_v25  ;;  %v8652_v25 = vld [vmem:[%s10780_s0 + $0xb0] sm:$0xff] }
0x2e7b   :  { %v6630_v18 = vadd.f32 %v8646_v33, %v6598_v37  ;;  %v6561_v44 = vmul.f32 %v10452_v7, %v6522_v13  ;;  %8610 = vrsqrt.f32 %v6465_v36  ;;  %v6435_v46 = vmul.f32 0.03125, %v6395_v2 }
0x2e7c   :  { %v8601_v15 = vpop.eup %8600  ;;  %v6631_v0 = vadd.f32 %v8647_v24, %v6599_v31  ;;  %v6562_v34 = vmul.f32 %v10452_v7, %v6523_v29  ;;  %v6466_v22 = vadd.f32 1e-05, %v6434_v56  ;;  %v8653_v56 = vld [vmem:[%s10780_s0 + $0xb8] sm:$0xff] }
0x2e7d   :  { %v8603_v28 = vpop.eup %8602  ;;  %6662 = vst.msk [vmem:[%s10793_s14 + $0x80] sm:$0xff] %vm90_vm0, %v6630_v18  ;;  %v6600_v45 = vadd.f32 %v10458_v47, %v6561_v44  ;;  %v6524_v40 = vmul.f32 %v8601_v15, %v10368_v14  ;;  %v6467_v50 = vadd.f32 1e-05, %v6435_v46  ;;  %v6398_v17 = vpop.xlane.xlu1 %6397 }
0x2e7e   :  { %v6401_v38 = vpop.xlane.xlu0 %6400  ;;  %6663 = vst.msk [vmem:[%s10793_s14 + $0x88] sm:$0xff] %vm90_vm0, %v6631_v0  ;;  %v6601_v32 = vadd.f32 %v10458_v47, %v6562_v34  ;;  %v6525_v52 = vmul.f32 %v8603_v28, %v10384_v55  ;;  %8612 = vrsqrt.f32 %v6466_v22  ;;  %v6436_v42 = vmul.f32 0.03125, %v6398_v17  ;;  %v8654_v34 = vld [vmem:[%s10780_s0 + $0xc0] sm:$0xff] }
0x2e7f   :  { %v6632_v11 = vadd.f32 %v8648_v39, %v6600_v45  ;;  %v6563_v14 = vmul.f32 %v10452_v7, %v6524_v40  ;;  %8614 = vrsqrt.f32 %v6467_v50  ;;  %v6437_v63 = vmul.f32 0.03125, %v6401_v38 }
0x2e80   :  { %v8605_v10 = vpop.eup %8604  ;;  %v6633_v35 = vadd.f32 %v8649_v54, %v6601_v32  ;;  %v6564_v41 = vmul.f32 %v10452_v7, %v6525_v52  ;;  %v6468_v55 = vadd.f32 1e-05, %v6436_v42  ;;  %v8656_v42 = vld [vmem:[%s10780_s0 + $0xd0] sm:$0xff] }
0x2e81   :  { %v8607_v61 = vpop.eup %8606  ;;  %6664 = vst.msk [vmem:[%s10793_s14 + $0x90] sm:$0xff] %vm90_vm0, %v6632_v11  ;;  %v6602_v23 = vadd.f32 %v10458_v47, %v6563_v14  ;;  %v6526_v4 = vmul.f32 %v8605_v10, %v10381_v26  ;;  %v6469_v16 = vadd.f32 1e-05, %v6437_v63 }
0x2e82   :  { %6665 = vst.msk [vmem:[%s10793_s14 + $0x98] sm:$0xff] %vm90_vm0, %v6633_v35  ;;  %v6603_v8 = vadd.f32 %v10458_v47, %v6564_v41  ;;  %v6527_v1 = vmul.f32 %v8607_v61, %v10395_v20  ;;  %8616 = vrsqrt.f32 %v6468_v55  ;;  %v8658_v35 = vld [vmem:[%s10780_s0 + $0xe0] sm:$0xff]  ;;  %v8659_v61 = vld [vmem:[%s10780_s0 + $0xe8] sm:$0xff] }
0x2e83   :  { %v6634_v30 = vadd.f32 %v8650_v5, %v6602_v23  ;;  %v6565_v12 = vmul.f32 %v10452_v7, %v6526_v4  ;;  %8618 = vrsqrt.f32 %v6469_v16 }
0x2e84   :  { %v8609_v26 = vpop.eup %8608  ;;  %v6635_v53 = vadd.f32 %v8651_v59, %v6603_v8  ;;  %v6566_v48 = vmul.f32 %v10452_v7, %v6527_v1  ;;  %v6407_v49 = vpop.xlane.xlu0 %6406 }
0x2e85   :  { %v8611_v6 = vpop.eup %8610  ;;  %6666 = vst.msk [vmem:[%s10793_s14 + $0xa0] sm:$0xff] %vm90_vm0, %v6634_v30  ;;  %v6604_v20 = vadd.f32 %v10458_v47, %v6565_v12  ;;  %v6528_v60 = vmul.f32 %v8609_v26, %v10392_v43  ;;  %v6439_v57 = vmul.f32 0.03125, %v6407_v49  ;;  %v6404_v58 = vpop.xlane.xlu1 %6403  ;;  %v8660_v30 = vld [vmem:[%s10780_s0 + $0xf8] sm:$0xff] }
0x2e86   :  { %6667 = vst.msk [vmem:[%s10793_s14 + $0xa8] sm:$0xff] %vm90_vm0, %v6635_v53  ;;  %v6605_v37 = vadd.f32 %v10458_v47, %v6566_v48  ;;  %v6529_v13 = vmul.f32 %v8611_v6, %v10408_v3  ;;  %v6438_v36 = vmul.f32 0.03125, %v6404_v58 }
0x2e87   :  { %v6636_v2 = vadd.f32 %v8652_v25, %v6604_v20  ;;  %v6567_v31 = vmul.f32 %v10452_v7, %v6528_v60  ;;  %v6471_v43 = vadd.f32 1e-05, %v6439_v57 }
0x2e88   :  { %v8613_v29 = vpop.eup %8612  ;;  %v6637_v33 = vadd.f32 %v8653_v56, %v6605_v37  ;;  %v6568_v18 = vmul.f32 %v10452_v7, %v6529_v13  ;;  %v6470_v44 = vadd.f32 1e-05, %v6438_v36 }
0x2e89   :  { %v8615_v46 = vpop.eup %8614  ;;  %6668 = vst.msk [vmem:[%s10793_s14 + $0xb0] sm:$0xff] %vm90_vm0, %v6636_v2  ;;  %v6606_v3 = vadd.f32 %v10458_v47, %v6567_v31  ;;  %v6530_v15 = vmul.f32 %v8613_v29, %v10405_v9  ;;  %8620 = vrsqrt.f32 %v6471_v43  ;;  %v8655_v9 = vld [vmem:[%s10780_s0 + $0xc8] sm:$0xff] }
0x2e8a   :  { %6669 = vst.msk [vmem:[%s10793_s14 + $0xb8] sm:$0xff] %vm90_vm0, %v6637_v33  ;;  %v6607_v24 = vadd.f32 %v10458_v47, %v6568_v18  ;;  %v6531_v0 = vmul.f32 %v8615_v46, %v10419_v27  ;;  %8622 = vrsqrt.f32 %v6470_v44 }
0x2e8b   :  { %v6638_v22 = vadd.f32 %v8654_v34, %v6606_v3  ;;  %v6569_v28 = vmul.f32 %v10452_v7, %v6530_v15 }
0x2e8c   :  { %v8617_v45 = vpop.eup %8616  ;;  %v6639_v40 = vadd.f32 %v8655_v9, %v6607_v24  ;;  %v6570_v50 = vmul.f32 %v10452_v7, %v6531_v0 }
0x2e8d   :  { %v8619_v17 = vpop.eup %8618  ;;  %6670 = vst.msk [vmem:[%s10793_s14 + $0xc0] sm:$0xff] %vm90_vm0, %v6638_v22  ;;  %v6608_v27 = vadd.f32 %v10458_v47, %v6569_v28  ;;  %v6532_v38 = vmul.f32 %v8617_v45, %v10416_v51  ;;  %v8657_v51 = vld [vmem:[%s10780_s0 + $0xd8] sm:$0xff] }
0x2e8e   :  { %6671 = vst.msk [vmem:[%s10793_s14 + $0xc8] sm:$0xff] %vm90_vm0, %v6639_v40  ;;  %v6609_v32 = vadd.f32 %v10458_v47, %v6570_v50  ;;  %v6533_v52 = vmul.f32 %v8619_v17, %v10427_v19 }
0x2e8f   :  { %v6640_v39 = vadd.f32 %v8656_v42, %v6608_v27  ;;  %v6571_v11 = vmul.f32 %v10452_v7, %v6532_v38 }
0x2e90   :  { %v6641_v14 = vadd.f32 %v8657_v51, %v6609_v32  ;;  %v6572_v63 = vmul.f32 %v10452_v7, %v6533_v52 }
0x2e91   :  { %6672 = vst.msk [vmem:[%s10793_s14 + $0xd0] sm:$0xff] %vm90_vm0, %v6640_v39  ;;  %v6610_v19 = vadd.f32 %v10458_v47, %v6571_v11 }
0x2e92   :  { %6673 = vst.msk [vmem:[%s10793_s14 + $0xd8] sm:$0xff] %vm90_vm0, %v6641_v14  ;;  %v6611_v10 = vadd.f32 %v10458_v47, %v6572_v63 }
0x2e93   :  { %v8621_v54 = vpop.eup %8620  ;;  %v6642_v41 = vadd.f32 %v8658_v35, %v6610_v19 }
0x2e94   :  { %v8623_v55 = vpop.eup %8622  ;;  %v6643_v23 = vadd.f32 %v8659_v61, %v6611_v10  ;;  %v6535_v4 = vmul.f32 %v8621_v54, %v10438_v21 }
0x2e95   :  { %6674 = vst.msk [vmem:[%s10793_s14 + $0xe0] sm:$0xff] %vm90_vm0, %v6642_v41  ;;  %v6534_v16 = vmul.f32 %v8623_v55, %v10441_v62  ;;  %v8661_v62 = vld [vmem:[%s10780_s0 + $0xf0] sm:$0xff] }
0x2e96   :  { %6675 = vst.msk [vmem:[%s10793_s14 + $0xe8] sm:$0xff] %vm90_vm0, %v6643_v23  ;;  %v6574_v8 = vmul.f32 %v10452_v7, %v6535_v4 }
0x2e97   :  { %v6573_v1 = vmul.f32 %v10452_v7, %v6534_v16 }
0x2e98   :  { %v6613_v5 = vadd.f32 %v10458_v47, %v6574_v8 }
0x2e99   :  { %v6612_v21 = vadd.f32 %v10458_v47, %v6573_v1 }
0x2e9a   :  { %v6645_v12 = vadd.f32 %v8660_v30, %v6613_v5 }
0x2e9b   :  { %v6644_v26 = vadd.f32 %v8661_v62, %v6612_v21 }
0x2e9c   :  { %6677 = vst.msk [vmem:[%s10793_s14 + $0xf8] sm:$0xff] %vm90_vm0, %v6645_v12 }
0x2e9d   :  { %6676 = vst.msk [vmem:[%s10793_s14 + $0xf0] sm:$0xff] %vm90_vm0, %v6644_v26 }

</bundles_post_ra>
